<compile_context>
chip_gen: v7x
topology: tpu7x:2x2x1
jax: 0.10.0
libtpu: 0.0.40
codegen_flags: <defaults>
</compile_context>

<pallas_src>
import functools

import numpy as np
import jax
import jax.numpy as jnp
from jax import lax
from jax.experimental import pallas as pl
from jax.experimental.pallas import tpu as pltpu

F32 = jnp.float32
BF16 = jnp.bfloat16


def _vmem():
    return pl.BlockSpec(memory_space=pltpu.MemorySpace.VMEM)


def _ln(x, g, b, eps=1e-5):
    mu = jnp.mean(x, axis=-1, keepdims=True)
    xc = x - mu
    var = jnp.mean(xc * xc, axis=-1, keepdims=True)
    return xc * lax.rsqrt(var + eps) * g + b


def _softplus(x):
    # stable softplus in plain exp/log (f32, VPU/EUP friendly)
    return jnp.maximum(x, 0.0) + jnp.log(1.0 + jnp.exp(-jnp.abs(x)))


# ---------------------------------------------------------------------------
# Kernel A: patch-embed matmul + LN + LN1 + in_proj (tok, lane-dense xz slab)
# ---------------------------------------------------------------------------
def _embed_kernel(p_ref, pew_ref, peb_ref, peg_ref, pebt_ref,
                  l1g_ref, l1b_ref, inw_ref, inb_ref,
                  tok_ref, xz_ref):
    t = jnp.dot(p_ref[...].astype(BF16), pew_ref[...],
                preferred_element_type=jnp.float32) + peb_ref[...]
    tok = _ln(t, peg_ref[...], pebt_ref[...])
    tok_ref[...] = tok
    h = _ln(tok, l1g_ref[...], l1b_ref[...])
    xz_ref[...] = jnp.dot(h.astype(BF16), inw_ref[...],
                          preferred_element_type=jnp.float32) + inb_ref[...]


def embed_block(patches, p, d_model, d_inner):
    BL = patches.shape[0]
    return pl.pallas_call(
        _embed_kernel,
        out_shape=(jax.ShapeDtypeStruct((BL, d_model), F32),
                   jax.ShapeDtypeStruct((BL, 2 * d_inner), F32)),
        in_specs=[_vmem()] * 9,
        out_specs=(_vmem(), _vmem()),
    )(patches, p['pe_w'], p['pe_b'], p['pe_ln_g'], p['pe_ln_b'],
      p['ln1_g'], p['ln1_b'], p['in_w'], p['in_b'])


# ---------------------------------------------------------------------------
# Kernel B: depthwise 3x3 conv + SiLU, (B, Hp+2, Wpad=8, C) layout
# ---------------------------------------------------------------------------
def _dwconv_silu_kernel(xp_ref, w_ref, b_ref, o_ref, *, Hp, Wp):
    xp = xp_ref[...]                                  # (B, Hp+2, Wpad, C)
    w = w_ref[...]                                    # (9, C)
    acc = jnp.zeros(o_ref.shape, jnp.float32)
    for a in range(3):
        for d in range(3):
            acc = acc + xp[:, a:a + Hp, d:d + Wp, :] * w[a * 3 + d]
    acc = acc + b_ref[...]
    o_ref[...] = acc * jax.nn.sigmoid(acc)            # SiLU


def dwconv3x3_silu(xpad, w, b, B, Hp, Wp, C):
    kern = functools.partial(_dwconv_silu_kernel, Hp=Hp, Wp=Wp)
    return pl.pallas_call(
        kern,
        out_shape=jax.ShapeDtypeStruct((B, Hp, Wp, C), F32),
        in_specs=[_vmem()] * 3,
        out_specs=_vmem(),
    )(xpad, w, b)


# ---------------------------------------------------------------------------
# Kernel C: fused projections + 4-direction selective scan + tail + head
# ---------------------------------------------------------------------------
def _scan_token(k, p, Hp, Wp, L):
    # static (trace-time) token index for direction k at scan step p
    q = p if k < 2 else L - 1 - p          # dirs 2,3 run the reversed sequences
    if k % 2 == 0:                         # dirs 0,2: row-major grid order
        return q
    return (q % Hp) * Wp + (q // Hp)       # dirs 1,3: transposed grid order


def _mamba_tail_kernel(x_ref, xz_ref, tok_ref,
                       pw_ref, dtb_ref, a_ref, dsum_ref,
                       ong_ref, onb_ref, ow_ref, ob_ref,
                       ng_ref, nb_ref, hw_ref, hb_ref,
                       out_ref, dA_scr, dBu_scr,
                       *, B, L, Hp, Wp, d_inner, d_state, K, d_model):
    di, S = d_inner, d_state
    x = x_ref[...]                                                # (BL, di)

    # --- fused x_proj + dt_proj for all K directions: ONE wide matmul ---
    proj = jnp.dot(x.astype(BF16), pw_ref[...],
                   preferred_element_type=jnp.float32)            # (BL, K*di + 2*K*S)
    dt_all = _softplus(proj[:, :K * di] + dtb_ref[...])           # (BL, K*di) lane-dense
    dt_all = dt_all.reshape(B, L, K * di)
    bc_all = proj[:, K * di:].reshape(B, L, 2 * K * S)
    u = x.reshape(B, L, di)
    A = a_ref[...]                                                # (K, S, di), negative

    # --- vectorized precompute of exp(dt*A) and dt*B*u into VMEM scratch ---
    # (EUP work off the serial chain; bounded liveness instead of spilling)
    for k in range(K):
        dt_k = dt_all[:, :, k * di:(k + 1) * di]                  # (B, L, di)
        B_k = bc_all[:, :, 2 * S * k: 2 * S * k + S]              # (B, L, S)
        dA_scr[k] = jnp.exp(dt_k[:, :, None, :] * A[k][None, None, :, :])
        dBu_scr[k] = (dt_k * u)[:, :, None, :] * B_k[:, :, :, None]

    # --- 4 direction scans; permutations are static per-step token indices,
    #     C contraction folded into the loop, no h history buffer ---
    y_tok = [None] * L
    for k in range(K):
        C_k = bc_all[:, :, 2 * S * k + S: 2 * S * (k + 1)]        # (B, L, S)
        h = jnp.zeros((B, S, di), jnp.float32)
        for p in range(L):
            t = _scan_token(k, p, Hp, Wp, L)                      # python int
            h = dA_scr[k, :, t] * h + dBu_scr[k, :, t]            # (B, S, di)
            y_t = jnp.sum(C_k[:, t, :][:, :, None] * h, axis=1)   # (B, di)
            y_tok[t] = y_t if y_tok[t] is None else y_tok[t] + y_t

    y = jnp.stack(y_tok, axis=1) + u * dsum_ref[...]              # (B, L, di)
    y = y.reshape(B * L, di)

    # --- out_norm -> SiLU gate -> out_proj -> residual -> LN -> pool -> head ---
    y = _ln(y, ong_ref[...], onb_ref[...])
    z = xz_ref[...][:, di:]
    y = y * (z * jax.nn.sigmoid(z))                               # y * SiLU(z)
    o = jnp.dot(y.astype(BF16), ow_ref[...],
                preferred_element_type=jnp.float32) + ob_ref[...]
    tkn = _ln(tok_ref[...] + o, ng_ref[...], nb_ref[...])
    feat = jnp.mean(tkn.reshape(B, L, d_model), axis=1)           # (B, d_model)
    out_ref[...] = jnp.dot(feat.astype(BF16), hw_ref[...],
                           preferred_element_type=jnp.float32) + hb_ref[...]


def mamba_tail(x_tok, xz, tok, p, cfg, B, L, Hp, Wp):
    di, ds, K = cfg['d_inner'], cfg['d_state'], cfg['K']
    dm, ncls = cfg['d_model'], cfg['n_cls']
    kern = functools.partial(_mamba_tail_kernel, B=B, L=L, Hp=Hp, Wp=Wp,
                             d_inner=di, d_state=ds, K=K, d_model=dm)
    return pl.pallas_call(
        kern,
        out_shape=jax.ShapeDtypeStruct((B, ncls), F32),
        in_specs=[_vmem()] * 15,
        out_specs=_vmem(),
        scratch_shapes=[pltpu.VMEM((K, B, L, ds, di), jnp.float32),
                        pltpu.VMEM((K, B, L, ds, di), jnp.float32)],
    )(x_tok, xz, tok,
      p['proj_w'], p['dt_b'], p['A'], p['D_sum'],
      p['outnorm_g'], p['outnorm_b'], p['out_w'], p['out_b'],
      p['norm_g'], p['norm_b'], p['head_w'], p['head_b'])


# ---------------------------------------------------------------------------
# deterministic synthetic parameters (weights pre-transposed / pre-fused)
# ---------------------------------------------------------------------------
def init_params(key):
    d_model, d_inner, d_state, dt_rank, K = 32, 64, 8, 4, 4
    patch, in_ch, n_cls = 4, 3, 5
    ks = jax.random.split(key, 8)

    def nrm(k, shape, s=0.02):
        return (s * jax.random.normal(k, shape)).astype(F32)

    # raw PyTorch-style params, then exact fusion:
    #   dt = softplus(x @ Wx[:, :r] @ Wdt.T + b);  [B|C] = x @ Wx[:, r:]
    # (composition done in f32, cast once to bf16; benign at 0.02-scale weights)
    xproj_w = nrm(ks[3], (K, dt_rank + 2 * d_state, d_inner))      # x_proj.weight
    dtproj_w = nrm(ks[4], (K, d_inner, dt_rank), 0.1)              # dt_proj.weight
    dtproj_b = jnp.full((K, d_inner), 0.01, F32)
    Wx = jnp.transpose(xproj_w, (0, 2, 1))                         # (K, di, r+2S)
    Wdt = jnp.transpose(dtproj_w, (0, 2, 1))                       # (K, r, di)
    comp = jnp.einsum('kir,krj->kij', Wx[:, :, :dt_rank], Wdt)     # (K, di, di)
    dt_block = jnp.concatenate([comp[k] for k in range(K)], axis=1)            # (di, K*di)
    bc_block = jnp.concatenate([Wx[k, :, dt_rank:] for k in range(K)], axis=1)  # (di, K*2S)
    proj_w = jnp.concatenate([dt_block, bc_block], axis=1)          # (di, K*(di+2S)) = (64, 320)

    A_log = jnp.log(jnp.broadcast_to(
        jnp.arange(1, d_state + 1, dtype=F32), (K, d_inner, d_state)))
    A = jnp.transpose(-jnp.exp(A_log), (0, 2, 1))                   # (K, S, di)
    Ds = jnp.ones((K, d_inner), F32)

    p = {
        'pe_w': nrm(ks[0], (in_ch * patch * patch, d_model)).astype(BF16),
        'pe_b': jnp.zeros((1, d_model), F32),
        'pe_ln_g': jnp.ones((1, d_model), F32), 'pe_ln_b': jnp.zeros((1, d_model), F32),
        'ln1_g': jnp.ones((1, d_model), F32), 'ln1_b': jnp.zeros((1, d_model), F32),
        'in_w': nrm(ks[1], (d_model, 2 * d_inner)).astype(BF16),
        'in_b': jnp.zeros((1, 2 * d_inner), F32),
        'dw_w': nrm(ks[2], (9, d_inner), 0.1),
        'dw_b': jnp.zeros((1, d_inner), F32),
        'proj_w': proj_w.astype(BF16),
        'dt_b': dtproj_b.reshape(1, K * d_inner),                   # (1, 256), k-major
        'A': A,
        'D_sum': jnp.sum(Ds, axis=0, keepdims=True),                # sum_k D_k, (1, di)
        'outnorm_g': jnp.ones((1, d_inner), F32), 'outnorm_b': jnp.zeros((1, d_inner), F32),
        'out_w': nrm(ks[5], (d_inner, d_model)).astype(BF16),
        'out_b': jnp.zeros((1, d_model), F32),
        'norm_g': jnp.ones((1, d_model), F32), 'norm_b': jnp.zeros((1, d_model), F32),
        'head_w': nrm(ks[6], (d_model, n_cls)).astype(BF16),
        'head_b': jnp.zeros((1, n_cls), F32),
    }
    cfg = dict(d_model=d_model, d_inner=d_inner, d_state=d_state,
               dt_rank=dt_rank, K=K, patch=patch, n_cls=n_cls)
    return p, cfg


# ---------------------------------------------------------------------------
# forward pass
# ---------------------------------------------------------------------------
def mamba_unet_forward(params, cfg, x_nchw):
    B = x_nchw.shape[0]
    if x_nchw.shape[1] == 1:                          # MambaUnet: repeat gray -> RGB
        x_nchw = jnp.repeat(x_nchw, 3, axis=1)
    x = jnp.transpose(x_nchw, (0, 2, 3, 1)).astype(F32)    # NHWC
    H, W = x.shape[1], x.shape[2]
    pch = cfg['patch']
    Hp, Wp = H // pch, W // pch
    L = Hp * Wp
    dm, di = cfg['d_model'], cfg['d_inner']
    BL = B * L

    # ---- Kernel A: patch embed (4x4/4 conv as matmul) + LN + LN1 + in_proj ----
    patches = x.reshape(B, Hp, pch, Wp, pch, 3).transpose(0, 1, 3, 5, 2, 4)
    patches = patches.reshape(BL, 3 * pch * pch)       # (c, kh, kw) ordering
    tok, xz = embed_block(patches, params, dm, di)

    # ---- Kernel B: depthwise conv + SiLU (pad, width rounded to 8 sublanes) ----
    x_sp = xz[:, :di].reshape(B, Hp, Wp, di)
    w_extra = (-(Wp + 2)) % 8
    x_sp = jnp.pad(x_sp, ((0, 0), (1, 1), (1, 1 + w_extra), (0, 0)))
    xc = dwconv3x3_silu(x_sp, params['dw_w'], params['dw_b'], B, Hp, Wp, di)
    x_tok = xc.reshape(BL, di)

    # ---- Kernel C: projections + 4-dir scan + gate/out_proj/LN/pool/head ----
    return mamba_tail(x_tok, xz, tok, params, cfg, B, L, Hp, Wp)


# ---------------------------------------------------------------------------
if __name__ == "__main__":
    params, cfg = init_params(jax.random.PRNGKey(42))
    x = jax.random.normal(jax.random.PRNGKey(0), (2, 1, 16, 16), dtype=jnp.float32)

    fwd = jax.jit(functools.partial(mamba_unet_forward, params, cfg))
    logits = jax.block_until_ready(fwd(x))

    assert logits.shape == (2, cfg['n_cls'])
    assert bool(jnp.all(jnp.isfinite(logits)))
    print("KERNEL_OK")
</pallas_src>

<mosaic_0001>
module attributes {stable_mosaic.version = 11 : i64} {
  func.func @_embed_kernel(%arg0: memref<32x48xf32, #tpu.memory_space<vmem>>, %arg1: memref<48x32xbf16, #tpu.memory_space<vmem>>, %arg2: memref<1x32xf32, #tpu.memory_space<vmem>>, %arg3: memref<1x32xf32, #tpu.memory_space<vmem>>, %arg4: memref<1x32xf32, #tpu.memory_space<vmem>>, %arg5: memref<1x32xf32, #tpu.memory_space<vmem>>, %arg6: memref<1x32xf32, #tpu.memory_space<vmem>>, %arg7: memref<32x128xbf16, #tpu.memory_space<vmem>>, %arg8: memref<1x128xf32, #tpu.memory_space<vmem>>, %arg9: memref<32x32xf32, #tpu.memory_space<vmem>>, %arg10: memref<32x128xf32, #tpu.memory_space<vmem>>) attributes {dimension_semantics = [], scalar_prefetch = 0 : i64, scratch_operands = 0 : i64, tpu.core_type = #tpu.core_type<tc>} {
    %c0 = arith.constant 0 : index
    %c0_0 = arith.constant 0 : index
    %0 = vector.load %arg0[%c0, %c0_0] : memref<32x48xf32, #tpu.memory_space<vmem>>, vector<32x48xf32>
    %1 = arith.truncf %0 : vector<32x48xf32> to vector<32x48xbf16>
    %c0_1 = arith.constant 0 : index
    %c0_2 = arith.constant 0 : index
    %2 = vector.load %arg1[%c0_1, %c0_2] : memref<48x32xbf16, #tpu.memory_space<vmem>>, vector<48x32xbf16>
    %cst = arith.constant dense<0.000000e+00> : vector<32x32xf32>
    %3 = tpu.matmul %1, %2, %cst {dimension_numbers = #tpu.dot_dimension_numbers<[1], [0], [0], [1], [0, 0, 1, 1], [], []>} : vector<32x48xbf16>, vector<48x32xbf16>, vector<32x32xf32> -> vector<32x32xf32>
    %c0_3 = arith.constant 0 : index
    %c0_4 = arith.constant 0 : index
    %4 = vector.load %arg2[%c0_3, %c0_4] : memref<1x32xf32, #tpu.memory_space<vmem>>, vector<1x32xf32>
    %5 = vector.broadcast %4 : vector<1x32xf32> to vector<32x32xf32>
    %6 = arith.addf %3, %5 : vector<32x32xf32>
    %c0_5 = arith.constant 0 : index
    %c0_6 = arith.constant 0 : index
    %7 = vector.load %arg3[%c0_5, %c0_6] : memref<1x32xf32, #tpu.memory_space<vmem>>, vector<1x32xf32>
    %c0_7 = arith.constant 0 : index
    %c0_8 = arith.constant 0 : index
    %8 = vector.load %arg4[%c0_7, %c0_8] : memref<1x32xf32, #tpu.memory_space<vmem>>, vector<1x32xf32>
    %cst_9 = arith.constant dense<0.000000e+00> : vector<32xf32>
    %9 = vector.multi_reduction <add>, %6, %cst_9 [1] : vector<32x32xf32> to vector<32xf32>
    %10 = vector.shape_cast %9 : vector<32xf32> to vector<32x1xf32>
    %cst_10 = arith.constant 3.200000e+01 : f32
    %11 = vector.broadcast %cst_10 : f32 to vector<32x1xf32>
    %12 = arith.divf %10, %11 : vector<32x1xf32>
    %13 = vector.broadcast %12 : vector<32x1xf32> to vector<32x32xf32>
    %14 = arith.subf %6, %13 : vector<32x32xf32>
    %15 = arith.mulf %14, %14 : vector<32x32xf32>
    %cst_11 = arith.constant dense<0.000000e+00> : vector<32xf32>
    %16 = vector.multi_reduction <add>, %15, %cst_11 [1] : vector<32x32xf32> to vector<32xf32>
    %17 = vector.shape_cast %16 : vector<32xf32> to vector<32x1xf32>
    %cst_12 = arith.constant 3.200000e+01 : f32
    %18 = vector.broadcast %cst_12 : f32 to vector<32x1xf32>
    %19 = arith.divf %17, %18 : vector<32x1xf32>
    %cst_13 = arith.constant 9.99999974E-6 : f32
    %20 = vector.broadcast %cst_13 : f32 to vector<32x1xf32>
    %21 = arith.addf %19, %20 : vector<32x1xf32>
    %22 = math.rsqrt %21 : vector<32x1xf32>
    %23 = vector.broadcast %22 : vector<32x1xf32> to vector<32x32xf32>
    %24 = arith.mulf %14, %23 : vector<32x32xf32>
    %25 = vector.broadcast %7 : vector<1x32xf32> to vector<32x32xf32>
    %26 = arith.mulf %24, %25 : vector<32x32xf32>
    %27 = vector.broadcast %8 : vector<1x32xf32> to vector<32x32xf32>
    %28 = arith.addf %26, %27 : vector<32x32xf32>
    %c0_14 = arith.constant 0 : index
    %c0_15 = arith.constant 0 : index
    %29 = vector.load %arg9[%c0_14, %c0_15] : memref<32x32xf32, #tpu.memory_space<vmem>>, vector<32x32xf32>
    tpu.vector_store %arg9[%c0_14, %c0_15], %28 {strides = array<i32>} : memref<32x32xf32, #tpu.memory_space<vmem>>, vector<32x32xf32>,
    %c0_16 = arith.constant 0 : index
    %c0_17 = arith.constant 0 : index
    %30 = vector.load %arg5[%c0_16, %c0_17] : memref<1x32xf32, #tpu.memory_space<vmem>>, vector<1x32xf32>
    %c0_18 = arith.constant 0 : index
    %c0_19 = arith.constant 0 : index
    %31 = vector.load %arg6[%c0_18, %c0_19] : memref<1x32xf32, #tpu.memory_space<vmem>>, vector<1x32xf32>
    %cst_20 = arith.constant dense<0.000000e+00> : vector<32xf32>
    %32 = vector.multi_reduction <add>, %28, %cst_20 [1] : vector<32x32xf32> to vector<32xf32>
    %33 = vector.shape_cast %32 : vector<32xf32> to vector<32x1xf32>
    %cst_21 = arith.constant 3.200000e+01 : f32
    %34 = vector.broadcast %cst_21 : f32 to vector<32x1xf32>
    %35 = arith.divf %33, %34 : vector<32x1xf32>
    %36 = vector.broadcast %35 : vector<32x1xf32> to vector<32x32xf32>
    %37 = arith.subf %28, %36 : vector<32x32xf32>
    %38 = arith.mulf %37, %37 : vector<32x32xf32>
    %cst_22 = arith.constant dense<0.000000e+00> : vector<32xf32>
    %39 = vector.multi_reduction <add>, %38, %cst_22 [1] : vector<32x32xf32> to vector<32xf32>
    %40 = vector.shape_cast %39 : vector<32xf32> to vector<32x1xf32>
    %cst_23 = arith.constant 3.200000e+01 : f32
    %41 = vector.broadcast %cst_23 : f32 to vector<32x1xf32>
    %42 = arith.divf %40, %41 : vector<32x1xf32>
    %cst_24 = arith.constant 9.99999974E-6 : f32
    %43 = vector.broadcast %cst_24 : f32 to vector<32x1xf32>
    %44 = arith.addf %42, %43 : vector<32x1xf32>
    %45 = math.rsqrt %44 : vector<32x1xf32>
    %46 = vector.broadcast %45 : vector<32x1xf32> to vector<32x32xf32>
    %47 = arith.mulf %37, %46 : vector<32x32xf32>
    %48 = vector.broadcast %30 : vector<1x32xf32> to vector<32x32xf32>
    %49 = arith.mulf %47, %48 : vector<32x32xf32>
    %50 = vector.broadcast %31 : vector<1x32xf32> to vector<32x32xf32>
    %51 = arith.addf %49, %50 : vector<32x32xf32>
    %52 = arith.truncf %51 : vector<32x32xf32> to vector<32x32xbf16>
    %c0_25 = arith.constant 0 : index
    %c0_26 = arith.constant 0 : index
    %53 = vector.load %arg7[%c0_25, %c0_26] : memref<32x128xbf16, #tpu.memory_space<vmem>>, vector<32x128xbf16>
    %cst_27 = arith.constant dense<0.000000e+00> : vector<32x128xf32>
    %54 = tpu.matmul %52, %53, %cst_27 {dimension_numbers = #tpu.dot_dimension_numbers<[1], [0], [0], [1], [0, 0, 1, 1], [], []>} : vector<32x32xbf16>, vector<32x128xbf16>, vector<32x128xf32> -> vector<32x128xf32>
    %c0_28 = arith.constant 0 : index
    %c0_29 = arith.constant 0 : index
    %55 = vector.load %arg8[%c0_28, %c0_29] : memref<1x128xf32, #tpu.memory_space<vmem>>, vector<1x128xf32>
    %56 = vector.broadcast %55 : vector<1x128xf32> to vector<32x128xf32>
    %57 = arith.addf %54, %56 : vector<32x128xf32>
    %c0_30 = arith.constant 0 : index
    %c0_31 = arith.constant 0 : index
    %58 = vector.load %arg10[%c0_30, %c0_31] : memref<32x128xf32, #tpu.memory_space<vmem>>, vector<32x128xf32>
    tpu.vector_store %arg10[%c0_30, %c0_31], %57 {strides = array<i32>} : memref<32x128xf32, #tpu.memory_space<vmem>>, vector<32x128xf32>,
    return
  }
}

module attributes {stable_mosaic.version = 11 : i64} {
  func.func @_dwconv_silu_kernel(%arg0: memref<2x6x8x64xf32, #tpu.memory_space<vmem>>, %arg1: memref<9x64xf32, #tpu.memory_space<vmem>>, %arg2: memref<1x64xf32, #tpu.memory_space<vmem>>, %arg3: memref<2x4x4x64xf32, #tpu.memory_space<vmem>>) attributes {dimension_semantics = [], scalar_prefetch = 0 : i64, scratch_operands = 0 : i64, tpu.core_type = #tpu.core_type<tc>} {
    %c0 = arith.constant 0 : index
    %c0_0 = arith.constant 0 : index
    %c0_1 = arith.constant 0 : index
    %c0_2 = arith.constant 0 : index
    %0 = vector.load %arg0[%c0, %c0_0, %c0_1, %c0_2] : memref<2x6x8x64xf32, #tpu.memory_space<vmem>>, vector<2x6x8x64xf32>
    %c0_3 = arith.constant 0 : index
    %c0_4 = arith.constant 0 : index
    %1 = vector.load %arg1[%c0_3, %c0_4] : memref<9x64xf32, #tpu.memory_space<vmem>>, vector<9x64xf32>
    %cst = arith.constant 0.000000e+00 : f32
    %2 = vector.broadcast %cst : f32 to vector<2x4x4x64xf32>
    %3 = vector.extract_strided_slice %0 {offsets = [0, 0, 0, 0], sizes = [2, 4, 4, 64], strides = [1, 1, 1, 1]} : vector<2x6x8x64xf32> to vector<2x4x4x64xf32>
    %4 = vector.extract_strided_slice %1 {offsets = [0, 0], sizes = [1, 64], strides = [1, 1]} : vector<9x64xf32> to vector<1x64xf32>
    %5 = vector.shape_cast %4 : vector<1x64xf32> to vector<64xf32>
    %6 = vector.shape_cast %5 : vector<64xf32> to vector<1x1x1x64xf32>
    %7 = vector.broadcast %6 : vector<1x1x1x64xf32> to vector<2x4x4x64xf32>
    %8 = arith.mulf %3, %7 : vector<2x4x4x64xf32>
    %9 = arith.addf %2, %8 : vector<2x4x4x64xf32>
    %10 = vector.extract_strided_slice %0 {offsets = [0, 0, 1, 0], sizes = [2, 4, 4, 64], strides = [1, 1, 1, 1]} : vector<2x6x8x64xf32> to vector<2x4x4x64xf32>
    %11 = vector.extract_strided_slice %1 {offsets = [1, 0], sizes = [1, 64], strides = [1, 1]} : vector<9x64xf32> to vector<1x64xf32>
    %12 = vector.shape_cast %11 : vector<1x64xf32> to vector<64xf32>
    %13 = vector.shape_cast %12 : vector<64xf32> to vector<1x1x1x64xf32>
    %14 = vector.broadcast %13 : vector<1x1x1x64xf32> to vector<2x4x4x64xf32>
    %15 = arith.mulf %10, %14 : vector<2x4x4x64xf32>
    %16 = arith.addf %9, %15 : vector<2x4x4x64xf32>
    %17 = vector.extract_strided_slice %0 {offsets = [0, 0, 2, 0], sizes = [2, 4, 4, 64], strides = [1, 1, 1, 1]} : vector<2x6x8x64xf32> to vector<2x4x4x64xf32>
    %18 = vector.extract_strided_slice %1 {offsets = [2, 0], sizes = [1, 64], strides = [1, 1]} : vector<9x64xf32> to vector<1x64xf32>
    %19 = vector.shape_cast %18 : vector<1x64xf32> to vector<64xf32>
    %20 = vector.shape_cast %19 : vector<64xf32> to vector<1x1x1x64xf32>
    %21 = vector.broadcast %20 : vector<1x1x1x64xf32> to vector<2x4x4x64xf32>
    %22 = arith.mulf %17, %21 : vector<2x4x4x64xf32>
    %23 = arith.addf %16, %22 : vector<2x4x4x64xf32>
    %24 = vector.extract_strided_slice %0 {offsets = [0, 1, 0, 0], sizes = [2, 4, 4, 64], strides = [1, 1, 1, 1]} : vector<2x6x8x64xf32> to vector<2x4x4x64xf32>
    %25 = vector.extract_strided_slice %1 {offsets = [3, 0], sizes = [1, 64], strides = [1, 1]} : vector<9x64xf32> to vector<1x64xf32>
    %26 = vector.shape_cast %25 : vector<1x64xf32> to vector<64xf32>
    %27 = vector.shape_cast %26 : vector<64xf32> to vector<1x1x1x64xf32>
    %28 = vector.broadcast %27 : vector<1x1x1x64xf32> to vector<2x4x4x64xf32>
    %29 = arith.mulf %24, %28 : vector<2x4x4x64xf32>
    %30 = arith.addf %23, %29 : vector<2x4x4x64xf32>
    %31 = vector.extract_strided_slice %0 {offsets = [0, 1, 1, 0], sizes = [2, 4, 4, 64], strides = [1, 1, 1, 1]} : vector<2x6x8x64xf32> to vector<2x4x4x64xf32>
    %32 = vector.extract_strided_slice %1 {offsets = [4, 0], sizes = [1, 64], strides = [1, 1]} : vector<9x64xf32> to vector<1x64xf32>
    %33 = vector.shape_cast %32 : vector<1x64xf32> to vector<64xf32>
    %34 = vector.shape_cast %33 : vector<64xf32> to vector<1x1x1x64xf32>
    %35 = vector.broadcast %34 : vector<1x1x1x64xf32> to vector<2x4x4x64xf32>
    %36 = arith.mulf %31, %35 : vector<2x4x4x64xf32>
    %37 = arith.addf %30, %36 : vector<2x4x4x64xf32>
    %38 = vector.extract_strided_slice %0 {offsets = [0, 1, 2, 0], sizes = [2, 4, 4, 64], strides = [1, 1, 1, 1]} : vector<2x6x8x64xf32> to vector<2x4x4x64xf32>
    %39 = vector.extract_strided_slice %1 {offsets = [5, 0], sizes = [1, 64], strides = [1, 1]} : vector<9x64xf32> to vector<1x64xf32>
    %40 = vector.shape_cast %39 : vector<1x64xf32> to vector<64xf32>
    %41 = vector.shape_cast %40 : vector<64xf32> to vector<1x1x1x64xf32>
    %42 = vector.broadcast %41 : vector<1x1x1x64xf32> to vector<2x4x4x64xf32>
    %43 = arith.mulf %38, %42 : vector<2x4x4x64xf32>
    %44 = arith.addf %37, %43 : vector<2x4x4x64xf32>
    %45 = vector.extract_strided_slice %0 {offsets = [0, 2, 0, 0], sizes = [2, 4, 4, 64], strides = [1, 1, 1, 1]} : vector<2x6x8x64xf32> to vector<2x4x4x64xf32>
    %46 = vector.extract_strided_slice %1 {offsets = [6, 0], sizes = [1, 64], strides = [1, 1]} : vector<9x64xf32> to vector<1x64xf32>
    %47 = vector.shape_cast %46 : vector<1x64xf32> to vector<64xf32>
    %48 = vector.shape_cast %47 : vector<64xf32> to vector<1x1x1x64xf32>
    %49 = vector.broadcast %48 : vector<1x1x1x64xf32> to vector<2x4x4x64xf32>
    %50 = arith.mulf %45, %49 : vector<2x4x4x64xf32>
    %51 = arith.addf %44, %50 : vector<2x4x4x64xf32>
    %52 = vector.extract_strided_slice %0 {offsets = [0, 2, 1, 0], sizes = [2, 4, 4, 64], strides = [1, 1, 1, 1]} : vector<2x6x8x64xf32> to vector<2x4x4x64xf32>
    %53 = vector.extract_strided_slice %1 {offsets = [7, 0], sizes = [1, 64], strides = [1, 1]} : vector<9x64xf32> to vector<1x64xf32>
    %54 = vector.shape_cast %53 : vector<1x64xf32> to vector<64xf32>
    %55 = vector.shape_cast %54 : vector<64xf32> to vector<1x1x1x64xf32>
    %56 = vector.broadcast %55 : vector<1x1x1x64xf32> to vector<2x4x4x64xf32>
    %57 = arith.mulf %52, %56 : vector<2x4x4x64xf32>
    %58 = arith.addf %51, %57 : vector<2x4x4x64xf32>
    %59 = vector.extract_strided_slice %0 {offsets = [0, 2, 2, 0], sizes = [2, 4, 4, 64], strides = [1, 1, 1, 1]} : vector<2x6x8x64xf32> to vector<2x4x4x64xf32>
    %60 = vector.extract_strided_slice %1 {offsets = [8, 0], sizes = [1, 64], strides = [1, 1]} : vector<9x64xf32> to vector<1x64xf32>
    %61 = vector.shape_cast %60 : vector<1x64xf32> to vector<64xf32>
    %62 = vector.shape_cast %61 : vector<64xf32> to vector<1x1x1x64xf32>
    %63 = vector.broadcast %62 : vector<1x1x1x64xf32> to vector<2x4x4x64xf32>
    %64 = arith.mulf %59, %63 : vector<2x4x4x64xf32>
    %65 = arith.addf %58, %64 : vector<2x4x4x64xf32>
    %c0_5 = arith.constant 0 : index
    %c0_6 = arith.constant 0 : index
    %66 = vector.load %arg2[%c0_5, %c0_6] : memref<1x64xf32, #tpu.memory_space<vmem>>, vector<1x64xf32>
    %67 = vector.shape_cast %66 : vector<1x64xf32> to vector<1x1x1x64xf32>
    %68 = vector.broadcast %67 : vector<1x1x1x64xf32> to vector<2x4x4x64xf32>
    %69 = arith.addf %65, %68 : vector<2x4x4x64xf32>
    %70 = arith.negf %69 : vector<2x4x4x64xf32>
    %71 = math.exp %70 : vector<2x4x4x64xf32>
    %cst_7 = arith.constant 1.000000e+00 : f32
    %72 = vector.broadcast %cst_7 : f32 to vector<2x4x4x64xf32>
    %73 = arith.addf %72, %71 : vector<2x4x4x64xf32>
    %74 = arith.divf %72, %73 : vector<2x4x4x64xf32>
    %75 = arith.mulf %69, %74 : vector<2x4x4x64xf32>
    %c0_8 = arith.constant 0 : index
    %c0_9 = arith.constant 0 : index
    %c0_10 = arith.constant 0 : index
    %c0_11 = arith.constant 0 : index
    %76 = vector.load %arg3[%c0_8, %c0_9, %c0_10, %c0_11] : memref<2x4x4x64xf32, #tpu.memory_space<vmem>>, vector<2x4x4x64xf32>
    tpu.vector_store %arg3[%c0_8, %c0_9, %c0_10, %c0_11], %75 {strides = array<i32>} : memref<2x4x4x64xf32, #tpu.memory_space<vmem>>, vector<2x4x4x64xf32>,
    return
  }
}

module attributes {stable_mosaic.version = 11 : i64} {
  func.func @_mamba_tail_kernel(%arg0: memref<32x64xf32, #tpu.memory_space<vmem>>, %arg1: memref<32x128xf32, #tpu.memory_space<vmem>>, %arg2: memref<32x32xf32, #tpu.memory_space<vmem>>, %arg3: memref<64x320xbf16, #tpu.memory_space<vmem>>, %arg4: memref<1x256xf32, #tpu.memory_space<vmem>>, %arg5: memref<4x8x64xf32, #tpu.memory_space<vmem>>, %arg6: memref<1x64xf32, #tpu.memory_space<vmem>>, %arg7: memref<1x64xf32, #tpu.memory_space<vmem>>, %arg8: memref<1x64xf32, #tpu.memory_space<vmem>>, %arg9: memref<64x32xbf16, #tpu.memory_space<vmem>>, %arg10: memref<1x32xf32, #tpu.memory_space<vmem>>, %arg11: memref<1x32xf32, #tpu.memory_space<vmem>>, %arg12: memref<1x32xf32, #tpu.memory_space<vmem>>, %arg13: memref<32x5xbf16, #tpu.memory_space<vmem>>, %arg14: memref<1x5xf32, #tpu.memory_space<vmem>>, %arg15: memref<2x5xf32, #tpu.memory_space<vmem>>, %arg16: memref<4x2x16x8x64xf32, #tpu.memory_space<vmem>>, %arg17: memref<4x2x16x8x64xf32, #tpu.memory_space<vmem>>) attributes {dimension_semantics = [], scalar_prefetch = 0 : i64, scratch_operands = 2 : i64, tpu.core_type = #tpu.core_type<tc>} {
    %c0 = arith.constant 0 : index
    %c0_0 = arith.constant 0 : index
    %0 = vector.load %arg0[%c0, %c0_0] : memref<32x64xf32, #tpu.memory_space<vmem>>, vector<32x64xf32>
    %1 = arith.truncf %0 : vector<32x64xf32> to vector<32x64xbf16>
    %c0_1 = arith.constant 0 : index
    %c0_2 = arith.constant 0 : index
    %2 = vector.load %arg3[%c0_1, %c0_2] : memref<64x320xbf16, #tpu.memory_space<vmem>>, vector<64x320xbf16>
    %cst = arith.constant dense<0.000000e+00> : vector<32x320xf32>
    %3 = tpu.matmul %1, %2, %cst {dimension_numbers = #tpu.dot_dimension_numbers<[1], [0], [0], [1], [0, 0, 1, 1], [], []>} : vector<32x64xbf16>, vector<64x320xbf16>, vector<32x320xf32> -> vector<32x320xf32>
    %4 = vector.extract_strided_slice %3 {offsets = [0, 0], sizes = [32, 256], strides = [1, 1]} : vector<32x320xf32> to vector<32x256xf32>
    %c0_3 = arith.constant 0 : index
    %c0_4 = arith.constant 0 : index
    %5 = vector.load %arg4[%c0_3, %c0_4] : memref<1x256xf32, #tpu.memory_space<vmem>>, vector<1x256xf32>
    %6 = vector.broadcast %5 : vector<1x256xf32> to vector<32x256xf32>
    %7 = arith.addf %4, %6 : vector<32x256xf32>
    %cst_5 = arith.constant 0.000000e+00 : f32
    %8 = vector.broadcast %cst_5 : f32 to vector<32x256xf32>
    %9 = arith.maximumf %7, %8 : vector<32x256xf32>
    %10 = math.absf %7 : vector<32x256xf32>
    %cst_6 = arith.constant 0.000000e+00 : f32
    %11 = vector.broadcast %cst_6 : f32 to vector<32x256xf32>
    %12 = arith.subf %11, %10 : vector<32x256xf32>
    %13 = math.exp %12 : vector<32x256xf32>
    %cst_7 = arith.constant 1.000000e+00 : f32
    %14 = vector.broadcast %cst_7 : f32 to vector<32x256xf32>
    %15 = arith.addf %14, %13 : vector<32x256xf32>
    %16 = math.log %15 : vector<32x256xf32>
    %17 = arith.addf %9, %16 : vector<32x256xf32>
    %18 = vector.shape_cast %17 : vector<32x256xf32> to vector<2x16x256xf32>
    %19 = vector.extract_strided_slice %3 {offsets = [0, 256], sizes = [32, 64], strides = [1, 1]} : vector<32x320xf32> to vector<32x64xf32>
    %20 = vector.shape_cast %19 : vector<32x64xf32> to vector<2x16x64xf32>
    %21 = vector.shape_cast %0 : vector<32x64xf32> to vector<2x16x64xf32>
    %c0_8 = arith.constant 0 : index
    %c0_9 = arith.constant 0 : index
    %c0_10 = arith.constant 0 : index
    %22 = vector.load %arg5[%c0_8, %c0_9, %c0_10] : memref<4x8x64xf32, #tpu.memory_space<vmem>>, vector<4x8x64xf32>
    %23 = vector.extract_strided_slice %18 {offsets = [0, 0, 0], sizes = [2, 16, 64], strides = [1, 1, 1]} : vector<2x16x256xf32> to vector<2x16x64xf32>
    %24 = vector.extract_strided_slice %20 {offsets = [0, 0, 0], sizes = [2, 16, 8], strides = [1, 1, 1]} : vector<2x16x64xf32> to vector<2x16x8xf32>
    %25 = vector.shape_cast %23 : vector<2x16x64xf32> to vector<2x16x1x64xf32>
    %26 = vector.extract_strided_slice %22 {offsets = [0, 0, 0], sizes = [1, 8, 64], strides = [1, 1, 1]} : vector<4x8x64xf32> to vector<1x8x64xf32>
    %27 = vector.shape_cast %26 : vector<1x8x64xf32> to vector<8x64xf32>
    %28 = vector.shape_cast %27 : vector<8x64xf32> to vector<1x1x8x64xf32>
    %29 = vector.broadcast %25 : vector<2x16x1x64xf32> to vector<2x16x8x64xf32>
    %30 = vector.broadcast %28 : vector<1x1x8x64xf32> to vector<2x16x8x64xf32>
    %31 = arith.mulf %29, %30 : vector<2x16x8x64xf32>
    %32 = math.exp %31 : vector<2x16x8x64xf32>
    %c0_11 = arith.constant 0 : index
    %c0_12 = arith.constant 0 : index
    %c0_13 = arith.constant 0 : index
    %c0_14 = arith.constant 0 : index
    %c0_15 = arith.constant 0 : index
    %33 = vector.load %arg16[%c0_11, %c0_12, %c0_13, %c0_14, %c0_15] : memref<4x2x16x8x64xf32, #tpu.memory_space<vmem>>, vector<1x2x16x8x64xf32>
    %34 = vector.shape_cast %33 : vector<1x2x16x8x64xf32> to vector<2x16x8x64xf32>
    %35 = vector.shape_cast %32 : vector<2x16x8x64xf32> to vector<1x2x16x8x64xf32>
    tpu.vector_store %arg16[%c0_11, %c0_12, %c0_13, %c0_14, %c0_15], %35 {strides = array<i32>} : memref<4x2x16x8x64xf32, #tpu.memory_space<vmem>>, vector<1x2x16x8x64xf32>,
    %36 = arith.mulf %23, %21 : vector<2x16x64xf32>
    %37 = vector.shape_cast %36 : vector<2x16x64xf32> to vector<2x16x1x64xf32>
    %38 = vector.shape_cast %24 : vector<2x16x8xf32> to vector<2x16x8x1xf32>
    %39 = vector.broadcast %37 : vector<2x16x1x64xf32> to vector<2x16x8x64xf32>
    %40 = vector.broadcast %38 : vector<2x16x8x1xf32> to vector<2x16x8x64xf32>
    %41 = arith.mulf %39, %40 : vector<2x16x8x64xf32>
    %c0_16 = arith.constant 0 : index
    %c0_17 = arith.constant 0 : index
    %c0_18 = arith.constant 0 : index
    %c0_19 = arith.constant 0 : index
    %c0_20 = arith.constant 0 : index
    %42 = vector.load %arg17[%c0_16, %c0_17, %c0_18, %c0_19, %c0_20] : memref<4x2x16x8x64xf32, #tpu.memory_space<vmem>>, vector<1x2x16x8x64xf32>
    %43 = vector.shape_cast %42 : vector<1x2x16x8x64xf32> to vector<2x16x8x64xf32>
    %44 = vector.shape_cast %41 : vector<2x16x8x64xf32> to vector<1x2x16x8x64xf32>
    tpu.vector_store %arg17[%c0_16, %c0_17, %c0_18, %c0_19, %c0_20], %44 {strides = array<i32>} : memref<4x2x16x8x64xf32, #tpu.memory_space<vmem>>, vector<1x2x16x8x64xf32>,
    %45 = vector.extract_strided_slice %18 {offsets = [0, 0, 64], sizes = [2, 16, 64], strides = [1, 1, 1]} : vector<2x16x256xf32> to vector<2x16x64xf32>
    %46 = vector.extract_strided_slice %20 {offsets = [0, 0, 16], sizes = [2, 16, 8], strides = [1, 1, 1]} : vector<2x16x64xf32> to vector<2x16x8xf32>
    %47 = vector.shape_cast %45 : vector<2x16x64xf32> to vector<2x16x1x64xf32>
    %48 = vector.extract_strided_slice %22 {offsets = [1, 0, 0], sizes = [1, 8, 64], strides = [1, 1, 1]} : vector<4x8x64xf32> to vector<1x8x64xf32>
    %49 = vector.shape_cast %48 : vector<1x8x64xf32> to vector<8x64xf32>
    %50 = vector.shape_cast %49 : vector<8x64xf32> to vector<1x1x8x64xf32>
    %51 = vector.broadcast %47 : vector<2x16x1x64xf32> to vector<2x16x8x64xf32>
    %52 = vector.broadcast %50 : vector<1x1x8x64xf32> to vector<2x16x8x64xf32>
    %53 = arith.mulf %51, %52 : vector<2x16x8x64xf32>
    %54 = math.exp %53 : vector<2x16x8x64xf32>
    %c1 = arith.constant 1 : index
    %c0_21 = arith.constant 0 : index
    %c0_22 = arith.constant 0 : index
    %c0_23 = arith.constant 0 : index
    %c0_24 = arith.constant 0 : index
    %55 = vector.load %arg16[%c1, %c0_21, %c0_22, %c0_23, %c0_24] : memref<4x2x16x8x64xf32, #tpu.memory_space<vmem>>, vector<1x2x16x8x64xf32>
    %56 = vector.shape_cast %55 : vector<1x2x16x8x64xf32> to vector<2x16x8x64xf32>
    %57 = vector.shape_cast %54 : vector<2x16x8x64xf32> to vector<1x2x16x8x64xf32>
    tpu.vector_store %arg16[%c1, %c0_21, %c0_22, %c0_23, %c0_24], %57 {strides = array<i32>} : memref<4x2x16x8x64xf32, #tpu.memory_space<vmem>>, vector<1x2x16x8x64xf32>,
    %58 = arith.mulf %45, %21 : vector<2x16x64xf32>
    %59 = vector.shape_cast %58 : vector<2x16x64xf32> to vector<2x16x1x64xf32>
    %60 = vector.shape_cast %46 : vector<2x16x8xf32> to vector<2x16x8x1xf32>
    %61 = vector.broadcast %59 : vector<2x16x1x64xf32> to vector<2x16x8x64xf32>
    %62 = vector.broadcast %60 : vector<2x16x8x1xf32> to vector<2x16x8x64xf32>
    %63 = arith.mulf %61, %62 : vector<2x16x8x64xf32>
    %c1_25 = arith.constant 1 : index
    %c0_26 = arith.constant 0 : index
    %c0_27 = arith.constant 0 : index
    %c0_28 = arith.constant 0 : index
    %c0_29 = arith.constant 0 : index
    %64 = vector.load %arg17[%c1_25, %c0_26, %c0_27, %c0_28, %c0_29] : memref<4x2x16x8x64xf32, #tpu.memory_space<vmem>>, vector<1x2x16x8x64xf32>
    %65 = vector.shape_cast %64 : vector<1x2x16x8x64xf32> to vector<2x16x8x64xf32>
    %66 = vector.shape_cast %63 : vector<2x16x8x64xf32> to vector<1x2x16x8x64xf32>
    tpu.vector_store %arg17[%c1_25, %c0_26, %c0_27, %c0_28, %c0_29], %66 {strides = array<i32>} : memref<4x2x16x8x64xf32, #tpu.memory_space<vmem>>, vector<1x2x16x8x64xf32>,
    %67 = vector.extract_strided_slice %18 {offsets = [0, 0, 128], sizes = [2, 16, 64], strides = [1, 1, 1]} : vector<2x16x256xf32> to vector<2x16x64xf32>
    %68 = vector.extract_strided_slice %20 {offsets = [0, 0, 32], sizes = [2, 16, 8], strides = [1, 1, 1]} : vector<2x16x64xf32> to vector<2x16x8xf32>
    %69 = vector.shape_cast %67 : vector<2x16x64xf32> to vector<2x16x1x64xf32>
    %70 = vector.extract_strided_slice %22 {offsets = [2, 0, 0], sizes = [1, 8, 64], strides = [1, 1, 1]} : vector<4x8x64xf32> to vector<1x8x64xf32>
    %71 = vector.shape_cast %70 : vector<1x8x64xf32> to vector<8x64xf32>
    %72 = vector.shape_cast %71 : vector<8x64xf32> to vector<1x1x8x64xf32>
    %73 = vector.broadcast %69 : vector<2x16x1x64xf32> to vector<2x16x8x64xf32>
    %74 = vector.broadcast %72 : vector<1x1x8x64xf32> to vector<2x16x8x64xf32>
    %75 = arith.mulf %73, %74 : vector<2x16x8x64xf32>
    %76 = math.exp %75 : vector<2x16x8x64xf32>
    %c2 = arith.constant 2 : index
    %c0_30 = arith.constant 0 : index
    %c0_31 = arith.constant 0 : index
    %c0_32 = arith.constant 0 : index
    %c0_33 = arith.constant 0 : index
    %77 = vector.load %arg16[%c2, %c0_30, %c0_31, %c0_32, %c0_33] : memref<4x2x16x8x64xf32, #tpu.memory_space<vmem>>, vector<1x2x16x8x64xf32>
    %78 = vector.shape_cast %77 : vector<1x2x16x8x64xf32> to vector<2x16x8x64xf32>
    %79 = vector.shape_cast %76 : vector<2x16x8x64xf32> to vector<1x2x16x8x64xf32>
    tpu.vector_store %arg16[%c2, %c0_30, %c0_31, %c0_32, %c0_33], %79 {strides = array<i32>} : memref<4x2x16x8x64xf32, #tpu.memory_space<vmem>>, vector<1x2x16x8x64xf32>,
    %80 = arith.mulf %67, %21 : vector<2x16x64xf32>
    %81 = vector.shape_cast %80 : vector<2x16x64xf32> to vector<2x16x1x64xf32>
    %82 = vector.shape_cast %68 : vector<2x16x8xf32> to vector<2x16x8x1xf32>
    %83 = vector.broadcast %81 : vector<2x16x1x64xf32> to vector<2x16x8x64xf32>
    %84 = vector.broadcast %82 : vector<2x16x8x1xf32> to vector<2x16x8x64xf32>
    %85 = arith.mulf %83, %84 : vector<2x16x8x64xf32>
    %c2_34 = arith.constant 2 : index
    %c0_35 = arith.constant 0 : index
    %c0_36 = arith.constant 0 : index
    %c0_37 = arith.constant 0 : index
    %c0_38 = arith.constant 0 : index
    %86 = vector.load %arg17[%c2_34, %c0_35, %c0_36, %c0_37, %c0_38] : memref<4x2x16x8x64xf32, #tpu.memory_space<vmem>>, vector<1x2x16x8x64xf32>
    %87 = vector.shape_cast %86 : vector<1x2x16x8x64xf32> to vector<2x16x8x64xf32>
    %88 = vector.shape_cast %85 : vector<2x16x8x64xf32> to vector<1x2x16x8x64xf32>
    tpu.vector_store %arg17[%c2_34, %c0_35, %c0_36, %c0_37, %c0_38], %88 {strides = array<i32>} : memref<4x2x16x8x64xf32, #tpu.memory_space<vmem>>, vector<1x2x16x8x64xf32>,
    %89 = vector.extract_strided_slice %18 {offsets = [0, 0, 192], sizes = [2, 16, 64], strides = [1, 1, 1]} : vector<2x16x256xf32> to vector<2x16x64xf32>
    %90 = vector.extract_strided_slice %20 {offsets = [0, 0, 48], sizes = [2, 16, 8], strides = [1, 1, 1]} : vector<2x16x64xf32> to vector<2x16x8xf32>
    %91 = vector.shape_cast %89 : vector<2x16x64xf32> to vector<2x16x1x64xf32>
    %92 = vector.extract_strided_slice %22 {offsets = [3, 0, 0], sizes = [1, 8, 64], strides = [1, 1, 1]} : vector<4x8x64xf32> to vector<1x8x64xf32>
    %93 = vector.shape_cast %92 : vector<1x8x64xf32> to vector<8x64xf32>
    %94 = vector.shape_cast %93 : vector<8x64xf32> to vector<1x1x8x64xf32>
    %95 = vector.broadcast %91 : vector<2x16x1x64xf32> to vector<2x16x8x64xf32>
    %96 = vector.broadcast %94 : vector<1x1x8x64xf32> to vector<2x16x8x64xf32>
    %97 = arith.mulf %95, %96 : vector<2x16x8x64xf32>
    %98 = math.exp %97 : vector<2x16x8x64xf32>
    %c3 = arith.constant 3 : index
    %c0_39 = arith.constant 0 : index
    %c0_40 = arith.constant 0 : index
    %c0_41 = arith.constant 0 : index
    %c0_42 = arith.constant 0 : index
    %99 = vector.load %arg16[%c3, %c0_39, %c0_40, %c0_41, %c0_42] : memref<4x2x16x8x64xf32, #tpu.memory_space<vmem>>, vector<1x2x16x8x64xf32>
    %100 = vector.shape_cast %99 : vector<1x2x16x8x64xf32> to vector<2x16x8x64xf32>
    %101 = vector.shape_cast %98 : vector<2x16x8x64xf32> to vector<1x2x16x8x64xf32>
    tpu.vector_store %arg16[%c3, %c0_39, %c0_40, %c0_41, %c0_42], %101 {strides = array<i32>} : memref<4x2x16x8x64xf32, #tpu.memory_space<vmem>>, vector<1x2x16x8x64xf32>,
    %102 = arith.mulf %89, %21 : vector<2x16x64xf32>
    %103 = vector.shape_cast %102 : vector<2x16x64xf32> to vector<2x16x1x64xf32>
    %104 = vector.shape_cast %90 : vector<2x16x8xf32> to vector<2x16x8x1xf32>
    %105 = vector.broadcast %103 : vector<2x16x1x64xf32> to vector<2x16x8x64xf32>
    %106 = vector.broadcast %104 : vector<2x16x8x1xf32> to vector<2x16x8x64xf32>
    %107 = arith.mulf %105, %106 : vector<2x16x8x64xf32>
    %c3_43 = arith.constant 3 : index
    %c0_44 = arith.constant 0 : index
    %c0_45 = arith.constant 0 : index
    %c0_46 = arith.constant 0 : index
    %c0_47 = arith.constant 0 : index
    %108 = vector.load %arg17[%c3_43, %c0_44, %c0_45, %c0_46, %c0_47] : memref<4x2x16x8x64xf32, #tpu.memory_space<vmem>>, vector<1x2x16x8x64xf32>
    %109 = vector.shape_cast %108 : vector<1x2x16x8x64xf32> to vector<2x16x8x64xf32>
    %110 = vector.shape_cast %107 : vector<2x16x8x64xf32> to vector<1x2x16x8x64xf32>
    tpu.vector_store %arg17[%c3_43, %c0_44, %c0_45, %c0_46, %c0_47], %110 {strides = array<i32>} : memref<4x2x16x8x64xf32, #tpu.memory_space<vmem>>, vector<1x2x16x8x64xf32>,
    %111 = vector.extract_strided_slice %20 {offsets = [0, 0, 8], sizes = [2, 16, 8], strides = [1, 1, 1]} : vector<2x16x64xf32> to vector<2x16x8xf32>
    %cst_48 = arith.constant 0.000000e+00 : f32
    %112 = vector.broadcast %cst_48 : f32 to vector<2x8x64xf32>
    %c0_49 = arith.constant 0 : index
    %c0_50 = arith.constant 0 : index
    %c0_51 = arith.constant 0 : index
    %c0_52 = arith.constant 0 : index
    %c0_53 = arith.constant 0 : index
    %113 = vector.load %arg16[%c0_49, %c0_50, %c0_51, %c0_52, %c0_53] : memref<4x2x16x8x64xf32, #tpu.memory_space<vmem>>, vector<1x2x1x8x64xf32>
    %114 = vector.shape_cast %113 : vector<1x2x1x8x64xf32> to vector<2x8x64xf32>
    %115 = arith.mulf %114, %112 : vector<2x8x64xf32>
    %c0_54 = arith.constant 0 : index
    %c0_55 = arith.constant 0 : index
    %c0_56 = arith.constant 0 : index
    %c0_57 = arith.constant 0 : index
    %c0_58 = arith.constant 0 : index
    %116 = vector.load %arg17[%c0_54, %c0_55, %c0_56, %c0_57, %c0_58] : memref<4x2x16x8x64xf32, #tpu.memory_space<vmem>>, vector<1x2x1x8x64xf32>
    %117 = vector.shape_cast %116 : vector<1x2x1x8x64xf32> to vector<2x8x64xf32>
    %118 = arith.addf %115, %117 : vector<2x8x64xf32>
    %119 = vector.extract_strided_slice %111 {offsets = [0, 0, 0], sizes = [2, 1, 8], strides = [1, 1, 1]} : vector<2x16x8xf32> to vector<2x1x8xf32>
    %120 = vector.shape_cast %119 : vector<2x1x8xf32> to vector<2x8xf32>
    %121 = vector.shape_cast %120 : vector<2x8xf32> to vector<2x8x1xf32>
    %122 = vector.broadcast %121 : vector<2x8x1xf32> to vector<2x8x64xf32>
    %123 = arith.mulf %122, %118 : vector<2x8x64xf32>
    %cst_59 = arith.constant dense<0.000000e+00> : vector<2x64xf32>
    %124 = vector.multi_reduction <add>, %123, %cst_59 [1] : vector<2x8x64xf32> to vector<2x64xf32>
    %c0_60 = arith.constant 0 : index
    %c0_61 = arith.constant 0 : index
    %c1_62 = arith.constant 1 : index
    %c0_63 = arith.constant 0 : index
    %c0_64 = arith.constant 0 : index
    %125 = vector.load %arg16[%c0_60, %c0_61, %c1_62, %c0_63, %c0_64] : memref<4x2x16x8x64xf32, #tpu.memory_space<vmem>>, vector<1x2x1x8x64xf32>
    %126 = vector.shape_cast %125 : vector<1x2x1x8x64xf32> to vector<2x8x64xf32>
    %127 = arith.mulf %126, %118 : vector<2x8x64xf32>
    %c0_65 = arith.constant 0 : index
    %c0_66 = arith.constant 0 : index
    %c1_67 = arith.constant 1 : index
    %c0_68 = arith.constant 0 : index
    %c0_69 = arith.constant 0 : index
    %128 = vector.load %arg17[%c0_65, %c0_66, %c1_67, %c0_68, %c0_69] : memref<4x2x16x8x64xf32, #tpu.memory_space<vmem>>, vector<1x2x1x8x64xf32>
    %129 = vector.shape_cast %128 : vector<1x2x1x8x64xf32> to vector<2x8x64xf32>
    %130 = arith.addf %127, %129 : vector<2x8x64xf32>
    %131 = vector.extract_strided_slice %111 {offsets = [0, 1, 0], sizes = [2, 1, 8], strides = [1, 1, 1]} : vector<2x16x8xf32> to vector<2x1x8xf32>
    %132 = vector.shape_cast %131 : vector<2x1x8xf32> to vector<2x8xf32>
    %133 = vector.shape_cast %132 : vector<2x8xf32> to vector<2x8x1xf32>
    %134 = vector.broadcast %133 : vector<2x8x1xf32> to vector<2x8x64xf32>
    %135 = arith.mulf %134, %130 : vector<2x8x64xf32>
    %cst_70 = arith.constant dense<0.000000e+00> : vector<2x64xf32>
    %136 = vector.multi_reduction <add>, %135, %cst_70 [1] : vector<2x8x64xf32> to vector<2x64xf32>
    %c0_71 = arith.constant 0 : index
    %c0_72 = arith.constant 0 : index
    %c2_73 = arith.constant 2 : index
    %c0_74 = arith.constant 0 : index
    %c0_75 = arith.constant 0 : index
    %137 = vector.load %arg16[%c0_71, %c0_72, %c2_73, %c0_74, %c0_75] : memref<4x2x16x8x64xf32, #tpu.memory_space<vmem>>, vector<1x2x1x8x64xf32>
    %138 = vector.shape_cast %137 : vector<1x2x1x8x64xf32> to vector<2x8x64xf32>
    %139 = arith.mulf %138, %130 : vector<2x8x64xf32>
    %c0_76 = arith.constant 0 : index
    %c0_77 = arith.constant 0 : index
    %c2_78 = arith.constant 2 : index
    %c0_79 = arith.constant 0 : index
    %c0_80 = arith.constant 0 : index
    %140 = vector.load %arg17[%c0_76, %c0_77, %c2_78, %c0_79, %c0_80] : memref<4x2x16x8x64xf32, #tpu.memory_space<vmem>>, vector<1x2x1x8x64xf32>
    %141 = vector.shape_cast %140 : vector<1x2x1x8x64xf32> to vector<2x8x64xf32>
    %142 = arith.addf %139, %141 : vector<2x8x64xf32>
    %143 = vector.extract_strided_slice %111 {offsets = [0, 2, 0], sizes = [2, 1, 8], strides = [1, 1, 1]} : vector<2x16x8xf32> to vector<2x1x8xf32>
    %144 = vector.shape_cast %143 : vector<2x1x8xf32> to vector<2x8xf32>
    %145 = vector.shape_cast %144 : vector<2x8xf32> to vector<2x8x1xf32>
    %146 = vector.broadcast %145 : vector<2x8x1xf32> to vector<2x8x64xf32>
    %147 = arith.mulf %146, %142 : vector<2x8x64xf32>
    %cst_81 = arith.constant dense<0.000000e+00> : vector<2x64xf32>
    %148 = vector.multi_reduction <add>, %147, %cst_81 [1] : vector<2x8x64xf32> to vector<2x64xf32>
    %c0_82 = arith.constant 0 : index
    %c0_83 = arith.constant 0 : index
    %c3_84 = arith.constant 3 : index
    %c0_85 = arith.constant 0 : index
    %c0_86 = arith.constant 0 : index
    %149 = vector.load %arg16[%c0_82, %c0_83, %c3_84, %c0_85, %c0_86] : memref<4x2x16x8x64xf32, #tpu.memory_space<vmem>>, vector<1x2x1x8x64xf32>
    %150 = vector.shape_cast %149 : vector<1x2x1x8x64xf32> to vector<2x8x64xf32>
    %151 = arith.mulf %150, %142 : vector<2x8x64xf32>
    %c0_87 = arith.constant 0 : index
    %c0_88 = arith.constant 0 : index
    %c3_89 = arith.constant 3 : index
    %c0_90 = arith.constant 0 : index
    %c0_91 = arith.constant 0 : index
    %152 = vector.load %arg17[%c0_87, %c0_88, %c3_89, %c0_90, %c0_91] : memref<4x2x16x8x64xf32, #tpu.memory_space<vmem>>, vector<1x2x1x8x64xf32>
    %153 = vector.shape_cast %152 : vector<1x2x1x8x64xf32> to vector<2x8x64xf32>
    %154 = arith.addf %151, %153 : vector<2x8x64xf32>
    %155 = vector.extract_strided_slice %111 {offsets = [0, 3, 0], sizes = [2, 1, 8], strides = [1, 1, 1]} : vector<2x16x8xf32> to vector<2x1x8xf32>
    %156 = vector.shape_cast %155 : vector<2x1x8xf32> to vector<2x8xf32>
    %157 = vector.shape_cast %156 : vector<2x8xf32> to vector<2x8x1xf32>
    %158 = vector.broadcast %157 : vector<2x8x1xf32> to vector<2x8x64xf32>
    %159 = arith.mulf %158, %154 : vector<2x8x64xf32>
    %cst_92 = arith.constant dense<0.000000e+00> : vector<2x64xf32>
    %160 = vector.multi_reduction <add>, %159, %cst_92 [1] : vector<2x8x64xf32> to vector<2x64xf32>
    %c0_93 = arith.constant 0 : index
    %c0_94 = arith.constant 0 : index
    %c4 = arith.constant 4 : index
    %c0_95 = arith.constant 0 : index
    %c0_96 = arith.constant 0 : index
    %161 = vector.load %arg16[%c0_93, %c0_94, %c4, %c0_95, %c0_96] : memref<4x2x16x8x64xf32, #tpu.memory_space<vmem>>, vector<1x2x1x8x64xf32>
    %162 = vector.shape_cast %161 : vector<1x2x1x8x64xf32> to vector<2x8x64xf32>
    %163 = arith.mulf %162, %154 : vector<2x8x64xf32>
    %c0_97 = arith.constant 0 : index
    %c0_98 = arith.constant 0 : index
    %c4_99 = arith.constant 4 : index
    %c0_100 = arith.constant 0 : index
    %c0_101 = arith.constant 0 : index
    %164 = vector.load %arg17[%c0_97, %c0_98, %c4_99, %c0_100, %c0_101] : memref<4x2x16x8x64xf32, #tpu.memory_space<vmem>>, vector<1x2x1x8x64xf32>
    %165 = vector.shape_cast %164 : vector<1x2x1x8x64xf32> to vector<2x8x64xf32>
    %166 = arith.addf %163, %165 : vector<2x8x64xf32>
    %167 = vector.extract_strided_slice %111 {offsets = [0, 4, 0], sizes = [2, 1, 8], strides = [1, 1, 1]} : vector<2x16x8xf32> to vector<2x1x8xf32>
    %168 = vector.shape_cast %167 : vector<2x1x8xf32> to vector<2x8xf32>
    %169 = vector.shape_cast %168 : vector<2x8xf32> to vector<2x8x1xf32>
    %170 = vector.broadcast %169 : vector<2x8x1xf32> to vector<2x8x64xf32>
    %171 = arith.mulf %170, %166 : vector<2x8x64xf32>
    %cst_102 = arith.constant dense<0.000000e+00> : vector<2x64xf32>
    %172 = vector.multi_reduction <add>, %171, %cst_102 [1] : vector<2x8x64xf32> to vector<2x64xf32>
    %c0_103 = arith.constant 0 : index
    %c0_104 = arith.constant 0 : index
    %c5 = arith.constant 5 : index
    %c0_105 = arith.constant 0 : index
    %c0_106 = arith.constant 0 : index
    %173 = vector.load %arg16[%c0_103, %c0_104, %c5, %c0_105, %c0_106] : memref<4x2x16x8x64xf32, #tpu.memory_space<vmem>>, vector<1x2x1x8x64xf32>
    %174 = vector.shape_cast %173 : vector<1x2x1x8x64xf32> to vector<2x8x64xf32>
    %175 = arith.mulf %174, %166 : vector<2x8x64xf32>
    %c0_107 = arith.constant 0 : index
    %c0_108 = arith.constant 0 : index
    %c5_109 = arith.constant 5 : index
    %c0_110 = arith.constant 0 : index
    %c0_111 = arith.constant 0 : index
    %176 = vector.load %arg17[%c0_107, %c0_108, %c5_109, %c0_110, %c0_111] : memref<4x2x16x8x64xf32, #tpu.memory_space<vmem>>, vector<1x2x1x8x64xf32>
    %177 = vector.shape_cast %176 : vector<1x2x1x8x64xf32> to vector<2x8x64xf32>
    %178 = arith.addf %175, %177 : vector<2x8x64xf32>
    %179 = vector.extract_strided_slice %111 {offsets = [0, 5, 0], sizes = [2, 1, 8], strides = [1, 1, 1]} : vector<2x16x8xf32> to vector<2x1x8xf32>
    %180 = vector.shape_cast %179 : vector<2x1x8xf32> to vector<2x8xf32>
    %181 = vector.shape_cast %180 : vector<2x8xf32> to vector<2x8x1xf32>
    %182 = vector.broadcast %181 : vector<2x8x1xf32> to vector<2x8x64xf32>
    %183 = arith.mulf %182, %178 : vector<2x8x64xf32>
    %cst_112 = arith.constant dense<0.000000e+00> : vector<2x64xf32>
    %184 = vector.multi_reduction <add>, %183, %cst_112 [1] : vector<2x8x64xf32> to vector<2x64xf32>
    %c0_113 = arith.constant 0 : index
    %c0_114 = arith.constant 0 : index
    %c6 = arith.constant 6 : index
    %c0_115 = arith.constant 0 : index
    %c0_116 = arith.constant 0 : index
    %185 = vector.load %arg16[%c0_113, %c0_114, %c6, %c0_115, %c0_116] : memref<4x2x16x8x64xf32, #tpu.memory_space<vmem>>, vector<1x2x1x8x64xf32>
    %186 = vector.shape_cast %185 : vector<1x2x1x8x64xf32> to vector<2x8x64xf32>
    %187 = arith.mulf %186, %178 : vector<2x8x64xf32>
    %c0_117 = arith.constant 0 : index
    %c0_118 = arith.constant 0 : index
    %c6_119 = arith.constant 6 : index
    %c0_120 = arith.constant 0 : index
    %c0_121 = arith.constant 0 : index
    %188 = vector.load %arg17[%c0_117, %c0_118, %c6_119, %c0_120, %c0_121] : memref<4x2x16x8x64xf32, #tpu.memory_space<vmem>>, vector<1x2x1x8x64xf32>
    %189 = vector.shape_cast %188 : vector<1x2x1x8x64xf32> to vector<2x8x64xf32>
    %190 = arith.addf %187, %189 : vector<2x8x64xf32>
    %191 = vector.extract_strided_slice %111 {offsets = [0, 6, 0], sizes = [2, 1, 8], strides = [1, 1, 1]} : vector<2x16x8xf32> to vector<2x1x8xf32>
    %192 = vector.shape_cast %191 : vector<2x1x8xf32> to vector<2x8xf32>
    %193 = vector.shape_cast %192 : vector<2x8xf32> to vector<2x8x1xf32>
    %194 = vector.broadcast %193 : vector<2x8x1xf32> to vector<2x8x64xf32>
    %195 = arith.mulf %194, %190 : vector<2x8x64xf32>
    %cst_122 = arith.constant dense<0.000000e+00> : vector<2x64xf32>
    %196 = vector.multi_reduction <add>, %195, %cst_122 [1] : vector<2x8x64xf32> to vector<2x64xf32>
    %c0_123 = arith.constant 0 : index
    %c0_124 = arith.constant 0 : index
    %c7 = arith.constant 7 : index
    %c0_125 = arith.constant 0 : index
    %c0_126 = arith.constant 0 : index
    %197 = vector.load %arg16[%c0_123, %c0_124, %c7, %c0_125, %c0_126] : memref<4x2x16x8x64xf32, #tpu.memory_space<vmem>>, vector<1x2x1x8x64xf32>
    %198 = vector.shape_cast %197 : vector<1x2x1x8x64xf32> to vector<2x8x64xf32>
    %199 = arith.mulf %198, %190 : vector<2x8x64xf32>
    %c0_127 = arith.constant 0 : index
    %c0_128 = arith.constant 0 : index
    %c7_129 = arith.constant 7 : index
    %c0_130 = arith.constant 0 : index
    %c0_131 = arith.constant 0 : index
    %200 = vector.load %arg17[%c0_127, %c0_128, %c7_129, %c0_130, %c0_131] : memref<4x2x16x8x64xf32, #tpu.memory_space<vmem>>, vector<1x2x1x8x64xf32>
    %201 = vector.shape_cast %200 : vector<1x2x1x8x64xf32> to vector<2x8x64xf32>
    %202 = arith.addf %199, %201 : vector<2x8x64xf32>
    %203 = vector.extract_strided_slice %111 {offsets = [0, 7, 0], sizes = [2, 1, 8], strides = [1, 1, 1]} : vector<2x16x8xf32> to vector<2x1x8xf32>
    %204 = vector.shape_cast %203 : vector<2x1x8xf32> to vector<2x8xf32>
    %205 = vector.shape_cast %204 : vector<2x8xf32> to vector<2x8x1xf32>
    %206 = vector.broadcast %205 : vector<2x8x1xf32> to vector<2x8x64xf32>
    %207 = arith.mulf %206, %202 : vector<2x8x64xf32>
    %cst_132 = arith.constant dense<0.000000e+00> : vector<2x64xf32>
    %208 = vector.multi_reduction <add>, %207, %cst_132 [1] : vector<2x8x64xf32> to vector<2x64xf32>
    %c0_133 = arith.constant 0 : index
    %c0_134 = arith.constant 0 : index
    %c8 = arith.constant 8 : index
    %c0_135 = arith.constant 0 : index
    %c0_136 = arith.constant 0 : index
    %209 = vector.load %arg16[%c0_133, %c0_134, %c8, %c0_135, %c0_136] : memref<4x2x16x8x64xf32, #tpu.memory_space<vmem>>, vector<1x2x1x8x64xf32>
    %210 = vector.shape_cast %209 : vector<1x2x1x8x64xf32> to vector<2x8x64xf32>
    %211 = arith.mulf %210, %202 : vector<2x8x64xf32>
    %c0_137 = arith.constant 0 : index
    %c0_138 = arith.constant 0 : index
    %c8_139 = arith.constant 8 : index
    %c0_140 = arith.constant 0 : index
    %c0_141 = arith.constant 0 : index
    %212 = vector.load %arg17[%c0_137, %c0_138, %c8_139, %c0_140, %c0_141] : memref<4x2x16x8x64xf32, #tpu.memory_space<vmem>>, vector<1x2x1x8x64xf32>
    %213 = vector.shape_cast %212 : vector<1x2x1x8x64xf32> to vector<2x8x64xf32>
    %214 = arith.addf %211, %213 : vector<2x8x64xf32>
    %215 = vector.extract_strided_slice %111 {offsets = [0, 8, 0], sizes = [2, 1, 8], strides = [1, 1, 1]} : vector<2x16x8xf32> to vector<2x1x8xf32>
    %216 = vector.shape_cast %215 : vector<2x1x8xf32> to vector<2x8xf32>
    %217 = vector.shape_cast %216 : vector<2x8xf32> to vector<2x8x1xf32>
    %218 = vector.broadcast %217 : vector<2x8x1xf32> to vector<2x8x64xf32>
    %219 = arith.mulf %218, %214 : vector<2x8x64xf32>
    %cst_142 = arith.constant dense<0.000000e+00> : vector<2x64xf32>
    %220 = vector.multi_reduction <add>, %219, %cst_142 [1] : vector<2x8x64xf32> to vector<2x64xf32>
    %c0_143 = arith.constant 0 : index
    %c0_144 = arith.constant 0 : index
    %c9 = arith.constant 9 : index
    %c0_145 = arith.constant 0 : index
    %c0_146 = arith.constant 0 : index
    %221 = vector.load %arg16[%c0_143, %c0_144, %c9, %c0_145, %c0_146] : memref<4x2x16x8x64xf32, #tpu.memory_space<vmem>>, vector<1x2x1x8x64xf32>
    %222 = vector.shape_cast %221 : vector<1x2x1x8x64xf32> to vector<2x8x64xf32>
    %223 = arith.mulf %222, %214 : vector<2x8x64xf32>
    %c0_147 = arith.constant 0 : index
    %c0_148 = arith.constant 0 : index
    %c9_149 = arith.constant 9 : index
    %c0_150 = arith.constant 0 : index
    %c0_151 = arith.constant 0 : index
    %224 = vector.load %arg17[%c0_147, %c0_148, %c9_149, %c0_150, %c0_151] : memref<4x2x16x8x64xf32, #tpu.memory_space<vmem>>, vector<1x2x1x8x64xf32>
    %225 = vector.shape_cast %224 : vector<1x2x1x8x64xf32> to vector<2x8x64xf32>
    %226 = arith.addf %223, %225 : vector<2x8x64xf32>
    %227 = vector.extract_strided_slice %111 {offsets = [0, 9, 0], sizes = [2, 1, 8], strides = [1, 1, 1]} : vector<2x16x8xf32> to vector<2x1x8xf32>
    %228 = vector.shape_cast %227 : vector<2x1x8xf32> to vector<2x8xf32>
    %229 = vector.shape_cast %228 : vector<2x8xf32> to vector<2x8x1xf32>
    %230 = vector.broadcast %229 : vector<2x8x1xf32> to vector<2x8x64xf32>
    %231 = arith.mulf %230, %226 : vector<2x8x64xf32>
    %cst_152 = arith.constant dense<0.000000e+00> : vector<2x64xf32>
    %232 = vector.multi_reduction <add>, %231, %cst_152 [1] : vector<2x8x64xf32> to vector<2x64xf32>
    %c0_153 = arith.constant 0 : index
    %c0_154 = arith.constant 0 : index
    %c10 = arith.constant 10 : index
    %c0_155 = arith.constant 0 : index
    %c0_156 = arith.constant 0 : index
    %233 = vector.load %arg16[%c0_153, %c0_154, %c10, %c0_155, %c0_156] : memref<4x2x16x8x64xf32, #tpu.memory_space<vmem>>, vector<1x2x1x8x64xf32>
    %234 = vector.shape_cast %233 : vector<1x2x1x8x64xf32> to vector<2x8x64xf32>
    %235 = arith.mulf %234, %226 : vector<2x8x64xf32>
    %c0_157 = arith.constant 0 : index
    %c0_158 = arith.constant 0 : index
    %c10_159 = arith.constant 10 : index
    %c0_160 = arith.constant 0 : index
    %c0_161 = arith.constant 0 : index
    %236 = vector.load %arg17[%c0_157, %c0_158, %c10_159, %c0_160, %c0_161] : memref<4x2x16x8x64xf32, #tpu.memory_space<vmem>>, vector<1x2x1x8x64xf32>
    %237 = vector.shape_cast %236 : vector<1x2x1x8x64xf32> to vector<2x8x64xf32>
    %238 = arith.addf %235, %237 : vector<2x8x64xf32>
    %239 = vector.extract_strided_slice %111 {offsets = [0, 10, 0], sizes = [2, 1, 8], strides = [1, 1, 1]} : vector<2x16x8xf32> to vector<2x1x8xf32>
    %240 = vector.shape_cast %239 : vector<2x1x8xf32> to vector<2x8xf32>
    %241 = vector.shape_cast %240 : vector<2x8xf32> to vector<2x8x1xf32>
    %242 = vector.broadcast %241 : vector<2x8x1xf32> to vector<2x8x64xf32>
    %243 = arith.mulf %242, %238 : vector<2x8x64xf32>
    %cst_162 = arith.constant dense<0.000000e+00> : vector<2x64xf32>
    %244 = vector.multi_reduction <add>, %243, %cst_162 [1] : vector<2x8x64xf32> to vector<2x64xf32>
    %c0_163 = arith.constant 0 : index
    %c0_164 = arith.constant 0 : index
    %c11 = arith.constant 11 : index
    %c0_165 = arith.constant 0 : index
    %c0_166 = arith.constant 0 : index
    %245 = vector.load %arg16[%c0_163, %c0_164, %c11, %c0_165, %c0_166] : memref<4x2x16x8x64xf32, #tpu.memory_space<vmem>>, vector<1x2x1x8x64xf32>
    %246 = vector.shape_cast %245 : vector<1x2x1x8x64xf32> to vector<2x8x64xf32>
    %247 = arith.mulf %246, %238 : vector<2x8x64xf32>
    %c0_167 = arith.constant 0 : index
    %c0_168 = arith.constant 0 : index
    %c11_169 = arith.constant 11 : index
    %c0_170 = arith.constant 0 : index
    %c0_171 = arith.constant 0 : index
    %248 = vector.load %arg17[%c0_167, %c0_168, %c11_169, %c0_170, %c0_171] : memref<4x2x16x8x64xf32, #tpu.memory_space<vmem>>, vector<1x2x1x8x64xf32>
    %249 = vector.shape_cast %248 : vector<1x2x1x8x64xf32> to vector<2x8x64xf32>
    %250 = arith.addf %247, %249 : vector<2x8x64xf32>
    %251 = vector.extract_strided_slice %111 {offsets = [0, 11, 0], sizes = [2, 1, 8], strides = [1, 1, 1]} : vector<2x16x8xf32> to vector<2x1x8xf32>
    %252 = vector.shape_cast %251 : vector<2x1x8xf32> to vector<2x8xf32>
    %253 = vector.shape_cast %252 : vector<2x8xf32> to vector<2x8x1xf32>
    %254 = vector.broadcast %253 : vector<2x8x1xf32> to vector<2x8x64xf32>
    %255 = arith.mulf %254, %250 : vector<2x8x64xf32>
    %cst_172 = arith.constant dense<0.000000e+00> : vector<2x64xf32>
    %256 = vector.multi_reduction <add>, %255, %cst_172 [1] : vector<2x8x64xf32> to vector<2x64xf32>
    %c0_173 = arith.constant 0 : index
    %c0_174 = arith.constant 0 : index
    %c12 = arith.constant 12 : index
    %c0_175 = arith.constant 0 : index
    %c0_176 = arith.constant 0 : index
    %257 = vector.load %arg16[%c0_173, %c0_174, %c12, %c0_175, %c0_176] : memref<4x2x16x8x64xf32, #tpu.memory_space<vmem>>, vector<1x2x1x8x64xf32>
    %258 = vector.shape_cast %257 : vector<1x2x1x8x64xf32> to vector<2x8x64xf32>
    %259 = arith.mulf %258, %250 : vector<2x8x64xf32>
    %c0_177 = arith.constant 0 : index
    %c0_178 = arith.constant 0 : index
    %c12_179 = arith.constant 12 : index
    %c0_180 = arith.constant 0 : index
    %c0_181 = arith.constant 0 : index
    %260 = vector.load %arg17[%c0_177, %c0_178, %c12_179, %c0_180, %c0_181] : memref<4x2x16x8x64xf32, #tpu.memory_space<vmem>>, vector<1x2x1x8x64xf32>
    %261 = vector.shape_cast %260 : vector<1x2x1x8x64xf32> to vector<2x8x64xf32>
    %262 = arith.addf %259, %261 : vector<2x8x64xf32>
    %263 = vector.extract_strided_slice %111 {offsets = [0, 12, 0], sizes = [2, 1, 8], strides = [1, 1, 1]} : vector<2x16x8xf32> to vector<2x1x8xf32>
    %264 = vector.shape_cast %263 : vector<2x1x8xf32> to vector<2x8xf32>
    %265 = vector.shape_cast %264 : vector<2x8xf32> to vector<2x8x1xf32>
    %266 = vector.broadcast %265 : vector<2x8x1xf32> to vector<2x8x64xf32>
    %267 = arith.mulf %266, %262 : vector<2x8x64xf32>
    %cst_182 = arith.constant dense<0.000000e+00> : vector<2x64xf32>
    %268 = vector.multi_reduction <add>, %267, %cst_182 [1] : vector<2x8x64xf32> to vector<2x64xf32>
    %c0_183 = arith.constant 0 : index
    %c0_184 = arith.constant 0 : index
    %c13 = arith.constant 13 : index
    %c0_185 = arith.constant 0 : index
    %c0_186 = arith.constant 0 : index
    %269 = vector.load %arg16[%c0_183, %c0_184, %c13, %c0_185, %c0_186] : memref<4x2x16x8x64xf32, #tpu.memory_space<vmem>>, vector<1x2x1x8x64xf32>
    %270 = vector.shape_cast %269 : vector<1x2x1x8x64xf32> to vector<2x8x64xf32>
    %271 = arith.mulf %270, %262 : vector<2x8x64xf32>
    %c0_187 = arith.constant 0 : index
    %c0_188 = arith.constant 0 : index
    %c13_189 = arith.constant 13 : index
    %c0_190 = arith.constant 0 : index
    %c0_191 = arith.constant 0 : index
    %272 = vector.load %arg17[%c0_187, %c0_188, %c13_189, %c0_190, %c0_191] : memref<4x2x16x8x64xf32, #tpu.memory_space<vmem>>, vector<1x2x1x8x64xf32>
    %273 = vector.shape_cast %272 : vector<1x2x1x8x64xf32> to vector<2x8x64xf32>
    %274 = arith.addf %271, %273 : vector<2x8x64xf32>
    %275 = vector.extract_strided_slice %111 {offsets = [0, 13, 0], sizes = [2, 1, 8], strides = [1, 1, 1]} : vector<2x16x8xf32> to vector<2x1x8xf32>
    %276 = vector.shape_cast %275 : vector<2x1x8xf32> to vector<2x8xf32>
    %277 = vector.shape_cast %276 : vector<2x8xf32> to vector<2x8x1xf32>
    %278 = vector.broadcast %277 : vector<2x8x1xf32> to vector<2x8x64xf32>
    %279 = arith.mulf %278, %274 : vector<2x8x64xf32>
    %cst_192 = arith.constant dense<0.000000e+00> : vector<2x64xf32>
    %280 = vector.multi_reduction <add>, %279, %cst_192 [1] : vector<2x8x64xf32> to vector<2x64xf32>
    %c0_193 = arith.constant 0 : index
    %c0_194 = arith.constant 0 : index
    %c14 = arith.constant 14 : index
    %c0_195 = arith.constant 0 : index
    %c0_196 = arith.constant 0 : index
    %281 = vector.load %arg16[%c0_193, %c0_194, %c14, %c0_195, %c0_196] : memref<4x2x16x8x64xf32, #tpu.memory_space<vmem>>, vector<1x2x1x8x64xf32>
    %282 = vector.shape_cast %281 : vector<1x2x1x8x64xf32> to vector<2x8x64xf32>
    %283 = arith.mulf %282, %274 : vector<2x8x64xf32>
    %c0_197 = arith.constant 0 : index
    %c0_198 = arith.constant 0 : index
    %c14_199 = arith.constant 14 : index
    %c0_200 = arith.constant 0 : index
    %c0_201 = arith.constant 0 : index
    %284 = vector.load %arg17[%c0_197, %c0_198, %c14_199, %c0_200, %c0_201] : memref<4x2x16x8x64xf32, #tpu.memory_space<vmem>>, vector<1x2x1x8x64xf32>
    %285 = vector.shape_cast %284 : vector<1x2x1x8x64xf32> to vector<2x8x64xf32>
    %286 = arith.addf %283, %285 : vector<2x8x64xf32>
    %287 = vector.extract_strided_slice %111 {offsets = [0, 14, 0], sizes = [2, 1, 8], strides = [1, 1, 1]} : vector<2x16x8xf32> to vector<2x1x8xf32>
    %288 = vector.shape_cast %287 : vector<2x1x8xf32> to vector<2x8xf32>
    %289 = vector.shape_cast %288 : vector<2x8xf32> to vector<2x8x1xf32>
    %290 = vector.broadcast %289 : vector<2x8x1xf32> to vector<2x8x64xf32>
    %291 = arith.mulf %290, %286 : vector<2x8x64xf32>
    %cst_202 = arith.constant dense<0.000000e+00> : vector<2x64xf32>
    %292 = vector.multi_reduction <add>, %291, %cst_202 [1] : vector<2x8x64xf32> to vector<2x64xf32>
    %c0_203 = arith.constant 0 : index
    %c0_204 = arith.constant 0 : index
    %c15 = arith.constant 15 : index
    %c0_205 = arith.constant 0 : index
    %c0_206 = arith.constant 0 : index
    %293 = vector.load %arg16[%c0_203, %c0_204, %c15, %c0_205, %c0_206] : memref<4x2x16x8x64xf32, #tpu.memory_space<vmem>>, vector<1x2x1x8x64xf32>
    %294 = vector.shape_cast %293 : vector<1x2x1x8x64xf32> to vector<2x8x64xf32>
    %295 = arith.mulf %294, %286 : vector<2x8x64xf32>
    %c0_207 = arith.constant 0 : index
    %c0_208 = arith.constant 0 : index
    %c15_209 = arith.constant 15 : index
    %c0_210 = arith.constant 0 : index
    %c0_211 = arith.constant 0 : index
    %296 = vector.load %arg17[%c0_207, %c0_208, %c15_209, %c0_210, %c0_211] : memref<4x2x16x8x64xf32, #tpu.memory_space<vmem>>, vector<1x2x1x8x64xf32>
    %297 = vector.shape_cast %296 : vector<1x2x1x8x64xf32> to vector<2x8x64xf32>
    %298 = arith.addf %295, %297 : vector<2x8x64xf32>
    %299 = vector.extract_strided_slice %111 {offsets = [0, 15, 0], sizes = [2, 1, 8], strides = [1, 1, 1]} : vector<2x16x8xf32> to vector<2x1x8xf32>
    %300 = vector.shape_cast %299 : vector<2x1x8xf32> to vector<2x8xf32>
    %301 = vector.shape_cast %300 : vector<2x8xf32> to vector<2x8x1xf32>
    %302 = vector.broadcast %301 : vector<2x8x1xf32> to vector<2x8x64xf32>
    %303 = arith.mulf %302, %298 : vector<2x8x64xf32>
    %cst_212 = arith.constant dense<0.000000e+00> : vector<2x64xf32>
    %304 = vector.multi_reduction <add>, %303, %cst_212 [1] : vector<2x8x64xf32> to vector<2x64xf32>
    %305 = vector.extract_strided_slice %20 {offsets = [0, 0, 24], sizes = [2, 16, 8], strides = [1, 1, 1]} : vector<2x16x64xf32> to vector<2x16x8xf32>
    %cst_213 = arith.constant 0.000000e+00 : f32
    %306 = vector.broadcast %cst_213 : f32 to vector<2x8x64xf32>
    %c1_214 = arith.constant 1 : index
    %c0_215 = arith.constant 0 : index
    %c0_216 = arith.constant 0 : index
    %c0_217 = arith.constant 0 : index
    %c0_218 = arith.constant 0 : index
    %307 = vector.load %arg16[%c1_214, %c0_215, %c0_216, %c0_217, %c0_218] : memref<4x2x16x8x64xf32, #tpu.memory_space<vmem>>, vector<1x2x1x8x64xf32>
    %308 = vector.shape_cast %307 : vector<1x2x1x8x64xf32> to vector<2x8x64xf32>
    %309 = arith.mulf %308, %306 : vector<2x8x64xf32>
    %c1_219 = arith.constant 1 : index
    %c0_220 = arith.constant 0 : index
    %c0_221 = arith.constant 0 : index
    %c0_222 = arith.constant 0 : index
    %c0_223 = arith.constant 0 : index
    %310 = vector.load %arg17[%c1_219, %c0_220, %c0_221, %c0_222, %c0_223] : memref<4x2x16x8x64xf32, #tpu.memory_space<vmem>>, vector<1x2x1x8x64xf32>
    %311 = vector.shape_cast %310 : vector<1x2x1x8x64xf32> to vector<2x8x64xf32>
    %312 = arith.addf %309, %311 : vector<2x8x64xf32>
    %313 = vector.extract_strided_slice %305 {offsets = [0, 0, 0], sizes = [2, 1, 8], strides = [1, 1, 1]} : vector<2x16x8xf32> to vector<2x1x8xf32>
    %314 = vector.shape_cast %313 : vector<2x1x8xf32> to vector<2x8xf32>
    %315 = vector.shape_cast %314 : vector<2x8xf32> to vector<2x8x1xf32>
    %316 = vector.broadcast %315 : vector<2x8x1xf32> to vector<2x8x64xf32>
    %317 = arith.mulf %316, %312 : vector<2x8x64xf32>
    %cst_224 = arith.constant dense<0.000000e+00> : vector<2x64xf32>
    %318 = vector.multi_reduction <add>, %317, %cst_224 [1] : vector<2x8x64xf32> to vector<2x64xf32>
    %319 = arith.addf %124, %318 : vector<2x64xf32>
    %c1_225 = arith.constant 1 : index
    %c0_226 = arith.constant 0 : index
    %c4_227 = arith.constant 4 : index
    %c0_228 = arith.constant 0 : index
    %c0_229 = arith.constant 0 : index
    %320 = vector.load %arg16[%c1_225, %c0_226, %c4_227, %c0_228, %c0_229] : memref<4x2x16x8x64xf32, #tpu.memory_space<vmem>>, vector<1x2x1x8x64xf32>
    %321 = vector.shape_cast %320 : vector<1x2x1x8x64xf32> to vector<2x8x64xf32>
    %322 = arith.mulf %321, %312 : vector<2x8x64xf32>
    %c1_230 = arith.constant 1 : index
    %c0_231 = arith.constant 0 : index
    %c4_232 = arith.constant 4 : index
    %c0_233 = arith.constant 0 : index
    %c0_234 = arith.constant 0 : index
    %323 = vector.load %arg17[%c1_230, %c0_231, %c4_232, %c0_233, %c0_234] : memref<4x2x16x8x64xf32, #tpu.memory_space<vmem>>, vector<1x2x1x8x64xf32>
    %324 = vector.shape_cast %323 : vector<1x2x1x8x64xf32> to vector<2x8x64xf32>
    %325 = arith.addf %322, %324 : vector<2x8x64xf32>
    %326 = vector.extract_strided_slice %305 {offsets = [0, 4, 0], sizes = [2, 1, 8], strides = [1, 1, 1]} : vector<2x16x8xf32> to vector<2x1x8xf32>
    %327 = vector.shape_cast %326 : vector<2x1x8xf32> to vector<2x8xf32>
    %328 = vector.shape_cast %327 : vector<2x8xf32> to vector<2x8x1xf32>
    %329 = vector.broadcast %328 : vector<2x8x1xf32> to vector<2x8x64xf32>
    %330 = arith.mulf %329, %325 : vector<2x8x64xf32>
    %cst_235 = arith.constant dense<0.000000e+00> : vector<2x64xf32>
    %331 = vector.multi_reduction <add>, %330, %cst_235 [1] : vector<2x8x64xf32> to vector<2x64xf32>
    %332 = arith.addf %172, %331 : vector<2x64xf32>
    %c1_236 = arith.constant 1 : index
    %c0_237 = arith.constant 0 : index
    %c8_238 = arith.constant 8 : index
    %c0_239 = arith.constant 0 : index
    %c0_240 = arith.constant 0 : index
    %333 = vector.load %arg16[%c1_236, %c0_237, %c8_238, %c0_239, %c0_240] : memref<4x2x16x8x64xf32, #tpu.memory_space<vmem>>, vector<1x2x1x8x64xf32>
    %334 = vector.shape_cast %333 : vector<1x2x1x8x64xf32> to vector<2x8x64xf32>
    %335 = arith.mulf %334, %325 : vector<2x8x64xf32>
    %c1_241 = arith.constant 1 : index
    %c0_242 = arith.constant 0 : index
    %c8_243 = arith.constant 8 : index
    %c0_244 = arith.constant 0 : index
    %c0_245 = arith.constant 0 : index
    %336 = vector.load %arg17[%c1_241, %c0_242, %c8_243, %c0_244, %c0_245] : memref<4x2x16x8x64xf32, #tpu.memory_space<vmem>>, vector<1x2x1x8x64xf32>
    %337 = vector.shape_cast %336 : vector<1x2x1x8x64xf32> to vector<2x8x64xf32>
    %338 = arith.addf %335, %337 : vector<2x8x64xf32>
    %339 = vector.extract_strided_slice %305 {offsets = [0, 8, 0], sizes = [2, 1, 8], strides = [1, 1, 1]} : vector<2x16x8xf32> to vector<2x1x8xf32>
    %340 = vector.shape_cast %339 : vector<2x1x8xf32> to vector<2x8xf32>
    %341 = vector.shape_cast %340 : vector<2x8xf32> to vector<2x8x1xf32>
    %342 = vector.broadcast %341 : vector<2x8x1xf32> to vector<2x8x64xf32>
    %343 = arith.mulf %342, %338 : vector<2x8x64xf32>
    %cst_246 = arith.constant dense<0.000000e+00> : vector<2x64xf32>
    %344 = vector.multi_reduction <add>, %343, %cst_246 [1] : vector<2x8x64xf32> to vector<2x64xf32>
    %345 = arith.addf %220, %344 : vector<2x64xf32>
    %c1_247 = arith.constant 1 : index
    %c0_248 = arith.constant 0 : index
    %c12_249 = arith.constant 12 : index
    %c0_250 = arith.constant 0 : index
    %c0_251 = arith.constant 0 : index
    %346 = vector.load %arg16[%c1_247, %c0_248, %c12_249, %c0_250, %c0_251] : memref<4x2x16x8x64xf32, #tpu.memory_space<vmem>>, vector<1x2x1x8x64xf32>
    %347 = vector.shape_cast %346 : vector<1x2x1x8x64xf32> to vector<2x8x64xf32>
    %348 = arith.mulf %347, %338 : vector<2x8x64xf32>
    %c1_252 = arith.constant 1 : index
    %c0_253 = arith.constant 0 : index
    %c12_254 = arith.constant 12 : index
    %c0_255 = arith.constant 0 : index
    %c0_256 = arith.constant 0 : index
    %349 = vector.load %arg17[%c1_252, %c0_253, %c12_254, %c0_255, %c0_256] : memref<4x2x16x8x64xf32, #tpu.memory_space<vmem>>, vector<1x2x1x8x64xf32>
    %350 = vector.shape_cast %349 : vector<1x2x1x8x64xf32> to vector<2x8x64xf32>
    %351 = arith.addf %348, %350 : vector<2x8x64xf32>
    %352 = vector.extract_strided_slice %305 {offsets = [0, 12, 0], sizes = [2, 1, 8], strides = [1, 1, 1]} : vector<2x16x8xf32> to vector<2x1x8xf32>
    %353 = vector.shape_cast %352 : vector<2x1x8xf32> to vector<2x8xf32>
    %354 = vector.shape_cast %353 : vector<2x8xf32> to vector<2x8x1xf32>
    %355 = vector.broadcast %354 : vector<2x8x1xf32> to vector<2x8x64xf32>
    %356 = arith.mulf %355, %351 : vector<2x8x64xf32>
    %cst_257 = arith.constant dense<0.000000e+00> : vector<2x64xf32>
    %357 = vector.multi_reduction <add>, %356, %cst_257 [1] : vector<2x8x64xf32> to vector<2x64xf32>
    %358 = arith.addf %268, %357 : vector<2x64xf32>
    %c1_258 = arith.constant 1 : index
    %c0_259 = arith.constant 0 : index
    %c1_260 = arith.constant 1 : index
    %c0_261 = arith.constant 0 : index
    %c0_262 = arith.constant 0 : index
    %359 = vector.load %arg16[%c1_258, %c0_259, %c1_260, %c0_261, %c0_262] : memref<4x2x16x8x64xf32, #tpu.memory_space<vmem>>, vector<1x2x1x8x64xf32>
    %360 = vector.shape_cast %359 : vector<1x2x1x8x64xf32> to vector<2x8x64xf32>
    %361 = arith.mulf %360, %351 : vector<2x8x64xf32>
    %c1_263 = arith.constant 1 : index
    %c0_264 = arith.constant 0 : index
    %c1_265 = arith.constant 1 : index
    %c0_266 = arith.constant 0 : index
    %c0_267 = arith.constant 0 : index
    %362 = vector.load %arg17[%c1_263, %c0_264, %c1_265, %c0_266, %c0_267] : memref<4x2x16x8x64xf32, #tpu.memory_space<vmem>>, vector<1x2x1x8x64xf32>
    %363 = vector.shape_cast %362 : vector<1x2x1x8x64xf32> to vector<2x8x64xf32>
    %364 = arith.addf %361, %363 : vector<2x8x64xf32>
    %365 = vector.extract_strided_slice %305 {offsets = [0, 1, 0], sizes = [2, 1, 8], strides = [1, 1, 1]} : vector<2x16x8xf32> to vector<2x1x8xf32>
    %366 = vector.shape_cast %365 : vector<2x1x8xf32> to vector<2x8xf32>
    %367 = vector.shape_cast %366 : vector<2x8xf32> to vector<2x8x1xf32>
    %368 = vector.broadcast %367 : vector<2x8x1xf32> to vector<2x8x64xf32>
    %369 = arith.mulf %368, %364 : vector<2x8x64xf32>
    %cst_268 = arith.constant dense<0.000000e+00> : vector<2x64xf32>
    %370 = vector.multi_reduction <add>, %369, %cst_268 [1] : vector<2x8x64xf32> to vector<2x64xf32>
    %371 = arith.addf %136, %370 : vector<2x64xf32>
    %c1_269 = arith.constant 1 : index
    %c0_270 = arith.constant 0 : index
    %c5_271 = arith.constant 5 : index
    %c0_272 = arith.constant 0 : index
    %c0_273 = arith.constant 0 : index
    %372 = vector.load %arg16[%c1_269, %c0_270, %c5_271, %c0_272, %c0_273] : memref<4x2x16x8x64xf32, #tpu.memory_space<vmem>>, vector<1x2x1x8x64xf32>
    %373 = vector.shape_cast %372 : vector<1x2x1x8x64xf32> to vector<2x8x64xf32>
    %374 = arith.mulf %373, %364 : vector<2x8x64xf32>
    %c1_274 = arith.constant 1 : index
    %c0_275 = arith.constant 0 : index
    %c5_276 = arith.constant 5 : index
    %c0_277 = arith.constant 0 : index
    %c0_278 = arith.constant 0 : index
    %375 = vector.load %arg17[%c1_274, %c0_275, %c5_276, %c0_277, %c0_278] : memref<4x2x16x8x64xf32, #tpu.memory_space<vmem>>, vector<1x2x1x8x64xf32>
    %376 = vector.shape_cast %375 : vector<1x2x1x8x64xf32> to vector<2x8x64xf32>
    %377 = arith.addf %374, %376 : vector<2x8x64xf32>
    %378 = vector.extract_strided_slice %305 {offsets = [0, 5, 0], sizes = [2, 1, 8], strides = [1, 1, 1]} : vector<2x16x8xf32> to vector<2x1x8xf32>
    %379 = vector.shape_cast %378 : vector<2x1x8xf32> to vector<2x8xf32>
    %380 = vector.shape_cast %379 : vector<2x8xf32> to vector<2x8x1xf32>
    %381 = vector.broadcast %380 : vector<2x8x1xf32> to vector<2x8x64xf32>
    %382 = arith.mulf %381, %377 : vector<2x8x64xf32>
    %cst_279 = arith.constant dense<0.000000e+00> : vector<2x64xf32>
    %383 = vector.multi_reduction <add>, %382, %cst_279 [1] : vector<2x8x64xf32> to vector<2x64xf32>
    %384 = arith.addf %184, %383 : vector<2x64xf32>
    %c1_280 = arith.constant 1 : index
    %c0_281 = arith.constant 0 : index
    %c9_282 = arith.constant 9 : index
    %c0_283 = arith.constant 0 : index
    %c0_284 = arith.constant 0 : index
    %385 = vector.load %arg16[%c1_280, %c0_281, %c9_282, %c0_283, %c0_284] : memref<4x2x16x8x64xf32, #tpu.memory_space<vmem>>, vector<1x2x1x8x64xf32>
    %386 = vector.shape_cast %385 : vector<1x2x1x8x64xf32> to vector<2x8x64xf32>
    %387 = arith.mulf %386, %377 : vector<2x8x64xf32>
    %c1_285 = arith.constant 1 : index
    %c0_286 = arith.constant 0 : index
    %c9_287 = arith.constant 9 : index
    %c0_288 = arith.constant 0 : index
    %c0_289 = arith.constant 0 : index
    %388 = vector.load %arg17[%c1_285, %c0_286, %c9_287, %c0_288, %c0_289] : memref<4x2x16x8x64xf32, #tpu.memory_space<vmem>>, vector<1x2x1x8x64xf32>
    %389 = vector.shape_cast %388 : vector<1x2x1x8x64xf32> to vector<2x8x64xf32>
    %390 = arith.addf %387, %389 : vector<2x8x64xf32>
    %391 = vector.extract_strided_slice %305 {offsets = [0, 9, 0], sizes = [2, 1, 8], strides = [1, 1, 1]} : vector<2x16x8xf32> to vector<2x1x8xf32>
    %392 = vector.shape_cast %391 : vector<2x1x8xf32> to vector<2x8xf32>
    %393 = vector.shape_cast %392 : vector<2x8xf32> to vector<2x8x1xf32>
    %394 = vector.broadcast %393 : vector<2x8x1xf32> to vector<2x8x64xf32>
    %395 = arith.mulf %394, %390 : vector<2x8x64xf32>
    %cst_290 = arith.constant dense<0.000000e+00> : vector<2x64xf32>
    %396 = vector.multi_reduction <add>, %395, %cst_290 [1] : vector<2x8x64xf32> to vector<2x64xf32>
    %397 = arith.addf %232, %396 : vector<2x64xf32>
    %c1_291 = arith.constant 1 : index
    %c0_292 = arith.constant 0 : index
    %c13_293 = arith.constant 13 : index
    %c0_294 = arith.constant 0 : index
    %c0_295 = arith.constant 0 : index
    %398 = vector.load %arg16[%c1_291, %c0_292, %c13_293, %c0_294, %c0_295] : memref<4x2x16x8x64xf32, #tpu.memory_space<vmem>>, vector<1x2x1x8x64xf32>
    %399 = vector.shape_cast %398 : vector<1x2x1x8x64xf32> to vector<2x8x64xf32>
    %400 = arith.mulf %399, %390 : vector<2x8x64xf32>
    %c1_296 = arith.constant 1 : index
    %c0_297 = arith.constant 0 : index
    %c13_298 = arith.constant 13 : index
    %c0_299 = arith.constant 0 : index
    %c0_300 = arith.constant 0 : index
    %401 = vector.load %arg17[%c1_296, %c0_297, %c13_298, %c0_299, %c0_300] : memref<4x2x16x8x64xf32, #tpu.memory_space<vmem>>, vector<1x2x1x8x64xf32>
    %402 = vector.shape_cast %401 : vector<1x2x1x8x64xf32> to vector<2x8x64xf32>
    %403 = arith.addf %400, %402 : vector<2x8x64xf32>
    %404 = vector.extract_strided_slice %305 {offsets = [0, 13, 0], sizes = [2, 1, 8], strides = [1, 1, 1]} : vector<2x16x8xf32> to vector<2x1x8xf32>
    %405 = vector.shape_cast %404 : vector<2x1x8xf32> to vector<2x8xf32>
    %406 = vector.shape_cast %405 : vector<2x8xf32> to vector<2x8x1xf32>
    %407 = vector.broadcast %406 : vector<2x8x1xf32> to vector<2x8x64xf32>
    %408 = arith.mulf %407, %403 : vector<2x8x64xf32>
    %cst_301 = arith.constant dense<0.000000e+00> : vector<2x64xf32>
    %409 = vector.multi_reduction <add>, %408, %cst_301 [1] : vector<2x8x64xf32> to vector<2x64xf32>
    %410 = arith.addf %280, %409 : vector<2x64xf32>
    %c1_302 = arith.constant 1 : index
    %c0_303 = arith.constant 0 : index
    %c2_304 = arith.constant 2 : index
    %c0_305 = arith.constant 0 : index
    %c0_306 = arith.constant 0 : index
    %411 = vector.load %arg16[%c1_302, %c0_303, %c2_304, %c0_305, %c0_306] : memref<4x2x16x8x64xf32, #tpu.memory_space<vmem>>, vector<1x2x1x8x64xf32>
    %412 = vector.shape_cast %411 : vector<1x2x1x8x64xf32> to vector<2x8x64xf32>
    %413 = arith.mulf %412, %403 : vector<2x8x64xf32>
    %c1_307 = arith.constant 1 : index
    %c0_308 = arith.constant 0 : index
    %c2_309 = arith.constant 2 : index
    %c0_310 = arith.constant 0 : index
    %c0_311 = arith.constant 0 : index
    %414 = vector.load %arg17[%c1_307, %c0_308, %c2_309, %c0_310, %c0_311] : memref<4x2x16x8x64xf32, #tpu.memory_space<vmem>>, vector<1x2x1x8x64xf32>
    %415 = vector.shape_cast %414 : vector<1x2x1x8x64xf32> to vector<2x8x64xf32>
    %416 = arith.addf %413, %415 : vector<2x8x64xf32>
    %417 = vector.extract_strided_slice %305 {offsets = [0, 2, 0], sizes = [2, 1, 8], strides = [1, 1, 1]} : vector<2x16x8xf32> to vector<2x1x8xf32>
    %418 = vector.shape_cast %417 : vector<2x1x8xf32> to vector<2x8xf32>
    %419 = vector.shape_cast %418 : vector<2x8xf32> to vector<2x8x1xf32>
    %420 = vector.broadcast %419 : vector<2x8x1xf32> to vector<2x8x64xf32>
    %421 = arith.mulf %420, %416 : vector<2x8x64xf32>
    %cst_312 = arith.constant dense<0.000000e+00> : vector<2x64xf32>
    %422 = vector.multi_reduction <add>, %421, %cst_312 [1] : vector<2x8x64xf32> to vector<2x64xf32>
    %423 = arith.addf %148, %422 : vector<2x64xf32>
    %c1_313 = arith.constant 1 : index
    %c0_314 = arith.constant 0 : index
    %c6_315 = arith.constant 6 : index
    %c0_316 = arith.constant 0 : index
    %c0_317 = arith.constant 0 : index
    %424 = vector.load %arg16[%c1_313, %c0_314, %c6_315, %c0_316, %c0_317] : memref<4x2x16x8x64xf32, #tpu.memory_space<vmem>>, vector<1x2x1x8x64xf32>
    %425 = vector.shape_cast %424 : vector<1x2x1x8x64xf32> to vector<2x8x64xf32>
    %426 = arith.mulf %425, %416 : vector<2x8x64xf32>
    %c1_318 = arith.constant 1 : index
    %c0_319 = arith.constant 0 : index
    %c6_320 = arith.constant 6 : index
    %c0_321 = arith.constant 0 : index
    %c0_322 = arith.constant 0 : index
    %427 = vector.load %arg17[%c1_318, %c0_319, %c6_320, %c0_321, %c0_322] : memref<4x2x16x8x64xf32, #tpu.memory_space<vmem>>, vector<1x2x1x8x64xf32>
    %428 = vector.shape_cast %427 : vector<1x2x1x8x64xf32> to vector<2x8x64xf32>
    %429 = arith.addf %426, %428 : vector<2x8x64xf32>
    %430 = vector.extract_strided_slice %305 {offsets = [0, 6, 0], sizes = [2, 1, 8], strides = [1, 1, 1]} : vector<2x16x8xf32> to vector<2x1x8xf32>
    %431 = vector.shape_cast %430 : vector<2x1x8xf32> to vector<2x8xf32>
    %432 = vector.shape_cast %431 : vector<2x8xf32> to vector<2x8x1xf32>
    %433 = vector.broadcast %432 : vector<2x8x1xf32> to vector<2x8x64xf32>
    %434 = arith.mulf %433, %429 : vector<2x8x64xf32>
    %cst_323 = arith.constant dense<0.000000e+00> : vector<2x64xf32>
    %435 = vector.multi_reduction <add>, %434, %cst_323 [1] : vector<2x8x64xf32> to vector<2x64xf32>
    %436 = arith.addf %196, %435 : vector<2x64xf32>
    %c1_324 = arith.constant 1 : index
    %c0_325 = arith.constant 0 : index
    %c10_326 = arith.constant 10 : index
    %c0_327 = arith.constant 0 : index
    %c0_328 = arith.constant 0 : index
    %437 = vector.load %arg16[%c1_324, %c0_325, %c10_326, %c0_327, %c0_328] : memref<4x2x16x8x64xf32, #tpu.memory_space<vmem>>, vector<1x2x1x8x64xf32>
    %438 = vector.shape_cast %437 : vector<1x2x1x8x64xf32> to vector<2x8x64xf32>
    %439 = arith.mulf %438, %429 : vector<2x8x64xf32>
    %c1_329 = arith.constant 1 : index
    %c0_330 = arith.constant 0 : index
    %c10_331 = arith.constant 10 : index
    %c0_332 = arith.constant 0 : index
    %c0_333 = arith.constant 0 : index
    %440 = vector.load %arg17[%c1_329, %c0_330, %c10_331, %c0_332, %c0_333] : memref<4x2x16x8x64xf32, #tpu.memory_space<vmem>>, vector<1x2x1x8x64xf32>
    %441 = vector.shape_cast %440 : vector<1x2x1x8x64xf32> to vector<2x8x64xf32>
    %442 = arith.addf %439, %441 : vector<2x8x64xf32>
    %443 = vector.extract_strided_slice %305 {offsets = [0, 10, 0], sizes = [2, 1, 8], strides = [1, 1, 1]} : vector<2x16x8xf32> to vector<2x1x8xf32>
    %444 = vector.shape_cast %443 : vector<2x1x8xf32> to vector<2x8xf32>
    %445 = vector.shape_cast %444 : vector<2x8xf32> to vector<2x8x1xf32>
    %446 = vector.broadcast %445 : vector<2x8x1xf32> to vector<2x8x64xf32>
    %447 = arith.mulf %446, %442 : vector<2x8x64xf32>
    %cst_334 = arith.constant dense<0.000000e+00> : vector<2x64xf32>
    %448 = vector.multi_reduction <add>, %447, %cst_334 [1] : vector<2x8x64xf32> to vector<2x64xf32>
    %449 = arith.addf %244, %448 : vector<2x64xf32>
    %c1_335 = arith.constant 1 : index
    %c0_336 = arith.constant 0 : index
    %c14_337 = arith.constant 14 : index
    %c0_338 = arith.constant 0 : index
    %c0_339 = arith.constant 0 : index
    %450 = vector.load %arg16[%c1_335, %c0_336, %c14_337, %c0_338, %c0_339] : memref<4x2x16x8x64xf32, #tpu.memory_space<vmem>>, vector<1x2x1x8x64xf32>
    %451 = vector.shape_cast %450 : vector<1x2x1x8x64xf32> to vector<2x8x64xf32>
    %452 = arith.mulf %451, %442 : vector<2x8x64xf32>
    %c1_340 = arith.constant 1 : index
    %c0_341 = arith.constant 0 : index
    %c14_342 = arith.constant 14 : index
    %c0_343 = arith.constant 0 : index
    %c0_344 = arith.constant 0 : index
    %453 = vector.load %arg17[%c1_340, %c0_341, %c14_342, %c0_343, %c0_344] : memref<4x2x16x8x64xf32, #tpu.memory_space<vmem>>, vector<1x2x1x8x64xf32>
    %454 = vector.shape_cast %453 : vector<1x2x1x8x64xf32> to vector<2x8x64xf32>
    %455 = arith.addf %452, %454 : vector<2x8x64xf32>
    %456 = vector.extract_strided_slice %305 {offsets = [0, 14, 0], sizes = [2, 1, 8], strides = [1, 1, 1]} : vector<2x16x8xf32> to vector<2x1x8xf32>
    %457 = vector.shape_cast %456 : vector<2x1x8xf32> to vector<2x8xf32>
    %458 = vector.shape_cast %457 : vector<2x8xf32> to vector<2x8x1xf32>
    %459 = vector.broadcast %458 : vector<2x8x1xf32> to vector<2x8x64xf32>
    %460 = arith.mulf %459, %455 : vector<2x8x64xf32>
    %cst_345 = arith.constant dense<0.000000e+00> : vector<2x64xf32>
    %461 = vector.multi_reduction <add>, %460, %cst_345 [1] : vector<2x8x64xf32> to vector<2x64xf32>
    %462 = arith.addf %292, %461 : vector<2x64xf32>
    %c1_346 = arith.constant 1 : index
    %c0_347 = arith.constant 0 : index
    %c3_348 = arith.constant 3 : index
    %c0_349 = arith.constant 0 : index
    %c0_350 = arith.constant 0 : index
    %463 = vector.load %arg16[%c1_346, %c0_347, %c3_348, %c0_349, %c0_350] : memref<4x2x16x8x64xf32, #tpu.memory_space<vmem>>, vector<1x2x1x8x64xf32>
    %464 = vector.shape_cast %463 : vector<1x2x1x8x64xf32> to vector<2x8x64xf32>
    %465 = arith.mulf %464, %455 : vector<2x8x64xf32>
    %c1_351 = arith.constant 1 : index
    %c0_352 = arith.constant 0 : index
    %c3_353 = arith.constant 3 : index
    %c0_354 = arith.constant 0 : index
    %c0_355 = arith.constant 0 : index
    %466 = vector.load %arg17[%c1_351, %c0_352, %c3_353, %c0_354, %c0_355] : memref<4x2x16x8x64xf32, #tpu.memory_space<vmem>>, vector<1x2x1x8x64xf32>
    %467 = vector.shape_cast %466 : vector<1x2x1x8x64xf32> to vector<2x8x64xf32>
    %468 = arith.addf %465, %467 : vector<2x8x64xf32>
    %469 = vector.extract_strided_slice %305 {offsets = [0, 3, 0], sizes = [2, 1, 8], strides = [1, 1, 1]} : vector<2x16x8xf32> to vector<2x1x8xf32>
    %470 = vector.shape_cast %469 : vector<2x1x8xf32> to vector<2x8xf32>
    %471 = vector.shape_cast %470 : vector<2x8xf32> to vector<2x8x1xf32>
    %472 = vector.broadcast %471 : vector<2x8x1xf32> to vector<2x8x64xf32>
    %473 = arith.mulf %472, %468 : vector<2x8x64xf32>
    %cst_356 = arith.constant dense<0.000000e+00> : vector<2x64xf32>
    %474 = vector.multi_reduction <add>, %473, %cst_356 [1] : vector<2x8x64xf32> to vector<2x64xf32>
    %475 = arith.addf %160, %474 : vector<2x64xf32>
    %c1_357 = arith.constant 1 : index
    %c0_358 = arith.constant 0 : index
    %c7_359 = arith.constant 7 : index
    %c0_360 = arith.constant 0 : index
    %c0_361 = arith.constant 0 : index
    %476 = vector.load %arg16[%c1_357, %c0_358, %c7_359, %c0_360, %c0_361] : memref<4x2x16x8x64xf32, #tpu.memory_space<vmem>>, vector<1x2x1x8x64xf32>
    %477 = vector.shape_cast %476 : vector<1x2x1x8x64xf32> to vector<2x8x64xf32>
    %478 = arith.mulf %477, %468 : vector<2x8x64xf32>
    %c1_362 = arith.constant 1 : index
    %c0_363 = arith.constant 0 : index
    %c7_364 = arith.constant 7 : index
    %c0_365 = arith.constant 0 : index
    %c0_366 = arith.constant 0 : index
    %479 = vector.load %arg17[%c1_362, %c0_363, %c7_364, %c0_365, %c0_366] : memref<4x2x16x8x64xf32, #tpu.memory_space<vmem>>, vector<1x2x1x8x64xf32>
    %480 = vector.shape_cast %479 : vector<1x2x1x8x64xf32> to vector<2x8x64xf32>
    %481 = arith.addf %478, %480 : vector<2x8x64xf32>
    %482 = vector.extract_strided_slice %305 {offsets = [0, 7, 0], sizes = [2, 1, 8], strides = [1, 1, 1]} : vector<2x16x8xf32> to vector<2x1x8xf32>
    %483 = vector.shape_cast %482 : vector<2x1x8xf32> to vector<2x8xf32>
    %484 = vector.shape_cast %483 : vector<2x8xf32> to vector<2x8x1xf32>
    %485 = vector.broadcast %484 : vector<2x8x1xf32> to vector<2x8x64xf32>
    %486 = arith.mulf %485, %481 : vector<2x8x64xf32>
    %cst_367 = arith.constant dense<0.000000e+00> : vector<2x64xf32>
    %487 = vector.multi_reduction <add>, %486, %cst_367 [1] : vector<2x8x64xf32> to vector<2x64xf32>
    %488 = arith.addf %208, %487 : vector<2x64xf32>
    %c1_368 = arith.constant 1 : index
    %c0_369 = arith.constant 0 : index
    %c11_370 = arith.constant 11 : index
    %c0_371 = arith.constant 0 : index
    %c0_372 = arith.constant 0 : index
    %489 = vector.load %arg16[%c1_368, %c0_369, %c11_370, %c0_371, %c0_372] : memref<4x2x16x8x64xf32, #tpu.memory_space<vmem>>, vector<1x2x1x8x64xf32>
    %490 = vector.shape_cast %489 : vector<1x2x1x8x64xf32> to vector<2x8x64xf32>
    %491 = arith.mulf %490, %481 : vector<2x8x64xf32>
    %c1_373 = arith.constant 1 : index
    %c0_374 = arith.constant 0 : index
    %c11_375 = arith.constant 11 : index
    %c0_376 = arith.constant 0 : index
    %c0_377 = arith.constant 0 : index
    %492 = vector.load %arg17[%c1_373, %c0_374, %c11_375, %c0_376, %c0_377] : memref<4x2x16x8x64xf32, #tpu.memory_space<vmem>>, vector<1x2x1x8x64xf32>
    %493 = vector.shape_cast %492 : vector<1x2x1x8x64xf32> to vector<2x8x64xf32>
    %494 = arith.addf %491, %493 : vector<2x8x64xf32>
    %495 = vector.extract_strided_slice %305 {offsets = [0, 11, 0], sizes = [2, 1, 8], strides = [1, 1, 1]} : vector<2x16x8xf32> to vector<2x1x8xf32>
    %496 = vector.shape_cast %495 : vector<2x1x8xf32> to vector<2x8xf32>
    %497 = vector.shape_cast %496 : vector<2x8xf32> to vector<2x8x1xf32>
    %498 = vector.broadcast %497 : vector<2x8x1xf32> to vector<2x8x64xf32>
    %499 = arith.mulf %498, %494 : vector<2x8x64xf32>
    %cst_378 = arith.constant dense<0.000000e+00> : vector<2x64xf32>
    %500 = vector.multi_reduction <add>, %499, %cst_378 [1] : vector<2x8x64xf32> to vector<2x64xf32>
    %501 = arith.addf %256, %500 : vector<2x64xf32>
    %c1_379 = arith.constant 1 : index
    %c0_380 = arith.constant 0 : index
    %c15_381 = arith.constant 15 : index
    %c0_382 = arith.constant 0 : index
    %c0_383 = arith.constant 0 : index
    %502 = vector.load %arg16[%c1_379, %c0_380, %c15_381, %c0_382, %c0_383] : memref<4x2x16x8x64xf32, #tpu.memory_space<vmem>>, vector<1x2x1x8x64xf32>
    %503 = vector.shape_cast %502 : vector<1x2x1x8x64xf32> to vector<2x8x64xf32>
    %504 = arith.mulf %503, %494 : vector<2x8x64xf32>
    %c1_384 = arith.constant 1 : index
    %c0_385 = arith.constant 0 : index
    %c15_386 = arith.constant 15 : index
    %c0_387 = arith.constant 0 : index
    %c0_388 = arith.constant 0 : index
    %505 = vector.load %arg17[%c1_384, %c0_385, %c15_386, %c0_387, %c0_388] : memref<4x2x16x8x64xf32, #tpu.memory_space<vmem>>, vector<1x2x1x8x64xf32>
    %506 = vector.shape_cast %505 : vector<1x2x1x8x64xf32> to vector<2x8x64xf32>
    %507 = arith.addf %504, %506 : vector<2x8x64xf32>
    %508 = vector.extract_strided_slice %305 {offsets = [0, 15, 0], sizes = [2, 1, 8], strides = [1, 1, 1]} : vector<2x16x8xf32> to vector<2x1x8xf32>
    %509 = vector.shape_cast %508 : vector<2x1x8xf32> to vector<2x8xf32>
    %510 = vector.shape_cast %509 : vector<2x8xf32> to vector<2x8x1xf32>
    %511 = vector.broadcast %510 : vector<2x8x1xf32> to vector<2x8x64xf32>
    %512 = arith.mulf %511, %507 : vector<2x8x64xf32>
    %cst_389 = arith.constant dense<0.000000e+00> : vector<2x64xf32>
    %513 = vector.multi_reduction <add>, %512, %cst_389 [1] : vector<2x8x64xf32> to vector<2x64xf32>
    %514 = arith.addf %304, %513 : vector<2x64xf32>
    %515 = vector.extract_strided_slice %20 {offsets = [0, 0, 40], sizes = [2, 16, 8], strides = [1, 1, 1]} : vector<2x16x64xf32> to vector<2x16x8xf32>
    %cst_390 = arith.constant 0.000000e+00 : f32
    %516 = vector.broadcast %cst_390 : f32 to vector<2x8x64xf32>
    %c2_391 = arith.constant 2 : index
    %c0_392 = arith.constant 0 : index
    %c15_393 = arith.constant 15 : index
    %c0_394 = arith.constant 0 : index
    %c0_395 = arith.constant 0 : index
    %517 = vector.load %arg16[%c2_391, %c0_392, %c15_393, %c0_394, %c0_395] : memref<4x2x16x8x64xf32, #tpu.memory_space<vmem>>, vector<1x2x1x8x64xf32>
    %518 = vector.shape_cast %517 : vector<1x2x1x8x64xf32> to vector<2x8x64xf32>
    %519 = arith.mulf %518, %516 : vector<2x8x64xf32>
    %c2_396 = arith.constant 2 : index
    %c0_397 = arith.constant 0 : index
    %c15_398 = arith.constant 15 : index
    %c0_399 = arith.constant 0 : index
    %c0_400 = arith.constant 0 : index
    %520 = vector.load %arg17[%c2_396, %c0_397, %c15_398, %c0_399, %c0_400] : memref<4x2x16x8x64xf32, #tpu.memory_space<vmem>>, vector<1x2x1x8x64xf32>
    %521 = vector.shape_cast %520 : vector<1x2x1x8x64xf32> to vector<2x8x64xf32>
    %522 = arith.addf %519, %521 : vector<2x8x64xf32>
    %523 = vector.extract_strided_slice %515 {offsets = [0, 15, 0], sizes = [2, 1, 8], strides = [1, 1, 1]} : vector<2x16x8xf32> to vector<2x1x8xf32>
    %524 = vector.shape_cast %523 : vector<2x1x8xf32> to vector<2x8xf32>
    %525 = vector.shape_cast %524 : vector<2x8xf32> to vector<2x8x1xf32>
    %526 = vector.broadcast %525 : vector<2x8x1xf32> to vector<2x8x64xf32>
    %527 = arith.mulf %526, %522 : vector<2x8x64xf32>
    %cst_401 = arith.constant dense<0.000000e+00> : vector<2x64xf32>
    %528 = vector.multi_reduction <add>, %527, %cst_401 [1] : vector<2x8x64xf32> to vector<2x64xf32>
    %529 = arith.addf %514, %528 : vector<2x64xf32>
    %c2_402 = arith.constant 2 : index
    %c0_403 = arith.constant 0 : index
    %c14_404 = arith.constant 14 : index
    %c0_405 = arith.constant 0 : index
    %c0_406 = arith.constant 0 : index
    %530 = vector.load %arg16[%c2_402, %c0_403, %c14_404, %c0_405, %c0_406] : memref<4x2x16x8x64xf32, #tpu.memory_space<vmem>>, vector<1x2x1x8x64xf32>
    %531 = vector.shape_cast %530 : vector<1x2x1x8x64xf32> to vector<2x8x64xf32>
    %532 = arith.mulf %531, %522 : vector<2x8x64xf32>
    %c2_407 = arith.constant 2 : index
    %c0_408 = arith.constant 0 : index
    %c14_409 = arith.constant 14 : index
    %c0_410 = arith.constant 0 : index
    %c0_411 = arith.constant 0 : index
    %533 = vector.load %arg17[%c2_407, %c0_408, %c14_409, %c0_410, %c0_411] : memref<4x2x16x8x64xf32, #tpu.memory_space<vmem>>, vector<1x2x1x8x64xf32>
    %534 = vector.shape_cast %533 : vector<1x2x1x8x64xf32> to vector<2x8x64xf32>
    %535 = arith.addf %532, %534 : vector<2x8x64xf32>
    %536 = vector.extract_strided_slice %515 {offsets = [0, 14, 0], sizes = [2, 1, 8], strides = [1, 1, 1]} : vector<2x16x8xf32> to vector<2x1x8xf32>
    %537 = vector.shape_cast %536 : vector<2x1x8xf32> to vector<2x8xf32>
    %538 = vector.shape_cast %537 : vector<2x8xf32> to vector<2x8x1xf32>
    %539 = vector.broadcast %538 : vector<2x8x1xf32> to vector<2x8x64xf32>
    %540 = arith.mulf %539, %535 : vector<2x8x64xf32>
    %cst_412 = arith.constant dense<0.000000e+00> : vector<2x64xf32>
    %541 = vector.multi_reduction <add>, %540, %cst_412 [1] : vector<2x8x64xf32> to vector<2x64xf32>
    %542 = arith.addf %462, %541 : vector<2x64xf32>
    %c2_413 = arith.constant 2 : index
    %c0_414 = arith.constant 0 : index
    %c13_415 = arith.constant 13 : index
    %c0_416 = arith.constant 0 : index
    %c0_417 = arith.constant 0 : index
    %543 = vector.load %arg16[%c2_413, %c0_414, %c13_415, %c0_416, %c0_417] : memref<4x2x16x8x64xf32, #tpu.memory_space<vmem>>, vector<1x2x1x8x64xf32>
    %544 = vector.shape_cast %543 : vector<1x2x1x8x64xf32> to vector<2x8x64xf32>
    %545 = arith.mulf %544, %535 : vector<2x8x64xf32>
    %c2_418 = arith.constant 2 : index
    %c0_419 = arith.constant 0 : index
    %c13_420 = arith.constant 13 : index
    %c0_421 = arith.constant 0 : index
    %c0_422 = arith.constant 0 : index
    %546 = vector.load %arg17[%c2_418, %c0_419, %c13_420, %c0_421, %c0_422] : memref<4x2x16x8x64xf32, #tpu.memory_space<vmem>>, vector<1x2x1x8x64xf32>
    %547 = vector.shape_cast %546 : vector<1x2x1x8x64xf32> to vector<2x8x64xf32>
    %548 = arith.addf %545, %547 : vector<2x8x64xf32>
    %549 = vector.extract_strided_slice %515 {offsets = [0, 13, 0], sizes = [2, 1, 8], strides = [1, 1, 1]} : vector<2x16x8xf32> to vector<2x1x8xf32>
    %550 = vector.shape_cast %549 : vector<2x1x8xf32> to vector<2x8xf32>
    %551 = vector.shape_cast %550 : vector<2x8xf32> to vector<2x8x1xf32>
    %552 = vector.broadcast %551 : vector<2x8x1xf32> to vector<2x8x64xf32>
    %553 = arith.mulf %552, %548 : vector<2x8x64xf32>
    %cst_423 = arith.constant dense<0.000000e+00> : vector<2x64xf32>
    %554 = vector.multi_reduction <add>, %553, %cst_423 [1] : vector<2x8x64xf32> to vector<2x64xf32>
    %555 = arith.addf %410, %554 : vector<2x64xf32>
    %c2_424 = arith.constant 2 : index
    %c0_425 = arith.constant 0 : index
    %c12_426 = arith.constant 12 : index
    %c0_427 = arith.constant 0 : index
    %c0_428 = arith.constant 0 : index
    %556 = vector.load %arg16[%c2_424, %c0_425, %c12_426, %c0_427, %c0_428] : memref<4x2x16x8x64xf32, #tpu.memory_space<vmem>>, vector<1x2x1x8x64xf32>
    %557 = vector.shape_cast %556 : vector<1x2x1x8x64xf32> to vector<2x8x64xf32>
    %558 = arith.mulf %557, %548 : vector<2x8x64xf32>
    %c2_429 = arith.constant 2 : index
    %c0_430 = arith.constant 0 : index
    %c12_431 = arith.constant 12 : index
    %c0_432 = arith.constant 0 : index
    %c0_433 = arith.constant 0 : index
    %559 = vector.load %arg17[%c2_429, %c0_430, %c12_431, %c0_432, %c0_433] : memref<4x2x16x8x64xf32, #tpu.memory_space<vmem>>, vector<1x2x1x8x64xf32>
    %560 = vector.shape_cast %559 : vector<1x2x1x8x64xf32> to vector<2x8x64xf32>
    %561 = arith.addf %558, %560 : vector<2x8x64xf32>
    %562 = vector.extract_strided_slice %515 {offsets = [0, 12, 0], sizes = [2, 1, 8], strides = [1, 1, 1]} : vector<2x16x8xf32> to vector<2x1x8xf32>
    %563 = vector.shape_cast %562 : vector<2x1x8xf32> to vector<2x8xf32>
    %564 = vector.shape_cast %563 : vector<2x8xf32> to vector<2x8x1xf32>
    %565 = vector.broadcast %564 : vector<2x8x1xf32> to vector<2x8x64xf32>
    %566 = arith.mulf %565, %561 : vector<2x8x64xf32>
    %cst_434 = arith.constant dense<0.000000e+00> : vector<2x64xf32>
    %567 = vector.multi_reduction <add>, %566, %cst_434 [1] : vector<2x8x64xf32> to vector<2x64xf32>
    %568 = arith.addf %358, %567 : vector<2x64xf32>
    %c2_435 = arith.constant 2 : index
    %c0_436 = arith.constant 0 : index
    %c11_437 = arith.constant 11 : index
    %c0_438 = arith.constant 0 : index
    %c0_439 = arith.constant 0 : index
    %569 = vector.load %arg16[%c2_435, %c0_436, %c11_437, %c0_438, %c0_439] : memref<4x2x16x8x64xf32, #tpu.memory_space<vmem>>, vector<1x2x1x8x64xf32>
    %570 = vector.shape_cast %569 : vector<1x2x1x8x64xf32> to vector<2x8x64xf32>
    %571 = arith.mulf %570, %561 : vector<2x8x64xf32>
    %c2_440 = arith.constant 2 : index
    %c0_441 = arith.constant 0 : index
    %c11_442 = arith.constant 11 : index
    %c0_443 = arith.constant 0 : index
    %c0_444 = arith.constant 0 : index
    %572 = vector.load %arg17[%c2_440, %c0_441, %c11_442, %c0_443, %c0_444] : memref<4x2x16x8x64xf32, #tpu.memory_space<vmem>>, vector<1x2x1x8x64xf32>
    %573 = vector.shape_cast %572 : vector<1x2x1x8x64xf32> to vector<2x8x64xf32>
    %574 = arith.addf %571, %573 : vector<2x8x64xf32>
    %575 = vector.extract_strided_slice %515 {offsets = [0, 11, 0], sizes = [2, 1, 8], strides = [1, 1, 1]} : vector<2x16x8xf32> to vector<2x1x8xf32>
    %576 = vector.shape_cast %575 : vector<2x1x8xf32> to vector<2x8xf32>
    %577 = vector.shape_cast %576 : vector<2x8xf32> to vector<2x8x1xf32>
    %578 = vector.broadcast %577 : vector<2x8x1xf32> to vector<2x8x64xf32>
    %579 = arith.mulf %578, %574 : vector<2x8x64xf32>
    %cst_445 = arith.constant dense<0.000000e+00> : vector<2x64xf32>
    %580 = vector.multi_reduction <add>, %579, %cst_445 [1] : vector<2x8x64xf32> to vector<2x64xf32>
    %581 = arith.addf %501, %580 : vector<2x64xf32>
    %c2_446 = arith.constant 2 : index
    %c0_447 = arith.constant 0 : index
    %c10_448 = arith.constant 10 : index
    %c0_449 = arith.constant 0 : index
    %c0_450 = arith.constant 0 : index
    %582 = vector.load %arg16[%c2_446, %c0_447, %c10_448, %c0_449, %c0_450] : memref<4x2x16x8x64xf32, #tpu.memory_space<vmem>>, vector<1x2x1x8x64xf32>
    %583 = vector.shape_cast %582 : vector<1x2x1x8x64xf32> to vector<2x8x64xf32>
    %584 = arith.mulf %583, %574 : vector<2x8x64xf32>
    %c2_451 = arith.constant 2 : index
    %c0_452 = arith.constant 0 : index
    %c10_453 = arith.constant 10 : index
    %c0_454 = arith.constant 0 : index
    %c0_455 = arith.constant 0 : index
    %585 = vector.load %arg17[%c2_451, %c0_452, %c10_453, %c0_454, %c0_455] : memref<4x2x16x8x64xf32, #tpu.memory_space<vmem>>, vector<1x2x1x8x64xf32>
    %586 = vector.shape_cast %585 : vector<1x2x1x8x64xf32> to vector<2x8x64xf32>
    %587 = arith.addf %584, %586 : vector<2x8x64xf32>
    %588 = vector.extract_strided_slice %515 {offsets = [0, 10, 0], sizes = [2, 1, 8], strides = [1, 1, 1]} : vector<2x16x8xf32> to vector<2x1x8xf32>
    %589 = vector.shape_cast %588 : vector<2x1x8xf32> to vector<2x8xf32>
    %590 = vector.shape_cast %589 : vector<2x8xf32> to vector<2x8x1xf32>
    %591 = vector.broadcast %590 : vector<2x8x1xf32> to vector<2x8x64xf32>
    %592 = arith.mulf %591, %587 : vector<2x8x64xf32>
    %cst_456 = arith.constant dense<0.000000e+00> : vector<2x64xf32>
    %593 = vector.multi_reduction <add>, %592, %cst_456 [1] : vector<2x8x64xf32> to vector<2x64xf32>
    %594 = arith.addf %449, %593 : vector<2x64xf32>
    %c2_457 = arith.constant 2 : index
    %c0_458 = arith.constant 0 : index
    %c9_459 = arith.constant 9 : index
    %c0_460 = arith.constant 0 : index
    %c0_461 = arith.constant 0 : index
    %595 = vector.load %arg16[%c2_457, %c0_458, %c9_459, %c0_460, %c0_461] : memref<4x2x16x8x64xf32, #tpu.memory_space<vmem>>, vector<1x2x1x8x64xf32>
    %596 = vector.shape_cast %595 : vector<1x2x1x8x64xf32> to vector<2x8x64xf32>
    %597 = arith.mulf %596, %587 : vector<2x8x64xf32>
    %c2_462 = arith.constant 2 : index
    %c0_463 = arith.constant 0 : index
    %c9_464 = arith.constant 9 : index
    %c0_465 = arith.constant 0 : index
    %c0_466 = arith.constant 0 : index
    %598 = vector.load %arg17[%c2_462, %c0_463, %c9_464, %c0_465, %c0_466] : memref<4x2x16x8x64xf32, #tpu.memory_space<vmem>>, vector<1x2x1x8x64xf32>
    %599 = vector.shape_cast %598 : vector<1x2x1x8x64xf32> to vector<2x8x64xf32>
    %600 = arith.addf %597, %599 : vector<2x8x64xf32>
    %601 = vector.extract_strided_slice %515 {offsets = [0, 9, 0], sizes = [2, 1, 8], strides = [1, 1, 1]} : vector<2x16x8xf32> to vector<2x1x8xf32>
    %602 = vector.shape_cast %601 : vector<2x1x8xf32> to vector<2x8xf32>
    %603 = vector.shape_cast %602 : vector<2x8xf32> to vector<2x8x1xf32>
    %604 = vector.broadcast %603 : vector<2x8x1xf32> to vector<2x8x64xf32>
    %605 = arith.mulf %604, %600 : vector<2x8x64xf32>
    %cst_467 = arith.constant dense<0.000000e+00> : vector<2x64xf32>
    %606 = vector.multi_reduction <add>, %605, %cst_467 [1] : vector<2x8x64xf32> to vector<2x64xf32>
    %607 = arith.addf %397, %606 : vector<2x64xf32>
    %c2_468 = arith.constant 2 : index
    %c0_469 = arith.constant 0 : index
    %c8_470 = arith.constant 8 : index
    %c0_471 = arith.constant 0 : index
    %c0_472 = arith.constant 0 : index
    %608 = vector.load %arg16[%c2_468, %c0_469, %c8_470, %c0_471, %c0_472] : memref<4x2x16x8x64xf32, #tpu.memory_space<vmem>>, vector<1x2x1x8x64xf32>
    %609 = vector.shape_cast %608 : vector<1x2x1x8x64xf32> to vector<2x8x64xf32>
    %610 = arith.mulf %609, %600 : vector<2x8x64xf32>
    %c2_473 = arith.constant 2 : index
    %c0_474 = arith.constant 0 : index
    %c8_475 = arith.constant 8 : index
    %c0_476 = arith.constant 0 : index
    %c0_477 = arith.constant 0 : index
    %611 = vector.load %arg17[%c2_473, %c0_474, %c8_475, %c0_476, %c0_477] : memref<4x2x16x8x64xf32, #tpu.memory_space<vmem>>, vector<1x2x1x8x64xf32>
    %612 = vector.shape_cast %611 : vector<1x2x1x8x64xf32> to vector<2x8x64xf32>
    %613 = arith.addf %610, %612 : vector<2x8x64xf32>
    %614 = vector.extract_strided_slice %515 {offsets = [0, 8, 0], sizes = [2, 1, 8], strides = [1, 1, 1]} : vector<2x16x8xf32> to vector<2x1x8xf32>
    %615 = vector.shape_cast %614 : vector<2x1x8xf32> to vector<2x8xf32>
    %616 = vector.shape_cast %615 : vector<2x8xf32> to vector<2x8x1xf32>
    %617 = vector.broadcast %616 : vector<2x8x1xf32> to vector<2x8x64xf32>
    %618 = arith.mulf %617, %613 : vector<2x8x64xf32>
    %cst_478 = arith.constant dense<0.000000e+00> : vector<2x64xf32>
    %619 = vector.multi_reduction <add>, %618, %cst_478 [1] : vector<2x8x64xf32> to vector<2x64xf32>
    %620 = arith.addf %345, %619 : vector<2x64xf32>
    %c2_479 = arith.constant 2 : index
    %c0_480 = arith.constant 0 : index
    %c7_481 = arith.constant 7 : index
    %c0_482 = arith.constant 0 : index
    %c0_483 = arith.constant 0 : index
    %621 = vector.load %arg16[%c2_479, %c0_480, %c7_481, %c0_482, %c0_483] : memref<4x2x16x8x64xf32, #tpu.memory_space<vmem>>, vector<1x2x1x8x64xf32>
    %622 = vector.shape_cast %621 : vector<1x2x1x8x64xf32> to vector<2x8x64xf32>
    %623 = arith.mulf %622, %613 : vector<2x8x64xf32>
    %c2_484 = arith.constant 2 : index
    %c0_485 = arith.constant 0 : index
    %c7_486 = arith.constant 7 : index
    %c0_487 = arith.constant 0 : index
    %c0_488 = arith.constant 0 : index
    %624 = vector.load %arg17[%c2_484, %c0_485, %c7_486, %c0_487, %c0_488] : memref<4x2x16x8x64xf32, #tpu.memory_space<vmem>>, vector<1x2x1x8x64xf32>
    %625 = vector.shape_cast %624 : vector<1x2x1x8x64xf32> to vector<2x8x64xf32>
    %626 = arith.addf %623, %625 : vector<2x8x64xf32>
    %627 = vector.extract_strided_slice %515 {offsets = [0, 7, 0], sizes = [2, 1, 8], strides = [1, 1, 1]} : vector<2x16x8xf32> to vector<2x1x8xf32>
    %628 = vector.shape_cast %627 : vector<2x1x8xf32> to vector<2x8xf32>
    %629 = vector.shape_cast %628 : vector<2x8xf32> to vector<2x8x1xf32>
    %630 = vector.broadcast %629 : vector<2x8x1xf32> to vector<2x8x64xf32>
    %631 = arith.mulf %630, %626 : vector<2x8x64xf32>
    %cst_489 = arith.constant dense<0.000000e+00> : vector<2x64xf32>
    %632 = vector.multi_reduction <add>, %631, %cst_489 [1] : vector<2x8x64xf32> to vector<2x64xf32>
    %633 = arith.addf %488, %632 : vector<2x64xf32>
    %c2_490 = arith.constant 2 : index
    %c0_491 = arith.constant 0 : index
    %c6_492 = arith.constant 6 : index
    %c0_493 = arith.constant 0 : index
    %c0_494 = arith.constant 0 : index
    %634 = vector.load %arg16[%c2_490, %c0_491, %c6_492, %c0_493, %c0_494] : memref<4x2x16x8x64xf32, #tpu.memory_space<vmem>>, vector<1x2x1x8x64xf32>
    %635 = vector.shape_cast %634 : vector<1x2x1x8x64xf32> to vector<2x8x64xf32>
    %636 = arith.mulf %635, %626 : vector<2x8x64xf32>
    %c2_495 = arith.constant 2 : index
    %c0_496 = arith.constant 0 : index
    %c6_497 = arith.constant 6 : index
    %c0_498 = arith.constant 0 : index
    %c0_499 = arith.constant 0 : index
    %637 = vector.load %arg17[%c2_495, %c0_496, %c6_497, %c0_498, %c0_499] : memref<4x2x16x8x64xf32, #tpu.memory_space<vmem>>, vector<1x2x1x8x64xf32>
    %638 = vector.shape_cast %637 : vector<1x2x1x8x64xf32> to vector<2x8x64xf32>
    %639 = arith.addf %636, %638 : vector<2x8x64xf32>
    %640 = vector.extract_strided_slice %515 {offsets = [0, 6, 0], sizes = [2, 1, 8], strides = [1, 1, 1]} : vector<2x16x8xf32> to vector<2x1x8xf32>
    %641 = vector.shape_cast %640 : vector<2x1x8xf32> to vector<2x8xf32>
    %642 = vector.shape_cast %641 : vector<2x8xf32> to vector<2x8x1xf32>
    %643 = vector.broadcast %642 : vector<2x8x1xf32> to vector<2x8x64xf32>
    %644 = arith.mulf %643, %639 : vector<2x8x64xf32>
    %cst_500 = arith.constant dense<0.000000e+00> : vector<2x64xf32>
    %645 = vector.multi_reduction <add>, %644, %cst_500 [1] : vector<2x8x64xf32> to vector<2x64xf32>
    %646 = arith.addf %436, %645 : vector<2x64xf32>
    %c2_501 = arith.constant 2 : index
    %c0_502 = arith.constant 0 : index
    %c5_503 = arith.constant 5 : index
    %c0_504 = arith.constant 0 : index
    %c0_505 = arith.constant 0 : index
    %647 = vector.load %arg16[%c2_501, %c0_502, %c5_503, %c0_504, %c0_505] : memref<4x2x16x8x64xf32, #tpu.memory_space<vmem>>, vector<1x2x1x8x64xf32>
    %648 = vector.shape_cast %647 : vector<1x2x1x8x64xf32> to vector<2x8x64xf32>
    %649 = arith.mulf %648, %639 : vector<2x8x64xf32>
    %c2_506 = arith.constant 2 : index
    %c0_507 = arith.constant 0 : index
    %c5_508 = arith.constant 5 : index
    %c0_509 = arith.constant 0 : index
    %c0_510 = arith.constant 0 : index
    %650 = vector.load %arg17[%c2_506, %c0_507, %c5_508, %c0_509, %c0_510] : memref<4x2x16x8x64xf32, #tpu.memory_space<vmem>>, vector<1x2x1x8x64xf32>
    %651 = vector.shape_cast %650 : vector<1x2x1x8x64xf32> to vector<2x8x64xf32>
    %652 = arith.addf %649, %651 : vector<2x8x64xf32>
    %653 = vector.extract_strided_slice %515 {offsets = [0, 5, 0], sizes = [2, 1, 8], strides = [1, 1, 1]} : vector<2x16x8xf32> to vector<2x1x8xf32>
    %654 = vector.shape_cast %653 : vector<2x1x8xf32> to vector<2x8xf32>
    %655 = vector.shape_cast %654 : vector<2x8xf32> to vector<2x8x1xf32>
    %656 = vector.broadcast %655 : vector<2x8x1xf32> to vector<2x8x64xf32>
    %657 = arith.mulf %656, %652 : vector<2x8x64xf32>
    %cst_511 = arith.constant dense<0.000000e+00> : vector<2x64xf32>
    %658 = vector.multi_reduction <add>, %657, %cst_511 [1] : vector<2x8x64xf32> to vector<2x64xf32>
    %659 = arith.addf %384, %658 : vector<2x64xf32>
    %c2_512 = arith.constant 2 : index
    %c0_513 = arith.constant 0 : index
    %c4_514 = arith.constant 4 : index
    %c0_515 = arith.constant 0 : index
    %c0_516 = arith.constant 0 : index
    %660 = vector.load %arg16[%c2_512, %c0_513, %c4_514, %c0_515, %c0_516] : memref<4x2x16x8x64xf32, #tpu.memory_space<vmem>>, vector<1x2x1x8x64xf32>
    %661 = vector.shape_cast %660 : vector<1x2x1x8x64xf32> to vector<2x8x64xf32>
    %662 = arith.mulf %661, %652 : vector<2x8x64xf32>
    %c2_517 = arith.constant 2 : index
    %c0_518 = arith.constant 0 : index
    %c4_519 = arith.constant 4 : index
    %c0_520 = arith.constant 0 : index
    %c0_521 = arith.constant 0 : index
    %663 = vector.load %arg17[%c2_517, %c0_518, %c4_519, %c0_520, %c0_521] : memref<4x2x16x8x64xf32, #tpu.memory_space<vmem>>, vector<1x2x1x8x64xf32>
    %664 = vector.shape_cast %663 : vector<1x2x1x8x64xf32> to vector<2x8x64xf32>
    %665 = arith.addf %662, %664 : vector<2x8x64xf32>
    %666 = vector.extract_strided_slice %515 {offsets = [0, 4, 0], sizes = [2, 1, 8], strides = [1, 1, 1]} : vector<2x16x8xf32> to vector<2x1x8xf32>
    %667 = vector.shape_cast %666 : vector<2x1x8xf32> to vector<2x8xf32>
    %668 = vector.shape_cast %667 : vector<2x8xf32> to vector<2x8x1xf32>
    %669 = vector.broadcast %668 : vector<2x8x1xf32> to vector<2x8x64xf32>
    %670 = arith.mulf %669, %665 : vector<2x8x64xf32>
    %cst_522 = arith.constant dense<0.000000e+00> : vector<2x64xf32>
    %671 = vector.multi_reduction <add>, %670, %cst_522 [1] : vector<2x8x64xf32> to vector<2x64xf32>
    %672 = arith.addf %332, %671 : vector<2x64xf32>
    %c2_523 = arith.constant 2 : index
    %c0_524 = arith.constant 0 : index
    %c3_525 = arith.constant 3 : index
    %c0_526 = arith.constant 0 : index
    %c0_527 = arith.constant 0 : index
    %673 = vector.load %arg16[%c2_523, %c0_524, %c3_525, %c0_526, %c0_527] : memref<4x2x16x8x64xf32, #tpu.memory_space<vmem>>, vector<1x2x1x8x64xf32>
    %674 = vector.shape_cast %673 : vector<1x2x1x8x64xf32> to vector<2x8x64xf32>
    %675 = arith.mulf %674, %665 : vector<2x8x64xf32>
    %c2_528 = arith.constant 2 : index
    %c0_529 = arith.constant 0 : index
    %c3_530 = arith.constant 3 : index
    %c0_531 = arith.constant 0 : index
    %c0_532 = arith.constant 0 : index
    %676 = vector.load %arg17[%c2_528, %c0_529, %c3_530, %c0_531, %c0_532] : memref<4x2x16x8x64xf32, #tpu.memory_space<vmem>>, vector<1x2x1x8x64xf32>
    %677 = vector.shape_cast %676 : vector<1x2x1x8x64xf32> to vector<2x8x64xf32>
    %678 = arith.addf %675, %677 : vector<2x8x64xf32>
    %679 = vector.extract_strided_slice %515 {offsets = [0, 3, 0], sizes = [2, 1, 8], strides = [1, 1, 1]} : vector<2x16x8xf32> to vector<2x1x8xf32>
    %680 = vector.shape_cast %679 : vector<2x1x8xf32> to vector<2x8xf32>
    %681 = vector.shape_cast %680 : vector<2x8xf32> to vector<2x8x1xf32>
    %682 = vector.broadcast %681 : vector<2x8x1xf32> to vector<2x8x64xf32>
    %683 = arith.mulf %682, %678 : vector<2x8x64xf32>
    %cst_533 = arith.constant dense<0.000000e+00> : vector<2x64xf32>
    %684 = vector.multi_reduction <add>, %683, %cst_533 [1] : vector<2x8x64xf32> to vector<2x64xf32>
    %685 = arith.addf %475, %684 : vector<2x64xf32>
    %c2_534 = arith.constant 2 : index
    %c0_535 = arith.constant 0 : index
    %c2_536 = arith.constant 2 : index
    %c0_537 = arith.constant 0 : index
    %c0_538 = arith.constant 0 : index
    %686 = vector.load %arg16[%c2_534, %c0_535, %c2_536, %c0_537, %c0_538] : memref<4x2x16x8x64xf32, #tpu.memory_space<vmem>>, vector<1x2x1x8x64xf32>
    %687 = vector.shape_cast %686 : vector<1x2x1x8x64xf32> to vector<2x8x64xf32>
    %688 = arith.mulf %687, %678 : vector<2x8x64xf32>
    %c2_539 = arith.constant 2 : index
    %c0_540 = arith.constant 0 : index
    %c2_541 = arith.constant 2 : index
    %c0_542 = arith.constant 0 : index
    %c0_543 = arith.constant 0 : index
    %689 = vector.load %arg17[%c2_539, %c0_540, %c2_541, %c0_542, %c0_543] : memref<4x2x16x8x64xf32, #tpu.memory_space<vmem>>, vector<1x2x1x8x64xf32>
    %690 = vector.shape_cast %689 : vector<1x2x1x8x64xf32> to vector<2x8x64xf32>
    %691 = arith.addf %688, %690 : vector<2x8x64xf32>
    %692 = vector.extract_strided_slice %515 {offsets = [0, 2, 0], sizes = [2, 1, 8], strides = [1, 1, 1]} : vector<2x16x8xf32> to vector<2x1x8xf32>
    %693 = vector.shape_cast %692 : vector<2x1x8xf32> to vector<2x8xf32>
    %694 = vector.shape_cast %693 : vector<2x8xf32> to vector<2x8x1xf32>
    %695 = vector.broadcast %694 : vector<2x8x1xf32> to vector<2x8x64xf32>
    %696 = arith.mulf %695, %691 : vector<2x8x64xf32>
    %cst_544 = arith.constant dense<0.000000e+00> : vector<2x64xf32>
    %697 = vector.multi_reduction <add>, %696, %cst_544 [1] : vector<2x8x64xf32> to vector<2x64xf32>
    %698 = arith.addf %423, %697 : vector<2x64xf32>
    %c2_545 = arith.constant 2 : index
    %c0_546 = arith.constant 0 : index
    %c1_547 = arith.constant 1 : index
    %c0_548 = arith.constant 0 : index
    %c0_549 = arith.constant 0 : index
    %699 = vector.load %arg16[%c2_545, %c0_546, %c1_547, %c0_548, %c0_549] : memref<4x2x16x8x64xf32, #tpu.memory_space<vmem>>, vector<1x2x1x8x64xf32>
    %700 = vector.shape_cast %699 : vector<1x2x1x8x64xf32> to vector<2x8x64xf32>
    %701 = arith.mulf %700, %691 : vector<2x8x64xf32>
    %c2_550 = arith.constant 2 : index
    %c0_551 = arith.constant 0 : index
    %c1_552 = arith.constant 1 : index
    %c0_553 = arith.constant 0 : index
    %c0_554 = arith.constant 0 : index
    %702 = vector.load %arg17[%c2_550, %c0_551, %c1_552, %c0_553, %c0_554] : memref<4x2x16x8x64xf32, #tpu.memory_space<vmem>>, vector<1x2x1x8x64xf32>
    %703 = vector.shape_cast %702 : vector<1x2x1x8x64xf32> to vector<2x8x64xf32>
    %704 = arith.addf %701, %703 : vector<2x8x64xf32>
    %705 = vector.extract_strided_slice %515 {offsets = [0, 1, 0], sizes = [2, 1, 8], strides = [1, 1, 1]} : vector<2x16x8xf32> to vector<2x1x8xf32>
    %706 = vector.shape_cast %705 : vector<2x1x8xf32> to vector<2x8xf32>
    %707 = vector.shape_cast %706 : vector<2x8xf32> to vector<2x8x1xf32>
    %708 = vector.broadcast %707 : vector<2x8x1xf32> to vector<2x8x64xf32>
    %709 = arith.mulf %708, %704 : vector<2x8x64xf32>
    %cst_555 = arith.constant dense<0.000000e+00> : vector<2x64xf32>
    %710 = vector.multi_reduction <add>, %709, %cst_555 [1] : vector<2x8x64xf32> to vector<2x64xf32>
    %711 = arith.addf %371, %710 : vector<2x64xf32>
    %c2_556 = arith.constant 2 : index
    %c0_557 = arith.constant 0 : index
    %c0_558 = arith.constant 0 : index
    %c0_559 = arith.constant 0 : index
    %c0_560 = arith.constant 0 : index
    %712 = vector.load %arg16[%c2_556, %c0_557, %c0_558, %c0_559, %c0_560] : memref<4x2x16x8x64xf32, #tpu.memory_space<vmem>>, vector<1x2x1x8x64xf32>
    %713 = vector.shape_cast %712 : vector<1x2x1x8x64xf32> to vector<2x8x64xf32>
    %714 = arith.mulf %713, %704 : vector<2x8x64xf32>
    %c2_561 = arith.constant 2 : index
    %c0_562 = arith.constant 0 : index
    %c0_563 = arith.constant 0 : index
    %c0_564 = arith.constant 0 : index
    %c0_565 = arith.constant 0 : index
    %715 = vector.load %arg17[%c2_561, %c0_562, %c0_563, %c0_564, %c0_565] : memref<4x2x16x8x64xf32, #tpu.memory_space<vmem>>, vector<1x2x1x8x64xf32>
    %716 = vector.shape_cast %715 : vector<1x2x1x8x64xf32> to vector<2x8x64xf32>
    %717 = arith.addf %714, %716 : vector<2x8x64xf32>
    %718 = vector.extract_strided_slice %515 {offsets = [0, 0, 0], sizes = [2, 1, 8], strides = [1, 1, 1]} : vector<2x16x8xf32> to vector<2x1x8xf32>
    %719 = vector.shape_cast %718 : vector<2x1x8xf32> to vector<2x8xf32>
    %720 = vector.shape_cast %719 : vector<2x8xf32> to vector<2x8x1xf32>
    %721 = vector.broadcast %720 : vector<2x8x1xf32> to vector<2x8x64xf32>
    %722 = arith.mulf %721, %717 : vector<2x8x64xf32>
    %cst_566 = arith.constant dense<0.000000e+00> : vector<2x64xf32>
    %723 = vector.multi_reduction <add>, %722, %cst_566 [1] : vector<2x8x64xf32> to vector<2x64xf32>
    %724 = arith.addf %319, %723 : vector<2x64xf32>
    %725 = vector.extract_strided_slice %20 {offsets = [0, 0, 56], sizes = [2, 16, 8], strides = [1, 1, 1]} : vector<2x16x64xf32> to vector<2x16x8xf32>
    %cst_567 = arith.constant 0.000000e+00 : f32
    %726 = vector.broadcast %cst_567 : f32 to vector<2x8x64xf32>
    %c3_568 = arith.constant 3 : index
    %c0_569 = arith.constant 0 : index
    %c15_570 = arith.constant 15 : index
    %c0_571 = arith.constant 0 : index
    %c0_572 = arith.constant 0 : index
    %727 = vector.load %arg16[%c3_568, %c0_569, %c15_570, %c0_571, %c0_572] : memref<4x2x16x8x64xf32, #tpu.memory_space<vmem>>, vector<1x2x1x8x64xf32>
    %728 = vector.shape_cast %727 : vector<1x2x1x8x64xf32> to vector<2x8x64xf32>
    %729 = arith.mulf %728, %726 : vector<2x8x64xf32>
    %c3_573 = arith.constant 3 : index
    %c0_574 = arith.constant 0 : index
    %c15_575 = arith.constant 15 : index
    %c0_576 = arith.constant 0 : index
    %c0_577 = arith.constant 0 : index
    %730 = vector.load %arg17[%c3_573, %c0_574, %c15_575, %c0_576, %c0_577] : memref<4x2x16x8x64xf32, #tpu.memory_space<vmem>>, vector<1x2x1x8x64xf32>
    %731 = vector.shape_cast %730 : vector<1x2x1x8x64xf32> to vector<2x8x64xf32>
    %732 = arith.addf %729, %731 : vector<2x8x64xf32>
    %733 = vector.extract_strided_slice %725 {offsets = [0, 15, 0], sizes = [2, 1, 8], strides = [1, 1, 1]} : vector<2x16x8xf32> to vector<2x1x8xf32>
    %734 = vector.shape_cast %733 : vector<2x1x8xf32> to vector<2x8xf32>
    %735 = vector.shape_cast %734 : vector<2x8xf32> to vector<2x8x1xf32>
    %736 = vector.broadcast %735 : vector<2x8x1xf32> to vector<2x8x64xf32>
    %737 = arith.mulf %736, %732 : vector<2x8x64xf32>
    %cst_578 = arith.constant dense<0.000000e+00> : vector<2x64xf32>
    %738 = vector.multi_reduction <add>, %737, %cst_578 [1] : vector<2x8x64xf32> to vector<2x64xf32>
    %739 = arith.addf %529, %738 : vector<2x64xf32>
    %c3_579 = arith.constant 3 : index
    %c0_580 = arith.constant 0 : index
    %c11_581 = arith.constant 11 : index
    %c0_582 = arith.constant 0 : index
    %c0_583 = arith.constant 0 : index
    %740 = vector.load %arg16[%c3_579, %c0_580, %c11_581, %c0_582, %c0_583] : memref<4x2x16x8x64xf32, #tpu.memory_space<vmem>>, vector<1x2x1x8x64xf32>
    %741 = vector.shape_cast %740 : vector<1x2x1x8x64xf32> to vector<2x8x64xf32>
    %742 = arith.mulf %741, %732 : vector<2x8x64xf32>
    %c3_584 = arith.constant 3 : index
    %c0_585 = arith.constant 0 : index
    %c11_586 = arith.constant 11 : index
    %c0_587 = arith.constant 0 : index
    %c0_588 = arith.constant 0 : index
    %743 = vector.load %arg17[%c3_584, %c0_585, %c11_586, %c0_587, %c0_588] : memref<4x2x16x8x64xf32, #tpu.memory_space<vmem>>, vector<1x2x1x8x64xf32>
    %744 = vector.shape_cast %743 : vector<1x2x1x8x64xf32> to vector<2x8x64xf32>
    %745 = arith.addf %742, %744 : vector<2x8x64xf32>
    %746 = vector.extract_strided_slice %725 {offsets = [0, 11, 0], sizes = [2, 1, 8], strides = [1, 1, 1]} : vector<2x16x8xf32> to vector<2x1x8xf32>
    %747 = vector.shape_cast %746 : vector<2x1x8xf32> to vector<2x8xf32>
    %748 = vector.shape_cast %747 : vector<2x8xf32> to vector<2x8x1xf32>
    %749 = vector.broadcast %748 : vector<2x8x1xf32> to vector<2x8x64xf32>
    %750 = arith.mulf %749, %745 : vector<2x8x64xf32>
    %cst_589 = arith.constant dense<0.000000e+00> : vector<2x64xf32>
    %751 = vector.multi_reduction <add>, %750, %cst_589 [1] : vector<2x8x64xf32> to vector<2x64xf32>
    %752 = arith.addf %581, %751 : vector<2x64xf32>
    %c3_590 = arith.constant 3 : index
    %c0_591 = arith.constant 0 : index
    %c7_592 = arith.constant 7 : index
    %c0_593 = arith.constant 0 : index
    %c0_594 = arith.constant 0 : index
    %753 = vector.load %arg16[%c3_590, %c0_591, %c7_592, %c0_593, %c0_594] : memref<4x2x16x8x64xf32, #tpu.memory_space<vmem>>, vector<1x2x1x8x64xf32>
    %754 = vector.shape_cast %753 : vector<1x2x1x8x64xf32> to vector<2x8x64xf32>
    %755 = arith.mulf %754, %745 : vector<2x8x64xf32>
    %c3_595 = arith.constant 3 : index
    %c0_596 = arith.constant 0 : index
    %c7_597 = arith.constant 7 : index
    %c0_598 = arith.constant 0 : index
    %c0_599 = arith.constant 0 : index
    %756 = vector.load %arg17[%c3_595, %c0_596, %c7_597, %c0_598, %c0_599] : memref<4x2x16x8x64xf32, #tpu.memory_space<vmem>>, vector<1x2x1x8x64xf32>
    %757 = vector.shape_cast %756 : vector<1x2x1x8x64xf32> to vector<2x8x64xf32>
    %758 = arith.addf %755, %757 : vector<2x8x64xf32>
    %759 = vector.extract_strided_slice %725 {offsets = [0, 7, 0], sizes = [2, 1, 8], strides = [1, 1, 1]} : vector<2x16x8xf32> to vector<2x1x8xf32>
    %760 = vector.shape_cast %759 : vector<2x1x8xf32> to vector<2x8xf32>
    %761 = vector.shape_cast %760 : vector<2x8xf32> to vector<2x8x1xf32>
    %762 = vector.broadcast %761 : vector<2x8x1xf32> to vector<2x8x64xf32>
    %763 = arith.mulf %762, %758 : vector<2x8x64xf32>
    %cst_600 = arith.constant dense<0.000000e+00> : vector<2x64xf32>
    %764 = vector.multi_reduction <add>, %763, %cst_600 [1] : vector<2x8x64xf32> to vector<2x64xf32>
    %765 = arith.addf %633, %764 : vector<2x64xf32>
    %c3_601 = arith.constant 3 : index
    %c0_602 = arith.constant 0 : index
    %c3_603 = arith.constant 3 : index
    %c0_604 = arith.constant 0 : index
    %c0_605 = arith.constant 0 : index
    %766 = vector.load %arg16[%c3_601, %c0_602, %c3_603, %c0_604, %c0_605] : memref<4x2x16x8x64xf32, #tpu.memory_space<vmem>>, vector<1x2x1x8x64xf32>
    %767 = vector.shape_cast %766 : vector<1x2x1x8x64xf32> to vector<2x8x64xf32>
    %768 = arith.mulf %767, %758 : vector<2x8x64xf32>
    %c3_606 = arith.constant 3 : index
    %c0_607 = arith.constant 0 : index
    %c3_608 = arith.constant 3 : index
    %c0_609 = arith.constant 0 : index
    %c0_610 = arith.constant 0 : index
    %769 = vector.load %arg17[%c3_606, %c0_607, %c3_608, %c0_609, %c0_610] : memref<4x2x16x8x64xf32, #tpu.memory_space<vmem>>, vector<1x2x1x8x64xf32>
    %770 = vector.shape_cast %769 : vector<1x2x1x8x64xf32> to vector<2x8x64xf32>
    %771 = arith.addf %768, %770 : vector<2x8x64xf32>
    %772 = vector.extract_strided_slice %725 {offsets = [0, 3, 0], sizes = [2, 1, 8], strides = [1, 1, 1]} : vector<2x16x8xf32> to vector<2x1x8xf32>
    %773 = vector.shape_cast %772 : vector<2x1x8xf32> to vector<2x8xf32>
    %774 = vector.shape_cast %773 : vector<2x8xf32> to vector<2x8x1xf32>
    %775 = vector.broadcast %774 : vector<2x8x1xf32> to vector<2x8x64xf32>
    %776 = arith.mulf %775, %771 : vector<2x8x64xf32>
    %cst_611 = arith.constant dense<0.000000e+00> : vector<2x64xf32>
    %777 = vector.multi_reduction <add>, %776, %cst_611 [1] : vector<2x8x64xf32> to vector<2x64xf32>
    %778 = arith.addf %685, %777 : vector<2x64xf32>
    %c3_612 = arith.constant 3 : index
    %c0_613 = arith.constant 0 : index
    %c14_614 = arith.constant 14 : index
    %c0_615 = arith.constant 0 : index
    %c0_616 = arith.constant 0 : index
    %779 = vector.load %arg16[%c3_612, %c0_613, %c14_614, %c0_615, %c0_616] : memref<4x2x16x8x64xf32, #tpu.memory_space<vmem>>, vector<1x2x1x8x64xf32>
    %780 = vector.shape_cast %779 : vector<1x2x1x8x64xf32> to vector<2x8x64xf32>
    %781 = arith.mulf %780, %771 : vector<2x8x64xf32>
    %c3_617 = arith.constant 3 : index
    %c0_618 = arith.constant 0 : index
    %c14_619 = arith.constant 14 : index
    %c0_620 = arith.constant 0 : index
    %c0_621 = arith.constant 0 : index
    %782 = vector.load %arg17[%c3_617, %c0_618, %c14_619, %c0_620, %c0_621] : memref<4x2x16x8x64xf32, #tpu.memory_space<vmem>>, vector<1x2x1x8x64xf32>
    %783 = vector.shape_cast %782 : vector<1x2x1x8x64xf32> to vector<2x8x64xf32>
    %784 = arith.addf %781, %783 : vector<2x8x64xf32>
    %785 = vector.extract_strided_slice %725 {offsets = [0, 14, 0], sizes = [2, 1, 8], strides = [1, 1, 1]} : vector<2x16x8xf32> to vector<2x1x8xf32>
    %786 = vector.shape_cast %785 : vector<2x1x8xf32> to vector<2x8xf32>
    %787 = vector.shape_cast %786 : vector<2x8xf32> to vector<2x8x1xf32>
    %788 = vector.broadcast %787 : vector<2x8x1xf32> to vector<2x8x64xf32>
    %789 = arith.mulf %788, %784 : vector<2x8x64xf32>
    %cst_622 = arith.constant dense<0.000000e+00> : vector<2x64xf32>
    %790 = vector.multi_reduction <add>, %789, %cst_622 [1] : vector<2x8x64xf32> to vector<2x64xf32>
    %791 = arith.addf %542, %790 : vector<2x64xf32>
    %c3_623 = arith.constant 3 : index
    %c0_624 = arith.constant 0 : index
    %c10_625 = arith.constant 10 : index
    %c0_626 = arith.constant 0 : index
    %c0_627 = arith.constant 0 : index
    %792 = vector.load %arg16[%c3_623, %c0_624, %c10_625, %c0_626, %c0_627] : memref<4x2x16x8x64xf32, #tpu.memory_space<vmem>>, vector<1x2x1x8x64xf32>
    %793 = vector.shape_cast %792 : vector<1x2x1x8x64xf32> to vector<2x8x64xf32>
    %794 = arith.mulf %793, %784 : vector<2x8x64xf32>
    %c3_628 = arith.constant 3 : index
    %c0_629 = arith.constant 0 : index
    %c10_630 = arith.constant 10 : index
    %c0_631 = arith.constant 0 : index
    %c0_632 = arith.constant 0 : index
    %795 = vector.load %arg17[%c3_628, %c0_629, %c10_630, %c0_631, %c0_632] : memref<4x2x16x8x64xf32, #tpu.memory_space<vmem>>, vector<1x2x1x8x64xf32>
    %796 = vector.shape_cast %795 : vector<1x2x1x8x64xf32> to vector<2x8x64xf32>
    %797 = arith.addf %794, %796 : vector<2x8x64xf32>
    %798 = vector.extract_strided_slice %725 {offsets = [0, 10, 0], sizes = [2, 1, 8], strides = [1, 1, 1]} : vector<2x16x8xf32> to vector<2x1x8xf32>
    %799 = vector.shape_cast %798 : vector<2x1x8xf32> to vector<2x8xf32>
    %800 = vector.shape_cast %799 : vector<2x8xf32> to vector<2x8x1xf32>
    %801 = vector.broadcast %800 : vector<2x8x1xf32> to vector<2x8x64xf32>
    %802 = arith.mulf %801, %797 : vector<2x8x64xf32>
    %cst_633 = arith.constant dense<0.000000e+00> : vector<2x64xf32>
    %803 = vector.multi_reduction <add>, %802, %cst_633 [1] : vector<2x8x64xf32> to vector<2x64xf32>
    %804 = arith.addf %594, %803 : vector<2x64xf32>
    %c3_634 = arith.constant 3 : index
    %c0_635 = arith.constant 0 : index
    %c6_636 = arith.constant 6 : index
    %c0_637 = arith.constant 0 : index
    %c0_638 = arith.constant 0 : index
    %805 = vector.load %arg16[%c3_634, %c0_635, %c6_636, %c0_637, %c0_638] : memref<4x2x16x8x64xf32, #tpu.memory_space<vmem>>, vector<1x2x1x8x64xf32>
    %806 = vector.shape_cast %805 : vector<1x2x1x8x64xf32> to vector<2x8x64xf32>
    %807 = arith.mulf %806, %797 : vector<2x8x64xf32>
    %c3_639 = arith.constant 3 : index
    %c0_640 = arith.constant 0 : index
    %c6_641 = arith.constant 6 : index
    %c0_642 = arith.constant 0 : index
    %c0_643 = arith.constant 0 : index
    %808 = vector.load %arg17[%c3_639, %c0_640, %c6_641, %c0_642, %c0_643] : memref<4x2x16x8x64xf32, #tpu.memory_space<vmem>>, vector<1x2x1x8x64xf32>
    %809 = vector.shape_cast %808 : vector<1x2x1x8x64xf32> to vector<2x8x64xf32>
    %810 = arith.addf %807, %809 : vector<2x8x64xf32>
    %811 = vector.extract_strided_slice %725 {offsets = [0, 6, 0], sizes = [2, 1, 8], strides = [1, 1, 1]} : vector<2x16x8xf32> to vector<2x1x8xf32>
    %812 = vector.shape_cast %811 : vector<2x1x8xf32> to vector<2x8xf32>
    %813 = vector.shape_cast %812 : vector<2x8xf32> to vector<2x8x1xf32>
    %814 = vector.broadcast %813 : vector<2x8x1xf32> to vector<2x8x64xf32>
    %815 = arith.mulf %814, %810 : vector<2x8x64xf32>
    %cst_644 = arith.constant dense<0.000000e+00> : vector<2x64xf32>
    %816 = vector.multi_reduction <add>, %815, %cst_644 [1] : vector<2x8x64xf32> to vector<2x64xf32>
    %817 = arith.addf %646, %816 : vector<2x64xf32>
    %c3_645 = arith.constant 3 : index
    %c0_646 = arith.constant 0 : index
    %c2_647 = arith.constant 2 : index
    %c0_648 = arith.constant 0 : index
    %c0_649 = arith.constant 0 : index
    %818 = vector.load %arg16[%c3_645, %c0_646, %c2_647, %c0_648, %c0_649] : memref<4x2x16x8x64xf32, #tpu.memory_space<vmem>>, vector<1x2x1x8x64xf32>
    %819 = vector.shape_cast %818 : vector<1x2x1x8x64xf32> to vector<2x8x64xf32>
    %820 = arith.mulf %819, %810 : vector<2x8x64xf32>
    %c3_650 = arith.constant 3 : index
    %c0_651 = arith.constant 0 : index
    %c2_652 = arith.constant 2 : index
    %c0_653 = arith.constant 0 : index
    %c0_654 = arith.constant 0 : index
    %821 = vector.load %arg17[%c3_650, %c0_651, %c2_652, %c0_653, %c0_654] : memref<4x2x16x8x64xf32, #tpu.memory_space<vmem>>, vector<1x2x1x8x64xf32>
    %822 = vector.shape_cast %821 : vector<1x2x1x8x64xf32> to vector<2x8x64xf32>
    %823 = arith.addf %820, %822 : vector<2x8x64xf32>
    %824 = vector.extract_strided_slice %725 {offsets = [0, 2, 0], sizes = [2, 1, 8], strides = [1, 1, 1]} : vector<2x16x8xf32> to vector<2x1x8xf32>
    %825 = vector.shape_cast %824 : vector<2x1x8xf32> to vector<2x8xf32>
    %826 = vector.shape_cast %825 : vector<2x8xf32> to vector<2x8x1xf32>
    %827 = vector.broadcast %826 : vector<2x8x1xf32> to vector<2x8x64xf32>
    %828 = arith.mulf %827, %823 : vector<2x8x64xf32>
    %cst_655 = arith.constant dense<0.000000e+00> : vector<2x64xf32>
    %829 = vector.multi_reduction <add>, %828, %cst_655 [1] : vector<2x8x64xf32> to vector<2x64xf32>
    %830 = arith.addf %698, %829 : vector<2x64xf32>
    %c3_656 = arith.constant 3 : index
    %c0_657 = arith.constant 0 : index
    %c13_658 = arith.constant 13 : index
    %c0_659 = arith.constant 0 : index
    %c0_660 = arith.constant 0 : index
    %831 = vector.load %arg16[%c3_656, %c0_657, %c13_658, %c0_659, %c0_660] : memref<4x2x16x8x64xf32, #tpu.memory_space<vmem>>, vector<1x2x1x8x64xf32>
    %832 = vector.shape_cast %831 : vector<1x2x1x8x64xf32> to vector<2x8x64xf32>
    %833 = arith.mulf %832, %823 : vector<2x8x64xf32>
    %c3_661 = arith.constant 3 : index
    %c0_662 = arith.constant 0 : index
    %c13_663 = arith.constant 13 : index
    %c0_664 = arith.constant 0 : index
    %c0_665 = arith.constant 0 : index
    %834 = vector.load %arg17[%c3_661, %c0_662, %c13_663, %c0_664, %c0_665] : memref<4x2x16x8x64xf32, #tpu.memory_space<vmem>>, vector<1x2x1x8x64xf32>
    %835 = vector.shape_cast %834 : vector<1x2x1x8x64xf32> to vector<2x8x64xf32>
    %836 = arith.addf %833, %835 : vector<2x8x64xf32>
    %837 = vector.extract_strided_slice %725 {offsets = [0, 13, 0], sizes = [2, 1, 8], strides = [1, 1, 1]} : vector<2x16x8xf32> to vector<2x1x8xf32>
    %838 = vector.shape_cast %837 : vector<2x1x8xf32> to vector<2x8xf32>
    %839 = vector.shape_cast %838 : vector<2x8xf32> to vector<2x8x1xf32>
    %840 = vector.broadcast %839 : vector<2x8x1xf32> to vector<2x8x64xf32>
    %841 = arith.mulf %840, %836 : vector<2x8x64xf32>
    %cst_666 = arith.constant dense<0.000000e+00> : vector<2x64xf32>
    %842 = vector.multi_reduction <add>, %841, %cst_666 [1] : vector<2x8x64xf32> to vector<2x64xf32>
    %843 = arith.addf %555, %842 : vector<2x64xf32>
    %c3_667 = arith.constant 3 : index
    %c0_668 = arith.constant 0 : index
    %c9_669 = arith.constant 9 : index
    %c0_670 = arith.constant 0 : index
    %c0_671 = arith.constant 0 : index
    %844 = vector.load %arg16[%c3_667, %c0_668, %c9_669, %c0_670, %c0_671] : memref<4x2x16x8x64xf32, #tpu.memory_space<vmem>>, vector<1x2x1x8x64xf32>
    %845 = vector.shape_cast %844 : vector<1x2x1x8x64xf32> to vector<2x8x64xf32>
    %846 = arith.mulf %845, %836 : vector<2x8x64xf32>
    %c3_672 = arith.constant 3 : index
    %c0_673 = arith.constant 0 : index
    %c9_674 = arith.constant 9 : index
    %c0_675 = arith.constant 0 : index
    %c0_676 = arith.constant 0 : index
    %847 = vector.load %arg17[%c3_672, %c0_673, %c9_674, %c0_675, %c0_676] : memref<4x2x16x8x64xf32, #tpu.memory_space<vmem>>, vector<1x2x1x8x64xf32>
    %848 = vector.shape_cast %847 : vector<1x2x1x8x64xf32> to vector<2x8x64xf32>
    %849 = arith.addf %846, %848 : vector<2x8x64xf32>
    %850 = vector.extract_strided_slice %725 {offsets = [0, 9, 0], sizes = [2, 1, 8], strides = [1, 1, 1]} : vector<2x16x8xf32> to vector<2x1x8xf32>
    %851 = vector.shape_cast %850 : vector<2x1x8xf32> to vector<2x8xf32>
    %852 = vector.shape_cast %851 : vector<2x8xf32> to vector<2x8x1xf32>
    %853 = vector.broadcast %852 : vector<2x8x1xf32> to vector<2x8x64xf32>
    %854 = arith.mulf %853, %849 : vector<2x8x64xf32>
    %cst_677 = arith.constant dense<0.000000e+00> : vector<2x64xf32>
    %855 = vector.multi_reduction <add>, %854, %cst_677 [1] : vector<2x8x64xf32> to vector<2x64xf32>
    %856 = arith.addf %607, %855 : vector<2x64xf32>
    %c3_678 = arith.constant 3 : index
    %c0_679 = arith.constant 0 : index
    %c5_680 = arith.constant 5 : index
    %c0_681 = arith.constant 0 : index
    %c0_682 = arith.constant 0 : index
    %857 = vector.load %arg16[%c3_678, %c0_679, %c5_680, %c0_681, %c0_682] : memref<4x2x16x8x64xf32, #tpu.memory_space<vmem>>, vector<1x2x1x8x64xf32>
    %858 = vector.shape_cast %857 : vector<1x2x1x8x64xf32> to vector<2x8x64xf32>
    %859 = arith.mulf %858, %849 : vector<2x8x64xf32>
    %c3_683 = arith.constant 3 : index
    %c0_684 = arith.constant 0 : index
    %c5_685 = arith.constant 5 : index
    %c0_686 = arith.constant 0 : index
    %c0_687 = arith.constant 0 : index
    %860 = vector.load %arg17[%c3_683, %c0_684, %c5_685, %c0_686, %c0_687] : memref<4x2x16x8x64xf32, #tpu.memory_space<vmem>>, vector<1x2x1x8x64xf32>
    %861 = vector.shape_cast %860 : vector<1x2x1x8x64xf32> to vector<2x8x64xf32>
    %862 = arith.addf %859, %861 : vector<2x8x64xf32>
    %863 = vector.extract_strided_slice %725 {offsets = [0, 5, 0], sizes = [2, 1, 8], strides = [1, 1, 1]} : vector<2x16x8xf32> to vector<2x1x8xf32>
    %864 = vector.shape_cast %863 : vector<2x1x8xf32> to vector<2x8xf32>
    %865 = vector.shape_cast %864 : vector<2x8xf32> to vector<2x8x1xf32>
    %866 = vector.broadcast %865 : vector<2x8x1xf32> to vector<2x8x64xf32>
    %867 = arith.mulf %866, %862 : vector<2x8x64xf32>
    %cst_688 = arith.constant dense<0.000000e+00> : vector<2x64xf32>
    %868 = vector.multi_reduction <add>, %867, %cst_688 [1] : vector<2x8x64xf32> to vector<2x64xf32>
    %869 = arith.addf %659, %868 : vector<2x64xf32>
    %c3_689 = arith.constant 3 : index
    %c0_690 = arith.constant 0 : index
    %c1_691 = arith.constant 1 : index
    %c0_692 = arith.constant 0 : index
    %c0_693 = arith.constant 0 : index
    %870 = vector.load %arg16[%c3_689, %c0_690, %c1_691, %c0_692, %c0_693] : memref<4x2x16x8x64xf32, #tpu.memory_space<vmem>>, vector<1x2x1x8x64xf32>
    %871 = vector.shape_cast %870 : vector<1x2x1x8x64xf32> to vector<2x8x64xf32>
    %872 = arith.mulf %871, %862 : vector<2x8x64xf32>
    %c3_694 = arith.constant 3 : index
    %c0_695 = arith.constant 0 : index
    %c1_696 = arith.constant 1 : index
    %c0_697 = arith.constant 0 : index
    %c0_698 = arith.constant 0 : index
    %873 = vector.load %arg17[%c3_694, %c0_695, %c1_696, %c0_697, %c0_698] : memref<4x2x16x8x64xf32, #tpu.memory_space<vmem>>, vector<1x2x1x8x64xf32>
    %874 = vector.shape_cast %873 : vector<1x2x1x8x64xf32> to vector<2x8x64xf32>
    %875 = arith.addf %872, %874 : vector<2x8x64xf32>
    %876 = vector.extract_strided_slice %725 {offsets = [0, 1, 0], sizes = [2, 1, 8], strides = [1, 1, 1]} : vector<2x16x8xf32> to vector<2x1x8xf32>
    %877 = vector.shape_cast %876 : vector<2x1x8xf32> to vector<2x8xf32>
    %878 = vector.shape_cast %877 : vector<2x8xf32> to vector<2x8x1xf32>
    %879 = vector.broadcast %878 : vector<2x8x1xf32> to vector<2x8x64xf32>
    %880 = arith.mulf %879, %875 : vector<2x8x64xf32>
    %cst_699 = arith.constant dense<0.000000e+00> : vector<2x64xf32>
    %881 = vector.multi_reduction <add>, %880, %cst_699 [1] : vector<2x8x64xf32> to vector<2x64xf32>
    %882 = arith.addf %711, %881 : vector<2x64xf32>
    %c3_700 = arith.constant 3 : index
    %c0_701 = arith.constant 0 : index
    %c12_702 = arith.constant 12 : index
    %c0_703 = arith.constant 0 : index
    %c0_704 = arith.constant 0 : index
    %883 = vector.load %arg16[%c3_700, %c0_701, %c12_702, %c0_703, %c0_704] : memref<4x2x16x8x64xf32, #tpu.memory_space<vmem>>, vector<1x2x1x8x64xf32>
    %884 = vector.shape_cast %883 : vector<1x2x1x8x64xf32> to vector<2x8x64xf32>
    %885 = arith.mulf %884, %875 : vector<2x8x64xf32>
    %c3_705 = arith.constant 3 : index
    %c0_706 = arith.constant 0 : index
    %c12_707 = arith.constant 12 : index
    %c0_708 = arith.constant 0 : index
    %c0_709 = arith.constant 0 : index
    %886 = vector.load %arg17[%c3_705, %c0_706, %c12_707, %c0_708, %c0_709] : memref<4x2x16x8x64xf32, #tpu.memory_space<vmem>>, vector<1x2x1x8x64xf32>
    %887 = vector.shape_cast %886 : vector<1x2x1x8x64xf32> to vector<2x8x64xf32>
    %888 = arith.addf %885, %887 : vector<2x8x64xf32>
    %889 = vector.extract_strided_slice %725 {offsets = [0, 12, 0], sizes = [2, 1, 8], strides = [1, 1, 1]} : vector<2x16x8xf32> to vector<2x1x8xf32>
    %890 = vector.shape_cast %889 : vector<2x1x8xf32> to vector<2x8xf32>
    %891 = vector.shape_cast %890 : vector<2x8xf32> to vector<2x8x1xf32>
    %892 = vector.broadcast %891 : vector<2x8x1xf32> to vector<2x8x64xf32>
    %893 = arith.mulf %892, %888 : vector<2x8x64xf32>
    %cst_710 = arith.constant dense<0.000000e+00> : vector<2x64xf32>
    %894 = vector.multi_reduction <add>, %893, %cst_710 [1] : vector<2x8x64xf32> to vector<2x64xf32>
    %895 = arith.addf %568, %894 : vector<2x64xf32>
    %c3_711 = arith.constant 3 : index
    %c0_712 = arith.constant 0 : index
    %c8_713 = arith.constant 8 : index
    %c0_714 = arith.constant 0 : index
    %c0_715 = arith.constant 0 : index
    %896 = vector.load %arg16[%c3_711, %c0_712, %c8_713, %c0_714, %c0_715] : memref<4x2x16x8x64xf32, #tpu.memory_space<vmem>>, vector<1x2x1x8x64xf32>
    %897 = vector.shape_cast %896 : vector<1x2x1x8x64xf32> to vector<2x8x64xf32>
    %898 = arith.mulf %897, %888 : vector<2x8x64xf32>
    %c3_716 = arith.constant 3 : index
    %c0_717 = arith.constant 0 : index
    %c8_718 = arith.constant 8 : index
    %c0_719 = arith.constant 0 : index
    %c0_720 = arith.constant 0 : index
    %899 = vector.load %arg17[%c3_716, %c0_717, %c8_718, %c0_719, %c0_720] : memref<4x2x16x8x64xf32, #tpu.memory_space<vmem>>, vector<1x2x1x8x64xf32>
    %900 = vector.shape_cast %899 : vector<1x2x1x8x64xf32> to vector<2x8x64xf32>
    %901 = arith.addf %898, %900 : vector<2x8x64xf32>
    %902 = vector.extract_strided_slice %725 {offsets = [0, 8, 0], sizes = [2, 1, 8], strides = [1, 1, 1]} : vector<2x16x8xf32> to vector<2x1x8xf32>
    %903 = vector.shape_cast %902 : vector<2x1x8xf32> to vector<2x8xf32>
    %904 = vector.shape_cast %903 : vector<2x8xf32> to vector<2x8x1xf32>
    %905 = vector.broadcast %904 : vector<2x8x1xf32> to vector<2x8x64xf32>
    %906 = arith.mulf %905, %901 : vector<2x8x64xf32>
    %cst_721 = arith.constant dense<0.000000e+00> : vector<2x64xf32>
    %907 = vector.multi_reduction <add>, %906, %cst_721 [1] : vector<2x8x64xf32> to vector<2x64xf32>
    %908 = arith.addf %620, %907 : vector<2x64xf32>
    %c3_722 = arith.constant 3 : index
    %c0_723 = arith.constant 0 : index
    %c4_724 = arith.constant 4 : index
    %c0_725 = arith.constant 0 : index
    %c0_726 = arith.constant 0 : index
    %909 = vector.load %arg16[%c3_722, %c0_723, %c4_724, %c0_725, %c0_726] : memref<4x2x16x8x64xf32, #tpu.memory_space<vmem>>, vector<1x2x1x8x64xf32>
    %910 = vector.shape_cast %909 : vector<1x2x1x8x64xf32> to vector<2x8x64xf32>
    %911 = arith.mulf %910, %901 : vector<2x8x64xf32>
    %c3_727 = arith.constant 3 : index
    %c0_728 = arith.constant 0 : index
    %c4_729 = arith.constant 4 : index
    %c0_730 = arith.constant 0 : index
    %c0_731 = arith.constant 0 : index
    %912 = vector.load %arg17[%c3_727, %c0_728, %c4_729, %c0_730, %c0_731] : memref<4x2x16x8x64xf32, #tpu.memory_space<vmem>>, vector<1x2x1x8x64xf32>
    %913 = vector.shape_cast %912 : vector<1x2x1x8x64xf32> to vector<2x8x64xf32>
    %914 = arith.addf %911, %913 : vector<2x8x64xf32>
    %915 = vector.extract_strided_slice %725 {offsets = [0, 4, 0], sizes = [2, 1, 8], strides = [1, 1, 1]} : vector<2x16x8xf32> to vector<2x1x8xf32>
    %916 = vector.shape_cast %915 : vector<2x1x8xf32> to vector<2x8xf32>
    %917 = vector.shape_cast %916 : vector<2x8xf32> to vector<2x8x1xf32>
    %918 = vector.broadcast %917 : vector<2x8x1xf32> to vector<2x8x64xf32>
    %919 = arith.mulf %918, %914 : vector<2x8x64xf32>
    %cst_732 = arith.constant dense<0.000000e+00> : vector<2x64xf32>
    %920 = vector.multi_reduction <add>, %919, %cst_732 [1] : vector<2x8x64xf32> to vector<2x64xf32>
    %921 = arith.addf %672, %920 : vector<2x64xf32>
    %c3_733 = arith.constant 3 : index
    %c0_734 = arith.constant 0 : index
    %c0_735 = arith.constant 0 : index
    %c0_736 = arith.constant 0 : index
    %c0_737 = arith.constant 0 : index
    %922 = vector.load %arg16[%c3_733, %c0_734, %c0_735, %c0_736, %c0_737] : memref<4x2x16x8x64xf32, #tpu.memory_space<vmem>>, vector<1x2x1x8x64xf32>
    %923 = vector.shape_cast %922 : vector<1x2x1x8x64xf32> to vector<2x8x64xf32>
    %924 = arith.mulf %923, %914 : vector<2x8x64xf32>
    %c3_738 = arith.constant 3 : index
    %c0_739 = arith.constant 0 : index
    %c0_740 = arith.constant 0 : index
    %c0_741 = arith.constant 0 : index
    %c0_742 = arith.constant 0 : index
    %925 = vector.load %arg17[%c3_738, %c0_739, %c0_740, %c0_741, %c0_742] : memref<4x2x16x8x64xf32, #tpu.memory_space<vmem>>, vector<1x2x1x8x64xf32>
    %926 = vector.shape_cast %925 : vector<1x2x1x8x64xf32> to vector<2x8x64xf32>
    %927 = arith.addf %924, %926 : vector<2x8x64xf32>
    %928 = vector.extract_strided_slice %725 {offsets = [0, 0, 0], sizes = [2, 1, 8], strides = [1, 1, 1]} : vector<2x16x8xf32> to vector<2x1x8xf32>
    %929 = vector.shape_cast %928 : vector<2x1x8xf32> to vector<2x8xf32>
    %930 = vector.shape_cast %929 : vector<2x8xf32> to vector<2x8x1xf32>
    %931 = vector.broadcast %930 : vector<2x8x1xf32> to vector<2x8x64xf32>
    %932 = arith.mulf %931, %927 : vector<2x8x64xf32>
    %cst_743 = arith.constant dense<0.000000e+00> : vector<2x64xf32>
    %933 = vector.multi_reduction <add>, %932, %cst_743 [1] : vector<2x8x64xf32> to vector<2x64xf32>
    %934 = arith.addf %724, %933 : vector<2x64xf32>
    %935 = vector.shape_cast %934 : vector<2x64xf32> to vector<2x1x64xf32>
    %936 = vector.shape_cast %882 : vector<2x64xf32> to vector<2x1x64xf32>
    %937 = vector.shape_cast %830 : vector<2x64xf32> to vector<2x1x64xf32>
    %938 = vector.shape_cast %778 : vector<2x64xf32> to vector<2x1x64xf32>
    %939 = vector.shape_cast %921 : vector<2x64xf32> to vector<2x1x64xf32>
    %940 = vector.shape_cast %869 : vector<2x64xf32> to vector<2x1x64xf32>
    %941 = vector.shape_cast %817 : vector<2x64xf32> to vector<2x1x64xf32>
    %942 = vector.shape_cast %765 : vector<2x64xf32> to vector<2x1x64xf32>
    %943 = vector.shape_cast %908 : vector<2x64xf32> to vector<2x1x64xf32>
    %944 = vector.shape_cast %856 : vector<2x64xf32> to vector<2x1x64xf32>
    %945 = vector.shape_cast %804 : vector<2x64xf32> to vector<2x1x64xf32>
    %946 = vector.shape_cast %752 : vector<2x64xf32> to vector<2x1x64xf32>
    %947 = vector.shape_cast %895 : vector<2x64xf32> to vector<2x1x64xf32>
    %948 = vector.shape_cast %843 : vector<2x64xf32> to vector<2x1x64xf32>
    %949 = vector.shape_cast %791 : vector<2x64xf32> to vector<2x1x64xf32>
    %950 = vector.shape_cast %739 : vector<2x64xf32> to vector<2x1x64xf32>
    %951 = tpu.concatenate %935, %936, %937, %938, %939, %940, %941, %942, %943, %944, %945, %946, %947, %948, %949, %950 in 1 : vector<2x1x64xf32>, vector<2x1x64xf32>, vector<2x1x64xf32>, vector<2x1x64xf32>, vector<2x1x64xf32>, vector<2x1x64xf32>, vector<2x1x64xf32>, vector<2x1x64xf32>, vector<2x1x64xf32>, vector<2x1x64xf32>, vector<2x1x64xf32>, vector<2x1x64xf32>, vector<2x1x64xf32>, vector<2x1x64xf32>, vector<2x1x64xf32>, vector<2x1x64xf32> -> vector<2x16x64xf32>
    %c0_744 = arith.constant 0 : index
    %c0_745 = arith.constant 0 : index
    %952 = vector.load %arg6[%c0_744, %c0_745] : memref<1x64xf32, #tpu.memory_space<vmem>>, vector<1x64xf32>
    %953 = vector.shape_cast %952 : vector<1x64xf32> to vector<1x1x64xf32>
    %954 = vector.broadcast %953 : vector<1x1x64xf32> to vector<2x16x64xf32>
    %955 = arith.mulf %21, %954 : vector<2x16x64xf32>
    %956 = arith.addf %951, %955 : vector<2x16x64xf32>
    %957 = vector.shape_cast %956 : vector<2x16x64xf32> to vector<32x64xf32>
    %c0_746 = arith.constant 0 : index
    %c0_747 = arith.constant 0 : index
    %958 = vector.load %arg7[%c0_746, %c0_747] : memref<1x64xf32, #tpu.memory_space<vmem>>, vector<1x64xf32>
    %c0_748 = arith.constant 0 : index
    %c0_749 = arith.constant 0 : index
    %959 = vector.load %arg8[%c0_748, %c0_749] : memref<1x64xf32, #tpu.memory_space<vmem>>, vector<1x64xf32>
    %cst_750 = arith.constant dense<0.000000e+00> : vector<32xf32>
    %960 = vector.multi_reduction <add>, %957, %cst_750 [1] : vector<32x64xf32> to vector<32xf32>
    %961 = vector.shape_cast %960 : vector<32xf32> to vector<32x1xf32>
    %cst_751 = arith.constant 6.400000e+01 : f32
    %962 = vector.broadcast %cst_751 : f32 to vector<32x1xf32>
    %963 = arith.divf %961, %962 : vector<32x1xf32>
    %964 = vector.broadcast %963 : vector<32x1xf32> to vector<32x64xf32>
    %965 = arith.subf %957, %964 : vector<32x64xf32>
    %966 = arith.mulf %965, %965 : vector<32x64xf32>
    %cst_752 = arith.constant dense<0.000000e+00> : vector<32xf32>
    %967 = vector.multi_reduction <add>, %966, %cst_752 [1] : vector<32x64xf32> to vector<32xf32>
    %968 = vector.shape_cast %967 : vector<32xf32> to vector<32x1xf32>
    %cst_753 = arith.constant 6.400000e+01 : f32
    %969 = vector.broadcast %cst_753 : f32 to vector<32x1xf32>
    %970 = arith.divf %968, %969 : vector<32x1xf32>
    %cst_754 = arith.constant 9.99999974E-6 : f32
    %971 = vector.broadcast %cst_754 : f32 to vector<32x1xf32>
    %972 = arith.addf %970, %971 : vector<32x1xf32>
    %973 = math.rsqrt %972 : vector<32x1xf32>
    %974 = vector.broadcast %973 : vector<32x1xf32> to vector<32x64xf32>
    %975 = arith.mulf %965, %974 : vector<32x64xf32>
    %976 = vector.broadcast %958 : vector<1x64xf32> to vector<32x64xf32>
    %977 = arith.mulf %975, %976 : vector<32x64xf32>
    %978 = vector.broadcast %959 : vector<1x64xf32> to vector<32x64xf32>
    %979 = arith.addf %977, %978 : vector<32x64xf32>
    %c0_755 = arith.constant 0 : index
    %c0_756 = arith.constant 0 : index
    %980 = vector.load %arg1[%c0_755, %c0_756] : memref<32x128xf32, #tpu.memory_space<vmem>>, vector<32x128xf32>
    %981 = vector.extract_strided_slice %980 {offsets = [0, 64], sizes = [32, 64], strides = [1, 1]} : vector<32x128xf32> to vector<32x64xf32>
    %982 = arith.negf %981 : vector<32x64xf32>
    %983 = math.exp %982 : vector<32x64xf32>
    %cst_757 = arith.constant 1.000000e+00 : f32
    %984 = vector.broadcast %cst_757 : f32 to vector<32x64xf32>
    %985 = arith.addf %984, %983 : vector<32x64xf32>
    %986 = arith.divf %984, %985 : vector<32x64xf32>
    %987 = arith.mulf %981, %986 : vector<32x64xf32>
    %988 = arith.mulf %979, %987 : vector<32x64xf32>
    %989 = arith.truncf %988 : vector<32x64xf32> to vector<32x64xbf16>
    %c0_758 = arith.constant 0 : index
    %c0_759 = arith.constant 0 : index
    %990 = vector.load %arg9[%c0_758, %c0_759] : memref<64x32xbf16, #tpu.memory_space<vmem>>, vector<64x32xbf16>
    %cst_760 = arith.constant dense<0.000000e+00> : vector<32x32xf32>
    %991 = tpu.matmul %989, %990, %cst_760 {dimension_numbers = #tpu.dot_dimension_numbers<[1], [0], [0], [1], [0, 0, 1, 1], [], []>} : vector<32x64xbf16>, vector<64x32xbf16>, vector<32x32xf32> -> vector<32x32xf32>
    %c0_761 = arith.constant 0 : index
    %c0_762 = arith.constant 0 : index
    %992 = vector.load %arg10[%c0_761, %c0_762] : memref<1x32xf32, #tpu.memory_space<vmem>>, vector<1x32xf32>
    %993 = vector.broadcast %992 : vector<1x32xf32> to vector<32x32xf32>
    %994 = arith.addf %991, %993 : vector<32x32xf32>
    %c0_763 = arith.constant 0 : index
    %c0_764 = arith.constant 0 : index
    %995 = vector.load %arg2[%c0_763, %c0_764] : memref<32x32xf32, #tpu.memory_space<vmem>>, vector<32x32xf32>
    %996 = arith.addf %995, %994 : vector<32x32xf32>
    %c0_765 = arith.constant 0 : index
    %c0_766 = arith.constant 0 : index
    %997 = vector.load %arg11[%c0_765, %c0_766] : memref<1x32xf32, #tpu.memory_space<vmem>>, vector<1x32xf32>
    %c0_767 = arith.constant 0 : index
    %c0_768 = arith.constant 0 : index
    %998 = vector.load %arg12[%c0_767, %c0_768] : memref<1x32xf32, #tpu.memory_space<vmem>>, vector<1x32xf32>
    %cst_769 = arith.constant dense<0.000000e+00> : vector<32xf32>
    %999 = vector.multi_reduction <add>, %996, %cst_769 [1] : vector<32x32xf32> to vector<32xf32>
    %1000 = vector.shape_cast %999 : vector<32xf32> to vector<32x1xf32>
    %cst_770 = arith.constant 3.200000e+01 : f32
    %1001 = vector.broadcast %cst_770 : f32 to vector<32x1xf32>
    %1002 = arith.divf %1000, %1001 : vector<32x1xf32>
    %1003 = vector.broadcast %1002 : vector<32x1xf32> to vector<32x32xf32>
    %1004 = arith.subf %996, %1003 : vector<32x32xf32>
    %1005 = arith.mulf %1004, %1004 : vector<32x32xf32>
    %cst_771 = arith.constant dense<0.000000e+00> : vector<32xf32>
    %1006 = vector.multi_reduction <add>, %1005, %cst_771 [1] : vector<32x32xf32> to vector<32xf32>
    %1007 = vector.shape_cast %1006 : vector<32xf32> to vector<32x1xf32>
    %cst_772 = arith.constant 3.200000e+01 : f32
    %1008 = vector.broadcast %cst_772 : f32 to vector<32x1xf32>
    %1009 = arith.divf %1007, %1008 : vector<32x1xf32>
    %cst_773 = arith.constant 9.99999974E-6 : f32
    %1010 = vector.broadcast %cst_773 : f32 to vector<32x1xf32>
    %1011 = arith.addf %1009, %1010 : vector<32x1xf32>
    %1012 = math.rsqrt %1011 : vector<32x1xf32>
    %1013 = vector.broadcast %1012 : vector<32x1xf32> to vector<32x32xf32>
    %1014 = arith.mulf %1004, %1013 : vector<32x32xf32>
    %1015 = vector.broadcast %997 : vector<1x32xf32> to vector<32x32xf32>
    %1016 = arith.mulf %1014, %1015 : vector<32x32xf32>
    %1017 = vector.broadcast %998 : vector<1x32xf32> to vector<32x32xf32>
    %1018 = arith.addf %1016, %1017 : vector<32x32xf32>
    %1019 = vector.shape_cast %1018 : vector<32x32xf32> to vector<2x16x32xf32>
    %cst_774 = arith.constant dense<0.000000e+00> : vector<2x32xf32>
    %1020 = vector.multi_reduction <add>, %1019, %cst_774 [1] : vector<2x16x32xf32> to vector<2x32xf32>
    %cst_775 = arith.constant 1.600000e+01 : f32
    %1021 = vector.broadcast %cst_775 : f32 to vector<2x32xf32>
    %1022 = arith.divf %1020, %1021 : vector<2x32xf32>
    %1023 = arith.truncf %1022 : vector<2x32xf32> to vector<2x32xbf16>
    %c0_776 = arith.constant 0 : index
    %c0_777 = arith.constant 0 : index
    %1024 = vector.load %arg13[%c0_776, %c0_777] : memref<32x5xbf16, #tpu.memory_space<vmem>>, vector<32x5xbf16>
    %cst_778 = arith.constant dense<0.000000e+00> : vector<2x5xf32>
    %1025 = tpu.matmul %1023, %1024, %cst_778 {dimension_numbers = #tpu.dot_dimension_numbers<[1], [0], [0], [1], [0, 0, 1, 1], [], []>} : vector<2x32xbf16>, vector<32x5xbf16>, vector<2x5xf32> -> vector<2x5xf32>
    %c0_779 = arith.constant 0 : index
    %c0_780 = arith.constant 0 : index
    %1026 = vector.load %arg14[%c0_779, %c0_780] : memref<1x5xf32, #tpu.memory_space<vmem>>, vector<1x5xf32>
    %1027 = vector.broadcast %1026 : vector<1x5xf32> to vector<2x5xf32>
    %1028 = arith.addf %1025, %1027 : vector<2x5xf32>
    %c0_781 = arith.constant 0 : index
    %c0_782 = arith.constant 0 : index
    %1029 = vector.load %arg15[%c0_781, %c0_782] : memref<2x5xf32, #tpu.memory_space<vmem>>, vector<2x5xf32>
    tpu.vector_store %arg15[%c0_781, %c0_782], %1028 {strides = array<i32>} : memref<2x5xf32, #tpu.memory_space<vmem>>, vector<2x5xf32>,
    return
  }
}

</mosaic_0001>

<bundles_post_ra>
// kernel: mamba_unet_forward.3
= control target key start
LH: loop header
LB: loop body
LE: loop exit
PB: predicated region body
PF: predicated region fallthrough
CT: control target
= control target key end

     0   :  { %vm72_vm0 = vcmask 392192   ;;  %vm130_vm1 = vcmask 261120   ;;  %s583_s1 = inlined_call_operand.vmem [shape: bf16[48,32], index: 1, kind: input, shape index: {}]   ;;  %s584_s0 = inlined_call_operand.vmem [shape: f32[32,48], index: 0, kind: input, shape index: {}]   ;;  %s585_s2 = inlined_call_operand.vmem [shape: f32[1,32], index: 2, kind: input, shape index: {}, may-alias: {2,4,6}]   ;;  %s586_s3 = inlined_call_operand.vmem [shape: f32[1,32], index: 3, kind: input, shape index: {}, may-alias: {3,5}]   ;;  %s587_s4 = inlined_call_operand.vmem [shape: f32[1,32], index: 4, kind: input, shape index: {}, may-alias: {2,4,6}]   ;;  %s588_s9 = inlined_call_operand.vmem [shape: f32[32,32], index: 9, kind: output, shape index: {0}]   ;;  %s589_s7 = inlined_call_operand.vmem [shape: bf16[32,128], index: 7, kind: input, shape index: {}]   ;;  %s590_s5 = inlined_call_operand.vmem [shape: f32[1,32], index: 5, kind: input, shape index: {}, may-alias: {3,5}]   ;;  %s591_s6 = inlined_call_operand.vmem [shape: f32[1,32], index: 6, kind: input, shape index: {}, may-alias: {2,4,6}]   ;;  %s592_s8 = inlined_call_operand.vmem [shape: f32[1,128], index: 8, kind: input, shape index: {}]   ;;  %s593_s10 = inlined_call_operand.vmem [shape: f32[32,128], index: 10, kind: output, shape index: {1}]  }
   0x1   :  { %v416_v0 = vld [vmem:[%s583_s1] sm:$0xff]   ;;  %v417_v1 = vld [vmem:[%s583_s1 + $0x8] sm:$0xff]   ;;  %v418_v4 = vld [vmem:[%s583_s1 + $0x10] sm:$0xff]  }
   0x2   :  { %398 = vmatprep.subr.bf16.mxu0 %v416_v0  ;;  %v35_v2 = vld [vmem:[%s584_s0] sm:$0xff]  ;;  %v36_v3 = vld [vmem:[%s584_s0 + $0x8] sm:$0xff]  ;;  %v37_v6 = vld [vmem:[%s584_s0 + $0x10] sm:$0xff] }
   0x3   :  { %399 = vmatpush3.bf16.msra.mxu0 %v416_v0  ;;  %v39_v5 = vpack.c.bf16 %v36_v3, %v35_v2  ;;  %v38_v7 = vld [vmem:[%s584_s0 + $0x18] sm:$0xff]  ;;  %v374_v9 = vld [vmem:[%s585_s2] ss:$0 sm:$0xff] }
   0x4   :  { %400 = vmatprep.subr.bf16.mxu0 %v417_v1  ;;  %v40_v8 = vpack.c.bf16 %v38_v7, %v37_v6  ;;  %v380_v55 = vld [vmem:[%s586_s3] ss:$0 sm:$0xff] }
   0x5   :  { %404 = vmatprep.mubr.msk.bf16.mxu0 %vm72_vm0, %v39_v5  ;;  %v381_v57 = vld [vmem:[%s587_s4] ss:$0 sm:$0xff] }
   0x7   :  { %401 = vmatpush3.bf16.msra.mxu0 %v417_v1 }
   0x8   :  { %402 = vmatprep.subr.bf16.mxu0 %v418_v4 }
   0xb   :  { %403 = vmatpush3.bf16.msra.mxu0 %v418_v4 }
   0xe   :  { %405 = vmatmul.mubr.msk.bf16.vlgmr.msra.gmra.mrb[0].mxu0 %vm72_vm0, %v40_v8 }
  0xe1   :  { %v406_v10 = vpop.f32.mrb[0].mxu0 }
  0xe2   :  { %v122_v11 = vadd.f32 %v406_v10, %v374_v9  ;;  %v113_v12 = vpop.f32.mrb[1].mxu0 }
  0xe3   :  { %v114_v13 = vadd.f32 %v374_v9, %v113_v12  ;;  %v407_v14 = vpop.f32.mrb[2].mxu0 }
  0xe4   :  { %v125_v15 = vadd.f32 %v407_v14, %v374_v9  ;;  %v116_v16 = vpop.f32.mrb[3].mxu0  ;;  %v137_v17 = vsel %vm130_vm1, %v122_v11, 0.0 }
  0xe5   :  { %v117_v18 = vadd.f32 %v374_v9, %v116_v16  ;;  %138 = vadd.xlane.f32.xlu1 %v137_v17  ;;  %v131_v19 = vsel %vm130_vm1, %v114_v13, 0.0 }
  0xe6   :  { %132 = vadd.xlane.f32.xlu0 %v131_v19  ;;  %v140_v20 = vsel %vm130_vm1, %v125_v15, 0.0 }
  0xe7   :  { %v134_v21 = vsel %vm130_vm1, %v117_v18, 0.0 }
  0xe9   :  { %141 = vadd.xlane.f32.xlu1 %v140_v20 }
  0xea   :  { %135 = vadd.xlane.f32.xlu0 %v134_v21 }
 0x172   :  { %v139_v22 = vpop.xlane.xlu1 %138 }
 0x173   :  { %v146_v23 = vmul.f32 0.03125, %v139_v22  ;;  %v133_v24 = vpop.xlane.xlu0 %132 }
 0x174   :  { %v144_v25 = vmul.f32 0.03125, %v133_v24 }
 0x175   :  { %v150_v26 = vsub.f32 %v122_v11, %v146_v23 }
 0x176   :  { %v148_v27 = vsub.f32 %v114_v13, %v144_v25  ;;  %v142_v28 = vpop.xlane.xlu1 %141 }
 0x177   :  { %v147_v29 = vmul.f32 0.03125, %v142_v28  ;;  %v136_v30 = vpop.xlane.xlu0 %135  ;;  %v154_v36 = vmul.f32 %v150_v26, %v150_v26 }
 0x178   :  { %v145_v31 = vmul.f32 0.03125, %v136_v30  ;;  %v152_v32 = vmul.f32 %v148_v27, %v148_v27 }
 0x179   :  { %v151_v33 = vsub.f32 %v125_v15, %v147_v29  ;;  %v162_v38 = vsel %vm130_vm1, %v154_v36, 0.0 }
 0x17a   :  { %v149_v34 = vsub.f32 %v117_v18, %v145_v31  ;;  %v156_v35 = vsel %vm130_vm1, %v152_v32, 0.0  ;;  %v419_v32 = vld [vmem:[%s589_s7] sm:$0xff]  }
 0x17b   :  { %157 = vadd.xlane.f32.xlu0 %v156_v35  ;;  %v155_v40 = vmul.f32 %v151_v33, %v151_v33  ;;  %408 = vmatprep.subr.bf16.mxu1 %v419_v32 }
 0x17c   :  { %v153_v37 = vmul.f32 %v149_v34, %v149_v34  ;;  %409 = vmatpush3.bf16.msra.mxu1 %v419_v32 }
 0x17d   :  { %v165_v41 = vsel %vm130_vm1, %v155_v40, 0.0 }
 0x17e   :  { %v159_v39 = vsel %vm130_vm1, %v153_v37, 0.0 }
 0x17f   :  { %163 = vadd.xlane.f32.xlu0 %v162_v38  ;;  %160 = vadd.xlane.f32.xlu1 %v159_v39 }
 0x183   :  { %166 = vadd.xlane.f32.xlu1 %v165_v41 }
 0x208   :  { %v158_v42 = vpop.xlane.xlu0 %157 }
 0x209   :  { %v168_v43 = vmul.f32 0.03125, %v158_v42 }
 0x20b   :  { %v172_v44 = vadd.f32 1e-05, %v168_v43 }
 0x20c   :  { %v161_v45 = vpop.xlane.xlu1 %160  ;;  %v164_v46 = vpop.xlane.xlu0 %163 }
 0x20d   :  { %421 = vrsqrt.f32 %v172_v44  ;;  %v169_v47 = vmul.f32 0.03125, %v161_v45  ;;  %v170_v48 = vmul.f32 0.03125, %v164_v46 }
 0x20f   :  { %v173_v49 = vadd.f32 1e-05, %v169_v47  ;;  %v174_v50 = vadd.f32 1e-05, %v170_v48  ;;  %v382_v48 = vld [vmem:[%s590_s5] ss:$0 sm:$0xff] }
 0x210   :  { %v167_v51 = vpop.xlane.xlu1 %166 }
 0x211   :  { %423 = vrsqrt.f32 %v173_v49  ;;  %v171_v52 = vmul.f32 0.03125, %v167_v51 }
 0x212   :  { %425 = vrsqrt.f32 %v174_v50 }
 0x213   :  { %v175_v53 = vadd.f32 1e-05, %v171_v52 }
 0x215   :  { %427 = vrsqrt.f32 %v175_v53 }
 0x217   :  { %v422_v54 = vpop.eup %421 }
 0x218   :  { %v180_v56 = vmul.f32 %v422_v54, %v148_v27  ;;  %v383_v54 = vld [vmem:[%s591_s6] ss:$0 sm:$0xff] }
 0x21a   :  { %v190_v58 = vmul.f32 %v380_v55, %v180_v56 }
 0x21b   :  { %v424_v59 = vpop.eup %423 }
 0x21c   :  { %v426_v60 = vpop.eup %425  ;;  %v200_v61 = vadd.f32 %v381_v57, %v190_v58  ;;  %v181_v62 = vmul.f32 %v424_v59, %v149_v34 }
 0x21d   :  { %v182_v63 = vmul.f32 %v426_v60, %v150_v26 }
 0x21e   :  { %v210_v0 = vsel %vm130_vm1, %v200_v61, 0.0  ;;  %204 = vst.msk [vmem:[%s588_s9] sm:$0xff] %vm130_vm1, %v200_v61  ;;  %v191_v1 = vmul.f32 %v380_v55, %v181_v62 }
 0x21f   :  { %v428_v2 = vpop.eup %427  ;;  %211 = vadd.xlane.f32.xlu0 %v210_v0  ;;  %v192_v3 = vmul.f32 %v380_v55, %v182_v63 }
 0x220   :  { %v201_v4 = vadd.f32 %v381_v57, %v191_v1  ;;  %v183_v5 = vmul.f32 %v428_v2, %v151_v33  ;;  %v420_v33 = vld [vmem:[%s589_s7 + $0x8] sm:$0xff]   ;;  %v384_v2 = vld [vmem:[%s592_s8] ss:$0 sm:$0xff] }
 0x221   :  { %v202_v6 = vadd.f32 %v381_v57, %v192_v3  ;;  %410 = vmatprep.subr.bf16.mxu1 %v420_v33 }
 0x222   :  { %v213_v7 = vsel %vm130_vm1, %v201_v4, 0.0  ;;  %205 = vst.msk [vmem:[%s588_s9 + $0x8] sm:$0xff] %vm130_vm1, %v201_v4  ;;  %v193_v8 = vmul.f32 %v380_v55, %v183_v5  ;;  %411 = vmatpush3.bf16.msra.mxu1 %v420_v33 }
 0x223   :  { %214 = vadd.xlane.f32.xlu1 %v213_v7  ;;  %v216_v9 = vsel %vm130_vm1, %v202_v6, 0.0  ;;  %206 = vst.msk [vmem:[%s588_s9 + $0x10] sm:$0xff] %vm130_vm1, %v202_v6 }
 0x224   :  { %217 = vadd.xlane.f32.xlu0 %v216_v9  ;;  %v203_v10 = vadd.f32 %v381_v57, %v193_v8 }
 0x226   :  { %v219_v11 = vsel %vm130_vm1, %v203_v10, 0.0  ;;  %207 = vst.msk [vmem:[%s588_s9 + $0x18] sm:$0xff] %vm130_vm1, %v203_v10 }
 0x227   :  { %220 = vadd.xlane.f32.xlu1 %v219_v11 }
 0x2ac   :  { %v212_v12 = vpop.xlane.xlu0 %211 }
 0x2ad   :  { %v222_v13 = vmul.f32 0.03125, %v212_v12 }
 0x2af   :  { %v226_v14 = vsub.f32 %v200_v61, %v222_v13 }
 0x2b0   :  { %v215_v15 = vpop.xlane.xlu1 %214 }
 0x2b1   :  { %v223_v16 = vmul.f32 0.03125, %v215_v15  ;;  %v218_v17 = vpop.xlane.xlu0 %217  ;;  %v230_v18 = vmul.f32 %v226_v14, %v226_v14 }
 0x2b2   :  { %v224_v19 = vmul.f32 0.03125, %v218_v17 }
 0x2b3   :  { %v227_v20 = vsub.f32 %v201_v4, %v223_v16  ;;  %v234_v21 = vsel %vm130_vm1, %v230_v18, 0.0 }
 0x2b4   :  { %v228_v22 = vsub.f32 %v202_v6, %v224_v19  ;;  %v221_v23 = vpop.xlane.xlu1 %220  ;;  %235 = vadd.xlane.f32.xlu0 %v234_v21 }
 0x2b5   :  { %v225_v24 = vmul.f32 0.03125, %v221_v23  ;;  %v231_v25 = vmul.f32 %v227_v20, %v227_v20 }
 0x2b6   :  { %v232_v26 = vmul.f32 %v228_v22, %v228_v22 }
 0x2b7   :  { %v229_v27 = vsub.f32 %v203_v10, %v225_v24  ;;  %v237_v28 = vsel %vm130_vm1, %v231_v25, 0.0 }
 0x2b8   :  { %238 = vadd.xlane.f32.xlu1 %v237_v28  ;;  %v240_v29 = vsel %vm130_vm1, %v232_v26, 0.0 }
 0x2b9   :  { %241 = vadd.xlane.f32.xlu0 %v240_v29  ;;  %v233_v30 = vmul.f32 %v229_v27, %v229_v27 }
 0x2bb   :  { %v243_v31 = vsel %vm130_vm1, %v233_v30, 0.0 }
 0x2bc   :  { %244 = vadd.xlane.f32.xlu1 %v243_v31 }
 0x341   :  { %v236_v34 = vpop.xlane.xlu0 %235 }
 0x342   :  { %v246_v35 = vmul.f32 0.03125, %v236_v34 }
 0x344   :  { %v250_v36 = vadd.f32 1e-05, %v246_v35 }
 0x345   :  { %v239_v37 = vpop.xlane.xlu1 %238 }
 0x346   :  { %429 = vrsqrt.f32 %v250_v36  ;;  %v247_v38 = vmul.f32 0.03125, %v239_v37  ;;  %v242_v39 = vpop.xlane.xlu0 %241 }
 0x347   :  { %v248_v40 = vmul.f32 0.03125, %v242_v39 }
 0x348   :  { %v251_v41 = vadd.f32 1e-05, %v247_v38 }
 0x349   :  { %v252_v42 = vadd.f32 1e-05, %v248_v40  ;;  %v245_v43 = vpop.xlane.xlu1 %244 }
 0x34a   :  { %431 = vrsqrt.f32 %v251_v41  ;;  %v249_v44 = vmul.f32 0.03125, %v245_v43 }
 0x34b   :  { %433 = vrsqrt.f32 %v252_v42 }
 0x34c   :  { %v253_v45 = vadd.f32 1e-05, %v249_v44 }
 0x34e   :  { %435 = vrsqrt.f32 %v253_v45 }
 0x350   :  { %v430_v46 = vpop.eup %429 }
 0x351   :  { %v258_v47 = vmul.f32 %v430_v46, %v226_v14 }
 0x353   :  { %v268_v52 = vmul.f32 %v382_v48, %v258_v47 }
 0x354   :  { %v432_v49 = vpop.eup %431 }
 0x355   :  { %v434_v50 = vpop.eup %433  ;;  %v259_v51 = vmul.f32 %v432_v49, %v227_v20  ;;  %v278_v58 = vadd.f32 %v383_v54, %v268_v52 }
 0x356   :  { %v260_v53 = vmul.f32 %v434_v50, %v228_v22 }
 0x357   :  { %v269_v55 = vmul.f32 %v382_v48, %v259_v51 }
 0x358   :  { %v436_v56 = vpop.eup %435  ;;  %v270_v60 = vmul.f32 %v382_v48, %v260_v53 }
 0x359   :  { %v261_v57 = vmul.f32 %v436_v56, %v229_v27  ;;  %v279_v59 = vadd.f32 %v383_v54, %v269_v55 }
 0x35a   :  { %v280_v63 = vadd.f32 %v383_v54, %v270_v60 }
 0x35b   :  { %v282_v61 = vpack.c.bf16 %v279_v59, %v278_v58  ;;  %v271_v62 = vmul.f32 %v382_v48, %v261_v57 }
 0x35d   :  { %412 = vmatprep.mubr.msk.bf16.mxu1 %vm130_vm1, %v282_v61  ;;  %v281_v0 = vadd.f32 %v383_v54, %v271_v62 }
 0x35f   :  { %v283_v1 = vpack.c.bf16 %v281_v0, %v280_v63 }
 0x361   :  { %413 = vmatmul.mubr.msk.bf16.vlgmr.msra.gmra.mrb[0].mxu1 %vm130_vm1, %v283_v1 }
 0x434   :  { %v414_v3 = vpop.f32.mrb[0].mxu1 }
 0x435   :  { %v356_v4 = vadd.f32 %v414_v3, %v384_v2  ;;  %v347_v5 = vpop.f32.mrb[1].mxu1 }
 0x436   :  { %v348_v6 = vadd.f32 %v384_v2, %v347_v5  ;;  %v415_v7 = vpop.f32.mrb[2].mxu1 }
 0x437   :  { %364 = vst [vmem:[%s593_s10 + $0x10] sm:$0xff] %v356_v4  ;;  %v359_v8 = vadd.f32 %v415_v7, %v384_v2  ;;  %v350_v9 = vpop.f32.mrb[3].mxu1 }
 0x438   :  { %362 = vst [vmem:[%s593_s10] sm:$0xff] %v348_v6  ;;  %v351_v10 = vadd.f32 %v384_v2, %v350_v9 }
 0x439   :  { %365 = vst [vmem:[%s593_s10 + $0x18] sm:$0xff] %v359_v8 }
 0x43a   :  { %363 = vst [vmem:[%s593_s10 + $0x8] sm:$0xff] %v351_v10 }

// kernel: mamba_unet_forward.4
= control target key start
LH: loop header
LB: loop body
LE: loop exit
PB: predicated region body
PF: predicated region fallthrough
CT: control target
= control target key end

     0   :  { %v28_v0 = vlaneseq  ;;  %vm423_vm0 = vcmask 519168   ;;  %s703_s0 = inlined_call_operand.vmem [shape: f32[2,6,8,64], index: 0, kind: input, shape index: {}]   ;;  %s704_s1 = inlined_call_operand.vmem [shape: f32[9,64], index: 1, kind: input, shape index: {}]   ;;  %s705_s2 = inlined_call_operand.vmem [shape: f32[1,64], index: 2, kind: input, shape index: {}]   ;;  %s706_s3 = inlined_call_operand.vmem [shape: f32[2,4,4,64], index: 3, kind: output, shape index: {}]  }
   0x1   :  { %v16_v1 = vld [vmem:[%s703_s0 + $0x10] sm:$0xff]  ;;  %v504_v2 = vld [vmem:[%s704_s1 + $0x8] ss:$0 sm:$0xff]  ;;  %v26_v4 = vld [vmem:[%s704_s1] sm:$0xff] }
   0x2   :  { %v29_v3 = vshrl.u32 %v28_v0, 7  ;;  %v510_v5 = vmul.f32 %v504_v2, %v16_v1  ;;  %v14_v10 = vld [vmem:[%s703_s0] sm:$0xff]  ;;  %v15_v23 = vld [vmem:[%s703_s0 + $0x8] sm:$0xff]  ;;  %v17_v40 = vld [vmem:[%s703_s0 + $0x18] sm:$0xff] }
   0x3   :  { %v554_v50 = vmul.f32 %v504_v2, %v17_v40  ;;  %v18_v0 = vld [vmem:[%s703_s0 + $0x20] sm:$0xff] }
   0x4   :  { %v30_v6 = vsub.s32 0, %v29_v3  ;;  %v50_v7 = vsub.s32 1, %v29_v3  ;;  %v94_v8 = vsub.s32 2, %v29_v3  ;;  %v138_v9 = vsub.s32 3, %v29_v3 }
   0x5   :  { %v158_v11 = vsub.s32 4, %v29_v3  ;;  %v202_v12 = vsub.s32 5, %v29_v3  ;;  %v246_v13 = vsub.s32 6, %v29_v3  ;;  %v266_v14 = vsub.s32 7, %v29_v3 }
   0x6   :  { %v515_v15 = vrot.slane %v26_v4, %v30_v6  ;;  %v517_v16 = vrot.slane %v26_v4, %v50_v7  ;;  %v519_v17 = vrot.slane %v26_v4, %v94_v8  ;;  %v521_v18 = vrot.slane %v26_v4, %v138_v9 }
   0x7   :  { %v523_v19 = vrot.slane %v26_v4, %v158_v11  ;;  %v525_v20 = vrot.slane %v26_v4, %v202_v12  ;;  %v527_v21 = vrot.slane %v26_v4, %v246_v13  ;;  %v529_v22 = vrot.slane %v26_v4, %v266_v14 }
   0x8   :  { %v32_v24 = vmul.f32 %v515_v15, %v14_v10  ;;  %v52_v25 = vmul.f32 %v517_v16, %v14_v10  ;;  %v96_v26 = vmul.f32 %v519_v17, %v14_v10  ;;  %v140_v32 = vmul.f32 %v521_v18, %v15_v23 }
   0x9   :  { %v160_v27 = vmul.f32 %v523_v19, %v15_v23  ;;  %v204_v28 = vmul.f32 %v525_v20, %v15_v23  ;;  %v268_v29 = vmul.f32 %v529_v22, %v16_v1  ;;  %v248_v33 = vmul.f32 %v527_v21, %v16_v1 }
   0xa   :  { %v68_v30 = vrot.slane %v52_v25, 1  ;;  %v112_v31 = vrot.slane %v96_v26, 2  ;;  %v328_v35 = vrot.slane %v510_v5, 2  ;;  %v33_v36 = vmul.f32 %v515_v15, %v15_v23 }
   0xb   :  { %v176_v34 = vrot.slane %v160_v27, 1  ;;  %v53_v37 = vmul.f32 %v517_v16, %v15_v23  ;;  %v220_v39 = vrot.slane %v204_v28, 2  ;;  %v97_v41 = vmul.f32 %v519_v17, %v15_v23 }
   0xc   :  { %v84_v38 = vadd.f32 %v68_v30, %v32_v24  ;;  %v161_v42 = vmul.f32 %v523_v19, %v16_v1  ;;  %v284_v43 = vrot.slane %v268_v29, 1  ;;  %v205_v45 = vmul.f32 %v525_v20, %v16_v1  ;;  %v19_v30 = vld [vmem:[%s703_s0 + $0x28] sm:$0xff] }
   0xd   :  { %v69_v44 = vrot.slane %v53_v37, 1  ;;  %v269_v46 = vmul.f32 %v529_v22, %v17_v40  ;;  %v113_v48 = vrot.slane %v97_v41, 2  ;;  %v141_v49 = vmul.f32 %v521_v18, %v16_v1 }
   0xe   :  { %v128_v47 = vadd.f32 %v112_v31, %v84_v38  ;;  %v177_v52 = vrot.slane %v161_v42, 1  ;;  %v221_v53 = vrot.slane %v205_v45, 2  ;;  %v249_v54 = vmul.f32 %v527_v21, %v17_v40 }
   0xf   :  { %v85_v51 = vadd.f32 %v69_v44, %v33_v36  ;;  %v34_v56 = vmul.f32 %v515_v15, %v16_v1  ;;  %v54_v57 = vmul.f32 %v517_v16, %v16_v1  ;;  %v98_v58 = vmul.f32 %v519_v17, %v16_v1 }
  0x10   :  { %v148_v55 = vadd.f32 %v140_v32, %v128_v47  ;;  %v285_v60 = vrot.slane %v269_v46, 1  ;;  %v329_v61 = vrot.slane %v554_v50, 2  ;;  %v162_v62 = vmul.f32 %v523_v19, %v17_v40  ;;  %v20_v46 = vld [vmem:[%s703_s0 + $0x30] sm:$0xff] }
  0x11   :  { %v129_v59 = vadd.f32 %v113_v48, %v85_v51  ;;  %v70_v3 = vrot.slane %v54_v57, 1  ;;  %v114_v4 = vrot.slane %v98_v58, 2  ;;  %v206_v6 = vmul.f32 %v525_v20, %v17_v40 }
  0x12   :  { %v192_v63 = vadd.f32 %v176_v34, %v148_v55  ;;  %v142_v8 = vmul.f32 %v521_v18, %v17_v40  ;;  %v250_v1 = vmul.f32 %v527_v21, %v18_v0  ;;  %v270_v9 = vmul.f32 %v529_v22, %v18_v0 }
  0x13   :  { %v149_v7 = vadd.f32 %v141_v49, %v129_v59  ;;  %v86_v11 = vadd.f32 %v70_v3, %v34_v56  ;;  %v178_v12 = vrot.slane %v162_v62, 1  ;;  %v314_v13 = vmul.f32 %v504_v2, %v18_v0  ;;  %v21_v59 = vld [vmem:[%s703_s0 + $0x38] sm:$0xff] }
  0x14   :  { %v236_v10 = vadd.f32 %v220_v39, %v192_v63  ;;  %v35_v23 = vmul.f32 %v515_v15, %v17_v40  ;;  %v55_v24 = vmul.f32 %v517_v16, %v17_v40  ;;  %v99_v25 = vmul.f32 %v519_v17, %v17_v40 }
  0x15   :  { %v193_v14 = vadd.f32 %v177_v52, %v149_v7  ;;  %v130_v27 = vadd.f32 %v114_v4, %v86_v11  ;;  %v222_v28 = vrot.slane %v206_v6, 2  ;;  %v286_v29 = vrot.slane %v270_v9, 1 }
  0x16   :  { %v256_v26 = vadd.f32 %v248_v33, %v236_v10  ;;  %v71_v32 = vrot.slane %v55_v24, 1  ;;  %v115_v34 = vrot.slane %v99_v25, 2  ;;  %v163_v36 = vmul.f32 %v523_v19, %v18_v0  ;;  %v581_v33 = vld [vmem:[%s705_s2] ss:$0 sm:$0xff] }
  0x17   :  { %v237_v31 = vadd.f32 %v221_v53, %v193_v14  ;;  %v150_v38 = vadd.f32 %v142_v8, %v130_v27  ;;  %v330_v39 = vrot.slane %v314_v13, 2  ;;  %v207_v41 = vmul.f32 %v525_v20, %v18_v0 }
  0x18   :  { %v300_v37 = vadd.f32 %v284_v43, %v256_v26  ;;  %v87_v42 = vadd.f32 %v71_v32, %v35_v23  ;;  %v143_v44 = vmul.f32 %v521_v18, %v18_v0  ;;  %v271_v45 = vmul.f32 %v529_v22, %v19_v30 }
  0x19   :  { %v257_v40 = vadd.f32 %v249_v54, %v237_v31  ;;  %v194_v47 = vadd.f32 %v178_v12, %v150_v38  ;;  %v179_v48 = vrot.slane %v163_v36, 1  ;;  %v251_v49 = vmul.f32 %v527_v21, %v19_v30 }
  0x1a   :  { %v344_v43 = vadd.f32 %v328_v35, %v300_v37  ;;  %v131_v51 = vadd.f32 %v115_v34, %v87_v42  ;;  %v223_v52 = vrot.slane %v207_v41, 2  ;;  %v315_v53 = vmul.f32 %v504_v2, %v19_v30 }
  0x1b   :  { %v301_v50 = vadd.f32 %v285_v60, %v257_v40  ;;  %v238_v55 = vadd.f32 %v222_v28, %v194_v47  ;;  %v36_v56 = vmul.f32 %v515_v15, %v20_v46  ;;  %v56_v57 = vmul.f32 %v517_v16, %v20_v46 }
  0x1c   :  { %v593_v54 = vadd.f32 %v581_v33, %v344_v43  ;;  %v151_v5 = vadd.f32 %v143_v44, %v131_v51  ;;  %v287_v35 = vrot.slane %v271_v45, 1  ;;  %v100_v60 = vmul.f32 %v519_v17, %v20_v46  ;;  %v23_v46 = vld [vmem:[%s703_s0 + $0x48] sm:$0xff] }
  0x1d   :  { %v345_v58 = vadd.f32 %v329_v61, %v301_v50  ;;  %v258_v63 = vadd.f32 %v250_v1, %v238_v55  ;;  %v72_v0 = vrot.slane %v56_v57, 1  ;;  %v164_v3 = vmul.f32 %v523_v19, %v21_v59  ;;  %v22_v1 = vld [vmem:[%s703_s0 + $0x40] sm:$0xff] }
  0x1e   :  { %v438_v62 = vmul.f32 -1.442695, %v593_v54  ;;  %v195_v6 = vadd.f32 %v179_v48, %v151_v5  ;;  %v116_v7 = vrot.slane %v100_v60, 2  ;;  %v208_v61 = vmul.f32 %v525_v20, %v21_v59 }
  0x1f   :  { %v604_v4 = vadd.f32 %v581_v33, %v345_v58  ;;  %v302_v8 = vadd.f32 %v286_v29, %v258_v63  ;;  %v88_v9 = vadd.f32 %v72_v0, %v36_v56  ;;  %v144_v10 = vmul.f32 %v521_v18, %v21_v59 }
  0x20   :  { %446 = vpow2.f32 %v438_v62  ;;  %v239_v12 = vadd.f32 %v223_v52, %v195_v6  ;;  %v331_v13 = vrot.slane %v315_v53, 2  ;;  %v180_v14 = vrot.slane %v164_v3, 1 }
  0x21   :  { %v439_v11 = vmul.f32 -1.442695, %v604_v4  ;;  %v346_v23 = vadd.f32 %v330_v39, %v302_v8  ;;  %v132_v24 = vadd.f32 %v116_v7, %v88_v9  ;;  %v224_v25 = vrot.slane %v208_v61, 2 }
  0x22   :  { %v272_v26 = vmul.f32 %v529_v22, %v22_v1  ;;  %v259_v27 = vadd.f32 %v251_v49, %v239_v12  ;;  %v37_v28 = vmul.f32 %v515_v15, %v21_v59  ;;  %v57_v29 = vmul.f32 %v517_v16, %v21_v59 }
  0x23   :  { %448 = vpow2.f32 %v439_v11  ;;  %v616_v30 = vadd.f32 %v581_v33, %v346_v23  ;;  %v152_v31 = vadd.f32 %v144_v10, %v132_v24  ;;  %v252_v32 = vmul.f32 %v527_v21, %v22_v1  ;;  %v24_v24 = vld [vmem:[%s703_s0 + $0x50] sm:$0xff] }
  0x24   :  { %v316_v34 = vmul.f32 %v504_v2, %v22_v1  ;;  %v303_v36 = vadd.f32 %v287_v35, %v259_v27  ;;  %v288_v37 = vrot.slane %v272_v26, 1  ;;  %v73_v38 = vrot.slane %v57_v29, 1 }
  0x25   :  { %v101_v39 = vmul.f32 %v519_v17, %v21_v59  ;;  %v440_v41 = vmul.f32 -1.442695, %v616_v30  ;;  %v196_v40 = vadd.f32 %v180_v14, %v152_v31  ;;  %v165_v42 = vmul.f32 %v523_v19, %v22_v1 }
  0x26   :  { %v209_v44 = vmul.f32 %v525_v20, %v22_v1  ;;  %v347_v45 = vadd.f32 %v331_v13, %v303_v36  ;;  %v89_v43 = vadd.f32 %v73_v38, %v37_v28  ;;  %v145_v48 = vmul.f32 %v521_v18, %v22_v1 }
  0x27   :  { %v117_v47 = vrot.slane %v101_v39, 2  ;;  %450 = vpow2.f32 %v440_v41  ;;  %v240_v49 = vadd.f32 %v224_v25, %v196_v40  ;;  %v332_v50 = vrot.slane %v316_v34, 2 }
  0x28   :  { %v253_v51 = vmul.f32 %v527_v21, %v23_v46  ;;  %v630_v52 = vadd.f32 %v581_v33, %v347_v45  ;;  %v181_v55 = vrot.slane %v165_v42, 1  ;;  %v225_v56 = vrot.slane %v209_v44, 2 }
  0x29   :  { %v133_v53 = vadd.f32 %v117_v47, %v89_v43  ;;  %v260_v58 = vadd.f32 %v252_v32, %v240_v49  ;;  %v38_v5 = vmul.f32 %v515_v15, %v22_v1  ;;  %v58_v35 = vmul.f32 %v517_v16, %v22_v1 }
  0x2a   :  { %v447_v57 = vpop.eup %446  ;;  %v102_v59 = vmul.f32 %v519_v17, %v22_v1  ;;  %v441_v62 = vmul.f32 -1.442695, %v630_v52  ;;  %v273_v0 = vmul.f32 %v529_v22, %v23_v46  ;;  %v317_v6 = vmul.f32 %v504_v2, %v23_v46 }
  0x2b   :  { %v391_v60 = vadd.f32 1.0, %v447_v57  ;;  %v153_v63 = vadd.f32 %v145_v48, %v133_v53  ;;  %v304_v3 = vadd.f32 %v288_v37, %v260_v58  ;;  %v74_v7 = vrot.slane %v58_v35, 1 }
  0x2c   :  { %v118_v61 = vrot.slane %v102_v59, 2  ;;  %v146_v10 = vmul.f32 %v521_v18, %v23_v46  ;;  %v166_v11 = vmul.f32 %v523_v19, %v23_v46  ;;  %v289_v23 = vrot.slane %v273_v0, 1 }
  0x2d   :  { %v449_v8 = vpop.eup %448  ;;  %452 = vrcp.f32 %v391_v60  ;;  %v197_v9 = vadd.f32 %v181_v55, %v153_v63  ;;  %v348_v13 = vadd.f32 %v332_v50, %v304_v3  ;;  %v90_v1 = vadd.f32 %v74_v7, %v38_v5 }
  0x2e   :  { %v392_v12 = vadd.f32 1.0, %v449_v8  ;;  %454 = vpow2.f32 %v441_v62  ;;  %v182_v25 = vrot.slane %v166_v11, 1  ;;  %v210_v26 = vmul.f32 %v525_v20, %v23_v46 }
  0x2f   :  { %v241_v14 = vadd.f32 %v225_v56, %v197_v9  ;;  %v645_v27 = vadd.f32 %v581_v33, %v348_v13  ;;  %v134_v28 = vadd.f32 %v118_v61, %v90_v1  ;;  %v274_v29 = vmul.f32 %v529_v22, %v24_v24 }
  0x30   :  { %456 = vrcp.f32 %v392_v12  ;;  %v333_v32 = vrot.slane %v317_v6, 2  ;;  %v226_v34 = vrot.slane %v210_v26, 2  ;;  %v254_v36 = vmul.f32 %v527_v21, %v24_v24 }
  0x31   :  { %v261_v31 = vadd.f32 %v253_v51, %v241_v14  ;;  %v451_v37 = vpop.eup %450  ;;  %v442_v38 = vmul.f32 -1.442695, %v645_v27  ;;  %v154_v39 = vadd.f32 %v146_v10, %v134_v28  ;;  %v39_v41 = vmul.f32 %v515_v15, %v23_v46 }
  0x32   :  { %v59_v40 = vmul.f32 %v517_v16, %v23_v46  ;;  %v393_v42 = vadd.f32 1.0, %v451_v37  ;;  %v318_v45 = vmul.f32 %v504_v2, %v24_v24  ;;  %v103_v43 = vmul.f32 %v519_v17, %v23_v46  ;;  %v25_v46 = vld [vmem:[%s703_s0 + $0x58] sm:$0xff] }
  0x33   :  { %v305_v44 = vadd.f32 %v289_v23, %v261_v31  ;;  %458 = vpow2.f32 %v442_v38  ;;  %v198_v47 = vadd.f32 %v182_v25, %v154_v39  ;;  %v290_v48 = vrot.slane %v274_v29, 1 }
  0x34   :  { %v75_v49 = vrot.slane %v59_v40, 1  ;;  %460 = vrcp.f32 %v393_v42  ;;  %v119_v51 = vrot.slane %v103_v43, 2  ;;  %v167_v53 = vmul.f32 %v523_v19, %v24_v24 }
  0x35   :  { %v349_v50 = vadd.f32 %v333_v32, %v305_v44  ;;  %v242_v55 = vadd.f32 %v226_v34, %v198_v47  ;;  %v147_v15 = vmul.f32 %v521_v18, %v24_v24  ;;  %v211_v16 = vmul.f32 %v525_v20, %v24_v24 }
  0x36   :  { %v91_v56 = vadd.f32 %v75_v49, %v39_v41  ;;  %v334_v17 = vrot.slane %v318_v45, 2  ;;  %v183_v60 = vrot.slane %v167_v53, 1  ;;  %v275_v6 = vmul.f32 %v529_v22, %v25_v46 }
  0x37   :  { %v453_v57 = vpop.eup %452  ;;  %v364_v58 = vadd.f32 %v581_v33, %v349_v50  ;;  %v262_v59 = vadd.f32 %v254_v36, %v242_v55  ;;  %v227_v3 = vrot.slane %v211_v16, 2  ;;  %v319_v9 = vmul.f32 %v504_v2, %v25_v46 }
  0x38   :  { %v455_v5 = vpop.eup %454  ;;  %v415_v35 = vmul.f32 %v453_v57, %v593_v54  ;;  %v135_v19 = vadd.f32 %v119_v51, %v91_v56  ;;  %v255_v54 = vmul.f32 %v527_v21, %v25_v46  ;;  %v291_v22 = vrot.slane %v275_v6, 1 }
  0x39   :  { %v394_v62 = vadd.f32 1.0, %v455_v5  ;;  %v443_v63 = vmul.f32 -1.442695, %v364_v58  ;;  %v306_v20 = vadd.f32 %v290_v48, %v262_v59  ;;  %v335_v23 = vrot.slane %v319_v9, 2 }
  0x3a   :  { %v457_v18 = vpop.eup %456  ;;  %424 = vst.msk [vmem:[%s706_s3] sm:$0xf] %vm423_vm0, %v415_v35  ;;  %v155_v0 = vadd.f32 %v147_v15, %v135_v19 }
  0x3b   :  { %v416_v7 = vmul.f32 %v457_v18, %v604_v4  ;;  %462 = vrcp.f32 %v394_v62  ;;  %v350_v61 = vadd.f32 %v334_v17, %v306_v20 }
  0x3c   :  { %464 = vpow2.f32 %v443_v63  ;;  %v199_v8 = vadd.f32 %v183_v60, %v155_v0 }
  0x3d   :  { %425 = vst.msk [vmem:[%s706_s3 + $0x4] sm:$0xf] %vm423_vm0, %v416_v7  ;;  %v459_v10 = vpop.eup %458  ;;  %v365_v11 = vadd.f32 %v581_v33, %v350_v61 }
  0x3e   :  { %v243_v12 = vadd.f32 %v227_v3, %v199_v8  ;;  %v461_v13 = vpop.eup %460  ;;  %v395_v4 = vadd.f32 1.0, %v459_v10 }
  0x3f   :  { %v417_v1 = vmul.f32 %v461_v13, %v616_v30  ;;  %v444_v21 = vmul.f32 -1.442695, %v365_v11 }
  0x40   :  { %v263_v14 = vadd.f32 %v255_v54, %v243_v12  ;;  %466 = vrcp.f32 %v395_v4 }
  0x41   :  { %426 = vst.msk [vmem:[%s706_s3 + $0x8] sm:$0xf] %vm423_vm0, %v417_v1  ;;  %468 = vpow2.f32 %v444_v21 }
  0x42   :  { %v307_v2 = vadd.f32 %v291_v22, %v263_v14 }
  0x44   :  { %v351_v24 = vadd.f32 %v335_v23, %v307_v2 }
  0x45   :  { %v463_v25 = vpop.eup %462 }
  0x46   :  { %v465_v26 = vpop.eup %464  ;;  %v418_v28 = vmul.f32 %v463_v25, %v630_v52  ;;  %v366_v29 = vadd.f32 %v581_v33, %v351_v24 }
  0x47   :  { %v396_v31 = vadd.f32 1.0, %v465_v26 }
  0x48   :  { %427 = vst.msk [vmem:[%s706_s3 + $0xc] sm:$0xf] %vm423_vm0, %v418_v28  ;;  %v445_v30 = vmul.f32 -1.442695, %v366_v29 }
  0x49   :  { %470 = vrcp.f32 %v396_v31 }
  0x4a   :  { %472 = vpow2.f32 %v445_v30  ;;  %v467_v32 = vpop.eup %466 }
  0x4b   :  { %v469_v34 = vpop.eup %468  ;;  %v419_v36 = vmul.f32 %v467_v32, %v645_v27 }
  0x4c   :  { %v397_v37 = vadd.f32 1.0, %v469_v34 }
  0x4d   :  { %428 = vst.msk [vmem:[%s706_s3 + $0x10] sm:$0xf] %vm423_vm0, %v419_v36 }
  0x4e   :  { %474 = vrcp.f32 %v397_v37 }
  0x53   :  { %v471_v33 = vpop.eup %470 }
  0x54   :  { %v473_v52 = vpop.eup %472  ;;  %v420_v38 = vmul.f32 %v471_v33, %v364_v58 }
  0x55   :  { %v398_v39 = vadd.f32 1.0, %v473_v52 }
  0x56   :  { %429 = vst.msk [vmem:[%s706_s3 + $0x14] sm:$0xf] %vm423_vm0, %v420_v38 }
  0x57   :  { %476 = vrcp.f32 %v398_v39 }
  0x58   :  { %v475_v41 = vpop.eup %474 }
  0x59   :  { %v421_v40 = vmul.f32 %v475_v41, %v365_v11 }
  0x5b   :  { %430 = vst.msk [vmem:[%s706_s3 + $0x18] sm:$0xf] %vm423_vm0, %v421_v40 }
  0x61   :  { %v477_v27 = vpop.eup %476 }
  0x62   :  { %v422_v42 = vmul.f32 %v477_v27, %v366_v29 }
  0x64   :  { %431 = vst.msk [vmem:[%s706_s3 + $0x1c] sm:$0xf] %vm423_vm0, %v422_v42 }

// kernel: mamba_unet_forward.5
= control target key start
LH: loop header
LB: loop body
LE: loop exit
PB: predicated region body
PF: predicated region fallthrough
CT: control target
= control target key end

     0   :  { %vm138_vm0 = vcmask 523264   ;;  %v7635_v6 = vmov 0   ;;  %s7636_s18 = smov 64   ;;  %s11299_s0 = inlined_call_operand.vmem [shape: f32[32,64], index: 0, kind: input, shape index: {}]   ;;  %s11300_s1 = inlined_call_operand.vmem [shape: f32[32,128], index: 1, kind: input, shape index: {}]   ;;  %s11301_s2 = inlined_call_operand.vmem [shape: f32[32,32], index: 2, kind: input, shape index: {}]   ;;  %s11302_s3 = inlined_call_operand.vmem [shape: bf16[64,320], index: 3, kind: input, shape index: {}]   ;;  %s11303_s4 = inlined_call_operand.vmem [shape: f32[1,256], index: 4, kind: input, shape index: {}]   ;;  %s11304_s5 = inlined_call_operand.vmem [shape: f32[4,8,64], index: 5, kind: input, shape index: {}]   ;;  %s11305_s6 = inlined_call_operand.vmem [shape: f32[1,64], index: 6, kind: input, shape index: {}]   ;;  %s11306_s7 = inlined_call_operand.vmem [shape: f32[1,64], index: 7, kind: input, shape index: {}]   ;;  %s11307_s8 = inlined_call_operand.vmem [shape: f32[1,64], index: 8, kind: input, shape index: {}]   ;;  %s11308_s9 = inlined_call_operand.vmem [shape: bf16[64,32], index: 9, kind: input, shape index: {}]   ;;  %s11309_s10 = inlined_call_operand.vmem [shape: f32[1,32], index: 10, kind: input, shape index: {}, may-alias: {10,12}]   ;;  %s11310_s11 = inlined_call_operand.vmem [shape: f32[1,32], index: 11, kind: input, shape index: {}]   ;;  %s11311_s12 = inlined_call_operand.vmem [shape: f32[1,32], index: 12, kind: input, shape index: {}, may-alias: {10,12}]   ;;  %s11312_s13 = inlined_call_operand.vmem [shape: bf16[32,5], index: 13, kind: input, shape index: {}]   ;;  %s11313_s14 = inlined_call_operand.vmem [shape: f32[1,5], index: 14, kind: input, shape index: {}]   ;;  %s11314_s15 = inlined_call_operand.hbm [shape: f32[2,5], index: 15, kind: output, shape index: {}]  }
   0x1   :  { %v7259_v0 = vld [vmem:[%s11302_s3 + $0x8] ss:$12 sps:$4 sm:$0xff]   ;;  %v7260_v1 = vld [vmem:[%s11302_s3 + $0x20] ss:$12 sps:$4 sm:$0xff]   ;;  %v7261_v2 = vld [vmem:[%s11302_s3 + $0x38] ss:$12 sps:$4 sm:$0xff]   ;;  %177 = vmatprep.mubr.bf16.mxu0 %v7635_v6 }
   0x2   :  { %7221 = vmatprep.subr.bf16.mxu1 %v7259_v0  ;;  %v52_v3 = vld [vmem:[%s11299_s0] sm:$0xff]  ;;  %v53_v4 = vld [vmem:[%s11299_s0 + $0x8] sm:$0xff]  ;;  %v7262_v10 = vld [vmem:[%s11302_s3 + $0x50] ss:$12 sps:$4 sm:$0xff]  }
   0x3   :  { %7222 = vmatpush3.bf16.msra.mxu1 %v7259_v0  ;;  %v56_v5 = vpack.c.bf16 %v53_v4, %v52_v3  ;;  %v7263_v7 = vld [vmem:[%s11302_s3 + $0x4] ss:$12 sps:$4 sm:$0xff]   ;;  %v7265_v8 = vld [vmem:[%s11302_s3] ss:$12 sps:$4 sm:$0xff]   ;;  %v7266_v9 = vld [vmem:[%s11302_s3 + $0x1c] ss:$12 sps:$4 sm:$0xff]  }
   0x4   :  { %7223 = vmatprep.subr.bf16.mxu1 %v7260_v1  ;;  %145 = vmatprep.subr.bf16.mxu0 %v7263_v7  ;;  %v54_v11 = vld [vmem:[%s11299_s0 + $0x10] sm:$0xff]  ;;  %v7268_v12 = vld [vmem:[%s11302_s3 + $0x18] ss:$12 sps:$4 sm:$0xff]   ;;  %v340_v17 = vld [vmem:[%s11304_s5 + $0x8] sm:$0xff] }
   0x5   :  { %7229 = vmatprep.mubr.msk.bf16.mxu1 %vm138_vm0, %v56_v5  ;;  %146 = vmatpush1.bf16.msra.mxu0 %v7265_v8  ;;  %v55_v13 = vld [vmem:[%s11299_s0 + $0x18] sm:$0xff]  ;;  %v7269_v14 = vld [vmem:[%s11302_s3 + $0x34] ss:$12 sps:$4 sm:$0xff]  }
   0x6   :  { %147 = vmatprep.subr.bf16.mxu0 %v7266_v9  ;;  %v342_v15 = vld [vmem:[%s11304_s5 + $0x18] sm:$0xff]  ;;  %1484 = vrot.lane.b32.xlu1 %v340_v17, %s7636_s18  ;;  %v57_v19 = vpack.c.bf16 %v55_v13, %v54_v11 }
   0x7   :  { %7224 = vmatpush3.bf16.msra.mxu1 %v7260_v1  ;;  %v7271_v16 = vld [vmem:[%s11302_s3 + $0x30] ss:$12 sps:$4 sm:$0xff]   ;;  %3492 = vrot.lane.b32.xlu0 %v342_v15, %s7636_s18  ;;  %v7272_v18 = vld [vmem:[%s11302_s3 + $0x4c] ss:$12 sps:$4 sm:$0xff]  }
   0x8   :  { %7225 = vmatprep.subr.bf16.mxu1 %v7261_v2 }
   0x9   :  { %148 = vmatpush1.bf16.msra.mxu0 %v7268_v12 }
   0xa   :  { %149 = vmatprep.subr.bf16.mxu0 %v7269_v14 }
   0xb   :  { %7226 = vmatpush3.bf16.msra.mxu1 %v7261_v2  ;;  %1750 = vrot.lane.b32.xlu0 %v53_v4, %s7636_s18 }
   0xc   :  { %7227 = vmatprep.subr.bf16.mxu1 %v7262_v10 }
   0xf   :  { %7228 = vmatpush3.bf16.msra.mxu1 %v7262_v10 }
  0x10   :  { %20 = vsyncpa [#allocation5], 0  ;;  %1754 = vrot.lane.b32.xlu1 %v55_v13, %s7636_s18  ;;  %150 = vmatpush1.bf16.msra.mxu0 %v7271_v16  ;;  %v7274_v20 = vld [vmem:[%s11302_s3 + $0x48] ss:$12 sps:$4 sm:$0xff]   ;;  %v249_v21 = vlaneseq  ;;  %v247_v29 = vld [vmem:[%s11303_s4] sm:$0x3] }
  0x11   :  { %151 = vmatprep.subr.bf16.mxu0 %v7272_v18  ;;  %1748 = vrot.lane.b32.xlu0 %v52_v3, %s7636_s18  ;;  %vm6701_vm1 = vcmask 1040384   ;;  %vm6704_vm2 = vcmask 1041408   ;;  %vm6707_vm3 = vcmask 1042432   ;;  %vm6710_vm4 = vcmask 1043456   ;;  %s7640_s4 = smov [#allocation4]  }
  0x12   :  { %7230 = vmatmul.mubr.msk.bf16.vlgmr.msra.gmra.mrb[0].mxu1 %vm138_vm0, %v57_v19  ;;  %v7785_v22 = vshrl.u32 %v249_v21, 7  ;;  %vm6713_vm5 = vcmask 1044480   ;;  %vm6716_vm6 = vcmask 1045504   ;;  %vm6719_vm7 = vcmask 1046528   ;;  %s7162_s26 = sshll.u32 %s7640_s4, 4  ;;  %s7163_s26 = int_to_ptr.vmem [resolvable:$true] %s7162_s26 }
  0x13   :  { %vm6984_vm8 = vcmask 261120   ;;  %vm7639_vm9 = vmmov 0   ;;  %vm7096_vm10 = vcmask 1041409   ;;  %vm7154_vm11 = vcmask 33792   ;;  %s7611_s27 = scalar_lea.vmem %s7163_s26, 32  ;;  %p7616_p1 = scmp.lt.s32.totalorder %s7163_s26, %s7163_s26 }
  0x14   :  { %1752 = vrot.lane.b32.xlu1 %v54_v11, %s7636_s18  ;;  %152 = vmatpush1.bf16.msra.mxu0 %v7274_v20  ;;  %v7788_v23 = vsub.s32 0, %v7785_v22  ;;  %v7793_v25 = vsub.s32 1, %v7785_v22  ;;  %v7796_v26 = vsub.s32 4, %v7785_v22  ;;  %v7810_v31 = vsub.s32 2, %v7785_v22  ;;  %p7612_p0 = scmp.ne.s32.totalorder %s7163_s26, %s7611_s27  ;;  %p7617_p2 = scmp.lt.s32.totalorder %s7611_s27, %s7611_s27 }
  0x15   :  { %v7813_v32 = vsub.s32 3, %v7785_v22  ;;  %v7816_v33 = vsub.s32 5, %v7785_v22  ;;  %v7822_v35 = vsub.s32 6, %v7785_v22  ;;  %v7825_v36 = vsub.s32 7, %v7785_v22 }
  0x16   :  { %11555 = vst [vmem:[#allocation7_spill] sm:$0xff] %v7793_v25  ;;  %v252_v37 = vrot.slane %v247_v29, %v7788_v23  ;;  %v256_v38 = vrot.slane %v247_v29, %v7793_v25  ;;  %p7618_p3 = por %p7617_p2, %p7616_p1 }
  0x17   :  { %7182 = vmatmul.mubr.msk.bf16.vlgmr.msra.gmra.mrb[0].mxu0 %vm138_vm0, %v56_v5 }
  0x18   :  { %187 = vmatprep.mubr.bf16.mxu0 %v7635_v6  ;;  %p7619_p4 = pnand %p7618_p3, %p7612_p0 }
  0x1f   :  { %7183 = vmatmul.mubr.msk.bf16.gmra.mrb[4].mxu0 %vm138_vm0, %v57_v19 }
  0xe5   :  { %v7790_v24 = vpop.f32.mrb[0].mxu1 }
  0xe6   :  { %v7800_v27 = vrot.slane %v7790_v24, %v7788_v23  ;;  %v7802_v28 = vpop.f32.mrb[1].mxu1  ;;  %v7832_v39 = vrot.slane %v7790_v24, %v7793_v25  ;;  %v7836_v40 = vrot.slane %v7790_v24, %v7796_v26  ;;  %v7890_v56 = vrot.slane %v7790_v24, %v7810_v31 }
  0xe7   :  { %v7807_v30 = vpop.f32.mrb[2].mxu1  ;;  %v7900_v61 = vrot.slane %v7790_v24, %v7825_v36  ;;  %v7911_v2 = vrot.slane %v7790_v24, %v7813_v32 }
  0xe8   :  { %11556 = vst [vmem:[#allocation8_spill] sm:$0xff] %v7800_v27  ;;  %4022 = vbcast.lane.b32.xlu0 %v7800_v27, 304  ;;  %v7819_v34 = vpop.f32.mrb[3].mxu1  ;;  %2030 = vbcast.lane.b32.xlu1 %v7800_v27, 272  ;;  %11557 = vst [vmem:[#allocation9_spill] sm:$0xff] %v7832_v39  ;;  %v7840_v41 = vrot.slane %v7807_v30, %v7810_v31  ;;  %v7844_v42 = vrot.slane %v7807_v30, %v7813_v32 }
  0xe9   :  { %11558 = vst [vmem:[#allocation10_spill] sm:$0xff] %v7836_v40  ;;  %v7848_v43 = vrot.slane %v7807_v30, %v7796_v26  ;;  %v7852_v44 = vrot.slane %v7807_v30, %v7816_v33  ;;  %v7856_v45 = vrot.slane %v7807_v30, %v7822_v35  ;;  %v7860_v46 = vrot.slane %v7807_v30, %v7825_v36 }
  0xea   :  { %11559 = vst [vmem:[#allocation11_spill] sm:$0xff] %v7840_v41  ;;  %11560 = vst [vmem:[#allocation12_spill] sm:$0xff] %v7844_v42  ;;  %v179_v47 = vpop.f32.mrb[0].mxu0  ;;  %v7864_v48 = vrot.slane %v7819_v34, %v7810_v31  ;;  %v7868_v49 = vrot.slane %v7819_v34, %v7813_v32  ;;  %v7873_v51 = vrot.slane %v7819_v34, %v7796_v26 }
  0xeb   :  { %11561 = vst [vmem:[#allocation13_spill] sm:$0xff] %v7848_v43  ;;  %11562 = vst [vmem:[#allocation14_spill] sm:$0xff] %v7852_v44  ;;  %v181_v50 = vpop.f32.mrb[1].mxu0  ;;  %v7877_v52 = vrot.slane %v7819_v34, %v7816_v33  ;;  %v7881_v53 = vrot.slane %v7819_v34, %v7822_v35  ;;  %v7885_v54 = vrot.slane %v7819_v34, %v7825_v36 }
  0xec   :  { %11563 = vst [vmem:[#allocation15_spill] sm:$0xff] %v7856_v45  ;;  %11564 = vst [vmem:[#allocation16_spill] sm:$0xff] %v7860_v46  ;;  %1159 = vbcast.lane.b32.xlu0 %v7832_v39, 256  ;;  %2046 = vbcast.lane.b32.xlu1 %v7836_v40, 272  ;;  %v183_v55 = vpop.f32.mrb[2].mxu0  ;;  %v7892_v57 = vadd.f32 %v252_v37, %v179_v47  ;;  %v7894_v58 = vadd.f32 %v256_v38, %v181_v50 }
  0xed   :  { %11565 = vst [vmem:[#allocation17_spill] sm:$0xff] %v7864_v48  ;;  %11566 = vst [vmem:[#allocation18_spill] sm:$0xff] %v7868_v49  ;;  %v7896_v59 = vadd.f32 %v252_v37, %v183_v55  ;;  %v185_v60 = vpop.f32.mrb[3].mxu0  ;;  %v7931_v55 = vrot.slane %v7790_v24, %v7816_v33 }
  0xee   :  { %11567 = vst [vmem:[#allocation19_spill] sm:$0xff] %v7873_v51  ;;  %11568 = vst [vmem:[#allocation20_spill] sm:$0xff] %v7877_v52  ;;  %v7902_v62 = vadd.f32 %v256_v38, %v185_v60  ;;  %v275_v63 = vand.u32 2147483647, %v7892_v57  ;;  %v276_v0 = vand.u32 2147483647, %v7894_v58 }
  0xef   :  { %11569 = vst [vmem:[#allocation21_spill] sm:$0xff] %v7881_v53  ;;  %11570 = vst [vmem:[#allocation22_spill] sm:$0xff] %v7885_v54  ;;  %v277_v1 = vand.u32 2147483647, %v7896_v59 }
  0xf0   :  { %11571 = vst [vmem:[#allocation23_spill] sm:$0xff] %v7890_v56  ;;  %11572 = vst [vmem:[#allocation24_spill] sm:$0xff] %v7900_v61  ;;  %1166 = vbcast.lane.b32.xlu0 %v7890_v56, 256  ;;  %4050 = vbcast.lane.b32.xlu1 %v7900_v61, 304  ;;  %v283_v3 = vsub.f32 0.0, %v275_v63  ;;  %v284_v5 = vsub.f32 0.0, %v276_v0 }
  0xf1   :  { %11573 = vst [vmem:[#allocation25_spill] sm:$0xff] %v7911_v2  ;;  %v278_v4 = vand.u32 2147483647, %v7902_v62  ;;  %v285_v6 = vsub.f32 0.0, %v277_v1  ;;  %11574 = vst [vmem:[#allocation26_spill] sm:$0xff] %v7931_v55 }
  0xf2   :  { %v189_v7 = vpop.f32.mrb[4].mxu0  ;;  %v291_v8 = vmul.f32 1.442695, %v283_v3  ;;  %v293_v12 = vmul.f32 1.442695, %v284_v5  ;;  %v7938_v3 = vrot.slane %v7802_v28, %v7788_v23  ;;  %v7942_v5 = vrot.slane %v7790_v24, %v7822_v35 }
  0xf3   :  { %v286_v9 = vsub.f32 0.0, %v278_v4  ;;  %v7915_v10 = vadd.f32 %v252_v37, %v189_v7  ;;  %v191_v11 = vpop.f32.mrb[5].mxu0  ;;  %v295_v13 = vmul.f32 1.442695, %v285_v6 }
  0xf4   :  { %1173 = vbcast.lane.b32.xlu0 %v7911_v2, 256  ;;  %4034 = vbcast.lane.b32.xlu1 %v7911_v2, 304  ;;  %v7918_v14 = vadd.f32 %v256_v38, %v191_v11  ;;  %v193_v15 = vpop.f32.mrb[6].mxu0  ;;  %7281 = vpow2.f32 %v291_v8  ;;  %11575 = vst [vmem:[#allocation27_spill] sm:$0xff] %v7938_v3  ;;  %11576 = vst [vmem:[#allocation28_spill] sm:$0xff] %v7942_v5  ;;  %v7948_v11 = vrot.slane %v7802_v28, %v7796_v26 }
  0xf5   :  { %v297_v16 = vmul.f32 1.442695, %v286_v9  ;;  %v279_v17 = vand.u32 2147483647, %v7915_v10  ;;  %v195_v18 = vpop.f32.mrb[7].mxu0  ;;  %7283 = vpow2.f32 %v293_v12  ;;  %v7922_v20 = vadd.f32 %v252_v37, %v193_v15 }
  0xf6   :  { %v280_v19 = vand.u32 2147483647, %v7918_v14  ;;  %7285 = vpow2.f32 %v295_v13  ;;  %v7925_v29 = vadd.f32 %v256_v38, %v195_v18  ;;  %11577 = vst [vmem:[#allocation29_spill] sm:$0xff] %v7948_v11  ;;  %v7637_v15 = vmov 1966171168  }
  0xf7   :  { %v287_v21 = vsub.f32 0.0, %v279_v17  ;;  %7287 = vpow2.f32 %v297_v16  ;;  %v281_v50 = vand.u32 2147483647, %v7922_v20  ;;  %v349_v16 = vunpack.c.l.s4 %v7637_v15 }
  0xf8   :  { %1180 = vbcast.lane.b32.xlu0 %v7836_v40, 256  ;;  %2034 = vbcast.lane.b32.xlu1 %v7832_v39, 272  ;;  %v288_v47 = vsub.f32 0.0, %v280_v19  ;;  %v282_v60 = vand.u32 2147483647, %v7925_v29  ;;  %v7954_v18 = vrot.slane %v7802_v28, %v7825_v36  ;;  %v7967_v36 = vrot.slane %v7802_v28, %v7793_v25 }
  0xf9   :  { %v299_v37 = vmul.f32 1.442695, %v287_v21  ;;  %v289_v63 = vsub.f32 0.0, %v281_v50  ;;  %v350_v26 = vunpack.c.0.s8 %v349_v16 }
  0xfa   :  { %v301_v0 = vmul.f32 1.442695, %v288_v47  ;;  %v290_v1 = vsub.f32 0.0, %v282_v60  ;;  %11578 = vst [vmem:[#allocation30_spill] sm:$0xff] %v7954_v18  ;;  %v7960_v47 = vrot.slane %v7802_v28, %v7813_v32  ;;  %11580 = vst [vmem:[#allocation32_spill] sm:$0xff] %v7967_v36  ;;  %v7977_v32 = vrot.slane %v7802_v28, %v7816_v33 }
  0xfb   :  { %v303_v38 = vmul.f32 1.442695, %v289_v63  ;;  %7289 = vpow2.f32 %v299_v37  ;;  %v7963_v37 = vsub.s32 %v350_v26, %v7785_v22  ;;  %v267_v63 = vmax.f32 %v7892_v57, 0.0 }
  0xfc   :  { %1187 = vbcast.lane.b32.xlu0 %v7931_v55, 256  ;;  %2050 = vbcast.lane.b32.xlu1 %v7931_v55, 272  ;;  %v305_v4 = vmul.f32 1.442695, %v290_v1  ;;  %7291 = vpow2.f32 %v301_v0  ;;  %11579 = vst [vmem:[#allocation31_spill] sm:$0xff] %v7960_v47  ;;  %11582 = vst [vmem:[#allocation34_spill] sm:$0xff] %v7977_v32  ;;  %v7987_v57 = vrot.slane %v7807_v30, %v7788_v23 }
  0xfd   :  { %7293 = vpow2.f32 %v303_v38  ;;  %v7973_v38 = vrot.slane %v7802_v28, %v7810_v31  ;;  %v268_v22 = vmax.f32 %v7894_v58, 0.0  ;;  %v7992_v33 = vrot.slane %v7807_v30, %v7793_v25 }
  0xfe   :  { %v7282_v6 = vpop.eup %7281  ;;  %7295 = vpow2.f32 %v305_v4  ;;  %11584 = vst [vmem:[#allocation36_spill] sm:$0xff] %v7987_v57  ;;  %v270_v58 = vmax.f32 %v7902_v62, 0.0 }
  0xff   :  { %v7284_v7 = vpop.eup %7283  ;;  %v307_v8 = vadd.f32 1.0, %v7282_v6  ;;  %11581 = vst [vmem:[#allocation33_spill] sm:$0xff] %v7973_v38  ;;  %11585 = vst [vmem:[#allocation37_spill] sm:$0xff] %v7992_v33 }
 0x100   :  { %1966 = vbcast.lane.b32.xlu0 %v7938_v3, 272  ;;  %4046 = vbcast.lane.b32.xlu1 %v7942_v5, 304  ;;  %v7286_v9 = vpop.eup %7285  ;;  %v308_v12 = vadd.f32 1.0, %v7284_v7  ;;  %v7983_v7 = vrot.slane %v7802_v28, %v7822_v35 }
 0x101   :  { %v7288_v13 = vpop.eup %7287  ;;  %7297 = vlog2.f32 %v307_v8  ;;  %v309_v24 = vadd.f32 1.0, %v7286_v9  ;;  %v269_v8 = vmax.f32 %v7896_v59, 0.0 }
 0x102   :  { %7299 = vlog2.f32 %v308_v12  ;;  %v310_v17 = vadd.f32 1.0, %v7288_v13  ;;  %11583 = vst [vmem:[#allocation35_spill] sm:$0xff] %v7983_v7 }
 0x103   :  { %7301 = vlog2.f32 %v309_v24 }
 0x104   :  { %1982 = vbcast.lane.b32.xlu0 %v7948_v11, 272  ;;  %4030 = vbcast.lane.b32.xlu1 %v7890_v56, 304  ;;  %7303 = vlog2.f32 %v310_v17 }
 0x105   :  { %v7290_v19 = vpop.eup %7289 }
 0x106   :  { %v7292_v21 = vpop.eup %7291  ;;  %v311_v0 = vadd.f32 1.0, %v7290_v19 }
 0x107   :  { %v7294_v50 = vpop.eup %7293  ;;  %v312_v4 = vadd.f32 1.0, %v7292_v21 }
 0x108   :  { %3986 = vbcast.lane.b32.xlu0 %v7954_v18, 304  ;;  %2038 = vbcast.lane.b32.xlu1 %v7890_v56, 272  ;;  %v7296_v60 = vpop.eup %7295  ;;  %v313_v13 = vadd.f32 1.0, %v7294_v50  ;;  %7305 = vlog2.f32 %v311_v0 }
 0x109   :  { %7307 = vlog2.f32 %v312_v4  ;;  %v8009_v19 = vadd.f32 1.0, %v7296_v60 }
 0x10a   :  { %7309 = vlog2.f32 %v313_v13 }
 0x10b   :  { %v7298_v1 = vpop.eup %7297 }
 0x10c   :  { %3970 = vbcast.lane.b32.xlu0 %v7960_v47, 304  ;;  %2054 = vbcast.lane.b32.xlu1 %v7942_v5, 272  ;;  %v7300_v6 = vpop.eup %7299  ;;  %v316_v31 = vmul.f32 0.6931472, %v7298_v1 }
 0x10d   :  { %v7302_v9 = vpop.eup %7301  ;;  %v318_v12 = vmul.f32 0.6931472, %v7300_v6 }
 0x10e   :  { %v7304_v24 = vpop.eup %7303  ;;  %v7996_v28 = vadd.f32 %v316_v31, %v267_v63  ;;  %v320_v35 = vmul.f32 0.6931472, %v7302_v9  ;;  %v8032_v9 = vld [vmem:[%s11304_s5] sm:$0xff] }
 0x10f   :  { %v8000_v59 = vadd.f32 %v318_v12, %v268_v22  ;;  %v322_v16 = vmul.f32 0.6931472, %v7304_v24 }
 0x110   :  { %1970 = vbcast.lane.b32.xlu0 %v7967_v36, 272  ;;  %11586 = vst [vmem:[#allocation38_spill] sm:$0xff] %v7996_v28  ;;  %4042 = vbcast.lane.b32.xlu1 %v7931_v55, 304  ;;  %v347_v62 = vcombine.high %v7996_v28, %v7996_v28  ;;  %v354_v17 = vrot.slane %v7996_v28, %v7963_v37 }
 0x111   :  { %11587 = vst [vmem:[#allocation39_spill] sm:$0xff] %v8000_v59  ;;  %v8007_v26 = vadd.f32 %v320_v35, %v269_v8  ;;  %v2449_v21 = vcombine.high %v8000_v59, %v8000_v59  ;;  %v2456_v50 = vrot.slane %v8000_v59, %v7963_v37  ;;  %v8015_v63 = vadd.f32 %v322_v16, %v270_v58 }
 0x112   :  { %v361_v0 = vrot.slane %v347_v62, %v7963_v37  ;;  %v362_v1 = vcombine.high %v354_v17, %v354_v17  ;;  %v370_v22 = vrot.slane %v354_v17, %v7963_v37 }
 0x113   :  { %11588 = vst [vmem:[#allocation40_spill] sm:$0xff] %v8007_v26  ;;  %11589 = vst [vmem:[#allocation41_spill] sm:$0xff] %v8015_v63  ;;  %v2463_v4 = vrot.slane %v2449_v21, %v7963_v37  ;;  %v2464_v6 = vcombine.high %v2456_v50, %v2456_v50  ;;  %v2472_v31 = vrot.slane %v2456_v50, %v7963_v37 }
 0x114   :  { %1986 = vbcast.lane.b32.xlu0 %v7977_v32, 272  ;;  %4026 = vbcast.lane.b32.xlu1 %v7832_v39, 304  ;;  %v8027_v8 = vrot.slane %v8007_v26, %v7963_v37  ;;  %v363_v12 = vcombine.high %v361_v0, %v361_v0  ;;  %v377_v58 = vrot.slane %v361_v0, %v7963_v37 }
 0x115   :  { %v384_v13 = vrot.slane %v362_v1, %v7963_v37  ;;  %v392_v24 = vcombine.high %v370_v22, %v370_v22  ;;  %v8037_v35 = vrot.slane %v370_v22, %v7788_v23  ;;  %v2465_v16 = vcombine.high %v2463_v4, %v2463_v4 }
 0x116   :  { %v2479_v62 = vrot.slane %v2463_v4, %v7963_v37  ;;  %v2486_v17 = vrot.slane %v2464_v6, %v7963_v37  ;;  %v391_v21 = vrot.slane %v363_v12, %v7963_v37  ;;  %v393_v50 = vcombine.high %v377_v58, %v377_v58  ;;  %v8056_v6 = vpop.eup %7305 }
 0x117   :  { %v394_v30 = vcombine.high %v384_v13, %v384_v13  ;;  %v8043_v15 = vrot.slane %v384_v13, %v7788_v23  ;;  %v8047_v0 = vrot.slane %v392_v24, %v7788_v23  ;;  %v8050_v1 = vrot.slane %v377_v58, %v7788_v23  ;;  %v8067_v58 = vpop.eup %7307 }
 0x118   :  { %3982 = vbcast.lane.b32.xlu0 %v7983_v7, 304  ;;  %v703_v22 = vmul.f32 %v8037_v35, %v8032_v9  ;;  %v2493_v4 = vrot.slane %v2465_v16, %v7963_v37  ;;  %2042 = vbcast.lane.b32.xlu1 %v7911_v2, 272  ;;  %v395_v12 = vcombine.high %v391_v21, %v391_v21  ;;  %v8085_v59 = vpop.eup %7309 }
 0x119   :  { %11590 = vst [vmem:[#allocation42_spill] sm:$0xff] %v8043_v15  ;;  %11591 = vst [vmem:[#allocation43_spill] sm:$0xff] %v8047_v0  ;;  %v8059_v13 = vrot.slane %v394_v30, %v7788_v23  ;;  %v8062_v60 = vrot.slane %v391_v21, %v7788_v23  ;;  %v8065_v24 = vrot.slane %v393_v50, %v7788_v23 }
 0x11a   :  { %v704_v39 = vmul.f32 %v8043_v15, %v8032_v9  ;;  %v705_v16 = vmul.f32 %v8047_v0, %v8032_v9  ;;  %v707_v56 = vmul.f32 %v8050_v1, %v8032_v9  ;;  %v735_v2 = vmul.f32 1.442695, %v703_v22 }
 0x11b   :  { %11592 = vst [vmem:[#allocation44_spill] sm:$0xff] %v8059_v13  ;;  %11593 = vst [vmem:[#allocation45_spill] sm:$0xff] %v8062_v60  ;;  %v8076_v30 = vrot.slane %v395_v12, %v7788_v23  ;;  %v706_v21 = vmul.f32 %v8059_v13, %v8032_v9  ;;  %v708_v50 = vmul.f32 %v8062_v60, %v8032_v9 }
 0x11c   :  { %11594 = vst [vmem:[#allocation46_spill] sm:$0xff] %v8065_v24  ;;  %v709_v55 = vmul.f32 %v8065_v24, %v8032_v9  ;;  %3966 = vbcast.lane.b32.xlu0 %v7973_v38, 304  ;;  %7311 = vpow2.f32 %v735_v2  ;;  %v737_v5 = vmul.f32 1.442695, %v704_v39  ;;  %v739_v28 = vmul.f32 1.442695, %v705_v16 }
 0x11d   :  { %11595 = vst [vmem:[#allocation47_spill] sm:$0xff] %v8076_v30  ;;  %v743_v22 = vmul.f32 1.442695, %v707_v56  ;;  %v710_v12 = vmul.f32 %v8076_v30, %v8032_v9  ;;  %v741_v52 = vmul.f32 1.442695, %v706_v21  ;;  %v2494_v15 = vcombine.high %v2472_v31, %v2472_v31  ;;  %2058 = vbcast.lane.b32.xlu1 %v7900_v61, 272 }
 0x11e   :  { %v745_v0 = vmul.f32 1.442695, %v708_v50  ;;  %v747_v13 = vmul.f32 1.442695, %v709_v55  ;;  %7313 = vpow2.f32 %v737_v5  ;;  %v2495_v60 = vcombine.high %v2479_v62, %v2479_v62  ;;  %v8093_v39 = vld [vmem:[%s11304_s5 + $0x10] sm:$0xff] }
 0x11f   :  { %v2496_v25 = vcombine.high %v2486_v17, %v2486_v17  ;;  %7315 = vpow2.f32 %v739_v28  ;;  %v749_v24 = vmul.f32 1.442695, %v710_v12  ;;  %v2497_v56 = vcombine.high %v2493_v4, %v2493_v4 }
 0x120   :  { %v8096_v2 = vrot.slane %v2472_v31, %v7788_v23  ;;  %1974 = vbcast.lane.b32.xlu0 %v7973_v38, 272  ;;  %7317 = vpow2.f32 %v741_v52  ;;  %v8100_v55 = vrot.slane %v2486_v17, %v7788_v23  ;;  %v8103_v5 = vrot.slane %v2494_v15, %v7788_v23 }
 0x121   :  { %v8106_v28 = vrot.slane %v2496_v25, %v7788_v23  ;;  %7319 = vpow2.f32 %v743_v22  ;;  %v8109_v16 = vrot.slane %v2479_v62, %v7788_v23  ;;  %v8112_v21 = vrot.slane %v2493_v4, %v7788_v23  ;;  %4038 = vbcast.lane.b32.xlu1 %v7836_v40, 304 }
 0x122   :  { %11596 = vst [vmem:[#allocation48_spill] sm:$0xff] %v8096_v2  ;;  %11597 = vst [vmem:[#allocation49_spill] sm:$0xff] %v8100_v55  ;;  %v8115_v31 = vrot.slane %v2495_v60, %v7788_v23  ;;  %7321 = vpow2.f32 %v745_v0  ;;  %v8118_v52 = vrot.slane %v2497_v56, %v7788_v23  ;;  %v2805_v15 = vmul.f32 %v8096_v2, %v8093_v39 }
 0x123   :  { %11598 = vst [vmem:[#allocation50_spill] sm:$0xff] %v8109_v16  ;;  %11599 = vst [vmem:[#allocation51_spill] sm:$0xff] %v8112_v21  ;;  %v2806_v25 = vmul.f32 %v8100_v55, %v8093_v39  ;;  %7323 = vpow2.f32 %v747_v13  ;;  %v2807_v62 = vmul.f32 %v8103_v5, %v8093_v39  ;;  %v2808_v60 = vmul.f32 %v8106_v28, %v8093_v39 }
 0x124   :  { %11600 = vst [vmem:[#allocation52_spill] sm:$0xff] %v8118_v52  ;;  %v2809_v17 = vmul.f32 %v8109_v16, %v8093_v39  ;;  %1990 = vbcast.lane.b32.xlu0 %v7983_v7, 272  ;;  %7325 = vpow2.f32 %v749_v24  ;;  %v2810_v0 = vmul.f32 %v8112_v21, %v8093_v39  ;;  %v2811_v4 = vmul.f32 %v8115_v31, %v8093_v39 }
 0x125   :  { %v2812_v13 = vmul.f32 %v8118_v52, %v8093_v39  ;;  %v2837_v50 = vmul.f32 1.442695, %v2805_v15  ;;  %v2839_v22 = vmul.f32 1.442695, %v2806_v25  ;;  %v2841_v12 = vmul.f32 1.442695, %v2807_v62 }
 0x126   :  { %v11601_v56 = vcombine.high %v8007_v26, %v8007_v26  ;;  %v7312_v16 = vpop.eup %7311  ;;  %v2843_v30 = vmul.f32 1.442695, %v2808_v60  ;;  %v2845_v24 = vmul.f32 1.442695, %v2809_v17  ;;  %v2847_v55 = vmul.f32 1.442695, %v2810_v0 }
 0x127   :  { %v411_v40 = vcombine.high %v8027_v8, %v8027_v8  ;;  %799 = vst.msk [vmem:[#allocation2] sm:$0xff] %vm138_vm0, %v7312_v16  ;;  %7327 = vpow2.f32 %v2837_v50  ;;  %v2849_v21 = vmul.f32 1.442695, %v2811_v4  ;;  %v2851_v61 = vmul.f32 1.442695, %v2812_v13  ;;  %1152 = vbcast.lane.b32.xlu1 %v7800_v27, 256 }
 0x128   :  { %v410_v2 = vrot.slane %v11601_v56, %v7963_v37  ;;  %3978 = vbcast.lane.b32.xlu0 %v7977_v32, 304  ;;  %v7314_v25 = vpop.eup %7313  ;;  %7329 = vpow2.f32 %v2839_v22  ;;  %v419_v62 = vrot.slane %v8027_v8, %v7963_v37  ;;  %v2498_v4 = vcombine.high %v8015_v63, %v8015_v63 }
 0x129   :  { %v433_v17 = vrot.slane %v411_v40, %v7963_v37  ;;  %v7316_v0 = vpop.eup %7315  ;;  %800 = vst.msk [vmem:[#allocation2 + $0x8] sm:$0xff] %vm138_vm0, %v7314_v25  ;;  %7331 = vpow2.f32 %v2841_v12  ;;  %v8157_v13 = vrot.slane %v8015_v63, %v7963_v37 }
 0x12a   :  { %v412_v15 = vcombine.high %v410_v2, %v410_v2  ;;  %v426_v60 = vrot.slane %v410_v2, %v7963_v37  ;;  %v7318_v50 = vpop.eup %7317  ;;  %801 = vst.msk [vmem:[#allocation2 + $0x10] sm:$0xff] %vm138_vm0, %v7316_v0  ;;  %7333 = vpow2.f32 %v2843_v30  ;;  %v441_v8 = vcombine.high %v419_v62, %v419_v62 }
 0x12b   :  { %v443_v40 = vcombine.high %v433_v17, %v433_v17  ;;  %v7320_v22 = vpop.eup %7319  ;;  %802 = vst.msk [vmem:[#allocation2 + $0x18] sm:$0xff] %vm138_vm0, %v7318_v50  ;;  %7335 = vpow2.f32 %v2845_v24  ;;  %v8162_v56 = vrot.slane %v419_v62, %v7788_v23  ;;  %3974 = vbcast.lane.b32.xlu1 %v7948_v11, 304  ;;  %v2512_v26 = vrot.slane %v2498_v4, %v7963_v37 }
 0x12c   :  { %v440_v16 = vrot.slane %v412_v15, %v7963_v37  ;;  %v442_v2 = vcombine.high %v426_v60, %v426_v60  ;;  %v8165_v15 = vrot.slane %v433_v17, %v7788_v23  ;;  %3962 = vbcast.lane.b32.xlu0 %v7967_v36, 304  ;;  %v7322_v25 = vpop.eup %7321  ;;  %803 = vst.msk [vmem:[#allocation2 + $0x20] sm:$0xff] %vm138_vm0, %v7320_v22  ;;  %7337 = vpow2.f32 %v2847_v55 }
 0x12d   :  { %v8171_v30 = vrot.slane %v441_v8, %v7788_v23  ;;  %v8174_v24 = vrot.slane %v443_v40, %v7788_v23  ;;  %v8177_v62 = vrot.slane %v426_v60, %v7788_v23  ;;  %v7324_v0 = vpop.eup %7323  ;;  %804 = vst.msk [vmem:[#allocation2 + $0x28] sm:$0xff] %vm138_vm0, %v7322_v25  ;;  %7339 = vpow2.f32 %v2849_v21 }
 0x12e   :  { %v444_v12 = vcombine.high %v440_v16, %v440_v16  ;;  %v8181_v17 = vrot.slane %v440_v16, %v7788_v23  ;;  %v8184_v50 = vrot.slane %v442_v2, %v7788_v23  ;;  %v7326_v8 = vpop.eup %7325  ;;  %805 = vst.msk [vmem:[#allocation2 + $0x30] sm:$0xff] %vm138_vm0, %v7324_v0  ;;  %7341 = vpow2.f32 %v2851_v61 }
 0x12f   :  { %11602 = vst [vmem:[#allocation53_spill] sm:$0xff] %v8171_v30  ;;  %11603 = vst [vmem:[#allocation54_spill] sm:$0xff] %v8174_v24  ;;  %v711_v60 = vmul.f32 %v8162_v56, %v8032_v9  ;;  %v712_v40 = vmul.f32 %v8165_v15, %v8032_v9  ;;  %v713_v21 = vmul.f32 %v8171_v30, %v8032_v9  ;;  %3958 = vbcast.lane.b32.xlu1 %v7938_v3, 304 }
 0x130   :  { %11604 = vst [vmem:[#allocation55_spill] sm:$0xff] %v8181_v17  ;;  %11605 = vst [vmem:[#allocation56_spill] sm:$0xff] %v8184_v50  ;;  %v8187_v55 = vrot.slane %v444_v12, %v7788_v23  ;;  %v714_v16 = vmul.f32 %v8174_v24, %v8032_v9  ;;  %v715_v2 = vmul.f32 %v8177_v62, %v8032_v9  ;;  %7343 = vlog2.f32 %v8009_v19 }
 0x131   :  { %806 = vst.msk [vmem:[#allocation2 + $0x38] sm:$0xff] %vm138_vm0, %v7326_v8  ;;  %v716_v61 = vmul.f32 %v8181_v17, %v8032_v9  ;;  %v717_v22 = vmul.f32 %v8184_v50, %v8032_v9  ;;  %v751_v25 = vmul.f32 1.442695, %v711_v60  ;;  %v753_v0 = vmul.f32 1.442695, %v712_v40  ;;  %v7328_v27 = vpop.eup %7327  ;;  %1978 = vbcast.lane.b32.xlu0 %v7960_v47, 272 }
 0x132   :  { %11606 = vst [vmem:[#allocation57_spill] sm:$0xff] %v8187_v55  ;;  %v718_v12 = vmul.f32 %v8187_v55, %v8032_v9  ;;  %v755_v8 = vmul.f32 1.442695, %v713_v21  ;;  %v757_v30 = vmul.f32 1.442695, %v714_v16  ;;  %v7330_v63 = vpop.eup %7329  ;;  %2902 = vst.msk [vmem:[#allocation2 + $0x200] sm:$0xff] %vm138_vm0, %v7328_v27  ;;  %v2513_v17 = vcombine.high %v8157_v13, %v8157_v13 }
 0x133   :  { %v759_v24 = vmul.f32 1.442695, %v715_v2  ;;  %7345 = vpow2.f32 %v751_v25  ;;  %v761_v50 = vmul.f32 1.442695, %v716_v61  ;;  %v763_v52 = vmul.f32 1.442695, %v717_v22  ;;  %v7332_v60 = vpop.eup %7331 }
 0x134   :  { %2903 = vst.msk [vmem:[#allocation2 + $0x208] sm:$0xff] %vm138_vm0, %v7330_v63  ;;  %7347 = vpow2.f32 %v753_v0  ;;  %v2514_v40 = vcombine.high %v2512_v26, %v2512_v26  ;;  %v2521_v4 = vrot.slane %v8157_v13, %v7963_v37  ;;  %v2528_v19 = vrot.slane %v2512_v26, %v7963_v37  ;;  %4082 = vbcast.lane.b32.xlu1 %v7860_v46, 304  ;;  %v7334_v27 = vpop.eup %7333 }
 0x135   :  { %2904 = vst.msk [vmem:[#allocation2 + $0x210] sm:$0xff] %vm138_vm0, %v7332_v60  ;;  %7349 = vpow2.f32 %v755_v8  ;;  %v765_v21 = vmul.f32 1.442695, %v718_v12  ;;  %v2535_v16 = vrot.slane %v2513_v17, %v7963_v37  ;;  %v324_v2 = vmul.f32 0.6931472, %v8056_v6  ;;  %v7336_v61 = vpop.eup %7335  ;;  %2905 = vst.msk [vmem:[#allocation2 + $0x218] sm:$0xff] %vm138_vm0, %v7334_v27 }
 0x136   :  { %7351 = vpow2.f32 %v757_v30  ;;  %v2542_v63 = vrot.slane %v2514_v40, %v7963_v37  ;;  %v2543_v13 = vcombine.high %v2521_v4, %v2521_v4  ;;  %v2544_v22 = vcombine.high %v2528_v19, %v2528_v19  ;;  %v7338_v26 = vpop.eup %7337  ;;  %2906 = vst.msk [vmem:[#allocation2 + $0x220] sm:$0xff] %vm138_vm0, %v7336_v61  ;;  %1994 = vbcast.lane.b32.xlu0 %v7954_v18, 272 }
 0x137   :  { %7353 = vpow2.f32 %v759_v24  ;;  %v2545_v25 = vcombine.high %v2535_v16, %v2535_v16  ;;  %v8226_v0 = vrot.slane %v2521_v4, %v7788_v23  ;;  %v8229_v17 = vrot.slane %v2535_v16, %v7788_v23  ;;  %v7340_v6 = vpop.eup %7339  ;;  %2907 = vst.msk [vmem:[#allocation2 + $0x228] sm:$0xff] %vm138_vm0, %v7338_v26 }
 0x138   :  { %7355 = vpow2.f32 %v761_v50  ;;  %v2546_v30 = vcombine.high %v2542_v63, %v2542_v63  ;;  %v8234_v12 = vrot.slane %v2543_v13, %v7788_v23  ;;  %v8237_v8 = vrot.slane %v2528_v19, %v7788_v23  ;;  %4066 = vbcast.lane.b32.xlu1 %v7844_v42, 304  ;;  %v7342_v24 = vpop.eup %7341  ;;  %2908 = vst.msk [vmem:[#allocation2 + $0x230] sm:$0xff] %vm138_vm0, %v7340_v6 }
 0x139   :  { %11607 = vst [vmem:[#allocation58_spill] sm:$0xff] %v8226_v0  ;;  %11608 = vst [vmem:[#allocation59_spill] sm:$0xff] %v8229_v17  ;;  %7357 = vpow2.f32 %v763_v52  ;;  %v8242_v60 = vrot.slane %v2545_v25, %v7788_v23  ;;  %v8245_v40 = vrot.slane %v2542_v63, %v7788_v23  ;;  %v8248_v50 = vrot.slane %v2544_v22, %v7788_v23 }
 0x13a   :  { %11609 = vst [vmem:[#allocation60_spill] sm:$0xff] %v8237_v8  ;;  %2909 = vst.msk [vmem:[#allocation2 + $0x238] sm:$0xff] %vm138_vm0, %v7342_v24  ;;  %7359 = vpow2.f32 %v765_v21  ;;  %v8252_v4 = vrot.slane %v2546_v30, %v7788_v23  ;;  %v2813_v19 = vmul.f32 %v8226_v0, %v8093_v39  ;;  %v2814_v52 = vmul.f32 %v8229_v17, %v8093_v39  ;;  %v7344_v63 = vpop.eup %7343 }
 0x13b   :  { %11610 = vst [vmem:[#allocation61_spill] sm:$0xff] %v8242_v60  ;;  %v2815_v27 = vmul.f32 %v8234_v12, %v8093_v39  ;;  %v2816_v16 = vmul.f32 %v8242_v60, %v8093_v39  ;;  %v2817_v61 = vmul.f32 %v8237_v8, %v8093_v39  ;;  %v2818_v21 = vmul.f32 %v8245_v40, %v8093_v39 }
 0x13c   :  { %1040 = vbcast.lane.b32.xlu0 %v7938_v3, 256  ;;  %v2819_v13 = vmul.f32 %v8248_v50, %v8093_v39  ;;  %v2820_v22 = vmul.f32 %v8252_v4, %v8093_v39  ;;  %v2853_v26 = vmul.f32 1.442695, %v2813_v19  ;;  %v2855_v25 = vmul.f32 1.442695, %v2814_v52  ;;  %2062 = vbcast.lane.b32.xlu1 %v7987_v57, 272 }
 0x13d   :  { %v7346_v6 = vpop.eup %7345  ;;  %v2857_v30 = vmul.f32 1.442695, %v2815_v27  ;;  %v2859_v24 = vmul.f32 1.442695, %v2816_v16  ;;  %v11611_v55 = vmax.f32 %v7915_v10, 0.0  ;;  %v273_v3 = vmax.f32 %v7922_v20, 0.0 }
 0x13e   :  { %v7348_v8 = vpop.eup %7347  ;;  %807 = vst.msk [vmem:[#allocation2 + $0x40] sm:$0xff] %vm138_vm0, %v7346_v6  ;;  %7361 = vpow2.f32 %v2853_v26  ;;  %v2861_v17 = vmul.f32 1.442695, %v2817_v61  ;;  %v2863_v60 = vmul.f32 1.442695, %v2818_v21 }
 0x13f   :  { %v8274_v0 = vadd.f32 %v324_v2, %v11611_v55  ;;  %v2865_v18 = vmul.f32 1.442695, %v2819_v13  ;;  %v7350_v19 = vpop.eup %7349  ;;  %808 = vst.msk [vmem:[#allocation2 + $0x48] sm:$0xff] %vm138_vm0, %v7348_v8  ;;  %7363 = vpow2.f32 %v2855_v25  ;;  %v326_v55 = vmul.f32 0.6931472, %v8067_v58 }
 0x140   :  { %1047 = vbcast.lane.b32.xlu0 %v7967_v36, 256  ;;  %v7352_v20 = vpop.eup %7351  ;;  %809 = vst.msk [vmem:[#allocation2 + $0x50] sm:$0xff] %vm138_vm0, %v7350_v19  ;;  %7365 = vpow2.f32 %v2857_v30  ;;  %v2867_v2 = vmul.f32 1.442695, %v2820_v22  ;;  %v328_v27 = vmul.f32 0.6931472, %v8085_v59 }
 0x141   :  { %v445_v52 = vcombine.high %v8274_v0, %v8274_v0  ;;  %v452_v10 = vrot.slane %v8274_v0, %v7963_v37  ;;  %v274_v8 = vmax.f32 %v7925_v29, 0.0  ;;  %2078 = vbcast.lane.b32.xlu1 %v7848_v43, 272  ;;  %v7354_v16 = vpop.eup %7353  ;;  %810 = vst.msk [vmem:[#allocation2 + $0x58] sm:$0xff] %vm138_vm0, %v7352_v20  ;;  %7367 = vpow2.f32 %v2859_v24 }
 0x142   :  { %v7356_v13 = vpop.eup %7355  ;;  %811 = vst.msk [vmem:[#allocation2 + $0x60] sm:$0xff] %vm138_vm0, %v7354_v16  ;;  %7369 = vpow2.f32 %v2861_v17  ;;  %v11612_v22 = vmax.f32 %v7918_v14, 0.0  ;;  %v8297_v29 = vadd.f32 %v328_v27, %v273_v3  ;;  %v330_v26 = vmul.f32 0.6931472, %v7344_v63 }
 0x143   :  { %v459_v61 = vrot.slane %v445_v52, %v7963_v37  ;;  %v460_v58 = vcombine.high %v452_v10, %v452_v10  ;;  %v468_v21 = vrot.slane %v452_v10, %v7963_v37  ;;  %v7358_v25 = vpop.eup %7357  ;;  %812 = vst.msk [vmem:[#allocation2 + $0x68] sm:$0xff] %vm138_vm0, %v7356_v13  ;;  %7371 = vpow2.f32 %v2863_v60 }
 0x144   :  { %v8295_v59 = vadd.f32 %v326_v55, %v11612_v22  ;;  %11614 = vst [vmem:[#allocation63_spill] sm:$0xff] %v8297_v29  ;;  %1054 = vbcast.lane.b32.xlu0 %v7973_v38, 256  ;;  %v7360_v19 = vpop.eup %7359  ;;  %813 = vst.msk [vmem:[#allocation2 + $0x70] sm:$0xff] %vm138_vm0, %v7358_v25  ;;  %7373 = vpow2.f32 %v2865_v18 }
 0x145   :  { %v461_v6 = vcombine.high %v459_v61, %v459_v61  ;;  %v475_v30 = vrot.slane %v459_v61, %v7963_v37  ;;  %v482_v24 = vrot.slane %v460_v58, %v7963_v37  ;;  %v490_v14 = vcombine.high %v468_v21, %v468_v21  ;;  %4078 = vbcast.lane.b32.xlu1 %v7856_v45, 304 }
 0x146   :  { %11613 = vst [vmem:[#allocation62_spill] sm:$0xff] %v8295_v59  ;;  %v8305_v3 = vrot.slane %v468_v21, %v7788_v23  ;;  %v2547_v17 = vcombine.high %v8295_v59, %v8295_v59  ;;  %814 = vst.msk [vmem:[#allocation2 + $0x78] sm:$0xff] %vm138_vm0, %v7360_v19  ;;  %7375 = vpow2.f32 %v2867_v2 }
 0x147   :  { %v489_v60 = vrot.slane %v461_v6, %v7963_v37  ;;  %v491_v63 = vcombine.high %v475_v30, %v475_v30  ;;  %v492_v52 = vcombine.high %v482_v24, %v482_v24  ;;  %v8313_v10 = vrot.slane %v482_v24, %v7788_v23 }
 0x148   :  { %11615 = vst [vmem:[#allocation64_spill] sm:$0xff] %v8305_v3  ;;  %v8316_v18 = vrot.slane %v490_v14, %v7788_v23  ;;  %v8319_v55 = vrot.slane %v475_v30, %v7788_v23  ;;  %v719_v20 = vmul.f32 %v8305_v3, %v8032_v9  ;;  %1061 = vbcast.lane.b32.xlu0 %v7960_v47, 256  ;;  %v7362_v58 = vpop.eup %7361 }
 0x149   :  { %v493_v27 = vcombine.high %v489_v60, %v489_v60  ;;  %v8324_v16 = vrot.slane %v492_v52, %v7788_v23  ;;  %v8327_v2 = vrot.slane %v489_v60, %v7788_v23  ;;  %v8330_v61 = vrot.slane %v491_v63, %v7788_v23  ;;  %4062 = vbcast.lane.b32.xlu1 %v7840_v41, 304  ;;  %v7364_v6 = vpop.eup %7363 }
 0x14a   :  { %v720_v21 = vmul.f32 %v8313_v10, %v8032_v9  ;;  %v721_v13 = vmul.f32 %v8316_v18, %v8032_v9  ;;  %v723_v22 = vmul.f32 %v8319_v55, %v8032_v9  ;;  %v767_v25 = vmul.f32 1.442695, %v719_v20  ;;  %2910 = vst.msk [vmem:[#allocation2 + $0x240] sm:$0xff] %vm138_vm0, %v7362_v58  ;;  %v7366_v60 = vpop.eup %7365  ;;  %2911 = vst.msk [vmem:[#allocation2 + $0x248] sm:$0xff] %vm138_vm0, %v7364_v6  ;;  %v8353_v58 = vpop.permute.xlu0 %3492 }
 0x14b   :  { %11616 = vst [vmem:[#allocation65_spill] sm:$0xff] %v8324_v16  ;;  %11617 = vst [vmem:[#allocation66_spill] sm:$0xff] %v8330_v61  ;;  %v8342_v30 = vrot.slane %v493_v27, %v7788_v23  ;;  %v722_v24 = vmul.f32 %v8324_v16, %v8032_v9  ;;  %v724_v19 = vmul.f32 %v8327_v2, %v8032_v9  ;;  %v7368_v27 = vpop.eup %7367 }
 0x14c   :  { %v725_v14 = vmul.f32 %v8330_v61, %v8032_v9  ;;  %7377 = vpow2.f32 %v767_v25  ;;  %v769_v63 = vmul.f32 1.442695, %v720_v21  ;;  %v771_v52 = vmul.f32 1.442695, %v721_v13  ;;  %2912 = vst.msk [vmem:[#allocation2 + $0x250] sm:$0xff] %vm138_vm0, %v7366_v60  ;;  %v7370_v61 = vpop.eup %7369  ;;  %2913 = vst.msk [vmem:[#allocation2 + $0x258] sm:$0xff] %vm138_vm0, %v7368_v27 }
 0x14d   :  { %11618 = vst [vmem:[#allocation67_spill] sm:$0xff] %v8342_v30  ;;  %v8351_v20 = vadd.f32 %v330_v26, %v274_v8  ;;  %v726_v36 = vmul.f32 %v8342_v30, %v8032_v9  ;;  %v773_v16 = vmul.f32 1.442695, %v722_v24  ;;  %v775_v38 = vmul.f32 1.442695, %v723_v22  ;;  %1068 = vbcast.lane.b32.xlu0 %v7948_v11, 256  ;;  %v7372_v21 = vpop.eup %7371  ;;  %v8371_v24 = vpop.permute.xlu1 %1484 }
 0x14e   :  { %v777_v47 = vmul.f32 1.442695, %v724_v19  ;;  %7379 = vpow2.f32 %v769_v63  ;;  %v779_v25 = vmul.f32 1.442695, %v725_v14  ;;  %v2554_v8 = vrot.slane %v8295_v59, %v7963_v37  ;;  %2066 = vbcast.lane.b32.xlu1 %v7992_v33, 272  ;;  %2914 = vst.msk [vmem:[#allocation2 + $0x260] sm:$0xff] %vm138_vm0, %v7370_v61  ;;  %v7374_v19 = vpop.eup %7373 }
 0x14f   :  { %v2561_v26 = vrot.slane %v2547_v17, %v7963_v37  ;;  %7381 = vpow2.f32 %v771_v52  ;;  %v781_v13 = vmul.f32 1.442695, %v726_v36  ;;  %v494_v22 = vcombine.high %v8297_v29, %v8297_v29  ;;  %11619 = vst [vmem:[#allocation68_spill] sm:$0xff] %v8371_v24  ;;  %2915 = vst.msk [vmem:[#allocation2 + $0x268] sm:$0xff] %vm138_vm0, %v7372_v21  ;;  %v8385_v21 = vpop.permute.xlu0 %1750 }
 0x150   :  { %v8369_v6 = vrot.slane %v8297_v29, %v7963_v37  ;;  %7383 = vpow2.f32 %v773_v16  ;;  %v2562_v17 = vcombine.high %v2554_v8, %v2554_v8  ;;  %v2570_v60 = vrot.slane %v2554_v8, %v7963_v37  ;;  %v7376_v61 = vpop.eup %7375  ;;  %2916 = vst.msk [vmem:[#allocation2 + $0x270] sm:$0xff] %vm138_vm0, %v7374_v19  ;;  %11620 = vst [vmem:[#allocation69_spill] sm:$0xff] %v8385_v21 }
 0x151   :  { %v2563_v14 = vcombine.high %v2561_v26, %v2561_v26  ;;  %7385 = vpow2.f32 %v775_v38  ;;  %v2577_v36 = vrot.slane %v2561_v26, %v7963_v37  ;;  %v8378_v63 = vrot.slane %v494_v22, %v7963_v37  ;;  %2917 = vst.msk [vmem:[#allocation2 + $0x278] sm:$0xff] %vm138_vm0, %v7376_v61  ;;  %1075 = vbcast.lane.b32.xlu0 %v7977_v32, 256 }
 0x152   :  { %v509_v52 = vcombine.high %v8369_v6, %v8369_v6  ;;  %7387 = vpow2.f32 %v777_v47  ;;  %v2584_v16 = vrot.slane %v2562_v17, %v7963_v37  ;;  %v2592_v8 = vcombine.high %v2570_v60, %v2570_v60  ;;  %2082 = vbcast.lane.b32.xlu1 %v7852_v44, 272  ;;  %v8395_v47 = vpop.permute.xlu1 %1754 }
 0x153   :  { %v2591_v27 = vrot.slane %v2563_v14, %v7963_v37  ;;  %7389 = vpow2.f32 %v779_v25  ;;  %v2593_v38 = vcombine.high %v2577_v36, %v2577_v36  ;;  %v8390_v26 = vrot.slane %v2570_v60, %v7788_v23  ;;  %11623 = vst [vmem:[#allocation72_spill] sm:$0xff] %v8395_v47  ;;  %v8434_v21 = vpop.permute.xlu0 %1748 }
 0x154   :  { %v8393_v22 = vrot.slane %v2577_v36, %v7788_v23  ;;  %7391 = vpow2.f32 %v781_v13  ;;  %v2594_v19 = vcombine.high %v2584_v16, %v2584_v16  ;;  %v8398_v14 = vrot.slane %v2584_v16, %v7788_v23  ;;  %11629 = vst [vmem:[#allocation78_spill] sm:$0xff] %v8434_v21 }
 0x155   :  { %11621 = vst [vmem:[#allocation70_spill] sm:$0xff] %v8390_v26  ;;  %v2595_v17 = vcombine.high %v2591_v27, %v2591_v27  ;;  %v8401_v61 = vrot.slane %v2592_v8, %v7788_v23  ;;  %v8404_v25 = vrot.slane %v2591_v27, %v7788_v23  ;;  %v8407_v60 = vrot.slane %v2593_v38, %v7788_v23 }
 0x156   :  { %11622 = vst [vmem:[#allocation71_spill] sm:$0xff] %v8393_v22  ;;  %11624 = vst [vmem:[#allocation73_spill] sm:$0xff] %v8398_v14  ;;  %v2821_v36 = vmul.f32 %v8390_v26, %v8093_v39  ;;  %v7378_v30 = vpop.eup %7377  ;;  %v8412_v13 = vrot.slane %v2594_v19, %v7788_v23  ;;  %v2822_v16 = vmul.f32 %v8398_v14, %v8093_v39  ;;  %1082 = vbcast.lane.b32.xlu0 %v7983_v7, 256  ;;  %v8437_v59 = vpop.permute.xlu1 %1752 }
 0x157   :  { %11625 = vst [vmem:[#allocation74_spill] sm:$0xff] %v8404_v25  ;;  %11626 = vst [vmem:[#allocation75_spill] sm:$0xff] %v8407_v60  ;;  %v8415_v11 = vrot.slane %v2595_v17, %v7788_v23  ;;  %v2825_v27 = vmul.f32 %v8393_v22, %v8093_v39  ;;  %v2823_v8 = vmul.f32 %v8401_v61, %v8093_v39  ;;  %4074 = vbcast.lane.b32.xlu1 %v7852_v44, 304 }
 0x158   :  { %11627 = vst [vmem:[#allocation76_spill] sm:$0xff] %v8412_v13  ;;  %815 = vst.msk [vmem:[#allocation2 + $0x80] sm:$0xff] %vm138_vm0, %v7378_v30  ;;  %v2826_v38 = vmul.f32 %v8404_v25, %v8093_v39  ;;  %v2827_v19 = vmul.f32 %v8407_v60, %v8093_v39  ;;  %v2869_v17 = vmul.f32 1.442695, %v2821_v36  ;;  %v7380_v26 = vpop.eup %7379  ;;  %v2824_v22 = vmul.f32 %v8412_v13, %v8093_v39 }
 0x159   :  { %11628 = vst [vmem:[#allocation77_spill] sm:$0xff] %v8415_v11  ;;  %v2828_v14 = vmul.f32 %v8415_v11, %v8093_v39  ;;  %v2871_v30 = vmul.f32 1.442695, %v2822_v16  ;;  %v2877_v32 = vmul.f32 1.442695, %v2825_v27  ;;  %v7382_v47 = vpop.eup %7381  ;;  %816 = vst.msk [vmem:[#allocation2 + $0x88] sm:$0xff] %vm138_vm0, %v7380_v26  ;;  %v510_v16 = vcombine.high %v8378_v63, %v8378_v63 }
 0x15a   :  { %7393 = vpow2.f32 %v2869_v17  ;;  %v2873_v25 = vmul.f32 1.442695, %v2823_v8  ;;  %v2879_v29 = vmul.f32 1.442695, %v2826_v38  ;;  %v2881_v36 = vmul.f32 1.442695, %v2827_v19  ;;  %v7384_v7 = vpop.eup %7383  ;;  %v8459_v17 = vpop.permute.xlu1 %2030 }
 0x15b   :  { %11630 = vst [vmem:[#allocation79_spill] sm:$0xff] %v8437_v59  ;;  %817 = vst.msk [vmem:[#allocation2 + $0x90] sm:$0xff] %vm138_vm0, %v7382_v47  ;;  %7395 = vpow2.f32 %v2871_v30  ;;  %v2875_v3 = vmul.f32 1.442695, %v2824_v22  ;;  %v2883_v60 = vmul.f32 1.442695, %v2828_v14  ;;  %v7386_v27 = vpop.eup %7385  ;;  %v517_v26 = vrot.slane %v8369_v6, %v7963_v37  ;;  %v8456_v6 = vpop.permute.xlu0 %4022 }
 0x15c   :  { %3264 = vbcast.lane.b32.xlu0 %v7860_v46, 288  ;;  %818 = vst.msk [vmem:[#allocation2 + $0x98] sm:$0xff] %vm138_vm0, %v7384_v7  ;;  %7397 = vpow2.f32 %v2873_v25  ;;  %v524_v8 = vrot.slane %v8378_v63, %v7963_v37  ;;  %v531_v47 = vrot.slane %v509_v52, %v7963_v37  ;;  %4058 = vbcast.lane.b32.xlu1 %v7992_v33, 304  ;;  %v7388_v22 = vpop.eup %7387  ;;  %819 = vst.msk [vmem:[#allocation2 + $0xa0] sm:$0xff] %vm138_vm0, %v7386_v27 }
 0x15d   :  { %7399 = vpow2.f32 %v2875_v3  ;;  %v538_v14 = vrot.slane %v510_v16, %v7963_v37  ;;  %v2596_v7 = vcombine.high %v8351_v20, %v8351_v20  ;;  %v2603_v25 = vrot.slane %v8351_v20, %v7963_v37  ;;  %11631 = vst [vmem:[#allocation80_spill] sm:$0xff] %v8456_v6  ;;  %v7390_v38 = vpop.eup %7389  ;;  %820 = vst.msk [vmem:[#allocation2 + $0xa8] sm:$0xff] %vm138_vm0, %v7388_v22 }
 0x15e   :  { %7401 = vpow2.f32 %v2877_v32  ;;  %v539_v63 = vcombine.high %v517_v26, %v517_v26  ;;  %v540_v52 = vcombine.high %v524_v8, %v524_v8  ;;  %v541_v19 = vcombine.high %v531_v47, %v531_v47  ;;  %11632 = vst [vmem:[#allocation81_spill] sm:$0xff] %v8459_v17  ;;  %v7392_v3 = vpop.eup %7391  ;;  %821 = vst.msk [vmem:[#allocation2 + $0xb0] sm:$0xff] %vm138_vm0, %v7390_v38 }
 0x15f   :  { %7403 = vpow2.f32 %v2879_v29  ;;  %v542_v30 = vcombine.high %v538_v14, %v538_v14  ;;  %v8463_v16 = vrot.slane %v517_v26, %v7788_v23  ;;  %v8466_v27 = vrot.slane %v531_v47, %v7788_v23  ;;  %822 = vst.msk [vmem:[#allocation2 + $0xb8] sm:$0xff] %vm138_vm0, %v7392_v3  ;;  %v8489_v38 = vpop.permute.xlu0 %1159 }
 0x160   :  { %2074 = vbcast.lane.b32.xlu0 %v7844_v42, 272  ;;  %7405 = vpow2.f32 %v2881_v36  ;;  %v8471_v32 = vrot.slane %v539_v63, %v7788_v23  ;;  %v8474_v22 = vrot.slane %v541_v19, %v7788_v23  ;;  %v8477_v29 = vrot.slane %v524_v8, %v7788_v23  ;;  %2070 = vbcast.lane.b32.xlu1 %v7840_v41, 272  ;;  %v8499_v19 = vpop.permute.xlu1 %2046 }
 0x161   :  { %11633 = vst [vmem:[#allocation82_spill] sm:$0xff] %v8466_v27  ;;  %7407 = vpow2.f32 %v2883_v60  ;;  %v8481_v26 = vrot.slane %v538_v14, %v7788_v23  ;;  %v8484_v47 = vrot.slane %v540_v52, %v7788_v23  ;;  %v8487_v36 = vrot.slane %v542_v30, %v7788_v23  ;;  %11639 = vst [vmem:[#allocation88_spill] sm:$0xff] %v8499_v19 }
 0x162   :  { %11634 = vst [vmem:[#allocation83_spill] sm:$0xff] %v8471_v32  ;;  %11635 = vst [vmem:[#allocation84_spill] sm:$0xff] %v8474_v22  ;;  %v727_v63 = vmul.f32 %v8463_v16, %v8032_v9  ;;  %v728_v8 = vmul.f32 %v8466_v27, %v8032_v9  ;;  %v729_v60 = vmul.f32 %v8471_v32, %v8032_v9 }
 0x163   :  { %11636 = vst [vmem:[#allocation85_spill] sm:$0xff] %v8481_v26  ;;  %11637 = vst [vmem:[#allocation86_spill] sm:$0xff] %v8484_v47  ;;  %v730_v14 = vmul.f32 %v8474_v22, %v8032_v9  ;;  %v731_v52 = vmul.f32 %v8477_v29, %v8032_v9  ;;  %v732_v3 = vmul.f32 %v8481_v26, %v8032_v9  ;;  %v8512_v26 = vpop.permute.xlu0 %1166 }
 0x164   :  { %11638 = vst [vmem:[#allocation87_spill] sm:$0xff] %v8487_v36  ;;  %v733_v30 = vmul.f32 %v8484_v47, %v8032_v9  ;;  %v734_v6 = vmul.f32 %v8487_v36, %v8032_v9  ;;  %3256 = vbcast.lane.b32.xlu0 %v7852_v44, 288  ;;  %v7394_v32 = vpop.eup %7393  ;;  %v783_v17 = vmul.f32 1.442695, %v727_v63  ;;  %v785_v21 = vmul.f32 1.442695, %v728_v8  ;;  %v8516_v63 = vpop.permute.xlu1 %4050 }
 0x165   :  { %v787_v22 = vmul.f32 1.442695, %v729_v60  ;;  %v2610_v19 = vrot.slane %v2596_v7, %v7963_v37  ;;  %v7396_v11 = vpop.eup %7395  ;;  %2918 = vst.msk [vmem:[#allocation2 + $0x280] sm:$0xff] %vm138_vm0, %v7394_v32  ;;  %v789_v59 = vmul.f32 1.442695, %v730_v14  ;;  %v2611_v13 = vcombine.high %v2603_v25, %v2603_v25  ;;  %2086 = vbcast.lane.b32.xlu1 %v7856_v45, 272 }
 0x166   :  { %v7398_v27 = vpop.eup %7397  ;;  %2919 = vst.msk [vmem:[#allocation2 + $0x288] sm:$0xff] %vm138_vm0, %v7396_v11  ;;  %7409 = vpow2.f32 %v783_v17  ;;  %v791_v9 = vmul.f32 1.442695, %v731_v52  ;;  %v793_v36 = vmul.f32 1.442695, %v732_v3  ;;  %11640 = vst [vmem:[#allocation89_spill] sm:$0xff] %v8516_v63  ;;  %v2619_v7 = vrot.slane %v2603_v25, %v7963_v37 }
 0x167   :  { %v2612_v44 = vcombine.high %v2610_v19, %v2610_v19  ;;  %v7400_v8 = vpop.eup %7399  ;;  %2920 = vst.msk [vmem:[#allocation2 + $0x290] sm:$0xff] %vm138_vm0, %v7398_v27  ;;  %7411 = vpow2.f32 %v785_v21  ;;  %v2626_v32 = vrot.slane %v2610_v19, %v7963_v37  ;;  %v2633_v60 = vrot.slane %v2611_v13, %v7963_v37  ;;  %v8526_v19 = vpop.permute.xlu0 %1173 }
 0x168   :  { %3252 = vbcast.lane.b32.xlu0 %v7848_v43, 288  ;;  %v7402_v11 = vpop.eup %7401  ;;  %2921 = vst.msk [vmem:[#allocation2 + $0x298] sm:$0xff] %vm138_vm0, %v7400_v8  ;;  %7413 = vpow2.f32 %v787_v22  ;;  %v795_v17 = vmul.f32 1.442695, %v733_v30  ;;  %v797_v14 = vmul.f32 1.442695, %v734_v6  ;;  %v2641_v21 = vcombine.high %v2619_v7, %v2619_v7 }
 0x169   :  { %v2640_v52 = vrot.slane %v2612_v44, %v7963_v37  ;;  %v7404_v3 = vpop.eup %7403  ;;  %2922 = vst.msk [vmem:[#allocation2 + $0x2a0] sm:$0xff] %vm138_vm0, %v7402_v11  ;;  %7415 = vpow2.f32 %v789_v59  ;;  %v2642_v25 = vcombine.high %v2626_v32, %v2626_v32  ;;  %v2643_v27 = vcombine.high %v2633_v60, %v2633_v60  ;;  %4070 = vbcast.lane.b32.xlu1 %v7848_v43, 304  ;;  %v8533_v44 = vpop.permute.xlu1 %4034 }
 0x16a   :  { %v7406_v13 = vpop.eup %7405  ;;  %2923 = vst.msk [vmem:[#allocation2 + $0x2a8] sm:$0xff] %vm138_vm0, %v7404_v3  ;;  %7417 = vpow2.f32 %v791_v9  ;;  %v8530_v22 = vrot.slane %v2619_v7, %v7788_v23  ;;  %11642 = vst [vmem:[#allocation91_spill] sm:$0xff] %v8533_v44  ;;  %v8537_v59 = vrot.slane %v2633_v60, %v7788_v23  ;;  %v8540_v30 = vrot.slane %v2641_v21, %v7788_v23 }
 0x16b   :  { %v2644_v47 = vcombine.high %v2640_v52, %v2640_v52  ;;  %v7408_v6 = vpop.eup %7407  ;;  %2924 = vst.msk [vmem:[#allocation2 + $0x2b0] sm:$0xff] %vm138_vm0, %v7406_v13  ;;  %7419 = vpow2.f32 %v793_v36  ;;  %v8543_v9 = vrot.slane %v2643_v27, %v7788_v23  ;;  %v8548_v8 = vrot.slane %v2626_v32, %v7788_v23 }
 0x16c   :  { %11641 = vst [vmem:[#allocation90_spill] sm:$0xff] %v8530_v22  ;;  %11643 = vst [vmem:[#allocation92_spill] sm:$0xff] %v8537_v59  ;;  %3248 = vbcast.lane.b32.xlu0 %v7844_v42, 288  ;;  %7421 = vpow2.f32 %v795_v17  ;;  %v8551_v7 = vrot.slane %v2640_v52, %v7788_v23  ;;  %v8554_v36 = vrot.slane %v2642_v25, %v7788_v23  ;;  %v8562_v17 = vpop.permute.xlu0 %1180 }
 0x16d   :  { %2925 = vst.msk [vmem:[#allocation2 + $0x2b8] sm:$0xff] %vm138_vm0, %v7408_v6  ;;  %11644 = vst [vmem:[#allocation93_spill] sm:$0xff] %v8548_v8  ;;  %7423 = vpow2.f32 %v797_v14  ;;  %v2829_v60 = vmul.f32 %v8530_v22, %v8093_v39  ;;  %v2830_v11 = vmul.f32 %v8537_v59, %v8093_v39  ;;  %v2831_v3 = vmul.f32 %v8540_v30, %v8093_v39  ;;  %v8574_v25 = vpop.permute.xlu1 %2034 }
 0x16e   :  { %v8565_v32 = vrot.slane %v2644_v47, %v7788_v23  ;;  %v2832_v52 = vmul.f32 %v8543_v9, %v8093_v39  ;;  %v2833_v14 = vmul.f32 %v8548_v8, %v8093_v39  ;;  %v2834_v21 = vmul.f32 %v8551_v7, %v8093_v39  ;;  %4054 = vbcast.lane.b32.xlu1 %v7987_v57, 304 }
 0x16f   :  { %v2835_v27 = vmul.f32 %v8554_v36, %v8093_v39  ;;  %v2885_v13 = vmul.f32 1.442695, %v2829_v60  ;;  %v2887_v6 = vmul.f32 1.442695, %v2830_v11  ;;  %v2889_v47 = vmul.f32 1.442695, %v2831_v3 }
 0x170   :  { %v7410_v22 = vpop.eup %7409  ;;  %v2836_v43 = vmul.f32 %v8565_v32, %v8093_v39  ;;  %v2891_v42 = vmul.f32 1.442695, %v2832_v52  ;;  %v2893_v8 = vmul.f32 1.442695, %v2833_v14  ;;  %3244 = vbcast.lane.b32.xlu0 %v7840_v41, 288  ;;  %v8582_v44 = vpop.permute.xlu0 %1187 }
 0x171   :  { %v7412_v59 = vpop.eup %7411  ;;  %823 = vst.msk [vmem:[#allocation2 + $0xc0] sm:$0xff] %vm138_vm0, %v7410_v22  ;;  %7425 = vpow2.f32 %v2885_v13  ;;  %v2895_v60 = vmul.f32 1.442695, %v2834_v21  ;;  %v8586_v11 = vpop.permute.xlu1 %2050  ;;  %v2897_v22 = vmul.f32 1.442695, %v2835_v27 }
 0x172   :  { %v7414_v63 = vpop.eup %7413  ;;  %824 = vst.msk [vmem:[#allocation2 + $0xc8] sm:$0xff] %vm138_vm0, %v7412_v59  ;;  %7427 = vpow2.f32 %v2887_v6  ;;  %3260 = vbcast.lane.b32.xlu1 %v7856_v45, 288  ;;  %v2899_v52 = vmul.f32 1.442695, %v2836_v43  ;;  %v7601_v43 = vld [vmem:[%s11299_s0 + $0x10] sm:$0xff] }
 0x173   :  { %v7416_v39 = vpop.eup %7415  ;;  %825 = vst.msk [vmem:[#allocation2 + $0xd0] sm:$0xff] %vm138_vm0, %v7414_v63  ;;  %7429 = vpow2.f32 %v2889_v47 }
 0x174   :  { %v7418_v3 = vpop.eup %7417  ;;  %826 = vst.msk [vmem:[#allocation2 + $0xd8] sm:$0xff] %vm138_vm0, %v7416_v39  ;;  %7431 = vpow2.f32 %v2891_v42  ;;  %3240 = vbcast.lane.b32.xlu0 %v7992_v33, 288  ;;  %v8592_v59 = vpop.permute.xlu0 %1966  ;;  %v1487_v33 = vmul.f32 %v8371_v24, %v8037_v35 }
 0x175   :  { %v7420_v14 = vpop.eup %7419  ;;  %827 = vst.msk [vmem:[#allocation2 + $0xe0] sm:$0xff] %vm138_vm0, %v7418_v3  ;;  %7433 = vpow2.f32 %v2893_v8  ;;  %v8596_v63 = vpop.permute.xlu1 %4046  ;;  %v833_v8 = vmul.f32 %v7601_v43, %v8274_v0 }
 0x176   :  { %v7422_v21 = vpop.eup %7421  ;;  %828 = vst.msk [vmem:[#allocation2 + $0xe8] sm:$0xff] %vm138_vm0, %v7420_v14  ;;  %7435 = vpow2.f32 %v2895_v60  ;;  %2090 = vbcast.lane.b32.xlu1 %v7860_v46, 272 }
 0x177   :  { %v7424_v27 = vpop.eup %7423  ;;  %829 = vst.msk [vmem:[#allocation2 + $0xf0] sm:$0xff] %vm138_vm0, %v7422_v21  ;;  %7437 = vpow2.f32 %v2897_v22  ;;  %v944_v60 = vrot.slane %v833_v8, %v7963_v37  ;;  %v937_v22 = vcombine.high %v833_v8, %v833_v8 }
 0x178   :  { %830 = vst.msk [vmem:[#allocation2 + $0xf8] sm:$0xff] %vm138_vm0, %v7424_v27  ;;  %7439 = vpow2.f32 %v2899_v52  ;;  %4018 = vbcast.lane.b32.xlu0 %v7885_v54, 304  ;;  %v8601_v42 = vpop.permute.xlu0 %1982  ;;  %v8620_v27 = vrot.slane %v7819_v34, %v7788_v23 }
 0x179   :  { %v8607_v13 = vpop.permute.xlu1 %4030  ;;  %v952_v43 = vcombine.high %v944_v60, %v944_v60  ;;  %v8625_v8 = vrot.slane %v944_v60, %v7963_v37  ;;  %v951_v46 = vrot.slane %v937_v22, %v7963_v37 }
 0x17a   :  { %11646 = vst [vmem:[#allocation95_spill] sm:$0xff] %v8620_v27 }
 0x17b   :  { %v7426_v6 = vpop.eup %7425  ;;  %v8642_v22 = vrot.slane %v951_v46, %v7963_v37 }
 0x17c   :  { %v7428_v47 = vpop.eup %7427  ;;  %2926 = vst.msk [vmem:[#allocation2 + $0x2c0] sm:$0xff] %vm138_vm0, %v7426_v6  ;;  %4002 = vbcast.lane.b32.xlu0 %v7868_v49, 304  ;;  %v8613_v3 = vpop.permute.xlu0 %3986 }
 0x17d   :  { %v7430_v39 = vpop.eup %7429  ;;  %2927 = vst.msk [vmem:[#allocation2 + $0x2c8] sm:$0xff] %vm138_vm0, %v7428_v47  ;;  %v8616_v14 = vpop.permute.xlu1 %2038  ;;  %11649 = vst [vmem:[#allocation98_spill] sm:$0xff] %v8642_v22 }
 0x17e   :  { %v7432_v52 = vpop.eup %7431  ;;  %2928 = vst.msk [vmem:[#allocation2 + $0x2d0] sm:$0xff] %vm138_vm0, %v7430_v39  ;;  %11645 = vst [vmem:[#allocation94_spill] sm:$0xff] %v8616_v14  ;;  %v974_v39 = vrot.slane %v952_v43, %v7963_v37 }
 0x17f   :  { %v7434_v21 = vpop.eup %7433  ;;  %2929 = vst.msk [vmem:[#allocation2 + $0x2d8] sm:$0xff] %vm138_vm0, %v7432_v52  ;;  %v982_v52 = vcombine.high %v8625_v8, %v8625_v8 }
 0x180   :  { %v7436_v6 = vpop.eup %7435  ;;  %2930 = vst.msk [vmem:[#allocation2 + $0x2e0] sm:$0xff] %vm138_vm0, %v7434_v21  ;;  %1998 = vbcast.lane.b32.xlu0 %v8620_v27, 272  ;;  %v8631_v45 = vpop.permute.xlu0 %3970  ;;  %v1330_v60 = vrot.slane %v974_v39, %v7788_v23 }
 0x181   :  { %v7438_v47 = vpop.eup %7437  ;;  %2931 = vst.msk [vmem:[#allocation2 + $0x2e8] sm:$0xff] %vm138_vm0, %v7436_v6  ;;  %11647 = vst [vmem:[#allocation96_spill] sm:$0xff] %v8631_v45  ;;  %v8636_v21 = vpop.permute.xlu1 %2054  ;;  %v984_v6 = vcombine.high %v974_v39, %v974_v39  ;;  %v1334_v43 = vrot.slane %v982_v52, %v7788_v23  ;;  %v953_v45 = vcombine.high %v951_v46, %v951_v46 }
 0x182   :  { %v7440_v41 = vpop.eup %7439  ;;  %2932 = vst.msk [vmem:[#allocation2 + $0x2f0] sm:$0xff] %vm138_vm0, %v7438_v47  ;;  %11648 = vst [vmem:[#allocation97_spill] sm:$0xff] %v8636_v21  ;;  %v1436_v47 = vmul.f32 %v1330_v60, %v8489_v38  ;;  %v1342_v39 = vrot.slane %v8642_v22, %v7788_v23  ;;  %v1519_v60 = vmul.f32 1.442695, %v1487_v33 }
 0x183   :  { %2933 = vst.msk [vmem:[#allocation2 + $0x2f8] sm:$0xff] %vm138_vm0, %v7440_v41  ;;  %v1338_v14 = vrot.slane %v984_v6, %v7788_v23  ;;  %v1437_v41 = vmul.f32 %v1334_v43, %v8512_v26  ;;  %v8659_v38 = vrot.slane %v953_v45, %v7963_v37  ;;  %v1491_v45 = vmul.f32 %v8371_v24, %v8050_v1 }
 0x184   :  { %2014 = vbcast.lane.b32.xlu0 %v7873_v51, 272  ;;  %v8649_v21 = vpop.permute.xlu0 %1970  ;;  %1468 = vst.msk [vmem:[#allocation3 + $0x88] sm:$0xff] %vm138_vm0, %v1436_v47  ;;  %v1439_v46 = vmul.f32 %v1342_v39, %v8562_v17  ;;  %7441 = vpow2.f32 %v1519_v60  ;;  %v11654_v39 = vld [vmem:[#allocation7_spill] sm:$0xff] }
 0x185   :  { %v8654_v52 = vpop.permute.xlu1 %4042  ;;  %v1438_v35 = vmul.f32 %v1338_v14, %v8526_v19  ;;  %11651 = vst [vmem:[#allocation100_spill] sm:$0xff] %v8659_v38  ;;  %1469 = vst.msk [vmem:[#allocation3 + $0x90] sm:$0xff] %vm138_vm0, %v1437_v41  ;;  %v1346_v26 = vrot.slane %v8659_v38, %v7788_v23  ;;  %v1527_v33 = vmul.f32 1.442695, %v1491_v45  ;;  %v1495_v14 = vmul.f32 %v8371_v24, %v8162_v56  ;;  %v11656_v60 = vld [vmem:[#allocation43_spill] sm:$0xff] }
 0x186   :  { %11650 = vst [vmem:[#allocation99_spill] sm:$0xff] %v8654_v52  ;;  %1471 = vst.msk [vmem:[#allocation3 + $0xa0] sm:$0xff] %vm138_vm0, %v1439_v46  ;;  %v8685_v1 = vrot.slane %v7819_v34, %v11654_v39  ;;  %v3497_v39 = vmul.f32 %v8353_v58, %v8103_v5 }
 0x187   :  { %1470 = vst.msk [vmem:[#allocation3 + $0x98] sm:$0xff] %vm138_vm0, %v1438_v35  ;;  %v1440_v17 = vmul.f32 %v1346_v26, %v8582_v44  ;;  %7443 = vpow2.f32 %v1527_v33  ;;  %v1535_v47 = vmul.f32 1.442695, %v1495_v14  ;;  %v11655_v35 = vld [vmem:[#allocation42_spill] sm:$0xff]  ;;  %v1489_v26 = vmul.f32 %v8371_v24, %v11656_v60  ;;  %v11658_v33 = vld [vmem:[#allocation20_spill] sm:$0xff] }
 0x188   :  { %4014 = vbcast.lane.b32.xlu0 %v7881_v53, 304  ;;  %v8667_v6 = vpop.permute.xlu0 %1986  ;;  %v1488_v44 = vmul.f32 %v8371_v24, %v11655_v35  ;;  %v3531_v60 = vmul.f32 1.442695, %v3497_v39 }
 0x189   :  { %v8672_v19 = vpop.permute.xlu1 %4026  ;;  %1472 = vst.msk [vmem:[#allocation3 + $0xa8] sm:$0xff] %vm138_vm0, %v1440_v17  ;;  %7445 = vpow2.f32 %v1535_v47  ;;  %v1523_v14 = vmul.f32 1.442695, %v1489_v26 }
 0x18a   :  { %11652 = vst [vmem:[#allocation101_spill] sm:$0xff] %v8672_v19  ;;  %v1521_v46 = vmul.f32 1.442695, %v1488_v44 }
 0x18c   :  { %3998 = vbcast.lane.b32.xlu0 %v7864_v48, 304  ;;  %v8679_v43 = vpop.permute.xlu0 %3982  ;;  %7447 = vpow2.f32 %v1521_v46 }
 0x18d   :  { %v8681_v41 = vpop.permute.xlu1 %2042  ;;  %7449 = vpow2.f32 %v1523_v14  ;;  %v1326_v14 = vrot.slane %v8625_v8, %v7788_v23 }
 0x18e   :  { %11653 = vst [vmem:[#allocation102_spill] sm:$0xff] %v8681_v41  ;;  %v7442_v45 = vpop.eup %7441  ;;  %7451 = vpow2.f32 %v3531_v60  ;;  %v1496_v60 = vmul.f32 %v8371_v24, %v8165_v15  ;;  %v8736_v15 = vld [vmem:[%s11299_s0] sm:$0xff] }
 0x18f   :  { %1615 = vrot.lane.b32.xlu1 %v7442_v45, %s7636_s18  ;;  %v1499_v45 = vmul.f32 %v8371_v24, %v8177_v62 }
 0x190   :  { %2002 = vbcast.lane.b32.xlu0 %v8685_v1, 272  ;;  %v8690_v56 = vpop.permute.xlu0 %3966 }
 0x191   :  { %v8694_v17 = vpop.permute.xlu1 %2058  ;;  %v7444_v35 = vpop.eup %7443  ;;  %v1543_v26 = vmul.f32 1.442695, %v1499_v45 }
 0x192   :  { %11657 = vst [vmem:[#allocation7_spill] sm:$0xff] %v8694_v17 }
 0x193   :  { %1623 = vrot.lane.b32.xlu1 %v7444_v35, %s7636_s18  ;;  %v7446_v17 = vpop.eup %7445  ;;  %v11663_v35 = vld [vmem:[#allocation45_spill] sm:$0xff]  ;;  %7453 = vpow2.f32 %v1543_v26  ;;  %v3498_v26 = vmul.f32 %v8353_v58, %v8106_v28 }
 0x194   :  { %2018 = vbcast.lane.b32.xlu0 %v11658_v33, 272  ;;  %v8698_v34 = vpop.permute.xlu0 %1974 }
 0x195   :  { %11659 = vst [vmem:[#allocation42_spill] sm:$0xff] %v8698_v34  ;;  %v8702_v47 = vpop.permute.xlu1 %4038  ;;  %v3533_v28 = vmul.f32 1.442695, %v3498_v26 }
 0x196   :  { %11660 = vst [vmem:[#allocation43_spill] sm:$0xff] %v8702_v47  ;;  %v1492_v47 = vmul.f32 %v8371_v24, %v11663_v35  ;;  %v7448_v39 = vpop.eup %7447 }
 0x197   :  { %1631 = vrot.lane.b32.xlu1 %v7446_v17, %s7636_s18  ;;  %v7450_v35 = vpop.eup %7449 }
 0x198   :  { %4010 = vbcast.lane.b32.xlu0 %v11658_v33, 304  ;;  %v8706_v44 = vpop.permute.xlu0 %1990  ;;  %v1529_v17 = vmul.f32 1.442695, %v1492_v47 }
 0x199   :  { %11661 = vst [vmem:[#allocation103_spill] sm:$0xff] %v8706_v44  ;;  %v1153_v5 = vpop.permute.xlu1 %1152 }
 0x19a   :  { %v1435_v41 = vmul.f32 %v1326_v14, %v1153_v5  ;;  %7455 = vpow2.f32 %v1529_v17  ;;  %v1537_v5 = vmul.f32 1.442695, %v1496_v60  ;;  %v7452_v14 = vpop.eup %7451 }
 0x19b   :  { %1617 = vrot.lane.b32.xlu1 %v7448_v39, %s7636_s18 }
 0x19c   :  { %3994 = vbcast.lane.b32.xlu0 %v8685_v1, 304  ;;  %v8712_v46 = vpop.permute.xlu0 %3978  ;;  %1467 = vst.msk [vmem:[#allocation3 + $0x80] sm:$0xff] %vm138_vm0, %v1435_v41  ;;  %v11667_v41 = vld [vmem:[#allocation38_spill] sm:$0xff]  ;;  %7457 = vpow2.f32 %v1537_v5  ;;  %v3501_v5 = vmul.f32 %v8353_v58, %v8115_v31 }
 0x19d   :  { %11662 = vst [vmem:[#allocation104_spill] sm:$0xff] %v8712_v46  ;;  %v8720_v62 = vpop.permute.xlu1 %3974  ;;  %v831_v47 = vmul.f32 %v8736_v15, %v11667_v41  ;;  %v7454_v19 = vpop.eup %7453  ;;  %7459 = vpow2.f32 %v3533_v28  ;;  %v11671_v28 = vld [vmem:[#allocation55_spill] sm:$0xff] }
 0x19e   :  { %11664 = vst [vmem:[#allocation45_spill] sm:$0xff] %v8720_v62  ;;  %v3539_v46 = vmul.f32 1.442695, %v3501_v5 }
 0x19f   :  { %1619 = vrot.lane.b32.xlu1 %v7450_v35, %s7636_s18  ;;  %v846_v60 = vrot.slane %v831_v47, %v7963_v37  ;;  %v3505_v35 = vmul.f32 %v8353_v58, %v8234_v12 }
 0x1a0   :  { %2006 = vbcast.lane.b32.xlu0 %v7864_v48, 272  ;;  %v8725_v45 = vpop.permute.xlu0 %3962 }
 0x1a1   :  { %11665 = vst [vmem:[#allocation105_spill] sm:$0xff] %v8725_v45  ;;  %v8729_v8 = vpop.permute.xlu1 %3958  ;;  %v862_v62 = vrot.slane %v846_v60, %v7963_v37 }
 0x1a2   :  { %11666 = vst [vmem:[#allocation106_spill] sm:$0xff] %v8729_v8  ;;  %v854_v8 = vcombine.high %v846_v60, %v846_v60 }
 0x1a3   :  { %3627 = vrot.lane.b32.xlu1 %v7452_v14, %s7636_s18  ;;  %v1262_v26 = vrot.slane %v862_v62, %v7788_v23  ;;  %v884_v44 = vcombine.high %v862_v62, %v862_v62  ;;  %v11672_v62 = vld [vmem:[#allocation52_spill] sm:$0xff] }
 0x1a4   :  { %2022 = vbcast.lane.b32.xlu0 %v7881_v53, 272  ;;  %v8740_v39 = vpop.permute.xlu0 %1978  ;;  %v876_v12 = vrot.slane %v854_v8, %v7963_v37  ;;  %v7456_v52 = vpop.eup %7455 }
 0x1a5   :  { %11668 = vst [vmem:[#allocation38_spill] sm:$0xff] %v8740_v39  ;;  %v3547_v39 = vmul.f32 1.442695, %v3505_v35  ;;  %v1500_v35 = vmul.f32 %v8371_v24, %v11671_v28  ;;  %v3502_v28 = vmul.f32 %v8353_v58, %v11672_v62  ;;  %v1270_v34 = vrot.slane %v884_v44, %v7788_v23 }
 0x1a6   :  { %v8744_v17 = vpop.permute.xlu1 %4082  ;;  %v1266_v31 = vrot.slane %v876_v12, %v7788_v23  ;;  %v7458_v8 = vpop.eup %7457  ;;  %v3509_v44 = vmul.f32 %v8353_v58, %v8248_v50 }
 0x1a7   :  { %1639 = vrot.lane.b32.xlu1 %v7454_v19, %s7636_s18  ;;  %7461 = vpow2.f32 %v3547_v39  ;;  %v7460_v22 = vpop.eup %7459 }
 0x1a8   :  { %4006 = vbcast.lane.b32.xlu0 %v7873_v51, 304  ;;  %v8750_v45 = vpop.permute.xlu0 %1994  ;;  %7463 = vpow2.f32 %v3539_v46  ;;  %v3555_v50 = vmul.f32 1.442695, %v3509_v44  ;;  %v3510_v44 = vmul.f32 %v8353_v58, %v8252_v4  ;;  %v1507_v4 = vmul.f32 %v8371_v24, %v8319_v55 }
 0x1a9   :  { %11669 = vst [vmem:[#allocation107_spill] sm:$0xff] %v8750_v45 }
 0x1aa   :  { %v8754_v14 = vpop.permute.xlu1 %4066 }
 0x1ab   :  { %11670 = vst [vmem:[#allocation108_spill] sm:$0xff] %v8754_v14  ;;  %1625 = vrot.lane.b32.xlu1 %v7456_v52, %s7636_s18  ;;  %v7603_v52 = vld [vmem:[%s11299_s0 + $0x18] sm:$0xff] }
 0x1ac   :  { %3990 = vbcast.lane.b32.xlu0 %v8620_v27, 304  ;;  %v8772_v38 = vmul.f32 %v7603_v52, %v8351_v20  ;;  %v886_v52 = vcombine.high %v876_v12, %v876_v12 }
 0x1ae   :  { %v1041_v60 = vpop.permute.xlu0 %1040  ;;  %v8762_v45 = vpop.permute.xlu1 %2062  ;;  %v1274_v12 = vrot.slane %v886_v52, %v7788_v23 }
 0x1af   :  { %v1419_v19 = vmul.f32 %v1262_v26, %v1041_v60  ;;  %v839_v60 = vcombine.high %v831_v47, %v831_v47  ;;  %1633 = vrot.lane.b32.xlu1 %v7458_v8, %s7636_s18  ;;  %v3089_v8 = vcombine.high %v8772_v38, %v8772_v38 }
 0x1b0   :  { %3200 = vbcast.lane.b32.xlu0 %v7885_v54, 288 }
 0x1b1   :  { %1451 = vst.msk [vmem:[#allocation3] sm:$0xff] %vm138_vm0, %v1419_v19  ;;  %v1545_v19 = vmul.f32 1.442695, %v1500_v35  ;;  %v853_v47 = vrot.slane %v839_v60, %v7963_v37 }
 0x1b2   :  { %v1048_v26 = vpop.permute.xlu0 %1047 }
 0x1b3   :  { %v1420_v39 = vmul.f32 %v1266_v31, %v1048_v26  ;;  %v8776_v5 = vpop.permute.xlu1 %2078  ;;  %3629 = vrot.lane.b32.xlu1 %v7460_v22, %s7636_s18  ;;  %7465 = vpow2.f32 %v1545_v19  ;;  %v3541_v31 = vmul.f32 1.442695, %v3502_v28  ;;  %v7462_v26 = vpop.eup %7461  ;;  %v855_v62 = vcombine.high %v853_v47, %v853_v47 }
 0x1b4   :  { %2010 = vbcast.lane.b32.xlu0 %v7868_v49, 272  ;;  %v8795_v22 = vrot.slane %v3089_v8, %v7963_v37  ;;  %v3508_v19 = vmul.f32 %v8353_v58, %v8245_v40  ;;  %v7464_v28 = vpop.eup %7463 }
 0x1b5   :  { %1452 = vst.msk [vmem:[#allocation3 + $0x8] sm:$0xff] %vm138_vm0, %v1420_v39  ;;  %v869_v39 = vrot.slane %v853_v47, %v7963_v37  ;;  %7467 = vpow2.f32 %v3541_v31  ;;  %v8806_v47 = vrot.slane %v855_v62, %v7963_v37 }
 0x1b6   :  { %v1055_v14 = vpop.permute.xlu0 %1054  ;;  %v3105_v8 = vcombine.high %v8795_v22, %v8795_v22  ;;  %7469 = vpow2.f32 %v3555_v50  ;;  %v3553_v40 = vmul.f32 1.442695, %v3508_v19  ;;  %v3557_v19 = vmul.f32 1.442695, %v3510_v44 }
 0x1b7   :  { %v1421_v46 = vmul.f32 %v1270_v34, %v1055_v14  ;;  %v8787_v35 = vpop.permute.xlu1 %4078  ;;  %3643 = vrot.lane.b32.xlu1 %v7462_v26, %s7636_s18  ;;  %v1278_v52 = vrot.slane %v869_v39, %v7788_v23  ;;  %v885_v62 = vcombine.high %v869_v39, %v869_v39 }
 0x1b8   :  { %3196 = vbcast.lane.b32.xlu0 %v7881_v53, 288  ;;  %7471 = vpow2.f32 %v3553_v40  ;;  %v1511_v40 = vmul.f32 %v8371_v24, %v8463_v16  ;;  %v1504_v16 = vmul.f32 %v8371_v24, %v8313_v10 }
 0x1b9   :  { %1453 = vst.msk [vmem:[#allocation3 + $0x10] sm:$0xff] %vm138_vm0, %v1421_v46  ;;  %v1286_v39 = vrot.slane %v885_v62, %v7788_v23  ;;  %7473 = vpow2.f32 %v3557_v19  ;;  %v3096_v62 = vrot.slane %v8772_v38, %v7963_v37 }
 0x1ba   :  { %v1062_v60 = vpop.permute.xlu0 %1061  ;;  %v1567_v19 = vmul.f32 1.442695, %v1511_v40 }
 0x1bb   :  { %v1422_v34 = vmul.f32 %v1274_v12, %v1062_v60  ;;  %v8799_v14 = vpop.permute.xlu1 %4062  ;;  %3635 = vrot.lane.b32.xlu1 %v7464_v28, %s7636_s18  ;;  %v1282_v60 = vrot.slane %v8806_v47, %v7788_v23 }
 0x1bc   :  { %2026 = vbcast.lane.b32.xlu0 %v7885_v54, 272 }
 0x1bd   :  { %1454 = vst.msk [vmem:[#allocation3 + $0x18] sm:$0xff] %vm138_vm0, %v1422_v34  ;;  %v7466_v26 = vpop.eup %7465  ;;  %v3133_v34 = vrot.slane %v3105_v8, %v7963_v37 }
 0x1bf   :  { %v1069_v46 = vpop.permute.xlu0 %1068  ;;  %1641 = vrot.lane.b32.xlu1 %v7466_v26, %s7636_s18  ;;  %v1559_v26 = vmul.f32 1.442695, %v1507_v4  ;;  %v3385_v40 = vrot.slane %v3133_v34, %v7788_v23 }
 0x1c0   :  { %3192 = vbcast.lane.b32.xlu0 %v11658_v33, 288  ;;  %v8812_v31 = vpop.permute.xlu1 %2066  ;;  %v1423_v12 = vmul.f32 %v1278_v52, %v1069_v46  ;;  %v7468_v46 = vpop.eup %7467 }
 0x1c1   :  { %v7470_v55 = vpop.eup %7469  ;;  %7475 = vpow2.f32 %v1559_v26 }
 0x1c2   :  { %1455 = vst.msk [vmem:[#allocation3 + $0x20] sm:$0xff] %vm138_vm0, %v1423_v12  ;;  %v3137_v12 = vcombine.high %v3133_v34, %v3133_v34  ;;  %7477 = vpow2.f32 %v1567_v19 }
 0x1c3   :  { %v1076_v28 = vpop.permute.xlu0 %1075  ;;  %3637 = vrot.lane.b32.xlu1 %v7468_v46, %s7636_s18  ;;  %v7472_v46 = vpop.eup %7471 }
 0x1c4   :  { %3188 = vbcast.lane.b32.xlu0 %v7873_v51, 288  ;;  %v8822_v50 = vpop.permute.xlu1 %2082  ;;  %v1424_v52 = vmul.f32 %v1282_v60, %v1076_v28  ;;  %v3393_v60 = vrot.slane %v3137_v12, %v7788_v23  ;;  %v1553_v12 = vmul.f32 1.442695, %v1504_v16  ;;  %v7474_v10 = vpop.eup %7473 }
 0x1c6   :  { %1456 = vst.msk [vmem:[#allocation3 + $0x28] sm:$0xff] %vm138_vm0, %v1424_v52  ;;  %7479 = vpow2.f32 %v1553_v12  ;;  %v1515_v12 = vmul.f32 %v8371_v24, %v8477_v29  ;;  %v1508_v29 = vmul.f32 %v8371_v24, %v8327_v2 }
 0x1c7   :  { %3651 = vrot.lane.b32.xlu1 %v7470_v55, %s7636_s18 }
 0x1c8   :  { %3184 = vbcast.lane.b32.xlu0 %v7868_v49, 288  ;;  %v1083_v8 = vpop.permute.xlu0 %1082 }
 0x1c9   :  { %v1425_v44 = vmul.f32 %v1286_v39, %v1083_v8  ;;  %v8832_v54 = vpop.permute.xlu1 %4074  ;;  %v3104_v39 = vcombine.high %v3096_v62, %v3096_v62  ;;  %v1505_v8 = vmul.f32 %v8371_v24, %v8316_v18 }
 0x1cb   :  { %1457 = vst.msk [vmem:[#allocation3 + $0x30] sm:$0xff] %vm138_vm0, %v1425_v44  ;;  %3649 = vrot.lane.b32.xlu1 %v7472_v46, %s7636_s18  ;;  %v3119_v44 = vrot.slane %v8795_v22, %v7963_v37  ;;  %v3126_v55 = vrot.slane %v3104_v39, %v7963_v37  ;;  %v1555_v18 = vmul.f32 1.442695, %v1505_v8  ;;  %v7476_v16 = vpop.eup %7475  ;;  %v11677_v39 = vld [vmem:[#allocation28_spill] sm:$0xff] }
 0x1cc   :  { %3180 = vbcast.lane.b32.xlu0 %v7864_v48, 288  ;;  %v11706_v48 = vld [vmem:[#allocation63_spill] sm:$0xff] }
 0x1cd   :  { %v3381_v22 = vrot.slane %v3119_v44, %v7788_v23  ;;  %7481 = vpow2.f32 %v1555_v18  ;;  %v1575_v18 = vmul.f32 1.442695, %v1515_v12  ;;  %v11681_v12 = vld [vmem:[#allocation82_spill] sm:$0xff] }
 0x1ce   :  { %v3265_v28 = vpop.permute.xlu0 %3264  ;;  %v8842_v52 = vpop.permute.xlu1 %4058 }
 0x1cf   :  { %v3457_v4 = vmul.f32 %v3393_v60, %v3265_v28  ;;  %11673 = vst [vmem:[#allocation55_spill] sm:$0xff] %v8842_v52  ;;  %3653 = vrot.lane.b32.xlu1 %v7474_v10, %s7636_s18  ;;  %v3513_v60 = vmul.f32 %v8353_v58, %v8401_v61  ;;  %v8870_v10 = vrot.slane %v3096_v62, %v7963_v37 }
 0x1d0   :  { %3176 = vbcast.lane.b32.xlu0 %v8685_v1, 288 }
 0x1d1   :  { %3490 = vst.msk [vmem:[#allocation3 + $0x2f8] sm:$0xff] %vm138_vm0, %v3457_v4  ;;  %v3136_v4 = vcombine.high %v3126_v55, %v3126_v55  ;;  %v3563_v46 = vmul.f32 1.442695, %v3513_v60  ;;  %v3134_v62 = vcombine.high %v8870_v10, %v8870_v10 }
 0x1d2   :  { %v8847_v38 = vpop.permute.xlu0 %2074  ;;  %v8851_v26 = vpop.permute.xlu1 %2070 }
 0x1d3   :  { %11674 = vst [vmem:[#allocation52_spill] sm:$0xff] %v8847_v38  ;;  %11675 = vst [vmem:[#allocation109_spill] sm:$0xff] %v8851_v26  ;;  %1655 = vrot.lane.b32.xlu1 %v7476_v16, %s7636_s18  ;;  %7483 = vpow2.f32 %v3563_v46  ;;  %v1561_v46 = vmul.f32 1.442695, %v1508_v29  ;;  %v3373_v2 = vrot.slane %v3134_v62, %v7788_v23  ;;  %v3369_v62 = vrot.slane %v3126_v55, %v7788_v23  ;;  %v11684_v55 = vld [vmem:[#allocation75_spill] sm:$0xff] }
 0x1d4   :  { %3172 = vbcast.lane.b32.xlu0 %v8620_v27, 288  ;;  %7485 = vpow2.f32 %v1575_v18  ;;  %v11682_v18 = vld [vmem:[#allocation76_spill] sm:$0xff] }
 0x1d5   :  { %7487 = vpow2.f32 %v1561_v46  ;;  %v3514_v29 = vmul.f32 %v8353_v58, %v11682_v18  ;;  %v3521_v46 = vmul.f32 %v8353_v58, %v8540_v30 }
 0x1d6   :  { %v3257_v28 = vpop.permute.xlu0 %3256 }
 0x1d7   :  { %v3455_v19 = vmul.f32 %v3385_v40, %v3257_v28  ;;  %v8862_v34 = vpop.permute.xlu1 %2086  ;;  %v7478_v40 = vpop.eup %7477 }
 0x1d8   :  { %11676 = vst [vmem:[#allocation110_spill] sm:$0xff] %v8862_v34  ;;  %1194 = vbcast.lane.b32.xlu0 %v11677_v39, 256  ;;  %1663 = vrot.lane.b32.xlu1 %v7478_v40, %s7636_s18  ;;  %v1512_v40 = vmul.f32 %v8371_v24, %v11681_v12 }
 0x1d9   :  { %3488 = vst.msk [vmem:[#allocation3 + $0x2e8] sm:$0xff] %vm138_vm0, %v3455_v19  ;;  %v3377_v19 = vrot.slane %v3136_v4, %v7788_v23  ;;  %v11680_v4 = vld [vmem:[#allocation30_spill] sm:$0xff] }
 0x1da   :  { %v3253_v61 = vpop.permute.xlu0 %3252 }
 0x1db   :  { %v3454_v8 = vmul.f32 %v3381_v22, %v3253_v61  ;;  %v8873_v28 = vpop.permute.xlu1 %4070  ;;  %v3135_v22 = vcombine.high %v3119_v44, %v3119_v44  ;;  %v7480_v61 = vpop.eup %7479 }
 0x1dc   :  { %11678 = vst [vmem:[#allocation111_spill] sm:$0xff] %v8873_v28  ;;  %3236 = vbcast.lane.b32.xlu0 %v7987_v57, 288  ;;  %1649 = vrot.lane.b32.xlu1 %v7480_v61, %s7636_s18  ;;  %v7482_v44 = vpop.eup %7481  ;;  %v1569_v61 = vmul.f32 1.442695, %v1512_v40 }
 0x1dd   :  { %3487 = vst.msk [vmem:[#allocation3 + $0x2e0] sm:$0xff] %vm138_vm0, %v3454_v8  ;;  %v7484_v12 = vpop.eup %7483 }
 0x1de   :  { %v3249_v60 = vpop.permute.xlu0 %3248  ;;  %7489 = vpow2.f32 %v1569_v61 }
 0x1df   :  { %v3453_v16 = vmul.f32 %v3377_v19, %v3249_v60  ;;  %v3389_v60 = vrot.slane %v3135_v22, %v7788_v23 }
 0x1e0   :  { %v8883_v8 = vpop.permute.xlu1 %4054  ;;  %1089 = vbcast.lane.b32.xlu0 %v11680_v4, 256  ;;  %1651 = vrot.lane.b32.xlu1 %v7482_v44, %s7636_s18  ;;  %v3579_v44 = vmul.f32 1.442695, %v3521_v46 }
 0x1e1   :  { %3486 = vst.msk [vmem:[#allocation3 + $0x2d8] sm:$0xff] %vm138_vm0, %v3453_v16  ;;  %11679 = vst [vmem:[#allocation112_spill] sm:$0xff] %v8883_v8  ;;  %v11696_v8 = vld [vmem:[#allocation81_spill] sm:$0xff] }
 0x1e2   :  { %v3245_v19 = vpop.permute.xlu0 %3244 }
 0x1e3   :  { %v3452_v38 = vmul.f32 %v3373_v2, %v3245_v19  ;;  %v11683_v19 = vld [vmem:[#allocation24_spill] sm:$0xff] }
 0x1e4   :  { %v3261_v53 = vpop.permute.xlu1 %3260  ;;  %3168 = vbcast.lane.b32.xlu0 %v11680_v4, 288  ;;  %3659 = vrot.lane.b32.xlu1 %v7484_v12, %s7636_s18  ;;  %v11692_v4 = vld [vmem:[#allocation62_spill] sm:$0xff] }
 0x1e5   :  { %v3456_v16 = vmul.f32 %v3389_v60, %v3261_v53  ;;  %3485 = vst.msk [vmem:[#allocation3 + $0x2d0] sm:$0xff] %vm138_vm0, %v3452_v38  ;;  %v3565_v53 = vmul.f32 1.442695, %v3514_v29  ;;  %v7486_v38 = vpop.eup %7485  ;;  %v3517_v60 = vmul.f32 %v8353_v58, %v11684_v55 }
 0x1e6   :  { %v3241_v22 = vpop.permute.xlu0 %3240  ;;  %v7488_v30 = vpop.eup %7487 }
 0x1e7   :  { %3489 = vst.msk [vmem:[#allocation3 + $0x2f0] sm:$0xff] %vm138_vm0, %v3456_v16  ;;  %v3451_v2 = vmul.f32 %v3369_v62, %v3241_v22  ;;  %7491 = vpow2.f32 %v3565_v53  ;;  %v11685_v16 = vld [vmem:[#allocation61_spill] sm:$0xff]  ;;  %v3571_v29 = vmul.f32 1.442695, %v3517_v60  ;;  %v3522_v60 = vmul.f32 %v8353_v58, %v8543_v9 }
 0x1e8   :  { %1201 = vbcast.lane.b32.xlu0 %v11683_v19, 256  ;;  %1671 = vrot.lane.b32.xlu1 %v7486_v38, %s7636_s18  ;;  %v3506_v61 = vmul.f32 %v8353_v58, %v11685_v16  ;;  %v11686_v62 = vld [vmem:[#allocation85_spill] sm:$0xff]  ;;  %7493 = vpow2.f32 %v3579_v44  ;;  %v7490_v38 = vpop.eup %7489  ;;  %v11688_v16 = vld [vmem:[#allocation35_spill] sm:$0xff] }
 0x1e9   :  { %3484 = vst.msk [vmem:[#allocation3 + $0x2c8] sm:$0xff] %vm138_vm0, %v3451_v2  ;;  %v1516_v12 = vmul.f32 %v8371_v24, %v11686_v62  ;;  %v11687_v2 = vld [vmem:[#allocation64_spill] sm:$0xff]  ;;  %7495 = vpow2.f32 %v3571_v29  ;;  %v11689_v44 = vld [vmem:[#allocation79_spill] sm:$0xff]  ;;  %v3581_v29 = vmul.f32 1.442695, %v3522_v60 }
 0x1ea   :  { %v8903_v40 = vpop.permute.xlu0 %4018  ;;  %v3549_v22 = vmul.f32 1.442695, %v3506_v61  ;;  %v1503_v53 = vmul.f32 %v8371_v24, %v11687_v2  ;;  %v1762_v61 = vmul.f32 %v11689_v44, %v8274_v0 }
 0x1eb   :  { %v1577_v55 = vmul.f32 1.442695, %v1516_v12  ;;  %v11690_v12 = vld [vmem:[#allocation77_spill] sm:$0xff] }
 0x1ec   :  { %3232 = vbcast.lane.b32.xlu0 %v11683_v19, 288  ;;  %1657 = vrot.lane.b32.xlu1 %v7488_v30, %s7636_s18  ;;  %7497 = vpow2.f32 %v3549_v22  ;;  %v1551_v30 = vmul.f32 1.442695, %v1503_v53  ;;  %v1866_v19 = vcombine.high %v1762_v61, %v1762_v61  ;;  %v1873_v9 = vrot.slane %v1762_v61, %v7963_v37 }
 0x1ed   :  { %7499 = vpow2.f32 %v1577_v55  ;;  %v3525_v55 = vmul.f32 %v8353_v58, %v8554_v36 }
 0x1ee   :  { %v8911_v18 = vpop.permute.xlu0 %4002  ;;  %7501 = vpow2.f32 %v1551_v30  ;;  %v8942_v30 = vrot.slane %v1873_v9, %v7963_v37 }
 0x1ef   :  { %7503 = vpow2.f32 %v3581_v29  ;;  %v3587_v36 = vmul.f32 1.442695, %v3525_v55 }
 0x1f0   :  { %1096 = vbcast.lane.b32.xlu0 %v8620_v27, 256  ;;  %1665 = vrot.lane.b32.xlu1 %v7490_v38, %s7636_s18  ;;  %v3518_v38 = vmul.f32 %v8353_v58, %v11690_v12 }
 0x1f1   :  { %v7492_v2 = vpop.eup %7491 }
 0x1f2   :  { %v8919_v46 = vpop.permute.xlu0 %1998  ;;  %v7494_v53 = vpop.eup %7493  ;;  %v3573_v0 = vmul.f32 1.442695, %v3518_v38 }
 0x1f3   :  { %v7496_v60 = vpop.eup %7495 }
 0x1f4   :  { %3164 = vbcast.lane.b32.xlu0 %v11688_v16, 288  ;;  %3661 = vrot.lane.b32.xlu1 %v7492_v2, %s7636_s18  ;;  %v1880_v2 = vrot.slane %v1866_v19, %v7963_v37  ;;  %v3754_v16 = vmul.f32 %v11689_v44, %v11692_v4  ;;  %7505 = vpow2.f32 %v3573_v0  ;;  %v3524_v19 = vmul.f32 %v8353_v58, %v8551_v7 }
 0x1f5   :  { %7507 = vpow2.f32 %v3587_v36  ;;  %v3526_v0 = vmul.f32 %v8353_v58, %v8565_v32  ;;  %v8984_v32 = vld [vmem:[%s11299_s0 + $0x8] sm:$0xff] }
 0x1f6   :  { %v8927_v62 = vpop.permute.xlu0 %2014  ;;  %v7498_v61 = vpop.eup %7497  ;;  %v3858_v38 = vcombine.high %v3754_v16, %v3754_v16  ;;  %v3585_v7 = vmul.f32 1.442695, %v3524_v19  ;;  %v1882_v19 = vcombine.high %v1880_v2, %v1880_v2 }
 0x1f7   :  { %v7500_v29 = vpop.eup %7499 }
 0x1f8   :  { %1208 = vbcast.lane.b32.xlu0 %v7987_v57, 256  ;;  %3675 = vrot.lane.b32.xlu1 %v7494_v53, %s7636_s18  ;;  %v8949_v53 = vpop.permute.xlu1 %2090  ;;  %v8957_v57 = vrot.slane %v1880_v2, %v7963_v37  ;;  %v8968_v55 = vrot.slane %v3858_v38, %v7963_v37  ;;  %7509 = vpow2.f32 %v3585_v7 }
 0x1f9   :  { %11693 = vst [vmem:[#allocation76_spill] sm:$0xff] %v8949_v53  ;;  %v11695_v53 = vld [vmem:[#allocation78_spill] sm:$0xff] }
 0x1fa   :  { %v8934_v22 = vpop.permute.xlu0 %4014  ;;  %11694 = vst [vmem:[#allocation75_spill] sm:$0xff] %v8957_v57  ;;  %v1760_v27 = vmul.f32 %v11695_v53, %v11667_v41  ;;  %v2175_v33 = vrot.slane %v8957_v57, %v7788_v23  ;;  %v3874_v38 = vcombine.high %v8968_v55, %v8968_v55 }
 0x1fc   :  { %3228 = vbcast.lane.b32.xlu0 %v11677_v39, 288  ;;  %3667 = vrot.lane.b32.xlu1 %v7496_v60, %s7636_s18  ;;  %v2159_v39 = vrot.slane %v8942_v30, %v7788_v23  ;;  %v7502_v60 = vpop.eup %7501  ;;  %v8996_v34 = vrot.slane %v1760_v27, %v7963_v37 }
 0x1fe   :  { %v8944_v12 = vpop.permute.xlu0 %3998  ;;  %v2268_v28 = vmul.f32 %v2159_v39, %v11696_v8  ;;  %v11698_v39 = vld [vmem:[#allocation41_spill] sm:$0xff] }
 0x1ff   :  { %11691 = vst [vmem:[#allocation82_spill] sm:$0xff] %v8944_v12  ;;  %v8988_v8 = vmul.f32 %v8984_v32, %v11698_v39 }
 0x200   :  { %3645 = vrot.lane.b32.xlu0 %v7498_v61, %s7636_s18  ;;  %v1881_v61 = vcombine.high %v1873_v9, %v1873_v9  ;;  %1673 = vrot.lane.b32.xlu1 %v7500_v29, %s7636_s18  ;;  %v7504_v9 = vpop.eup %7503  ;;  %v1768_v29 = vcombine.high %v1760_v27, %v1760_v27 }
 0x201   :  { %v1616_v51 = vpop.permute.xlu1 %1615  ;;  %v2991_v27 = vcombine.high %v8988_v8, %v8988_v8 }
 0x202   :  { %v8959_v44 = vpop.permute.xlu0 %2002  ;;  %1712 = vst.msk [vmem:[#allocation2 + $0x100] sm:$0xff] %vm138_vm0, %v1616_v51  ;;  %v8977_v36 = vrot.slane %v1881_v61, %v7963_v37  ;;  %v3589_v51 = vmul.f32 1.442695, %v3526_v0  ;;  %v1782_v49 = vrot.slane %v1768_v29, %v7963_v37  ;;  %v9003_v0 = vrot.slane %v1882_v19, %v7963_v37 }
 0x204   :  { %1647 = vrot.lane.b32.xlu0 %v7502_v60, %s7636_s18  ;;  %11697 = vst [vmem:[#allocation61_spill] sm:$0xff] %v8977_v36  ;;  %3677 = vrot.lane.b32.xlu1 %v7504_v9, %s7636_s18  ;;  %v11699_v60 = vld [vmem:[#allocation88_spill] sm:$0xff]  ;;  %v2163_v7 = vrot.slane %v8977_v36, %v7788_v23  ;;  %11701 = vst [vmem:[#allocation64_spill] sm:$0xff] %v9003_v0  ;;  %7511 = vpow2.f32 %v3589_v51  ;;  %v2179_v51 = vrot.slane %v9003_v0, %v7788_v23  ;;  %v11705_v0 = vld [vmem:[#allocation39_spill] sm:$0xff] }
 0x205   :  { %v2272_v2 = vmul.f32 %v2175_v33, %v11699_v60  ;;  %v1624_v61 = vpop.permute.xlu1 %1623  ;;  %v9008_v33 = vrot.slane %v3754_v16, %v7963_v37  ;;  %v9013_v60 = vrot.slane %v3874_v38, %v7963_v37  ;;  %v1783_v16 = vcombine.high %v8996_v34, %v8996_v34 }
 0x206   :  { %v8973_v41 = vpop.permute.xlu0 %2018  ;;  %1716 = vst.msk [vmem:[#allocation2 + $0x120] sm:$0xff] %vm138_vm0, %v1624_v61  ;;  %v2269_v29 = vmul.f32 %v2163_v7, %v8574_v25  ;;  %v9026_v38 = vrot.slane %v1782_v49, %v7963_v37  ;;  %v9031_v25 = vrot.slane %v2991_v27, %v7963_v37  ;;  %v2273_v7 = vmul.f32 %v2179_v51, %v8586_v11 }
 0x207   :  { %11702 = vst [vmem:[#allocation79_spill] sm:$0xff] %v9013_v60  ;;  %v9049_v11 = vrot.slane %v1783_v16, %v7963_v37  ;;  %v1784_v51 = vcombine.high %v1782_v49, %v1782_v49 }
 0x208   :  { %2348 = vrot.lane.b32.xlu0 %v2268_v28, %s7636_s18  ;;  %v7506_v28 = vpop.eup %7505  ;;  %v2111_v27 = vrot.slane %v9026_v38, %v7788_v23 }
 0x209   :  { %3669 = vrot.lane.b32.xlu1 %v7506_v28, %s7636_s18  ;;  %v1632_v61 = vpop.permute.xlu1 %1631  ;;  %v7508_v19 = vpop.eup %7507  ;;  %v3873_v28 = vcombine.high %v9008_v33, %v9008_v33  ;;  %11709 = vst [vmem:[#allocation81_spill] sm:$0xff] %v9049_v11 }
 0x20a   :  { %v8993_v9 = vpop.permute.xlu0 %4010  ;;  %1720 = vst.msk [vmem:[#allocation2 + $0x140] sm:$0xff] %vm138_vm0, %v1632_v61  ;;  %v7510_v52 = vpop.eup %7509 }
 0x20b   :  { %11700 = vst [vmem:[#allocation85_spill] sm:$0xff] %v8993_v9  ;;  %v11707_v9 = vld [vmem:[#allocation72_spill] sm:$0xff] }
 0x20c   :  { %2356 = vrot.lane.b32.xlu0 %v2272_v2, %s7636_s18  ;;  %v3906_v2 = vcombine.high %v9013_v60, %v9013_v60  ;;  %v11710_v60 = vld [vmem:[#allocation69_spill] sm:$0xff] }
 0x20d   :  { %3683 = vrot.lane.b32.xlu1 %v7508_v19, %s7636_s18  ;;  %v1618_v61 = vpop.permute.xlu1 %1617  ;;  %v1763_v19 = vmul.f32 %v11707_v9, %v11706_v48 }
 0x20e   :  { %v9016_v36 = vpop.permute.xlu0 %3994  ;;  %1713 = vst.msk [vmem:[#allocation2 + $0x108] sm:$0xff] %vm138_vm0, %v1618_v61  ;;  %v4179_v61 = vrot.slane %v3906_v2, %v7788_v23  ;;  %v7512_v16 = vpop.eup %7511  ;;  %v9074_v2 = vrot.slane %v1784_v51, %v7963_v37 }
 0x20f   :  { %11703 = vst [vmem:[#allocation77_spill] sm:$0xff] %v9016_v36  ;;  %v3752_v36 = vmul.f32 %v11695_v53, %v11705_v0  ;;  %v3007_v53 = vcombine.high %v9031_v25, %v9031_v25  ;;  %v1915_v12 = vcombine.high %v1763_v19, %v1763_v19 }
 0x210   :  { %2350 = vrot.lane.b32.xlu0 %v2269_v29, %s7636_s18  ;;  %v9043_v29 = vrot.slane %v3873_v28, %v7963_v37  ;;  %v9057_v28 = vmul.f32 %v11710_v60, %v11698_v39  ;;  %v9069_v39 = vrot.slane %v8968_v55, %v7963_v37  ;;  %11713 = vst [vmem:[#allocation39_spill] sm:$0xff] %v9074_v2 }
 0x211   :  { %3681 = vrot.lane.b32.xlu1 %v7510_v52, %s7636_s18  ;;  %v1620_v48 = vpop.permute.xlu1 %1619  ;;  %v3760_v49 = vcombine.high %v3752_v36, %v3752_v36  ;;  %v1922_v52 = vrot.slane %v1763_v19, %v7963_v37  ;;  %v9079_v19 = vrot.slane %v3007_v53, %v7963_v37 }
 0x212   :  { %v9036_v26 = vpop.permute.xlu0 %2006  ;;  %11708 = vst [vmem:[#allocation78_spill] sm:$0xff] %v9043_v29  ;;  %1714 = vst.msk [vmem:[#allocation2 + $0x110] sm:$0xff] %vm138_vm0, %v1620_v48  ;;  %v3809_v48 = vcombine.high %v9057_v28, %v9057_v28  ;;  %v3904_v53 = vcombine.high %v9069_v39, %v9069_v39 }
 0x213   :  { %11704 = vst [vmem:[#allocation62_spill] sm:$0xff] %v9036_v26  ;;  %v2256_v26 = vmul.f32 %v2111_v27, %v8601_v42  ;;  %11712 = vst [vmem:[#allocation88_spill] sm:$0xff] %v9069_v39  ;;  %v2099_v42 = vrot.slane %v9049_v11, %v7788_v23  ;;  %v11714_v27 = vld [vmem:[#allocation89_spill] sm:$0xff]  ;;  %v9088_v51 = vrot.slane %v3760_v49, %v7963_v37 }
 0x214   :  { %2358 = vrot.lane.b32.xlu0 %v2273_v7, %s7636_s18  ;;  %v3905_v7 = vcombine.high %v9043_v29, %v9043_v29  ;;  %v4267_v29 = vmul.f32 %v4179_v61, %v11714_v27  ;;  %v2115_v61 = vrot.slane %v9074_v2, %v7788_v23  ;;  %v9103_v49 = vrot.slane %v3752_v36, %v7963_v37 }
 0x215   :  { %3685 = vrot.lane.b32.xlu1 %v7512_v16, %s7636_s18  ;;  %v2253_v55 = vmul.f32 %v2099_v42, %v8649_v21  ;;  %v1929_v16 = vrot.slane %v1915_v12, %v7963_v37  ;;  %v9098_v21 = vrot.slane %v1922_v52, %v7963_v37  ;;  %v9107_v12 = vrot.slane %v9008_v33, %v7963_v37  ;;  %v11717_v42 = vld [vmem:[#allocation91_spill] sm:$0xff] }
 0x216   :  { %v9061_v57 = vpop.permute.xlu0 %2022  ;;  %v2257_v39 = vmul.f32 %v2115_v61, %v8667_v6  ;;  %v3776_v36 = vcombine.high %v9088_v51, %v9088_v51  ;;  %v3775_v6 = vcombine.high %v9103_v49, %v9103_v49  ;;  %v9136_v61 = vrot.slane %v9031_v25, %v7963_v37 }
 0x217   :  { %11711 = vst [vmem:[#allocation41_spill] sm:$0xff] %v9061_v57  ;;  %v3628_v57 = vpop.permute.xlu1 %3627  ;;  %11716 = vst [vmem:[#allocation69_spill] sm:$0xff] %v9107_v12  ;;  %v3903_v33 = vcombine.high %v9107_v12, %v9107_v12 }
 0x218   :  { %2324 = vrot.lane.b32.xlu0 %v2256_v26, %s7636_s18  ;;  %v4163_v26 = vrot.slane %v3905_v7, %v7788_v23  ;;  %3722 = vst.msk [vmem:[#allocation2 + $0x310] sm:$0xff] %vm138_vm0, %v3628_v57  ;;  %v3039_v57 = vcombine.high %v9079_v19, %v9079_v19  ;;  %v9112_v7 = vrot.slane %v3809_v48, %v7963_v37 }
 0x219   :  { %4354 = vrot.lane.b32.xlu1 %v4267_v29, %s7636_s18  ;;  %v2191_v48 = vrot.slane %v9098_v21, %v7788_v23  ;;  %v9150_v25 = vrot.slane %v3776_v36, %v7963_v37 }
 0x21a   :  { %v9085_v24 = vpop.permute.xlu0 %4006  ;;  %v4263_v27 = vmul.f32 %v4163_v26, %v11717_v42  ;;  %v9127_v26 = vrot.slane %v1929_v16, %v7963_v37  ;;  %v3755_v42 = vmul.f32 %v11707_v9, %v8351_v20 }
 0x21b   :  { %11715 = vst [vmem:[#allocation72_spill] sm:$0xff] %v9085_v24  ;;  %v1640_v29 = vpop.permute.xlu1 %1639  ;;  %v4175_v24 = vrot.slane %v3904_v53, %v7788_v23  ;;  %v3825_v53 = vcombine.high %v9112_v7, %v9112_v7 }
 0x21c   :  { %2318 = vrot.lane.b32.xlu0 %v2253_v55, %s7636_s18  ;;  %v1930_v55 = vcombine.high %v1922_v52, %v1922_v52  ;;  %1724 = vst.msk [vmem:[#allocation2 + $0x160] sm:$0xff] %vm138_vm0, %v1640_v29  ;;  %v3329_v52 = vrot.slane %v3039_v57, %v7788_v23  ;;  %v4159_v57 = vrot.slane %v3903_v33, %v7788_v23 }
 0x21d   :  { %4346 = vrot.lane.b32.xlu1 %v4263_v27, %s7636_s18  ;;  %v4266_v29 = vmul.f32 %v4175_v24, %v8596_v63  ;;  %v2276_v27 = vmul.f32 %v2191_v48, %v8762_v45  ;;  %v2207_v20 = vrot.slane %v9127_v26, %v7788_v23  ;;  %v1931_v63 = vcombine.high %v1929_v16, %v1929_v16 }
 0x21e   :  { %v9116_v2 = vpop.permute.xlu0 %3990  ;;  %v9156_v24 = vrot.slane %v1930_v55, %v7963_v37  ;;  %v3037_v45 = vcombine.high %v9136_v61, %v9136_v61  ;;  %v3907_v16 = vcombine.high %v3755_v42, %v3755_v42 }
 0x21f   :  { %11718 = vst [vmem:[#allocation89_spill] sm:$0xff] %v9116_v2  ;;  %v9146_v2 = vrot.slane %v8996_v34, %v7963_v37  ;;  %v11719_v34 = vld [vmem:[#allocation40_spill] sm:$0xff]  ;;  %v2280_v36 = vmul.f32 %v2207_v20, %v8776_v5  ;;  %v9180_v5 = vrot.slane %v1931_v63, %v7963_v37 }
 0x220   :  { %2326 = vrot.lane.b32.xlu0 %v2257_v39, %s7636_s18  ;;  %v1626_v39 = vpop.permute.xlu1 %1625  ;;  %v1761_v9 = vmul.f32 %v11710_v60, %v11719_v34  ;;  %v9183_v60 = vrot.slane %v3825_v53, %v7963_v37 }
 0x221   :  { %1717 = vst.msk [vmem:[#allocation2 + $0x128] sm:$0xff] %vm138_vm0, %v1626_v39  ;;  %4352 = vrot.lane.b32.xlu1 %v4266_v29, %s7636_s18  ;;  %v2095_v48 = vrot.slane %v9146_v2, %v7788_v23  ;;  %v3325_v29 = vrot.slane %v3037_v45, %v7788_v23 }
 0x222   :  { %v3201_v12 = vpop.permute.xlu0 %3200  ;;  %v9191_v39 = vrot.slane %v1761_v9, %v7963_v37 }
 0x223   :  { %v3441_v11 = vmul.f32 %v3329_v52, %v3201_v12  ;;  %v4262_v12 = vmul.f32 %v4159_v57, %v8607_v13  ;;  %v9174_v52 = vrot.slane %v3775_v6, %v7963_v37  ;;  %v2195_v13 = vrot.slane %v9156_v24, %v7788_v23 }
 0x224   :  { %2364 = vrot.lane.b32.xlu0 %v2276_v27, %s7636_s18  ;;  %v1634_v33 = vpop.permute.xlu1 %1633  ;;  %v2998_v6 = vrot.slane %v8988_v8, %v7963_v37  ;;  %v1817_v27 = vcombine.high %v1761_v9, %v1761_v9  ;;  %v2252_v57 = vmul.f32 %v2095_v48, %v8592_v59  ;;  %v9204_v9 = vrot.slane %v9088_v51, %v7963_v37 }
 0x225   :  { %3474 = vst.msk [vmem:[#allocation3 + $0x278] sm:$0xff] %vm138_vm0, %v3441_v11  ;;  %v3808_v11 = vcombine.high %v9150_v25, %v9150_v25  ;;  %1721 = vst.msk [vmem:[#allocation2 + $0x148] sm:$0xff] %vm138_vm0, %v1634_v33  ;;  %4344 = vrot.lane.b32.xlu1 %v4262_v12, %s7636_s18  ;;  %v2277_v20 = vmul.f32 %v2195_v13, %v8812_v31  ;;  %v9196_v33 = vrot.slane %v3907_v16, %v7963_v37 }
 0x226   :  { %v9167_v55 = vpop.permute.xlu0 %2010  ;;  %v3807_v45 = vcombine.high %v9174_v52, %v9174_v52  ;;  %v2211_v59 = vrot.slane %v9180_v5, %v7788_v23  ;;  %v3857_v31 = vcombine.high %v9183_v60, %v9183_v60  ;;  %v9214_v16 = vrot.slane %v1817_v27, %v7963_v37 }
 0x227   :  { %v4115_v12 = vrot.slane %v3808_v11, %v7788_v23 }
 0x228   :  { %2372 = vrot.lane.b32.xlu0 %v2280_v36, %s7636_s18  ;;  %v3630_v63 = vpop.permute.xlu1 %3629  ;;  %v3006_v36 = vcombine.high %v2998_v6, %v2998_v6  ;;  %v2281_v51 = vmul.f32 %v2211_v59, %v8822_v50  ;;  %v4099_v27 = vrot.slane %v3807_v45, %v7788_v23  ;;  %v4147_v50 = vrot.slane %v3857_v31, %v7788_v23 }
 0x229   :  { %3723 = vst.msk [vmem:[#allocation2 + $0x318] sm:$0xff] %vm138_vm0, %v3630_v63  ;;  %2316 = vrot.lane.b32.xlu1 %v2252_v57, %s7636_s18  ;;  %v4251_v48 = vmul.f32 %v4115_v12, %v8613_v3  ;;  %v9225_v57 = vrot.slane %v3755_v42, %v7963_v37  ;;  %v3806_v3 = vcombine.high %v9204_v9, %v9204_v9  ;;  %v11720_v12 = vld [vmem:[#allocation96_spill] sm:$0xff] }
 0x22a   :  { %v3197_v53 = vpop.permute.xlu0 %3196  ;;  %v9236_v63 = vrot.slane %v9191_v39, %v7963_v37  ;;  %v9243_v42 = vrot.slane %v3006_v36, %v7963_v37  ;;  %v4247_v45 = vmul.f32 %v4099_v27, %v11720_v12 }
 0x22b   :  { %v3440_v8 = vmul.f32 %v3325_v29, %v3197_v53  ;;  %v9222_v29 = vrot.slane %v9103_v49, %v7963_v37  ;;  %v3321_v49 = vrot.slane %v9079_v19, %v7788_v23  ;;  %v1832_v53 = vcombine.high %v9191_v39, %v9191_v39 }
 0x22c   :  { %2366 = vrot.lane.b32.xlu0 %v2277_v20, %s7636_s18  ;;  %v3644_v11 = vpop.permute.xlu1 %3643  ;;  %v3923_v20 = vcombine.high %v9196_v33, %v9196_v33  ;;  %v4111_v39 = vrot.slane %v3806_v3, %v7788_v23  ;;  %v3038_v27 = vcombine.high %v9243_v42, %v9243_v42  ;;  %v9272_v3 = vrot.slane %v2998_v6, %v7963_v37 }
 0x22d   :  { %3473 = vst.msk [vmem:[#allocation3 + $0x270] sm:$0xff] %vm138_vm0, %v3440_v8  ;;  %3730 = vst.msk [vmem:[#allocation2 + $0x350] sm:$0xff] %vm138_vm0, %v3644_v11  ;;  %4322 = vrot.lane.b32.xlu1 %v4251_v48, %s7636_s18  ;;  %v4259_v8 = vmul.f32 %v4147_v50, %v8903_v40  ;;  %v3922_v48 = vcombine.high %v9225_v57, %v9225_v57  ;;  %v2127_v11 = vrot.slane %v9236_v63, %v7788_v23 }
 0x22e   :  { %v9218_v13 = vpop.permute.xlu0 %2026  ;;  %v9254_v19 = vrot.slane %v3923_v20, %v7963_v37  ;;  %v9262_v40 = vrot.slane %v9214_v16, %v7963_v37  ;;  %v3317_v20 = vrot.slane %v9136_v61, %v7788_v23  ;;  %v4250_v50 = vmul.f32 %v4111_v39, %v8679_v43 }
 0x22f   :  { %v9286_v43 = vrot.slane %v1832_v53, %v7963_v37 }
 0x230   :  { %2374 = vrot.lane.b32.xlu0 %v2281_v51, %s7636_s18  ;;  %v3636_v59 = vpop.permute.xlu1 %3635  ;;  %v3805_v51 = vcombine.high %v9222_v29, %v9222_v29  ;;  %v2143_v6 = vrot.slane %v9262_v40, %v7788_v23 }
 0x231   :  { %3726 = vst.msk [vmem:[#allocation2 + $0x330] sm:$0xff] %vm138_vm0, %v3636_v59  ;;  %4314 = vrot.lane.b32.xlu1 %v4247_v45, %s7636_s18 }
 0x232   :  { %v3193_v31 = vpop.permute.xlu0 %3192  ;;  %v4095_v45 = vrot.slane %v3805_v51, %v7788_v23  ;;  %v3036_v51 = vcombine.high %v9272_v3, %v9272_v3  ;;  %v2264_v39 = vmul.f32 %v2143_v6, %v8927_v62  ;;  %v9315_v62 = vmul.f32 %v8736_v15, %v11705_v0 }
 0x233   :  { %v3439_v36 = vmul.f32 %v3321_v49, %v3193_v31  ;;  %v2260_v49 = vmul.f32 %v2127_v11, %v8919_v46  ;;  %v9280_v31 = vrot.slane %v3922_v48, %v7963_v37  ;;  %v1833_v46 = vcombine.high %v9214_v16, %v9214_v16 }
 0x234   :  { %4338 = vrot.lane.b32.xlu0 %v4259_v8, %s7636_s18  ;;  %v1642_v12 = vpop.permute.xlu1 %1641  ;;  %v3955_v8 = vcombine.high %v9254_v19, %v9254_v19  ;;  %v3313_v48 = vrot.slane %v3038_v27, %v7788_v23  ;;  %v9304_v27 = vrot.slane %v9196_v33, %v7963_v37  ;;  %v9327_v6 = vrot.slane %v9225_v57, %v7963_v37  ;;  %v11721_v57 = vld [vmem:[#allocation108_spill] sm:$0xff] }
 0x235   :  { %3472 = vst.msk [vmem:[#allocation3 + $0x268] sm:$0xff] %vm138_vm0, %v3439_v36  ;;  %1725 = vst.msk [vmem:[#allocation2 + $0x168] sm:$0xff] %vm138_vm0, %v1642_v12  ;;  %4320 = vrot.lane.b32.xlu1 %v4250_v50, %s7636_s18  ;;  %v4246_v36 = vmul.f32 %v4095_v45, %v8690_v56  ;;  %v3954_v16 = vcombine.high %v9280_v31, %v9280_v31  ;;  %v9309_v56 = vrot.slane %v1833_v46, %v7963_v37 }
 0x236   :  { %v3189_v59 = vpop.permute.xlu0 %3188  ;;  %v3309_v12 = vrot.slane %v3036_v51, %v7788_v23  ;;  %v1813_v15 = vcombine.high %v9146_v2, %v9146_v2  ;;  %v2942_v2 = vcombine.high %v9315_v62, %v9315_v62 }
 0x237   :  { %v3438_v61 = vmul.f32 %v3317_v20, %v3189_v59  ;;  %v4211_v20 = vrot.slane %v3955_v8, %v7788_v23  ;;  %v2147_v46 = vrot.slane %v9309_v56, %v7788_v23 }
 0x238   :  { %2332 = vrot.lane.b32.xlu0 %v2260_v49, %s7636_s18  ;;  %v3638_v53 = vpop.permute.xlu1 %3637  ;;  %v2131_v49 = vrot.slane %v9286_v43, %v7788_v23 }
 0x239   :  { %3471 = vst.msk [vmem:[#allocation3 + $0x260] sm:$0xff] %vm138_vm0, %v3438_v61  ;;  %3727 = vst.msk [vmem:[#allocation2 + $0x338] sm:$0xff] %vm138_vm0, %v3638_v53  ;;  %4312 = vrot.lane.b32.xlu1 %v4246_v36, %s7636_s18  ;;  %v4275_v33 = vmul.f32 %v4211_v20, %v8744_v17  ;;  %v9323_v61 = vrot.slane %v9057_v28, %v7963_v37  ;;  %v4195_v17 = vrot.slane %v3954_v16, %v7788_v23 }
 0x23a   :  { %v3185_v11 = vpop.permute.xlu0 %3184  ;;  %v2261_v59 = vmul.f32 %v2131_v49, %v8959_v44  ;;  %v3953_v44 = vcombine.high %v9304_v27, %v9304_v27  ;;  %v3305_v28 = vrot.slane %v9243_v42, %v7788_v23  ;;  %v2265_v51 = vmul.f32 %v2147_v46, %v8973_v41  ;;  %v7605_v41 = vld [vmem:[%s11299_s0 + $0x10] sm:$0xff] }
 0x23b   :  { %v3437_v50 = vmul.f32 %v3313_v48, %v3185_v11  ;;  %v4271_v48 = vmul.f32 %v4195_v17, %v11721_v57  ;;  %v3824_v53 = vcombine.high %v9323_v61, %v9323_v61  ;;  %v1911_v11 = vcombine.high %v8942_v30, %v8942_v30  ;;  %v11724_v57 = vld [vmem:[#allocation94_spill] sm:$0xff] }
 0x23c   :  { %2340 = vrot.lane.b32.xlu0 %v2264_v39, %s7636_s18  ;;  %v3652_v45 = vpop.permute.xlu1 %3651  ;;  %v2103_v42 = vrot.slane %v1813_v15, %v7788_v23  ;;  %v4207_v16 = vrot.slane %v3953_v44, %v7788_v23  ;;  %v9361_v30 = vmul.f32 %v7605_v41, %v11692_v4  ;;  %v3301_v49 = vrot.slane %v9272_v3, %v7788_v23 }
 0x23d   :  { %3470 = vst.msk [vmem:[#allocation3 + $0x258] sm:$0xff] %vm138_vm0, %v3437_v50  ;;  %3734 = vst.msk [vmem:[#allocation2 + $0x370] sm:$0xff] %vm138_vm0, %v3652_v45  ;;  %4370 = vrot.lane.b32.xlu1 %v4275_v33, %s7636_s18  ;;  %v3952_v50 = vcombine.high %v9327_v6, %v9327_v6  ;;  %v11723_v45 = vld [vmem:[#allocation42_spill] sm:$0xff]  ;;  %v2167_v44 = vrot.slane %v1911_v11, %v7788_v23  ;;  %v9377_v3 = vrot.slane %v3824_v53, %v7963_v37 }
 0x23e   :  { %v3181_v8 = vpop.permute.xlu0 %3180  ;;  %v4274_v15 = vmul.f32 %v4207_v16, %v8787_v35  ;;  %v4203_v11 = vrot.slane %v9254_v19, %v7788_v23  ;;  %v887_v16 = vcombine.high %v8806_v47, %v8806_v47 }
 0x23f   :  { %v3436_v0 = vmul.f32 %v3309_v12, %v3181_v8  ;;  %v11722_v12 = vld [vmem:[#allocation98_spill] sm:$0xff]  ;;  %v2254_v8 = vmul.f32 %v2103_v42, %v11723_v45  ;;  %v4191_v46 = vrot.slane %v3952_v50, %v7788_v23  ;;  %v9396_v42 = vrot.slane %v9112_v7, %v7963_v37  ;;  %v11725_v45 = vld [vmem:[#allocation59_spill] sm:$0xff] }
 0x240   :  { %2334 = vrot.lane.b32.xlu0 %v2261_v59, %s7636_s18  ;;  %v3650_v36 = vpop.permute.xlu1 %3649  ;;  %v983_v33 = vcombine.high %v11722_v12, %v11722_v12  ;;  %v9369_v59 = vrot.slane %v2942_v2, %v7963_v37  ;;  %v3040_v2 = vcombine.high %v9361_v30, %v9361_v30  ;;  %v4273_v7 = vmul.f32 %v4203_v11, %v8832_v54 }
 0x241   :  { %3469 = vst.msk [vmem:[#allocation3 + $0x250] sm:$0xff] %vm138_vm0, %v3436_v0  ;;  %3733 = vst.msk [vmem:[#allocation2 + $0x368] sm:$0xff] %vm138_vm0, %v3650_v36  ;;  %4362 = vrot.lane.b32.xlu1 %v4271_v48, %s7636_s18  ;;  %v2270_v48 = vmul.f32 %v2167_v44, %v11724_v57  ;;  %v9414_v12 = vrot.slane %v9323_v61, %v7963_v37  ;;  %v3855_v47 = vcombine.high %v9396_v42, %v9396_v42 }
 0x242   :  { %v3177_v39 = vpop.permute.xlu0 %3176  ;;  %v1350_v35 = vrot.slane %v983_v33, %v7788_v23  ;;  %v9409_v50 = vrot.slane %v3040_v2, %v7963_v37  ;;  %v1290_v54 = vrot.slane %v887_v16, %v7788_v23  ;;  %v11726_v2 = vld [vmem:[#allocation92_spill] sm:$0xff] }
 0x243   :  { %v3435_v20 = vmul.f32 %v3305_v28, %v3177_v39  ;;  %v2958_v28 = vcombine.high %v9369_v59, %v9369_v59  ;;  %v3520_v57 = vmul.f32 %v8353_v58, %v11726_v2 }
 0x244   :  { %2342 = vrot.lane.b32.xlu0 %v2265_v51, %s7636_s18  ;;  %v3654_v0 = vpop.permute.xlu1 %3653  ;;  %v4270_v51 = vmul.f32 %v4191_v46, %v8799_v14  ;;  %v3365_v14 = vrot.slane %v8870_v10, %v7788_v23  ;;  %v4143_v46 = vrot.slane %v3855_v47, %v7788_v23 }
 0x245   :  { %3468 = vst.msk [vmem:[#allocation3 + $0x248] sm:$0xff] %vm138_vm0, %v3435_v20  ;;  %3735 = vst.msk [vmem:[#allocation2 + $0x378] sm:$0xff] %vm138_vm0, %v3654_v0  ;;  %4368 = vrot.lane.b32.xlu1 %v4274_v15, %s7636_s18  ;;  %v3856_v20 = vcombine.high %v9377_v3, %v9377_v3  ;;  %v9406_v19 = vrot.slane %v2958_v28, %v7963_v37  ;;  %v3056_v15 = vcombine.high %v9409_v50, %v9409_v50 }
 0x246   :  { %v3173_v17 = vpop.permute.xlu0 %3172  ;;  %v4258_v11 = vmul.f32 %v4143_v46, %v8934_v22 }
 0x247   :  { %v3434_v4 = vmul.f32 %v3301_v49, %v3173_v17  ;;  %v4131_v33 = vrot.slane %v3856_v20, %v7788_v23  ;;  %v2990_v61 = vcombine.high %v9406_v19, %v9406_v19 }
 0x248   :  { %2320 = vrot.lane.b32.xlu0 %v2254_v8, %s7636_s18  ;;  %v1656_v36 = vpop.permute.xlu1 %1655  ;;  %v3504_v8 = vmul.f32 %v8353_v58, %v11725_v45  ;;  %v11732_v45 = vld [vmem:[#allocation82_spill] sm:$0xff] }
 0x249   :  { %3467 = vst.msk [vmem:[#allocation3 + $0x240] sm:$0xff] %vm138_vm0, %v3434_v4  ;;  %1732 = vst.msk [vmem:[#allocation2 + $0x1a0] sm:$0xff] %vm138_vm0, %v1656_v36  ;;  %4360 = vrot.lane.b32.xlu1 %v4270_v51, %s7636_s18  ;;  %v4255_v0 = vmul.f32 %v4131_v33, %v8911_v18  ;;  %v3297_v18 = vrot.slane %v2990_v61, %v7788_v23  ;;  %v11728_v51 = vld [vmem:[#allocation100_spill] sm:$0xff] }
 0x24a   :  { %v1195_v39 = vpop.permute.xlu0 %1194  ;;  %v3545_v28 = vmul.f32 1.442695, %v3504_v8  ;;  %v985_v36 = vcombine.high %v11728_v51, %v11728_v51  ;;  %v11730_v33 = vld [vmem:[#allocation68_spill] sm:$0xff] }
 0x24b   :  { %v1441_v53 = vmul.f32 %v1350_v35, %v1195_v39  ;;  %v3854_v35 = vcombine.high %v9414_v12, %v9414_v12  ;;  %v9444_v39 = vrot.slane %v3056_v15, %v7963_v37  ;;  %v11733_v15 = vld [vmem:[#allocation75_spill] sm:$0xff] }
 0x24c   :  { %2352 = vrot.lane.b32.xlu0 %v2270_v48, %s7636_s18  ;;  %v1664_v41 = vpop.permute.xlu1 %1663  ;;  %v11727_v48 = vld [vmem:[#allocation34_spill] sm:$0xff]  ;;  %7513 = vpow2.f32 %v3545_v28  ;;  %v1354_v22 = vrot.slane %v985_v36, %v7788_v23  ;;  %v11736_v36 = vld [vmem:[#allocation103_spill] sm:$0xff] }
 0x24d   :  { %1473 = vst.msk [vmem:[#allocation3 + $0xb0] sm:$0xff] %vm138_vm0, %v1441_v53  ;;  %1736 = vst.msk [vmem:[#allocation2 + $0x1c0] sm:$0xff] %vm138_vm0, %v1664_v41  ;;  %4366 = vrot.lane.b32.xlu1 %v4273_v7, %s7636_s18  ;;  %v9448_v53 = vmul.f32 %v8984_v32, %v11719_v34  ;;  %v1814_v7 = vcombine.high %v9026_v38, %v9026_v38  ;;  %v4127_v41 = vrot.slane %v3854_v35, %v7788_v23  ;;  %v11731_v32 = vld [vmem:[#allocation37_spill] sm:$0xff]  ;;  %v11734_v35 = vld [vmem:[#allocation26_spill] sm:$0xff] }
 0x24e   :  { %v3237_v49 = vpop.permute.xlu0 %3236  ;;  %v3088_v34 = vcombine.high %v9444_v39, %v9444_v39 }
 0x24f   :  { %v3450_v10 = vmul.f32 %v3365_v14, %v3237_v49  ;;  %v3577_v49 = vmul.f32 1.442695, %v3520_v57  ;;  %v9465_v38 = vrot.slane %v9448_v53, %v7963_v37  ;;  %v4254_v8 = vmul.f32 %v4127_v41, %v11732_v45  ;;  %v11739_v45 = vld [vmem:[#allocation97_spill] sm:$0xff] }
 0x250   :  { %1103 = vbcast.lane.b32.xlu0 %v8685_v1, 256  ;;  %v1650_v17 = vpop.permute.xlu1 %1649  ;;  %v3361_v28 = vrot.slane %v3088_v34, %v7788_v23  ;;  %v9484_v57 = vrot.slane %v9369_v59, %v7963_v37  ;;  %v11738_v59 = vld [vmem:[#allocation66_spill] sm:$0xff] }
 0x251   :  { %3483 = vst.msk [vmem:[#allocation3 + $0x2c0] sm:$0xff] %vm138_vm0, %v3450_v10  ;;  %1729 = vst.msk [vmem:[#allocation2 + $0x188] sm:$0xff] %vm138_vm0, %v1650_v17  ;;  %4330 = vrot.lane.b32.xlu1 %v4255_v0, %s7636_s18  ;;  %v11729_v10 = vld [vmem:[#allocation46_spill] sm:$0xff]  ;;  %v1912_v0 = vcombine.high %v11733_v15, %v11733_v15  ;;  %7515 = vpow2.f32 %v3577_v49  ;;  %v9480_v2 = vrot.slane %v9465_v38, %v7963_v37 }
 0x252   :  { %v1090_v4 = vpop.permute.xlu0 %1089  ;;  %v1493_v47 = vmul.f32 %v11730_v33, %v11729_v10  ;;  %v1509_v10 = vmul.f32 %v11730_v33, %v11738_v59 }
 0x253   :  { %v1426_v44 = vmul.f32 %v1290_v54, %v1090_v4  ;;  %v2119_v4 = vrot.slane %v1814_v7, %v7788_v23  ;;  %v2183_v49 = vrot.slane %v1912_v0, %v7788_v23 }
 0x254   :  { %3160 = vbcast.lane.b32.xlu0 %v11727_v48, 288  ;;  %v1652_v20 = vpop.permute.xlu1 %1651  ;;  %v1531_v46 = vmul.f32 1.442695, %v1493_v47  ;;  %v1294_v47 = vrot.slane %v9480_v2, %v7788_v23 }
 0x255   :  { %1458 = vst.msk [vmem:[#allocation3 + $0x38] sm:$0xff] %vm138_vm0, %v1426_v44  ;;  %1730 = vst.msk [vmem:[#allocation2 + $0x190] sm:$0xff] %vm138_vm0, %v1652_v20  ;;  %4336 = vrot.lane.b32.xlu1 %v4258_v11, %s7636_s18  ;;  %v4139_v44 = vrot.slane %v9183_v60, %v7788_v23  ;;  %v7606_v60 = vld [vmem:[%s11299_s0 + $0x18] sm:$0xff]  ;;  %v2258_v11 = vmul.f32 %v2119_v4, %v11736_v36 }
 0x256   :  { %v3169_v14 = vpop.permute.xlu0 %3168  ;;  %v11737_v20 = vld [vmem:[#allocation85_spill] sm:$0xff]  ;;  %7517 = vpow2.f32 %v1531_v46  ;;  %v7514_v15 = vpop.eup %7513  ;;  %v9521_v46 = vrot.slane %v9409_v50, %v7963_v37 }
 0x257   :  { %v3433_v16 = vmul.f32 %v3297_v18, %v3169_v14  ;;  %v11735_v18 = vld [vmem:[#allocation63_spill] sm:$0xff]  ;;  %v4257_v14 = vmul.f32 %v4139_v44, %v11737_v20 }
 0x258   :  { %1215 = vbcast.lane.b32.xlu0 %v11731_v32, 256  ;;  %v3660_v54 = vpop.permute.xlu1 %3659  ;;  %v9490_v51 = vmul.f32 %v7606_v60, %v11735_v18  ;;  %v11741_v20 = vld [vmem:[#allocation51_spill] sm:$0xff] }
 0x259   :  { %3466 = vst.msk [vmem:[#allocation3 + $0x238] sm:$0xff] %vm138_vm0, %v3433_v16  ;;  %3738 = vst.msk [vmem:[#allocation2 + $0x390] sm:$0xff] %vm138_vm0, %v3660_v54  ;;  %4328 = vrot.lane.b32.xlu1 %v4254_v8, %s7636_s18  ;;  %v2274_v8 = vmul.f32 %v2183_v49, %v11739_v45  ;;  %v11743_v45 = vld [vmem:[#allocation74_spill] sm:$0xff] }
 0x25a   :  { %v1202_v61 = vpop.permute.xlu0 %1201  ;;  %v9507_v34 = vrot.slane %v9490_v51, %v7963_v37 }
 0x25b   :  { %v1442_v17 = vmul.f32 %v1354_v22, %v1202_v61  ;;  %v2988_v22 = vcombine.high %v9484_v57, %v9484_v57 }
 0x25c   :  { %3224 = vbcast.lane.b32.xlu0 %v11734_v35, 288  ;;  %v1672_v16 = vpop.permute.xlu1 %1671  ;;  %v9517_v44 = vrot.slane %v9507_v34, %v7963_v37 }
 0x25d   :  { %1474 = vst.msk [vmem:[#allocation3 + $0xb8] sm:$0xff] %vm138_vm0, %v1442_v17  ;;  %1740 = vst.msk [vmem:[#allocation2 + $0x1e0] sm:$0xff] %vm138_vm0, %v1672_v16  ;;  %4334 = vrot.lane.b32.xlu1 %v4257_v14, %s7636_s18  ;;  %v1563_v17 = vmul.f32 1.442695, %v1509_v10  ;;  %v3293_v4 = vrot.slane %v2988_v22, %v7788_v23  ;;  %v3500_v14 = vmul.f32 %v8353_v58, %v11741_v20 }
 0x25e   :  { %v3233_v7 = vpop.permute.xlu0 %3232  ;;  %v1358_v50 = vrot.slane %v9517_v44, %v7788_v23  ;;  %v3086_v16 = vcombine.high %v9521_v46, %v9521_v46  ;;  %v4123_v10 = vrot.slane %v9377_v3, %v7788_v23  ;;  %v1862_v3 = vcombine.high %v9236_v63, %v9236_v63 }
 0x25f   :  { %v3449_v41 = vmul.f32 %v3361_v28, %v3233_v7  ;;  %v7516_v28 = vpop.eup %7515  ;;  %7519 = vpow2.f32 %v1563_v17  ;;  %v3537_v22 = vmul.f32 1.442695, %v3500_v14  ;;  %v4187_v63 = vrot.slane %v9280_v31, %v7788_v23  ;;  %v11750_v31 = vld [vmem:[#allocation83_spill] sm:$0xff] }
 0x260   :  { %2328 = vrot.lane.b32.xlu0 %v2258_v11, %s7636_s18  ;;  %v1658_v54 = vpop.permute.xlu1 %1657  ;;  %v11740_v11 = vld [vmem:[#allocation17_spill] sm:$0xff]  ;;  %v7518_v49 = vpop.eup %7517 }
 0x261   :  { %3482 = vst.msk [vmem:[#allocation3 + $0x2b8] sm:$0xff] %vm138_vm0, %v3449_v41  ;;  %1733 = vst.msk [vmem:[#allocation2 + $0x1a8] sm:$0xff] %vm138_vm0, %v1658_v54  ;;  %3641 = vrot.lane.b32.xlu1 %v7514_v15, %s7636_s18  ;;  %v3357_v54 = vrot.slane %v3086_v16, %v7788_v23  ;;  %7521 = vpow2.f32 %v3537_v22  ;;  %v1960_v16 = vcombine.high %v9098_v21, %v9098_v21  ;;  %v11749_v22 = vld [vmem:[#allocation62_spill] sm:$0xff] }
 0x262   :  { %v1097_v61 = vpop.permute.xlu0 %1096 }
 0x263   :  { %v1427_v0 = vmul.f32 %v1294_v47, %v1097_v61  ;;  %v11742_v47 = vld [vmem:[#allocation29_spill] sm:$0xff]  ;;  %v2199_v21 = vrot.slane %v1960_v16, %v7788_v23 }
 0x264   :  { %2360 = vrot.lane.b32.xlu0 %v2274_v8, %s7636_s18  ;;  %v1666_v60 = vpop.permute.xlu1 %1665  ;;  %v3516_v8 = vmul.f32 %v8353_v58, %v11743_v45  ;;  %v11744_v61 = vld [vmem:[#allocation77_spill] sm:$0xff] }
 0x265   :  { %1459 = vst.msk [vmem:[#allocation3 + $0x40] sm:$0xff] %vm138_vm0, %v1427_v0  ;;  %1737 = vst.msk [vmem:[#allocation2 + $0x1c8] sm:$0xff] %vm138_vm0, %v1666_v60  ;;  %3673 = vrot.lane.b32.xlu1 %v7516_v28, %s7636_s18  ;;  %v4253_v15 = vmul.f32 %v4123_v10, %v11744_v61  ;;  %v11745_v28 = vld [vmem:[#allocation11_spill] sm:$0xff]  ;;  %v1513_v61 = vmul.f32 %v11730_v33, %v11750_v31 }
 0x266   :  { %v3165_v18 = vpop.permute.xlu0 %3164  ;;  %v3569_v60 = vmul.f32 1.442695, %v3516_v8 }
 0x267   :  { %v3432_v36 = vmul.f32 %v3293_v4, %v3165_v18  ;;  %v11746_v18 = vld [vmem:[#allocation53_spill] sm:$0xff] }
 0x268   :  { %1110 = vbcast.lane.b32.xlu0 %v11740_v11, 256  ;;  %v3662_v7 = vpop.permute.xlu1 %3661  ;;  %7523 = vpow2.f32 %v3569_v60  ;;  %v1571_v60 = vmul.f32 1.442695, %v1513_v61 }
 0x269   :  { %3465 = vst.msk [vmem:[#allocation3 + $0x230] sm:$0xff] %vm138_vm0, %v3432_v36  ;;  %3739 = vst.msk [vmem:[#allocation2 + $0x398] sm:$0xff] %vm138_vm0, %v3662_v7  ;;  %1627 = vrot.lane.b32.xlu1 %v7518_v49, %s7636_s18  ;;  %v1497_v36 = vmul.f32 %v11730_v33, %v11746_v18  ;;  %v2135_v7 = vrot.slane %v1862_v3, %v7788_v23 }
 0x26a   :  { %v1209_v41 = vpop.permute.xlu0 %1208 }
 0x26b   :  { %v1443_v59 = vmul.f32 %v1358_v50, %v1209_v41  ;;  %v7520_v50 = vpop.eup %7519  ;;  %v11747_v41 = vld [vmem:[#allocation10_spill] sm:$0xff]  ;;  %v1539_v49 = vmul.f32 1.442695, %v1497_v36  ;;  %v2262_v45 = vmul.f32 %v2135_v7, %v11749_v22 }
 0x26c   :  { %3156 = vbcast.lane.b32.xlu0 %v11742_v47, 288  ;;  %v3676_v0 = vpop.permute.xlu1 %3675  ;;  %v7522_v3 = vpop.eup %7521 }
 0x26d   :  { %1475 = vst.msk [vmem:[#allocation3 + $0xc0] sm:$0xff] %vm138_vm0, %v1443_v59  ;;  %3746 = vst.msk [vmem:[#allocation2 + $0x3d0] sm:$0xff] %vm138_vm0, %v3676_v0  ;;  %4326 = vrot.lane.b32.xlu1 %v4253_v15, %s7636_s18  ;;  %v11748_v59 = vld [vmem:[#allocation55_spill] sm:$0xff]  ;;  %7525 = vpow2.f32 %v1539_v49  ;;  %v11751_v15 = vld [vmem:[#allocation109_spill] sm:$0xff] }
 0x26e   :  { %v3229_v17 = vpop.permute.xlu0 %3228  ;;  %v4269_v10 = vmul.f32 %v4187_v63, %v11748_v59  ;;  %v2278_v0 = vmul.f32 %v2199_v21, %v11751_v15  ;;  %7527 = vpow2.f32 %v1571_v60  ;;  %v4107_v59 = vrot.slane %v9150_v25, %v7788_v23  ;;  %v11757_v25 = vld [vmem:[#allocation12_spill] sm:$0xff] }
 0x26f   :  { %v3448_v4 = vmul.f32 %v3357_v54, %v3229_v17  ;;  %v1863_v15 = vcombine.high %v9262_v40, %v9262_v40  ;;  %v1961_v40 = vcombine.high %v9127_v26, %v9127_v26 }
 0x270   :  { %1222 = vbcast.lane.b32.xlu0 %v11745_v28, 256  ;;  %v3668_v20 = vpop.permute.xlu1 %3667 }
 0x271   :  { %3481 = vst.msk [vmem:[#allocation3 + $0x2b0] sm:$0xff] %vm138_vm0, %v3448_v4  ;;  %3742 = vst.msk [vmem:[#allocation2 + $0x3b0] sm:$0xff] %vm138_vm0, %v3668_v20  ;;  %1659 = vrot.lane.b32.xlu1 %v7520_v50, %s7636_s18  ;;  %v11753_v50 = vld [vmem:[#allocation49_spill] sm:$0xff]  ;;  %v2215_v26 = vrot.slane %v1961_v40, %v7788_v23 }
 0x272   :  { %v3646_v14 = vpop.permute.xlu0 %3645  ;;  %v7524_v20 = vpop.eup %7523  ;;  %v3496_v63 = vmul.f32 %v8353_v58, %v11753_v50  ;;  %v2151_v50 = vrot.slane %v1863_v15, %v7788_v23 }
 0x273   :  { %3731 = vst.msk [vmem:[#allocation2 + $0x358] sm:$0xff] %vm138_vm0, %v3646_v14  ;;  %v11752_v14 = vld [vmem:[#allocation18_spill] sm:$0xff] }
 0x274   :  { %3220 = vbcast.lane.b32.xlu0 %v11747_v41, 288  ;;  %v1674_v8 = vpop.permute.xlu1 %1673  ;;  %v3529_v22 = vmul.f32 1.442695, %v3496_v63  ;;  %v11760_v63 = vld [vmem:[#allocation25_spill] sm:$0xff] }
 0x275   :  { %1741 = vst.msk [vmem:[#allocation2 + $0x1e8] sm:$0xff] %vm138_vm0, %v1674_v8  ;;  %4358 = vrot.lane.b32.xlu1 %v4269_v10, %s7636_s18  ;;  %v11754_v10 = vld [vmem:[#allocation31_spill] sm:$0xff] }
 0x276   :  { %v1648_v54 = vpop.permute.xlu0 %1647  ;;  %7529 = vpow2.f32 %v3529_v22 }
 0x277   :  { %1728 = vst.msk [vmem:[#allocation2 + $0x180] sm:$0xff] %vm138_vm0, %v1648_v54  ;;  %v7526_v49 = vpop.eup %7525  ;;  %v11756_v54 = vld [vmem:[#allocation104_spill] sm:$0xff] }
 0x278   :  { %2336 = vrot.lane.b32.xlu0 %v2262_v45, %s7636_s18  ;;  %v3678_v17 = vpop.permute.xlu1 %3677  ;;  %v11755_v45 = vld [vmem:[#allocation73_spill] sm:$0xff]  ;;  %v4249_v21 = vmul.f32 %v4107_v59, %v11756_v54  ;;  %v11763_v54 = vld [vmem:[#allocation86_spill] sm:$0xff] }
 0x279   :  { %3747 = vst.msk [vmem:[#allocation2 + $0x3d8] sm:$0xff] %vm138_vm0, %v3678_v17  ;;  %3633 = vrot.lane.b32.xlu1 %v7522_v3, %s7636_s18  ;;  %v3512_v8 = vmul.f32 %v8353_v58, %v11755_v45  ;;  %v11758_v17 = vld [vmem:[#allocation56_spill] sm:$0xff]  ;;  %v11762_v59 = vld [vmem:[#allocation41_spill] sm:$0xff] }
 0x27a   :  { %v2349_v4 = vpop.permute.xlu0 %2348  ;;  %v2266_v22 = vmul.f32 %v2151_v50, %v11762_v59  ;;  %v11767_v59 = vld [vmem:[#allocation33_spill] sm:$0xff] }
 0x27b   :  { %2429 = vst.msk [vmem:[#allocation3 + $0x180] sm:$0xff] %vm138_vm0, %v2349_v4  ;;  %v1501_v4 = vmul.f32 %v11730_v33, %v11758_v17 }
 0x27c   :  { %2368 = vrot.lane.b32.xlu0 %v2278_v0, %s7636_s18  ;;  %v3670_v18 = vpop.permute.xlu1 %3669  ;;  %v3561_v0 = vmul.f32 1.442695, %v3512_v8 }
 0x27d   :  { %3743 = vst.msk [vmem:[#allocation2 + $0x3b8] sm:$0xff] %vm138_vm0, %v3670_v18  ;;  %3665 = vrot.lane.b32.xlu1 %v7524_v20, %s7636_s18  ;;  %v7528_v18 = vpop.eup %7527 }
 0x27e   :  { %v2357_v36 = vpop.permute.xlu0 %2356  ;;  %7531 = vpow2.f32 %v3561_v0 }
 0x27f   :  { %2433 = vst.msk [vmem:[#allocation3 + $0x1a0] sm:$0xff] %vm138_vm0, %v2357_v36  ;;  %v11759_v36 = vld [vmem:[#allocation79_spill] sm:$0xff] }
 0x280   :  { %1117 = vbcast.lane.b32.xlu0 %v11752_v14, 256  ;;  %v3684_v16 = vpop.permute.xlu1 %3683  ;;  %v4171_v20 = vrot.slane %v11759_v36, %v7788_v23  ;;  %v7530_v17 = vpop.eup %7529  ;;  %v11765_v36 = vld [vmem:[#allocation19_spill] sm:$0xff] }
 0x281   :  { %3750 = vst.msk [vmem:[#allocation2 + $0x3f0] sm:$0xff] %vm138_vm0, %v3684_v16  ;;  %1635 = vrot.lane.b32.xlu1 %v7526_v49, %s7636_s18  ;;  %v1547_v16 = vmul.f32 1.442695, %v1501_v4 }
 0x282   :  { %v2351_v7 = vpop.permute.xlu0 %2350 }
 0x283   :  { %2430 = vst.msk [vmem:[#allocation3 + $0x188] sm:$0xff] %vm138_vm0, %v2351_v7  ;;  %v11761_v7 = vld [vmem:[#allocation99_spill] sm:$0xff]  ;;  %7533 = vpow2.f32 %v1547_v16 }
 0x284   :  { %3152 = vbcast.lane.b32.xlu0 %v11754_v10, 288  ;;  %v3682_v31 = vpop.permute.xlu1 %3681  ;;  %v4265_v49 = vmul.f32 %v4171_v20, %v11761_v7  ;;  %v11766_v20 = vld [vmem:[#allocation60_spill] sm:$0xff] }
 0x285   :  { %3749 = vst.msk [vmem:[#allocation2 + $0x3e8] sm:$0xff] %vm138_vm0, %v3682_v31  ;;  %4318 = vrot.lane.b32.xlu1 %v4249_v21, %s7636_s18  ;;  %v1517_v21 = vmul.f32 %v11730_v33, %v11763_v54  ;;  %v11764_v31 = vld [vmem:[#allocation110_spill] sm:$0xff]  ;;  %v3507_v40 = vmul.f32 %v8353_v58, %v11766_v20 }
 0x286   :  { %v2359_v61 = vpop.permute.xlu0 %2358  ;;  %v11773_v20 = vld [vmem:[#allocation78_spill] sm:$0xff] }
 0x287   :  { %2434 = vst.msk [vmem:[#allocation3 + $0x1a8] sm:$0xff] %vm138_vm0, %v2359_v61  ;;  %v2282_v61 = vmul.f32 %v2215_v26, %v11764_v31  ;;  %v1579_v4 = vmul.f32 1.442695, %v1517_v21  ;;  %v11769_v26 = vld [vmem:[#allocation105_spill] sm:$0xff] }
 0x288   :  { %1229 = vbcast.lane.b32.xlu0 %v11757_v25, 256  ;;  %v3686_v3 = vpop.permute.xlu1 %3685 }
 0x289   :  { %3751 = vst.msk [vmem:[#allocation2 + $0x3f8] sm:$0xff] %vm138_vm0, %v3686_v3  ;;  %1667 = vrot.lane.b32.xlu1 %v7528_v18, %s7636_s18  ;;  %v7532_v18 = vpop.eup %7531  ;;  %7535 = vpow2.f32 %v1579_v4 }
 0x28a   :  { %v2325_v60 = vpop.permute.xlu0 %2324 }
 0x28b   :  { %2417 = vst.msk [vmem:[#allocation3 + $0x120] sm:$0xff] %vm138_vm0, %v2325_v60 }
 0x28c   :  { %3216 = vbcast.lane.b32.xlu0 %v11760_v63, 288  ;;  %v4355_v45 = vpop.permute.xlu1 %4354 }
 0x28d   :  { %4428 = vst.msk [vmem:[#allocation3 + $0x3b8] sm:$0xff] %vm138_vm0, %v4355_v45  ;;  %4350 = vrot.lane.b32.xlu1 %v4265_v49, %s7636_s18  ;;  %v7534_v7 = vpop.eup %7533  ;;  %v4091_v49 = vrot.slane %v9174_v52, %v7788_v23  ;;  %v11768_v45 = vld [vmem:[#allocation93_spill] sm:$0xff] }
 0x28e   :  { %v2319_v8 = vpop.permute.xlu0 %2318  ;;  %v11771_v52 = vld [vmem:[#allocation13_spill] sm:$0xff] }
 0x28f   :  { %2414 = vst.msk [vmem:[#allocation3 + $0x108] sm:$0xff] %vm138_vm0, %v2319_v8  ;;  %v3523_v8 = vmul.f32 %v8353_v58, %v11768_v45  ;;  %v4245_v54 = vmul.f32 %v4091_v49, %v11769_v26  ;;  %v11775_v49 = vld [vmem:[#allocation23_spill] sm:$0xff]  ;;  %v11776_v45 = vld [vmem:[#allocation101_spill] sm:$0xff]  ;;  %v11777_v26 = vld [vmem:[#allocation38_spill] sm:$0xff] }
 0x290   :  { %2344 = vrot.lane.b32.xlu0 %v2266_v22, %s7636_s18  ;;  %v4347_v15 = vpop.permute.xlu1 %4346  ;;  %v3551_v22 = vmul.f32 1.442695, %v3507_v40  ;;  %v4155_v40 = vrot.slane %v11773_v20, %v7788_v23 }
 0x291   :  { %4424 = vst.msk [vmem:[#allocation3 + $0x398] sm:$0xff] %vm138_vm0, %v4347_v15  ;;  %3625 = vrot.lane.b32.xlu1 %v7530_v17, %s7636_s18  ;;  %v11772_v17 = vld [vmem:[#allocation44_spill] sm:$0xff] }
 0x292   :  { %v2327_v0 = vpop.permute.xlu0 %2326  ;;  %7537 = vpow2.f32 %v3551_v22  ;;  %v1490_v4 = vmul.f32 %v11730_v33, %v11772_v17  ;;  %v11779_v17 = vld [vmem:[#allocation102_spill] sm:$0xff] }
 0x293   :  { %2418 = vst.msk [vmem:[#allocation3 + $0x128] sm:$0xff] %vm138_vm0, %v2327_v0  ;;  %v3583_v0 = vmul.f32 1.442695, %v3523_v8  ;;  %v4261_v8 = vmul.f32 %v4155_v40, %v11776_v45 }
 0x294   :  { %2376 = vrot.lane.b32.xlu0 %v2282_v61, %s7636_s18  ;;  %v4353_v3 = vpop.permute.xlu1 %4352  ;;  %v11770_v61 = vld [vmem:[#allocation81_spill] sm:$0xff]  ;;  %v1525_v22 = vmul.f32 1.442695, %v1490_v4 }
 0x295   :  { %4427 = vst.msk [vmem:[#allocation3 + $0x3b0] sm:$0xff] %vm138_vm0, %v4353_v3  ;;  %3657 = vrot.lane.b32.xlu1 %v7532_v18, %s7636_s18  ;;  %v1815_v15 = vcombine.high %v11770_v61, %v11770_v61  ;;  %v7536_v18 = vpop.eup %7535  ;;  %7539 = vpow2.f32 %v3583_v0 }
 0x296   :  { %v2365_v60 = vpop.permute.xlu0 %2364  ;;  %7541 = vpow2.f32 %v1525_v22  ;;  %v11781_v22 = vld [vmem:[#allocation58_spill] sm:$0xff] }
 0x297   :  { %2437 = vst.msk [vmem:[#allocation3 + $0x1c0] sm:$0xff] %vm138_vm0, %v2365_v60  ;;  %v3503_v45 = vmul.f32 %v8353_v58, %v11781_v22  ;;  %v903_v22 = vcombine.high %v9465_v38, %v9465_v38 }
 0x298   :  { %1124 = vbcast.lane.b32.xlu0 %v11765_v36, 256  ;;  %v4345_v50 = vpop.permute.xlu1 %4344 }
 0x299   :  { %4423 = vst.msk [vmem:[#allocation3 + $0x390] sm:$0xff] %vm138_vm0, %v4345_v50  ;;  %1643 = vrot.lane.b32.xlu1 %v7534_v7, %s7636_s18  ;;  %v11774_v50 = vld [vmem:[#allocation61_spill] sm:$0xff]  ;;  %v2107_v7 = vrot.slane %v1815_v15, %v7788_v23 }
 0x29a   :  { %v2373_v16 = vpop.permute.xlu0 %2372  ;;  %v11778_v15 = vld [vmem:[#allocation65_spill] sm:$0xff] }
 0x29b   :  { %2441 = vst.msk [vmem:[#allocation3 + $0x1e0] sm:$0xff] %vm138_vm0, %v2373_v16  ;;  %v1913_v16 = vcombine.high %v11774_v50, %v11774_v50  ;;  %v1506_v0 = vmul.f32 %v11730_v33, %v11778_v15  ;;  %v11783_v15 = vld [vmem:[#allocation90_spill] sm:$0xff] }
 0x29c   :  { %3148 = vbcast.lane.b32.xlu0 %v11767_v59, 288  ;;  %v2317_v21 = vpop.permute.xlu1 %2316 }
 0x29d   :  { %2413 = vst.msk [vmem:[#allocation3 + $0x100] sm:$0xff] %vm138_vm0, %v2317_v21  ;;  %4310 = vrot.lane.b32.xlu1 %v4245_v54, %s7636_s18  ;;  %v2255_v54 = vmul.f32 %v2107_v7, %v11777_v26  ;;  %v2171_v61 = vrot.slane %v1913_v16, %v7788_v23  ;;  %v1557_v20 = vmul.f32 1.442695, %v1506_v0  ;;  %v11780_v7 = vld [vmem:[#allocation20_spill] sm:$0xff]  ;;  %v3519_v0 = vmul.f32 %v8353_v58, %v11783_v15 }
 0x29e   :  { %v2367_v31 = vpop.permute.xlu0 %2366 }
 0x29f   :  { %2438 = vst.msk [vmem:[#allocation3 + $0x1c8] sm:$0xff] %vm138_vm0, %v2367_v31  ;;  %v2271_v4 = vmul.f32 %v2171_v61, %v11779_v17  ;;  %7543 = vpow2.f32 %v1557_v20  ;;  %v3543_v61 = vmul.f32 1.442695, %v3503_v45  ;;  %v11784_v17 = vld [vmem:[#allocation72_spill] sm:$0xff] }
 0x2a0   :  { %1236 = vbcast.lane.b32.xlu0 %v11771_v52, 256  ;;  %v4323_v3 = vpop.permute.xlu1 %4322 }
 0x2a1   :  { %4412 = vst.msk [vmem:[#allocation3 + $0x338] sm:$0xff] %vm138_vm0, %v4323_v3  ;;  %1675 = vrot.lane.b32.xlu1 %v7536_v18, %s7636_s18  ;;  %v7538_v18 = vpop.eup %7537  ;;  %7545 = vpow2.f32 %v3543_v61  ;;  %v4199_v61 = vrot.slane %v9304_v27, %v7788_v23 }
 0x2a2   :  { %v2375_v60 = vpop.permute.xlu0 %2374  ;;  %v7540_v16 = vpop.eup %7539 }
 0x2a3   :  { %2442 = vst.msk [vmem:[#allocation3 + $0x1e8] sm:$0xff] %vm138_vm0, %v2375_v60 }
 0x2a4   :  { %3212 = vbcast.lane.b32.xlu0 %v11775_v49, 288  ;;  %v4315_v21 = vpop.permute.xlu1 %4314 }
 0x2a5   :  { %4408 = vst.msk [vmem:[#allocation3 + $0x318] sm:$0xff] %vm138_vm0, %v4315_v21  ;;  %4342 = vrot.lane.b32.xlu1 %v4261_v8, %s7636_s18  ;;  %v4135_v21 = vrot.slane %v9396_v42, %v7788_v23  ;;  %v11786_v42 = vld [vmem:[#allocation14_spill] sm:$0xff] }
 0x2a6   :  { %v4339_v31 = vpop.permute.xlu0 %4338 }
 0x2a7   :  { %4420 = vst.msk [vmem:[#allocation3 + $0x378] sm:$0xff] %vm138_vm0, %v4339_v31  ;;  %v11782_v31 = vld [vmem:[#allocation32_spill] sm:$0xff] }
 0x2a8   :  { %2322 = vrot.lane.b32.xlu0 %v2255_v54, %s7636_s18  ;;  %v4321_v3 = vpop.permute.xlu1 %4320  ;;  %v7542_v54 = vpop.eup %7541 }
 0x2a9   :  { %4411 = vst.msk [vmem:[#allocation3 + $0x330] sm:$0xff] %vm138_vm0, %v4321_v3  ;;  %3647 = vrot.lane.b32.xlu1 %v7538_v18, %s7636_s18  ;;  %v11785_v18 = vld [vmem:[#allocation39_spill] sm:$0xff] }
 0x2aa   :  { %v2333_v60 = vpop.permute.xlu0 %2332  ;;  %v1816_v20 = vcombine.high %v11785_v18, %v11785_v18 }
 0x2ab   :  { %2421 = vst.msk [vmem:[#allocation3 + $0x140] sm:$0xff] %vm138_vm0, %v2333_v60 }
 0x2ac   :  { %2354 = vrot.lane.b32.xlu0 %v2271_v4, %s7636_s18  ;;  %v4313_v40 = vpop.permute.xlu1 %4312  ;;  %v4256_v4 = vmul.f32 %v4135_v21, %v11784_v17  ;;  %v2123_v15 = vrot.slane %v1816_v20, %v7788_v23  ;;  %v9701_v17 = vrot.slane %v903_v22, %v7963_v37  ;;  %v11792_v20 = vld [vmem:[#allocation67_spill] sm:$0xff]  ;;  %v1001_v22 = vcombine.high %v9507_v34, %v9507_v34 }
 0x2ad   :  { %4407 = vst.msk [vmem:[#allocation3 + $0x310] sm:$0xff] %vm138_vm0, %v4313_v40  ;;  %3679 = vrot.lane.b32.xlu1 %v7540_v16, %s7636_s18  ;;  %v3575_v40 = vmul.f32 1.442695, %v3519_v0  ;;  %v11789_v0 = vld [vmem:[#allocation9_spill] sm:$0xff] }
 0x2ae   :  { %v2341_v50 = vpop.permute.xlu0 %2340  ;;  %v9724_v34 = vrot.slane %v1001_v22, %v7963_v37 }
 0x2af   :  { %2425 = vst.msk [vmem:[#allocation3 + $0x160] sm:$0xff] %vm138_vm0, %v2341_v50  ;;  %v11787_v50 = vld [vmem:[#allocation47_spill] sm:$0xff]  ;;  %7547 = vpow2.f32 %v3575_v40  ;;  %v1510_v40 = vmul.f32 %v11730_v33, %v11792_v20 }
 0x2b0   :  { %1131 = vbcast.lane.b32.xlu0 %v11780_v7, 256  ;;  %v4371_v8 = vpop.permute.xlu1 %4370  ;;  %v1494_v16 = vmul.f32 %v11730_v33, %v11787_v50 }
 0x2b1   :  { %4436 = vst.msk [vmem:[#allocation3 + $0x3f8] sm:$0xff] %vm138_vm0, %v4371_v8  ;;  %1621 = vrot.lane.b32.xlu1 %v7542_v54, %s7636_s18  ;;  %v11788_v54 = vld [vmem:[#allocation64_spill] sm:$0xff] }
 0x2b2   :  { %v2335_v26 = vpop.permute.xlu0 %2334  ;;  %v1914_v21 = vcombine.high %v11788_v54, %v11788_v54  ;;  %v1533_v38 = vmul.f32 1.442695, %v1494_v16  ;;  %v1298_v16 = vrot.slane %v9701_v17, %v7788_v23 }
 0x2b3   :  { %2422 = vst.msk [vmem:[#allocation3 + $0x148] sm:$0xff] %vm138_vm0, %v2335_v26  ;;  %v7544_v26 = vpop.eup %7543 }
 0x2b4   :  { %3144 = vbcast.lane.b32.xlu0 %v11782_v31, 288  ;;  %v4363_v3 = vpop.permute.xlu1 %4362  ;;  %v2187_v27 = vrot.slane %v1914_v21, %v7788_v23  ;;  %7549 = vpow2.f32 %v1533_v38  ;;  %v1565_v38 = vmul.f32 1.442695, %v1510_v40 }
 0x2b5   :  { %4432 = vst.msk [vmem:[#allocation3 + $0x3d8] sm:$0xff] %vm138_vm0, %v4363_v3  ;;  %4332 = vrot.lane.b32.xlu1 %v4256_v4, %s7636_s18  ;;  %v11790_v4 = vld [vmem:[#allocation107_spill] sm:$0xff] }
 0x2b6   :  { %v2343_v60 = vpop.permute.xlu0 %2342  ;;  %v2259_v3 = vmul.f32 %v2123_v15, %v11790_v4  ;;  %v3289_v4 = vrot.slane %v9406_v19, %v7788_v23  ;;  %7551 = vpow2.f32 %v1565_v38  ;;  %v1362_v19 = vrot.slane %v9724_v34, %v7788_v23 }
 0x2b7   :  { %2426 = vst.msk [vmem:[#allocation3 + $0x168] sm:$0xff] %vm138_vm0, %v2343_v60  ;;  %v11791_v60 = vld [vmem:[#allocation111_spill] sm:$0xff]  ;;  %v3353_v38 = vrot.slane %v9444_v39, %v7788_v23 }
 0x2b8   :  { %1243 = vbcast.lane.b32.xlu0 %v11786_v42, 256  ;;  %v4369_v45 = vpop.permute.xlu1 %4368  ;;  %v4272_v18 = vmul.f32 %v4199_v61, %v11791_v60  ;;  %v7546_v61 = vpop.eup %7545 }
 0x2b9   :  { %4435 = vst.msk [vmem:[#allocation3 + $0x3f0] sm:$0xff] %vm138_vm0, %v4369_v45  ;;  %1653 = vrot.lane.b32.xlu1 %v7544_v26, %s7636_s18 }
 0x2ba   :  { %v2321_v8 = vpop.permute.xlu0 %2320 }
 0x2bb   :  { %2415 = vst.msk [vmem:[#allocation3 + $0x110] sm:$0xff] %vm138_vm0, %v2321_v8  ;;  %v11793_v8 = vld [vmem:[#allocation7_spill] sm:$0xff] }
 0x2bc   :  { %3208 = vbcast.lane.b32.xlu0 %v11789_v0, 288  ;;  %v4361_v50 = vpop.permute.xlu1 %4360  ;;  %v2275_v26 = vmul.f32 %v2187_v27, %v11793_v8  ;;  %v11795_v27 = vld [vmem:[#allocation50_spill] sm:$0xff] }
 0x2bd   :  { %4431 = vst.msk [vmem:[#allocation3 + $0x3d0] sm:$0xff] %vm138_vm0, %v4361_v50  ;;  %4364 = vrot.lane.b32.xlu1 %v4272_v18, %s7636_s18  ;;  %v7548_v18 = vpop.eup %7547  ;;  %v3499_v20 = vmul.f32 %v8353_v58, %v11795_v27  ;;  %v11799_v27 = vld [vmem:[#allocation15_spill] sm:$0xff] }
 0x2be   :  { %v2353_v45 = vpop.permute.xlu0 %2352  ;;  %v7550_v22 = vpop.eup %7549 }
 0x2bf   :  { %2431 = vst.msk [vmem:[#allocation3 + $0x190] sm:$0xff] %vm138_vm0, %v2353_v45  ;;  %v11794_v45 = vld [vmem:[#allocation21_spill] sm:$0xff] }
 0x2c0   :  { %2330 = vrot.lane.b32.xlu0 %v2259_v3, %s7636_s18  ;;  %v4367_v54 = vpop.permute.xlu1 %4366 }
 0x2c1   :  { %4434 = vst.msk [vmem:[#allocation3 + $0x3e8] sm:$0xff] %vm138_vm0, %v4367_v54  ;;  %3639 = vrot.lane.b32.xlu1 %v7546_v61, %s7636_s18  ;;  %v11796_v54 = vld [vmem:[#allocation27_spill] sm:$0xff] }
 0x2c2   :  { %v1104_v15 = vpop.permute.xlu0 %1103  ;;  %v11797_v61 = vld [vmem:[#allocation71_spill] sm:$0xff] }
 0x2c3   :  { %v1428_v21 = vmul.f32 %v1298_v16, %v1104_v15  ;;  %v3535_v15 = vmul.f32 1.442695, %v3499_v20 }
 0x2c4   :  { %2362 = vrot.lane.b32.xlu0 %v2275_v26, %s7636_s18  ;;  %v4331_v3 = vpop.permute.xlu1 %4330  ;;  %v4119_v26 = vrot.slane %v9414_v12, %v7788_v23 }
 0x2c5   :  { %1460 = vst.msk [vmem:[#allocation3 + $0x48] sm:$0xff] %vm138_vm0, %v1428_v21  ;;  %4416 = vst.msk [vmem:[#allocation3 + $0x358] sm:$0xff] %vm138_vm0, %v4331_v3  ;;  %3671 = vrot.lane.b32.xlu1 %v7548_v18, %s7636_s18  ;;  %v3515_v21 = vmul.f32 %v8353_v58, %v11797_v61  ;;  %7553 = vpow2.f32 %v3535_v15  ;;  %v11801_v15 = vld [vmem:[#allocation8_spill] sm:$0xff] }
 0x2c6   :  { %v3161_v60 = vpop.permute.xlu0 %3160 }
 0x2c7   :  { %v3431_v50 = vmul.f32 %v3289_v4, %v3161_v60  ;;  %v11798_v4 = vld [vmem:[#allocation89_spill] sm:$0xff]  ;;  %v3567_v20 = vmul.f32 1.442695, %v3515_v21  ;;  %v933_v21 = vcombine.high %v9480_v2, %v9480_v2  ;;  %v11804_v2 = vld [vmem:[#allocation84_spill] sm:$0xff] }
 0x2c8   :  { %1138 = vbcast.lane.b32.xlu0 %v11794_v45, 256  ;;  %v4337_v40 = vpop.permute.xlu1 %4336  ;;  %v4252_v3 = vmul.f32 %v4119_v26, %v11798_v4  ;;  %v5699_v45 = vld [vmem:[#allocation2 + $0x2d8] sm:$0xff] }
 0x2c9   :  { %3464 = vst.msk [vmem:[#allocation3 + $0x228] sm:$0xff] %vm138_vm0, %v3431_v50  ;;  %4419 = vst.msk [vmem:[#allocation3 + $0x370] sm:$0xff] %vm138_vm0, %v4337_v40  ;;  %1629 = vrot.lane.b32.xlu1 %v7550_v22, %s7636_s18  ;;  %v1864_v50 = vcombine.high %v9286_v43, %v9286_v43  ;;  %v7552_v22 = vpop.eup %7551  ;;  %v1962_v43 = vcombine.high %v9156_v24, %v9156_v24  ;;  %7555 = vpow2.f32 %v3567_v20 }
 0x2ca   :  { %v1216_v16 = vpop.permute.xlu0 %1215  ;;  %v1302_v20 = vrot.slane %v933_v21, %v7788_v23 }
 0x2cb   :  { %v1444_v8 = vmul.f32 %v1362_v19, %v1216_v16  ;;  %v11800_v19 = vld [vmem:[#allocation54_spill] sm:$0xff]  ;;  %v2139_v26 = vrot.slane %v1864_v50, %v7788_v23  ;;  %v1514_v50 = vmul.f32 %v11730_v33, %v11804_v2 }
 0x2cc   :  { %3140 = vbcast.lane.b32.xlu0 %v11796_v54, 288  ;;  %v4329_v60 = vpop.permute.xlu1 %4328  ;;  %v1498_v40 = vmul.f32 %v11730_v33, %v11800_v19 }
 0x2cd   :  { %1476 = vst.msk [vmem:[#allocation3 + $0xc8] sm:$0xff] %vm138_vm0, %v1444_v8  ;;  %4415 = vst.msk [vmem:[#allocation3 + $0x350] sm:$0xff] %vm138_vm0, %v4329_v60  ;;  %4324 = vrot.lane.b32.xlu1 %v4252_v3, %s7636_s18  ;;  %v4183_v8 = vrot.slane %v9327_v6, %v7788_v23  ;;  %v11803_v3 = vld [vmem:[#allocation112_spill] sm:$0xff]  ;;  %v2263_v24 = vmul.f32 %v2139_v26, %v9167_v55  ;;  %v3285_v26 = vrot.slane %v9484_v57, %v7788_v23 }
 0x2ce   :  { %v3225_v18 = vpop.permute.xlu0 %3224  ;;  %v1541_v61 = vmul.f32 1.442695, %v1498_v40  ;;  %v11805_v55 = vld [vmem:[#allocation52_spill] sm:$0xff] }
 0x2cf   :  { %v3447_v12 = vmul.f32 %v3353_v38, %v3225_v18  ;;  %v11802_v38 = vld [vmem:[#allocation87_spill] sm:$0xff]  ;;  %v4268_v60 = vmul.f32 %v4183_v8, %v11803_v3 }
 0x2d0   :  { %1250 = vbcast.lane.b32.xlu0 %v11799_v27, 256  ;;  %v4335_v39 = vpop.permute.xlu1 %4334  ;;  %v1518_v4 = vmul.f32 %v11730_v33, %v11802_v38  ;;  %7557 = vpow2.f32 %v1541_v61  ;;  %v1031_v61 = vcombine.high %v9517_v44, %v9517_v44 }
 0x2d1   :  { %3480 = vst.msk [vmem:[#allocation3 + $0x2a8] sm:$0xff] %vm138_vm0, %v3447_v12  ;;  %4418 = vst.msk [vmem:[#allocation3 + $0x368] sm:$0xff] %vm138_vm0, %v4335_v39  ;;  %1661 = vrot.lane.b32.xlu1 %v7552_v22, %s7636_s18  ;;  %v2203_v12 = vrot.slane %v1962_v43, %v7788_v23  ;;  %v7554_v22 = vpop.eup %7553  ;;  %v1573_v43 = vmul.f32 1.442695, %v1514_v50 }
 0x2d2   :  { %v2329_v16 = vpop.permute.xlu0 %2328  ;;  %v1581_v19 = vmul.f32 1.442695, %v1518_v4  ;;  %v1366_v44 = vrot.slane %v1031_v61, %v7788_v23 }
 0x2d3   :  { %2419 = vst.msk [vmem:[#allocation3 + $0x130] sm:$0xff] %vm138_vm0, %v2329_v16  ;;  %v2279_v40 = vmul.f32 %v2203_v12, %v11805_v55  ;;  %v7556_v4 = vpop.eup %7555  ;;  %v1865_v55 = vcombine.high %v9309_v56, %v9309_v56 }
 0x2d4   :  { %3204 = vbcast.lane.b32.xlu0 %v11801_v15, 288  ;;  %v3642_v18 = vpop.permute.xlu1 %3641  ;;  %7559 = vpow2.f32 %v1581_v19  ;;  %v4103_v19 = vrot.slane %v9204_v9, %v7788_v23  ;;  %v11810_v9 = vld [vmem:[#allocation45_spill] sm:$0xff] }
 0x2d5   :  { %3729 = vst.msk [vmem:[#allocation2 + $0x348] sm:$0xff] %vm138_vm0, %v3642_v18  ;;  %4356 = vrot.lane.b32.xlu1 %v4268_v60, %s7636_s18  ;;  %v4087_v60 = vrot.slane %v9222_v29, %v7788_v23  ;;  %7561 = vpow2.f32 %v1573_v43  ;;  %v11807_v18 = vld [vmem:[#allocation48_spill] sm:$0xff] }
 0x2d6   :  { %v2361_v6 = vpop.permute.xlu0 %2360  ;;  %v3495_v57 = vmul.f32 %v8353_v58, %v11807_v18  ;;  %v4248_v43 = vmul.f32 %v4103_v19, %v11810_v9  ;;  %v11814_v9 = vld [vmem:[#allocation95_spill] sm:$0xff] }
 0x2d7   :  { %2435 = vst.msk [vmem:[#allocation3 + $0x1b0] sm:$0xff] %vm138_vm0, %v2361_v6  ;;  %v11808_v6 = vld [vmem:[#allocation106_spill] sm:$0xff] }
 0x2d8   :  { %2338 = vrot.lane.b32.xlu0 %v2263_v24, %s7636_s18  ;;  %v3674_v39 = vpop.permute.xlu1 %3673  ;;  %v11806_v24 = vld [vmem:[#allocation22_spill] sm:$0xff]  ;;  %v4244_v12 = vmul.f32 %v4087_v60, %v11808_v6 }
 0x2d9   :  { %3745 = vst.msk [vmem:[#allocation2 + $0x3c8] sm:$0xff] %vm138_vm0, %v3674_v39  ;;  %3631 = vrot.lane.b32.xlu1 %v7554_v22, %s7636_s18  ;;  %v11809_v39 = vld [vmem:[#allocation70_spill] sm:$0xff]  ;;  %v3349_v22 = vrot.slane %v9521_v46, %v7788_v23  ;;  %v11811_v46 = vld [vmem:[#allocation57_spill] sm:$0xff] }
 0x2da   :  { %v1111_v16 = vpop.permute.xlu0 %1110 }
 0x2db   :  { %v1429_v8 = vmul.f32 %v1302_v20, %v1111_v16  ;;  %v7558_v20 = vpop.eup %7557  ;;  %v3511_v16 = vmul.f32 %v8353_v58, %v11809_v39 }
 0x2dc   :  { %2370 = vrot.lane.b32.xlu0 %v2279_v40, %s7636_s18  ;;  %v1628_v21 = vpop.permute.xlu1 %1627  ;;  %v3527_v40 = vmul.f32 1.442695, %v3495_v57 }
 0x2dd   :  { %1461 = vst.msk [vmem:[#allocation3 + $0x50] sm:$0xff] %vm138_vm0, %v1429_v8  ;;  %1718 = vst.msk [vmem:[#allocation2 + $0x130] sm:$0xff] %vm138_vm0, %v1628_v21  ;;  %3663 = vrot.lane.b32.xlu1 %v7556_v4, %s7636_s18  ;;  %v9809_v8 = vrot.slane %v9315_v62, %v7963_v37  ;;  %v3559_v58 = vmul.f32 1.442695, %v3511_v16  ;;  %v1502_v62 = vmul.f32 %v11730_v33, %v11811_v46 }
 0x2de   :  { %v3157_v38 = vpop.permute.xlu0 %3156  ;;  %v7560_v61 = vpop.eup %7559  ;;  %7563 = vpow2.f32 %v3527_v40  ;;  %v935_v33 = vcombine.high %v9701_v17, %v9701_v17 }
 0x2df   :  { %v3430_v3 = vmul.f32 %v3285_v26, %v3157_v38  ;;  %v2155_v38 = vrot.slane %v1865_v55, %v7788_v23  ;;  %v2957_v4 = vcombine.high %v9809_v8, %v9809_v8  ;;  %v7562_v57 = vpop.eup %7561  ;;  %7565 = vpow2.f32 %v3559_v58 }
 0x2e0   :  { %1145 = vbcast.lane.b32.xlu0 %v11806_v24, 256  ;;  %v4327_v2 = vpop.permute.xlu1 %4326  ;;  %v1306_v17 = vrot.slane %v935_v33, %v7788_v23 }
 0x2e1   :  { %3463 = vst.msk [vmem:[#allocation3 + $0x220] sm:$0xff] %vm138_vm0, %v3430_v3  ;;  %4414 = vst.msk [vmem:[#allocation3 + $0x348] sm:$0xff] %vm138_vm0, %v4327_v2  ;;  %1637 = vrot.lane.b32.xlu1 %v7558_v20, %s7636_s18  ;;  %v2267_v3 = vmul.f32 %v2155_v38, %v9218_v13  ;;  %v9831_v13 = vrot.slane %v2957_v4, %v7963_v37  ;;  %v9835_v2 = vrot.slane %v9361_v30, %v7963_v37 }
 0x2e2   :  { %v1223_v50 = vpop.permute.xlu0 %1222 }
 0x2e3   :  { %v1445_v29 = vmul.f32 %v1366_v44, %v1223_v50  ;;  %v11812_v44 = vld [vmem:[#allocation88_spill] sm:$0xff]  ;;  %v11813_v50 = vld [vmem:[#allocation43_spill] sm:$0xff]  ;;  %v2989_v55 = vcombine.high %v9831_v13, %v9831_v13  ;;  %v3055_v30 = vcombine.high %v9835_v2, %v9835_v2 }
 0x2e4   :  { %4308 = vrot.lane.b32.xlu0 %v4244_v12, %s7636_s18  ;;  %v1660_v56 = vpop.permute.xlu1 %1659  ;;  %v4167_v6 = vrot.slane %v11812_v44, %v7788_v23  ;;  %v1549_v12 = vmul.f32 1.442695, %v1502_v62  ;;  %v11815_v44 = vld [vmem:[#allocation69_spill] sm:$0xff] }
 0x2e5   :  { %1477 = vst.msk [vmem:[#allocation3 + $0xd0] sm:$0xff] %vm138_vm0, %v1445_v29  ;;  %1734 = vst.msk [vmem:[#allocation2 + $0x1b0] sm:$0xff] %vm138_vm0, %v1660_v56  ;;  %4316 = vrot.lane.b32.xlu1 %v4248_v43, %s7636_s18  ;;  %v3281_v43 = vrot.slane %v2989_v55, %v7788_v23  ;;  %v1033_v56 = vcombine.high %v9724_v34, %v9724_v34 }
 0x2e6   :  { %v3221_v26 = vpop.permute.xlu0 %3220  ;;  %v4264_v20 = vmul.f32 %v4167_v6, %v11813_v50  ;;  %7567 = vpow2.f32 %v1549_v12  ;;  %v4151_v6 = vrot.slane %v11815_v44, %v7788_v23 }
 0x2e7   :  { %v3446_v21 = vmul.f32 %v3349_v22, %v3221_v26  ;;  %v9855_v26 = vrot.slane %v3055_v30, %v7963_v37  ;;  %v1370_v46 = vrot.slane %v1033_v56, %v7788_v23 }
 0x2e8   :  { %1677 = vrot.lane.b32.xlu0 %v7560_v61, %s7636_s18  ;;  %v4359_v60 = vpop.permute.xlu1 %4358  ;;  %v7564_v16 = vpop.eup %7563 }
 0x2e9   :  { %3479 = vst.msk [vmem:[#allocation3 + $0x2a0] sm:$0xff] %vm138_vm0, %v3446_v21  ;;  %4430 = vst.msk [vmem:[#allocation3 + $0x3c8] sm:$0xff] %vm138_vm0, %v4359_v60  ;;  %1669 = vrot.lane.b32.xlu1 %v7562_v57, %s7636_s18  ;;  %v7566_v38 = vpop.eup %7565  ;;  %v3087_v34 = vcombine.high %v9855_v26, %v9855_v26  ;;  %v888_v57 = vcombine.high %v9448_v53, %v9448_v53  ;;  %v11817_v53 = vld [vmem:[#allocation80_spill] sm:$0xff] }
 0x2ea   :  { %v2337_v18 = vpop.permute.xlu0 %2336 }
 0x2eb   :  { %2423 = vst.msk [vmem:[#allocation3 + $0x150] sm:$0xff] %vm138_vm0, %v2337_v18  ;;  %v3345_v18 = vrot.slane %v3087_v34, %v7788_v23 }
 0x2ec   :  { %2346 = vrot.lane.b32.xlu0 %v2267_v3, %s7636_s18  ;;  %v3634_v29 = vpop.permute.xlu1 %3633 }
 0x2ed   :  { %3725 = vst.msk [vmem:[#allocation2 + $0x328] sm:$0xff] %vm138_vm0, %v3634_v29  ;;  %4348 = vrot.lane.b32.xlu1 %v4264_v20, %s7636_s18  ;;  %v1963_v20 = vcombine.high %v9180_v5, %v9180_v5  ;;  %v11816_v29 = vld [vmem:[#allocation16_spill] sm:$0xff] }
 0x2ee   :  { %v2369_v19 = vpop.permute.xlu0 %2368 }
 0x2ef   :  { %2439 = vst.msk [vmem:[#allocation3 + $0x1d0] sm:$0xff] %vm138_vm0, %v2369_v19  ;;  %v9880_v19 = vrot.slane %v888_v57, %v7963_v37  ;;  %v9923_v57 = vrot.slane %v9835_v2, %v7963_v37 }
 0x2f0   :  { %4447 = vbcast.lane.b32.xlu0 %v11796_v54, 264  ;;  %v3666_v40 = vpop.permute.xlu1 %3665  ;;  %v7568_v3 = vpop.eup %7567 }
 0x2f1   :  { %3741 = vst.msk [vmem:[#allocation2 + $0x3a8] sm:$0xff] %vm138_vm0, %v3666_v40  ;;  %3623 = vrot.lane.b32.xlu1 %v7564_v16, %s7636_s18  ;;  %v2219_v40 = vrot.slane %v1963_v20, %v7788_v23  ;;  %v9890_v5 = vrot.slane %v9880_v19, %v7963_v37  ;;  %v986_v16 = vcombine.high %v9490_v51, %v9490_v51 }
 0x2f2   :  { %v1118_v39 = vpop.permute.xlu0 %1117 }
 0x2f3   :  { %v1430_v22 = vmul.f32 %v1306_v17, %v1118_v39  ;;  %v4260_v17 = vmul.f32 %v4151_v6, %v11817_v53  ;;  %v9894_v39 = vrot.slane %v9809_v8, %v7963_v37  ;;  %v1310_v8 = vrot.slane %v9890_v5, %v7788_v23  ;;  %v5555_v53 = vld [vmem:[#allocation2 + $0x2f8] sm:$0xff] }
 0x2f4   :  { %4719 = vbcast.lane.b32.xlu0 %v11814_v9, 264  ;;  %v1636_v61 = vpop.permute.xlu1 %1635  ;;  %v9908_v51 = vrot.slane %v986_v16, %v7963_v37  ;;  %v5560_v16 = vld [vmem:[#allocation3 + $0x2f8] sm:$0xff] }
 0x2f5   :  { %1462 = vst.msk [vmem:[#allocation3 + $0x58] sm:$0xff] %vm138_vm0, %v1430_v22  ;;  %1722 = vst.msk [vmem:[#allocation2 + $0x150] sm:$0xff] %vm138_vm0, %v1636_v61  ;;  %3655 = vrot.lane.b32.xlu1 %v7566_v38, %s7636_s18  ;;  %v11818_v22 = vld [vmem:[#allocation76_spill] sm:$0xff]  ;;  %v2987_v38 = vcombine.high %v9894_v39, %v9894_v39 }
 0x2f6   :  { %v3153_v21 = vpop.permute.xlu0 %3152 }
 0x2f7   :  { %v3429_v58 = vmul.f32 %v3281_v43, %v3153_v21  ;;  %v2283_v43 = vmul.f32 %v2219_v40, %v11818_v22  ;;  %v5554_v21 = vld [vmem:[#allocation2 + $0x278] sm:$0xff] }
 0x2f8   :  { %4989 = vbcast.lane.b32.xlu0 %v11796_v54, 280  ;;  %v4319_v62 = vpop.permute.xlu1 %4318 }
 0x2f9   :  { %3462 = vst.msk [vmem:[#allocation3 + $0x218] sm:$0xff] %vm138_vm0, %v3429_v58  ;;  %4410 = vst.msk [vmem:[#allocation3 + $0x328] sm:$0xff] %vm138_vm0, %v4319_v62  ;;  %1645 = vrot.lane.b32.xlu1 %v7568_v3, %s7636_s18  ;;  %v5559_v58 = vld [vmem:[#allocation3 + $0x278] sm:$0xff]  ;;  %v5556_v62 = vmul.f32 0.0, %v5554_v21 }
 0x2fa   :  { %v1230_v4 = vpop.permute.xlu0 %1229 }
 0x2fb   :  { %v1446_v60 = vmul.f32 %v1370_v46, %v1230_v4  ;;  %v9913_v3 = vadd.f32 %v5559_v58, %v5556_v62  ;;  %v5631_v58 = vld [vmem:[#allocation3 + $0x268] sm:$0xff] }
 0x2fc   :  { %5133 = vbcast.lane.b32.xlu0 %v11782_v31, 280  ;;  %v1668_v33 = vpop.permute.xlu1 %1667 }
 0x2fd   :  { %1478 = vst.msk [vmem:[#allocation3 + $0xd8] sm:$0xff] %vm138_vm0, %v1446_v60  ;;  %1738 = vst.msk [vmem:[#allocation2 + $0x1d0] sm:$0xff] %vm138_vm0, %v1668_v33  ;;  %1257 = vbcast.lane.b32.xlu1 %v11816_v29, 256  ;;  %v3277_v60 = vrot.slane %v2987_v38, %v7788_v23  ;;  %v5626_v38 = vld [vmem:[#allocation2 + $0x268] sm:$0xff] }
 0x2fe   :  { %v3217_v12 = vpop.permute.xlu0 %3216  ;;  %11819 = vst [vmem:[#allocation91_spill] sm:$0xff] %v9913_v3 }
 0x2ff   :  { %v3445_v50 = vmul.f32 %v3345_v18, %v3217_v12  ;;  %v9919_v18 = vrot.slane %v9908_v51, %v7963_v37  ;;  %v5590_v12 = vld [vmem:[#allocation2 + $0x270] sm:$0xff] }
 0x300   :  { %4451 = vbcast.lane.b32.xlu0 %v11801_v15, 264  ;;  %v4351_v55 = vpop.permute.xlu1 %4350  ;;  %v5592_v20 = vmul.f32 %v5590_v12, %v9913_v3  ;;  %v5627_v3 = vld [vmem:[#allocation2 + $0x2e8] sm:$0xff] }
 0x301   :  { %3478 = vst.msk [vmem:[#allocation3 + $0x298] sm:$0xff] %vm138_vm0, %v3445_v50  ;;  %4426 = vst.msk [vmem:[#allocation3 + $0x3a8] sm:$0xff] %vm138_vm0, %v4351_v55  ;;  %4340 = vrot.lane.b32.xlu1 %v4260_v17, %s7636_s18  ;;  %v5595_v50 = vld [vmem:[#allocation3 + $0x270] sm:$0xff]  ;;  %v1374_v2 = vrot.slane %v9919_v18, %v7788_v23  ;;  %v3085_v17 = vcombine.high %v9923_v57, %v9923_v57 }
 0x302   :  { %v2345_v30 = vpop.permute.xlu0 %2344  ;;  %v9934_v40 = vadd.f32 %v5595_v50, %v5592_v20  ;;  %v4979_v50 = vld [vmem:[#allocation2 + $0x100] sm:$0xff] }
 0x303   :  { %2427 = vst.msk [vmem:[#allocation3 + $0x170] sm:$0xff] %vm138_vm0, %v2345_v30  ;;  %v3341_v21 = vrot.slane %v3085_v17, %v7788_v23  ;;  %v4442_v20 = vld [vmem:[#allocation3 + $0x80] sm:$0xff] }
 0x304   :  { %4515 = vbcast.lane.b32.xlu0 %v11767_v59, 264  ;;  %v3626_v56 = vpop.permute.xlu1 %3625  ;;  %11820 = vst [vmem:[#allocation40_spill] sm:$0xff] %v9934_v40 }
 0x305   :  { %3721 = vst.msk [vmem:[#allocation2 + $0x308] sm:$0xff] %vm138_vm0, %v3626_v56  ;;  %2378 = vrot.lane.b32.xlu1 %v2283_v43, %s7636_s18  ;;  %v4437_v43 = vld [vmem:[#allocation2] sm:$0xff]  ;;  %v5557_v56 = vmul.f32 0.0, %v5555_v53  ;;  %v6129_v53 = vld [vmem:[#allocation2 + $0x3f8] sm:$0xff] }
 0x306   :  { %v2377_v61 = vpop.permute.xlu0 %2376 }
 0x307   :  { %2443 = vst.msk [vmem:[#allocation3 + $0x1f0] sm:$0xff] %vm138_vm0, %v2377_v61  ;;  %v6128_v61 = vld [vmem:[#allocation2 + $0x378] sm:$0xff] }
 0x308   :  { %4757 = vbcast.lane.b32.xlu0 %v11731_v32, 264  ;;  %v3658_v46 = vpop.permute.xlu1 %3657 }
 0x309   :  { %3737 = vst.msk [vmem:[#allocation2 + $0x388] sm:$0xff] %vm138_vm0, %v3658_v46  ;;  %4481 = vbcast.lane.b32.xlu1 %v11782_v31, 264  ;;  %v9941_v46 = vadd.f32 %v5560_v16, %v5557_v56 }
 0x30a   :  { %v1125_v34 = vpop.permute.xlu0 %1124 }
 0x30b   :  { %v1431_v4 = vmul.f32 %v1310_v8, %v1125_v34  ;;  %v4441_v8 = vld [vmem:[#allocation3] sm:$0xff]  ;;  %11821 = vst [vmem:[#allocation96_spill] sm:$0xff] %v9941_v46  ;;  %v6133_v34 = vld [vmem:[#allocation3 + $0x378] sm:$0xff] }
 0x30c   :  { %4993 = vbcast.lane.b32.xlu0 %v11801_v15, 280  ;;  %v1644_v44 = vpop.permute.xlu1 %1643 }
 0x30d   :  { %1463 = vst.msk [vmem:[#allocation3 + $0x60] sm:$0xff] %vm138_vm0, %v1431_v4  ;;  %1726 = vst.msk [vmem:[#allocation2 + $0x170] sm:$0xff] %vm138_vm0, %v1644_v44  ;;  %4753 = vbcast.lane.b32.xlu1 %v8685_v1, 264  ;;  %v4438_v44 = vld [vmem:[#allocation2 + $0x80] sm:$0xff] }
 0x30e   :  { %v3149_v6 = vpop.permute.xlu0 %3148  ;;  %v4440_v56 = vmul.f32 0.0, %v4438_v44 }
 0x30f   :  { %v3428_v33 = vmul.f32 %v3277_v60, %v3149_v6  ;;  %v4439_v60 = vmul.f32 0.0, %v4437_v43  ;;  %v5628_v6 = vmul.f32 %v5626_v38, %v9934_v40  ;;  %v4983_v43 = vld [vmem:[#allocation3 + $0x100] sm:$0xff] }
 0x310   :  { %5137 = vbcast.lane.b32.xlu0 %v11789_v0, 280  ;;  %v4311_v55 = vpop.permute.xlu1 %4310 }
 0x311   :  { %3461 = vst.msk [vmem:[#allocation3 + $0x210] sm:$0xff] %vm138_vm0, %v3428_v33  ;;  %4406 = vst.msk [vmem:[#allocation3 + $0x308] sm:$0xff] %vm138_vm0, %v4311_v55  ;;  %5061 = vbcast.lane.b32.xlu1 %v11814_v9, 280  ;;  %v6130_v33 = vmul.f32 0.0, %v6128_v61  ;;  %v9949_v17 = vadd.f32 %v5631_v58, %v5628_v6  ;;  %v5591_v55 = vld [vmem:[#allocation2 + $0x2f0] sm:$0xff]  ;;  %v4470_v58 = vld [vmem:[#allocation2 + $0x8] sm:$0xff] }
 0x312   :  { %v1237_v30 = vpop.permute.xlu0 %1236  ;;  %v5593_v61 = vmul.f32 %v5591_v55, %v9941_v46  ;;  %v4471_v55 = vld [vmem:[#allocation2 + $0x88] sm:$0xff]  ;;  %v4980_v46 = vld [vmem:[#allocation2 + $0x180] sm:$0xff] }
 0x313   :  { %v1447_v22 = vmul.f32 %v1374_v2, %v1237_v30  ;;  %v9947_v2 = vadd.f32 %v4441_v8, %v4439_v60  ;;  %11822 = vst [vmem:[#allocation108_spill] sm:$0xff] %v9949_v17  ;;  %v5596_v30 = vld [vmem:[#allocation3 + $0x2f0] sm:$0xff]  ;;  %v9951_v16 = vadd.f32 %v6133_v34, %v6130_v33  ;;  %v4981_v8 = vmul.f32 0.0, %v4979_v50  ;;  %v5662_v60 = vld [vmem:[#allocation2 + $0x260] sm:$0xff] }
 0x314   :  { %5277 = vbcast.lane.b32.xlu0 %v11767_v59, 280  ;;  %v1676_v62 = vpop.permute.xlu1 %1675  ;;  %v9959_v34 = vadd.f32 %v4442_v20, %v4440_v56  ;;  %v9961_v6 = vadd.f32 %v5596_v30, %v5593_v61  ;;  %v4475_v20 = vld [vmem:[#allocation3 + $0x8] sm:$0xff]  ;;  %v5667_v30 = vld [vmem:[#allocation3 + $0x260] sm:$0xff]  ;;  %v6169_v61 = vld [vmem:[#allocation3 + $0x358] sm:$0xff]  ;;  %v4982_v40 = vmul.f32 0.0, %v4980_v46 }
 0x315   :  { %1479 = vst.msk [vmem:[#allocation3 + $0xe0] sm:$0xff] %vm138_vm0, %v1447_v22  ;;  %1742 = vst.msk [vmem:[#allocation2 + $0x1f0] sm:$0xff] %vm138_vm0, %v1676_v62  ;;  %5205 = vbcast.lane.b32.xlu1 %v8685_v1, 280  ;;  %v904_v22 = vcombine.high %v9880_v19, %v9880_v19  ;;  %v6164_v19 = vld [vmem:[#allocation2 + $0x358] sm:$0xff]  ;;  %v4472_v44 = vmul.f32 %v4470_v58, %v9947_v2  ;;  %v9966_v33 = vadd.f32 %v4983_v43, %v4981_v8 }
 0x316   :  { %v3213_v4 = vpop.permute.xlu0 %3212  ;;  %11823 = vst [vmem:[#allocation98_spill] sm:$0xff] %v9951_v16  ;;  %11824 = vst [vmem:[#allocation42_spill] sm:$0xff] %v9961_v6  ;;  %v6166_v56 = vmul.f32 %v6164_v19, %v9951_v16  ;;  %v1002_v43 = vcombine.high %v9908_v51, %v9908_v51  ;;  %v4473_v8 = vmul.f32 %v4471_v55, %v9959_v34  ;;  %v6165_v58 = vld [vmem:[#allocation2 + $0x3d8] sm:$0xff]  ;;  %v4984_v16 = vld [vmem:[#allocation3 + $0x180] sm:$0xff] }
 0x317   :  { %v3444_v12 = vmul.f32 %v3341_v21, %v3213_v4  ;;  %v6134_v21 = vld [vmem:[#allocation3 + $0x3f8] sm:$0xff]  ;;  %v6131_v4 = vmul.f32 0.0, %v6129_v53  ;;  %v9972_v53 = vrot.slane %v904_v22, %v7963_v37  ;;  %v5019_v22 = vld [vmem:[#allocation3 + $0x120] sm:$0xff]  ;;  %v9983_v19 = vadd.f32 %v4475_v20, %v4472_v44  ;;  %v4476_v44 = vld [vmem:[#allocation3 + $0x88] sm:$0xff] }
 0x318   :  { %4519 = vbcast.lane.b32.xlu0 %v11775_v49, 264  ;;  %v4343_v38 = vpop.permute.xlu1 %4342  ;;  %v6170_v55 = vld [vmem:[#allocation3 + $0x3d8] sm:$0xff]  ;;  %v5632_v20 = vld [vmem:[#allocation3 + $0x2e8] sm:$0xff]  ;;  %v9998_v27 = vadd.f32 %v4984_v16, %v4982_v40  ;;  %v10010_v40 = vrot.slane %v1002_v43, %v7963_v37  ;;  %v5050_v16 = vld [vmem:[#allocation2 + $0x140] sm:$0xff] }
 0x319   :  { %3477 = vst.msk [vmem:[#allocation3 + $0x290] sm:$0xff] %vm138_vm0, %v3444_v12  ;;  %4422 = vst.msk [vmem:[#allocation3 + $0x388] sm:$0xff] %vm138_vm0, %v4343_v38  ;;  %4485 = vbcast.lane.b32.xlu1 %v11789_v0, 264  ;;  %v5664_v12 = vmul.f32 %v5662_v60, %v9949_v17  ;;  %v9969_v50 = vadd.f32 %v6134_v21, %v6131_v4  ;;  %v5014_v21 = vld [vmem:[#allocation2 + $0x120] sm:$0xff]  ;;  %v5629_v4 = vmul.f32 %v5627_v3, %v9961_v6  ;;  %v11826_v60 = vld [vmem:[#allocation36_spill] sm:$0xff] }
 0x31a   :  { %v2323_v62 = vpop.permute.xlu0 %2322  ;;  %v1314_v51 = vrot.slane %v9972_v53, %v7788_v23  ;;  %v9990_v17 = vadd.f32 %v6169_v61, %v6166_v56  ;;  %v5698_v46 = vld [vmem:[#allocation2 + $0x258] sm:$0xff] }
 0x31b   :  { %2416 = vst.msk [vmem:[#allocation3 + $0x118] sm:$0xff] %vm138_vm0, %v2323_v62  ;;  %11825 = vst [vmem:[#allocation94_spill] sm:$0xff] %v9969_v50  ;;  %v6167_v3 = vmul.f32 %v6165_v58, %v9969_v50  ;;  %v10000_v56 = vadd.f32 %v5632_v20, %v5629_v4  ;;  %v5015_v50 = vld [vmem:[#allocation2 + $0x1a0] sm:$0xff] }
 0x31c   :  { %4791 = vbcast.lane.b32.xlu0 %v11745_v28, 264  ;;  %v3648_v38 = vpop.permute.xlu1 %3647  ;;  %11828 = vst [vmem:[#allocation92_spill] sm:$0xff] %v9990_v17  ;;  %v5017_v43 = vmul.f32 %v5015_v50, %v9998_v27  ;;  %v1378_v50 = vrot.slane %v10010_v40, %v7788_v23 }
 0x31d   :  { %3732 = vst.msk [vmem:[#allocation2 + $0x360] sm:$0xff] %vm138_vm0, %v3648_v38  ;;  %4723 = vbcast.lane.b32.xlu1 %v11826_v60, 264  ;;  %v5016_v38 = vmul.f32 %v5014_v21, %v9966_v33  ;;  %11831 = vst [vmem:[#allocation68_spill] sm:$0xff] %v10000_v56 }
 0x31e   :  { %v2355_v62 = vpop.permute.xlu0 %2354 }
 0x31f   :  { %2432 = vst.msk [vmem:[#allocation3 + $0x198] sm:$0xff] %vm138_vm0, %v2355_v62  ;;  %v9986_v62 = vadd.f32 %v5667_v30, %v5664_v12  ;;  %v9993_v24 = vadd.f32 %v5019_v22, %v5016_v38  ;;  %v4504_v12 = vld [vmem:[#allocation2 + $0x10] sm:$0xff]  ;;  %v9996_v30 = vadd.f32 %v4476_v44, %v4473_v8  ;;  %v6200_v38 = vld [vmem:[#allocation2 + $0x338] sm:$0xff] }
 0x320   :  { %5281 = vbcast.lane.b32.xlu0 %v11775_v49, 280  ;;  %v3680_v6 = vpop.permute.xlu1 %3679  ;;  %v4506_v61 = vmul.f32 %v4504_v12, %v9983_v19  ;;  %v4509_v22 = vld [vmem:[#allocation3 + $0x10] sm:$0xff]  ;;  %v5703_v8 = vld [vmem:[#allocation3 + $0x258] sm:$0xff]  ;;  %v6202_v4 = vmul.f32 %v6200_v38, %v9990_v17  ;;  %v5020_v38 = vld [vmem:[#allocation3 + $0x1a0] sm:$0xff] }
 0x321   :  { %11827 = vst [vmem:[#allocation59_spill] sm:$0xff] %v9986_v62  ;;  %11829 = vst [vmem:[#allocation100_spill] sm:$0xff] %v9993_v24  ;;  %4787 = vbcast.lane.b32.xlu1 %v11740_v11, 264  ;;  %v5700_v58 = vmul.f32 %v5698_v46, %v9986_v62  ;;  %v5052_v12 = vmul.f32 %v5050_v16, %v9993_v24  ;;  %v4505_v46 = vld [vmem:[#allocation2 + $0x90] sm:$0xff]  ;;  %v6205_v17 = vld [vmem:[#allocation3 + $0x338] sm:$0xff] }
 0x322   :  { %v1132_v29 = vpop.permute.xlu0 %1131  ;;  %3748 = vst.msk [vmem:[#allocation2 + $0x3e0] sm:$0xff] %vm138_vm0, %v3680_v6  ;;  %11830 = vst [vmem:[#allocation46_spill] sm:$0xff] %v9996_v30  ;;  %v5055_v6 = vld [vmem:[#allocation3 + $0x140] sm:$0xff]  ;;  %v4507_v37 = vmul.f32 %v4505_v46, %v9996_v30 }
 0x323   :  { %v1432_v21 = vmul.f32 %v1314_v51, %v1132_v29  ;;  %v3273_v29 = vrot.slane %v9831_v13, %v7788_v23  ;;  %v10013_v51 = vadd.f32 %v6170_v55, %v6167_v3  ;;  %v10022_v3 = vadd.f32 %v4509_v22, %v4506_v61  ;;  %v4510_v61 = vld [vmem:[#allocation3 + $0x90] sm:$0xff]  ;;  %v5668_v22 = vld [vmem:[#allocation3 + $0x2e0] sm:$0xff] }
 0x324   :  { %5421 = vbcast.lane.b32.xlu0 %v11754_v10, 280  ;;  %v1622_v44 = vpop.permute.xlu1 %1621  ;;  %v10024_v55 = vadd.f32 %v5055_v6, %v5052_v12  ;;  %v10026_v16 = vadd.f32 %v5703_v8, %v5700_v58  ;;  %v4538_v58 = vld [vmem:[#allocation2 + $0x18] sm:$0xff]  ;;  %v5086_v8 = vld [vmem:[#allocation2 + $0x160] sm:$0xff]  ;;  %v10035_v12 = vadd.f32 %v4510_v61, %v4507_v37  ;;  %v3337_v37 = vrot.slane %v9855_v26, %v7788_v23 }
 0x325   :  { %1464 = vst.msk [vmem:[#allocation3 + $0x68] sm:$0xff] %vm138_vm0, %v1432_v21  ;;  %11832 = vst [vmem:[#allocation37_spill] sm:$0xff] %v10013_v51  ;;  %v5663_v21 = vld [vmem:[#allocation2 + $0x2e0] sm:$0xff]  ;;  %5065 = vbcast.lane.b32.xlu1 %v11826_v60, 280 }
 0x326   :  { %v3145_v20 = vpop.permute.xlu0 %3144  ;;  %1715 = vst.msk [vmem:[#allocation2 + $0x118] sm:$0xff] %vm138_vm0, %v1622_v44  ;;  %v5665_v62 = vmul.f32 %v5663_v21, %v10000_v56  ;;  %11833 = vst [vmem:[#allocation82_spill] sm:$0xff] %v10024_v55  ;;  %v6201_v44 = vld [vmem:[#allocation2 + $0x3b8] sm:$0xff]  ;;  %v10037_v56 = vadd.f32 %v5020_v38, %v5017_v43  ;;  %v5091_v43 = vld [vmem:[#allocation3 + $0x160] sm:$0xff] }
 0x327   :  { %v3427_v13 = vmul.f32 %v3273_v29, %v3145_v20  ;;  %11834 = vst [vmem:[#allocation75_spill] sm:$0xff] %v10026_v16  ;;  %v10031_v29 = vadd.f32 %v6205_v17, %v6202_v4  ;;  %v6203_v20 = vmul.f32 %v6201_v44, %v10013_v51  ;;  %v4540_v17 = vmul.f32 %v4538_v58, %v10022_v3  ;;  %v4539_v44 = vld [vmem:[#allocation2 + $0x98] sm:$0xff]  ;;  %v5739_v38 = vld [vmem:[#allocation3 + $0x250] sm:$0xff]  ;;  %v5056_v30 = vld [vmem:[#allocation3 + $0x1c0] sm:$0xff] }
 0x328   :  { %5781 = vbcast.lane.b32.xlu0 %v8685_v1, 296  ;;  %v4333_v46 = vpop.permute.xlu1 %4332  ;;  %11836 = vst [vmem:[#allocation103_spill] sm:$0xff] %v10037_v56  ;;  %v10039_v24 = vadd.f32 %v5668_v22, %v5665_v62  ;;  %v5088_v4 = vmul.f32 %v5086_v8, %v10024_v55  ;;  %v4543_v62 = vld [vmem:[#allocation3 + $0x18] sm:$0xff]  ;;  %v5051_v8 = vld [vmem:[#allocation2 + $0x1c0] sm:$0xff] }
 0x329   :  { %3460 = vst.msk [vmem:[#allocation3 + $0x208] sm:$0xff] %vm138_vm0, %v3427_v13  ;;  %11835 = vst [vmem:[#allocation63_spill] sm:$0xff] %v10031_v29  ;;  %v5734_v13 = vld [vmem:[#allocation2 + $0x250] sm:$0xff]  ;;  %5209 = vbcast.lane.b32.xlu1 %v11731_v32, 280  ;;  %v6237_v55 = vld [vmem:[#allocation2 + $0x398] sm:$0xff] }
 0x32a   :  { %v1244_v21 = vpop.permute.xlu0 %1243  ;;  %4417 = vst.msk [vmem:[#allocation3 + $0x360] sm:$0xff] %vm138_vm0, %v4333_v46  ;;  %11837 = vst [vmem:[#allocation85_spill] sm:$0xff] %v10039_v24  ;;  %v6236_v46 = vld [vmem:[#allocation2 + $0x318] sm:$0xff]  ;;  %v5701_v26 = vmul.f32 %v5699_v45, %v10039_v24 }
 0x32b   :  { %v1448_v6 = vmul.f32 %v1378_v50, %v1244_v21  ;;  %v5736_v50 = vmul.f32 %v5734_v13, %v10026_v16  ;;  %v6206_v21 = vld [vmem:[#allocation3 + $0x3b8] sm:$0xff]  ;;  %v6238_v61 = vmul.f32 %v6236_v46, %v10031_v29  ;;  %v5053_v16 = vmul.f32 %v5051_v8, %v10037_v56  ;;  %v5735_v56 = vld [vmem:[#allocation2 + $0x2d0] sm:$0xff] }
 0x32c   :  { %6069 = vbcast.lane.b32.xlu0 %v11782_v31, 296  ;;  %v10050_v22 = vadd.f32 %v6206_v21, %v6203_v20  ;;  %v1654_v58 = vpop.permute.xlu1 %1653  ;;  %v10058_v20 = vadd.f32 %v4543_v62, %v4540_v17  ;;  %v10060_v46 = vadd.f32 %v5091_v43, %v5088_v4  ;;  %v6241_v29 = vld [vmem:[#allocation3 + $0x318] sm:$0xff]  ;;  %v4572_v17 = vld [vmem:[#allocation2 + $0x20] sm:$0xff]  ;;  %v5122_v4 = vld [vmem:[#allocation2 + $0x108] sm:$0xff] }
 0x32d   :  { %1480 = vst.msk [vmem:[#allocation3 + $0xe8] sm:$0xff] %vm138_vm0, %v1448_v6  ;;  %1731 = vst.msk [vmem:[#allocation2 + $0x198] sm:$0xff] %vm138_vm0, %v1654_v58  ;;  %v4541_v6 = vmul.f32 %v4539_v44, %v10035_v12  ;;  %5349 = vbcast.lane.b32.xlu1 %v11740_v11, 280  ;;  %v10062_v21 = vadd.f32 %v5739_v38, %v5736_v50  ;;  %v10067_v44 = vadd.f32 %v6241_v29, %v6238_v61  ;;  %v4544_v8 = vld [vmem:[#allocation3 + $0x98] sm:$0xff]  ;;  %v5770_v62 = vld [vmem:[#allocation2 + $0x248] sm:$0xff] }
 0x32e   :  { %11838 = vst [vmem:[#allocation66_spill] sm:$0xff] %v10050_v22  ;;  %v3209_v51 = vpop.permute.xlu0 %3208  ;;  %11839 = vst [vmem:[#allocation97_spill] sm:$0xff] %v10058_v20  ;;  %v6239_v45 = vmul.f32 %v6237_v55, %v10050_v22  ;;  %v5704_v24 = vld [vmem:[#allocation3 + $0x2d8] sm:$0xff]  ;;  %v5124_v55 = vmul.f32 %v5122_v4, %v10060_v46  ;;  %v6272_v38 = vld [vmem:[#allocation2 + $0x370] sm:$0xff] }
 0x32f   :  { %v3443_v13 = vmul.f32 %v3337_v37, %v3209_v51  ;;  %11840 = vst [vmem:[#allocation17_spill] sm:$0xff] %v10060_v46  ;;  %11841 = vst [vmem:[#allocation51_spill] sm:$0xff] %v10062_v21  ;;  %v10065_v51 = vadd.f32 %v5056_v30, %v5053_v16  ;;  %v10072_v50 = vadd.f32 %v4544_v8, %v4541_v6  ;;  %v5087_v16 = vld [vmem:[#allocation2 + $0x1e0] sm:$0xff]  ;;  %v6242_v61 = vld [vmem:[#allocation3 + $0x398] sm:$0xff] }
 0x330   :  { %4553 = vbcast.lane.b32.xlu0 %v11760_v63, 264  ;;  %11843 = vst [vmem:[#allocation74_spill] sm:$0xff] %v10067_v44  ;;  %v4365_v37 = vpop.permute.xlu1 %4364  ;;  %v10074_v43 = vadd.f32 %v5704_v24, %v5701_v26  ;;  %v4574_v30 = vmul.f32 %v4572_v17, %v10058_v20  ;;  %v5772_v29 = vmul.f32 %v5770_v62, %v10062_v21  ;;  %v4577_v6 = vld [vmem:[#allocation3 + $0x20] sm:$0xff]  ;;  %v5775_v26 = vld [vmem:[#allocation3 + $0x248] sm:$0xff]  ;;  %v5740_v20 = vld [vmem:[#allocation3 + $0x2d0] sm:$0xff] }
 0x331   :  { %3476 = vst.msk [vmem:[#allocation3 + $0x288] sm:$0xff] %vm138_vm0, %v3443_v13  ;;  %11842 = vst [vmem:[#allocation29_spill] sm:$0xff] %v10065_v51  ;;  %4549 = vbcast.lane.b32.xlu1 %v11754_v10, 264  ;;  %v934_v13 = vcombine.high %v9890_v5, %v9890_v5  ;;  %v5089_v24 = vmul.f32 %v5087_v16, %v10065_v51  ;;  %v4573_v22 = vld [vmem:[#allocation2 + $0xa0] sm:$0xff]  ;;  %v5127_v62 = vld [vmem:[#allocation3 + $0x108] sm:$0xff] }
 0x332   :  { %v2331_v58 = vpop.permute.xlu0 %2330  ;;  %4433 = vst.msk [vmem:[#allocation3 + $0x3e0] sm:$0xff] %vm138_vm0, %v4365_v37  ;;  %11844 = vst [vmem:[#allocation77_spill] sm:$0xff] %v10072_v50  ;;  %v6274_v37 = vmul.f32 %v6272_v38, %v10067_v44  ;;  %v5092_v4 = vld [vmem:[#allocation3 + $0x1e0] sm:$0xff]  ;;  %v4575_v5 = vmul.f32 %v4573_v22, %v10072_v50  ;;  %v5737_v46 = vmul.f32 %v5735_v56, %v10074_v43  ;;  %v6273_v44 = vld [vmem:[#allocation2 + $0x3f0] sm:$0xff] }
 0x333   :  { %2420 = vst.msk [vmem:[#allocation3 + $0x138] sm:$0xff] %vm138_vm0, %v2331_v58  ;;  %11845 = vst [vmem:[#allocation11_spill] sm:$0xff] %v10074_v43  ;;  %v10085_v58 = vadd.f32 %v6242_v61, %v6239_v45  ;;  %v10093_v45 = vadd.f32 %v4577_v6, %v4574_v30  ;;  %v10095_v16 = vadd.f32 %v5127_v62, %v5124_v55  ;;  %v6277_v61 = vld [vmem:[#allocation3 + $0x370] sm:$0xff]  ;;  %v4578_v50 = vld [vmem:[#allocation3 + $0xa0] sm:$0xff] }
 0x334   :  { %4825 = vbcast.lane.b32.xlu0 %v11757_v25, 264  ;;  %v3640_v8 = vpop.permute.xlu1 %3639  ;;  %v10097_v38 = vadd.f32 %v5775_v26, %v5772_v29  ;;  %v10102_v21 = vadd.f32 %v6277_v61, %v6274_v37  ;;  %v3269_v55 = vrot.slane %v9894_v39, %v7788_v23  ;;  %v4606_v29 = vld [vmem:[#allocation2 + $0x28] sm:$0xff]  ;;  %v10108_v26 = vadd.f32 %v4578_v50, %v4575_v5  ;;  %v6308_v62 = vld [vmem:[#allocation2 + $0x350] sm:$0xff]  ;;  %v5811_v5 = vld [vmem:[#allocation3 + $0x240] sm:$0xff] }
 0x335   :  { %11846 = vst [vmem:[#allocation53_spill] sm:$0xff] %v10085_v58  ;;  %3728 = vst.msk [vmem:[#allocation2 + $0x340] sm:$0xff] %vm138_vm0, %v3640_v8  ;;  %4821 = vbcast.lane.b32.xlu1 %v11752_v14, 264  ;;  %v1318_v8 = vrot.slane %v934_v13, %v7788_v23  ;;  %v6275_v56 = vmul.f32 %v6273_v44, %v10085_v58  ;;  %v5158_v6 = vld [vmem:[#allocation2 + $0x128] sm:$0xff]  ;;  %v5806_v13 = vld [vmem:[#allocation2 + $0x240] sm:$0xff]  ;;  %v4608_v44 = vmul.f32 %v4606_v29, %v10093_v45 }
 0x336   :  { %v2363_v17 = vpop.permute.xlu0 %2362  ;;  %11847 = vst [vmem:[#allocation55_spill] sm:$0xff] %v10093_v45  ;;  %11848 = vst [vmem:[#allocation62_spill] sm:$0xff] %v10097_v38  ;;  %v5160_v37 = vmul.f32 %v5158_v6, %v10095_v16  ;;  %v6278_v39 = vld [vmem:[#allocation3 + $0x3f0] sm:$0xff]  ;;  %v1032_v50 = vcombine.high %v9919_v18, %v9919_v18  ;;  %v6310_v61 = vmul.f32 %v6308_v62, %v10102_v21  ;;  %v4607_v6 = vld [vmem:[#allocation2 + $0xa8] sm:$0xff] }
 0x337   :  { %2436 = vst.msk [vmem:[#allocation3 + $0x1b8] sm:$0xff] %vm138_vm0, %v2363_v17  ;;  %v10100_v17 = vadd.f32 %v5092_v4, %v5089_v24  ;;  %11850 = vst [vmem:[#allocation109_spill] sm:$0xff] %v10102_v21  ;;  %v10110_v24 = vadd.f32 %v5740_v20, %v5737_v46  ;;  %v5123_v4 = vld [vmem:[#allocation2 + $0x188] sm:$0xff]  ;;  %v6313_v21 = vld [vmem:[#allocation3 + $0x350] sm:$0xff] }
 0x338   :  { %5025 = vbcast.lane.b32.xlu0 %v11742_v47, 280  ;;  %v3672_v22 = vpop.permute.xlu1 %3671  ;;  %11851 = vst [vmem:[#allocation49_spill] sm:$0xff] %v10108_v26  ;;  %v4611_v20 = vld [vmem:[#allocation3 + $0x28] sm:$0xff] }
 0x339   :  { %11849 = vst [vmem:[#allocation83_spill] sm:$0xff] %v10100_v17  ;;  %3744 = vst.msk [vmem:[#allocation2 + $0x3c0] sm:$0xff] %vm138_vm0, %v3672_v22  ;;  %5353 = vbcast.lane.b32.xlu1 %v11745_v28, 280  ;;  %v5125_v46 = vmul.f32 %v5123_v4, %v10100_v17  ;;  %v5771_v58 = vld [vmem:[#allocation2 + $0x2c8] sm:$0xff]  ;;  %v10129_v4 = vadd.f32 %v4611_v20, %v4608_v44  ;;  %v6309_v17 = vld [vmem:[#allocation2 + $0x3d0] sm:$0xff] }
 0x33a   :  { %v1139_v43 = vpop.permute.xlu0 %1138  ;;  %11852 = vst [vmem:[#allocation73_spill] sm:$0xff] %v10110_v24  ;;  %v5163_v45 = vld [vmem:[#allocation3 + $0x128] sm:$0xff]  ;;  %v5773_v18 = vmul.f32 %v5771_v58, %v10110_v24  ;;  %v10139_v58 = vadd.f32 %v6313_v21, %v6310_v61  ;;  %v4640_v20 = vld [vmem:[#allocation2 + $0x30] sm:$0xff] }
 0x33b   :  { %v1433_v30 = vmul.f32 %v1318_v8, %v1139_v43  ;;  %v5808_v43 = vmul.f32 %v5806_v13, %v10097_v38  ;;  %v10122_v8 = vadd.f32 %v6278_v39, %v6275_v56  ;;  %11854 = vst [vmem:[#allocation56_spill] sm:$0xff] %v10129_v4  ;;  %v10131_v56 = vadd.f32 %v5163_v45, %v5160_v37  ;;  %v5128_v62 = vld [vmem:[#allocation3 + $0x188] sm:$0xff] }
 0x33c   :  { %5425 = vbcast.lane.b32.xlu0 %v11760_v63, 280  ;;  %v1630_v22 = vpop.permute.xlu1 %1629  ;;  %11857 = vst [vmem:[#allocation41_spill] sm:$0xff] %v10139_v58  ;;  %v4612_v45 = vld [vmem:[#allocation3 + $0xa8] sm:$0xff]  ;;  %v4642_v21 = vmul.f32 %v4640_v20, %v10129_v4 }
 0x33d   :  { %1465 = vst.msk [vmem:[#allocation3 + $0x70] sm:$0xff] %vm138_vm0, %v1433_v30  ;;  %11853 = vst [vmem:[#allocation104_spill] sm:$0xff] %v10122_v8  ;;  %v4609_v30 = vmul.f32 %v4607_v6, %v10108_v26  ;;  %5493 = vbcast.lane.b32.xlu1 %v11752_v14, 280  ;;  %v10133_v39 = vadd.f32 %v5811_v5, %v5808_v43  ;;  %v5776_v37 = vld [vmem:[#allocation3 + $0x2c8] sm:$0xff]  ;;  %v5847_v26 = vld [vmem:[#allocation3 + $0x238] sm:$0xff] }
 0x33e   :  { %v3141_v29 = vpop.permute.xlu0 %3140  ;;  %1719 = vst.msk [vmem:[#allocation2 + $0x138] sm:$0xff] %vm138_vm0, %v1630_v22  ;;  %11855 = vst [vmem:[#allocation79_spill] sm:$0xff] %v10131_v56  ;;  %v10137_v22 = vadd.f32 %v5128_v62, %v5125_v46  ;;  %v5194_v5 = vld [vmem:[#allocation2 + $0x148] sm:$0xff]  ;;  %v6344_v62 = vld [vmem:[#allocation2 + $0x330] sm:$0xff] }
 0x33f   :  { %v3426_v13 = vmul.f32 %v3269_v55, %v3141_v29  ;;  %11856 = vst [vmem:[#allocation99_spill] sm:$0xff] %v10133_v39  ;;  %v1382_v55 = vrot.slane %v1032_v50, %v7788_v23  ;;  %v6311_v29 = vmul.f32 %v6309_v17, %v10122_v8  ;;  %v10143_v24 = vadd.f32 %v4612_v45, %v4609_v30  ;;  %v5159_v46 = vld [vmem:[#allocation2 + $0x1a8] sm:$0xff]  ;;  %v5807_v8 = vld [vmem:[#allocation2 + $0x2c0] sm:$0xff] }
 0x340   :  { %5745 = vbcast.lane.b32.xlu0 %v11740_v11, 296  ;;  %v4325_v6 = vpop.permute.xlu1 %4324  ;;  %v10145_v50 = vadd.f32 %v5776_v37, %v5773_v18  ;;  %v5196_v17 = vmul.f32 %v5194_v5, %v10131_v56  ;;  %v3333_v30 = vrot.slane %v9923_v57, %v7788_v23  ;;  %v4645_v18 = vld [vmem:[#allocation3 + $0x30] sm:$0xff] }
 0x341   :  { %3459 = vst.msk [vmem:[#allocation3 + $0x200] sm:$0xff] %vm138_vm0, %v3426_v13  ;;  %4413 = vst.msk [vmem:[#allocation3 + $0x340] sm:$0xff] %vm138_vm0, %v4325_v6  ;;  %v5842_v13 = vld [vmem:[#allocation2 + $0x238] sm:$0xff]  ;;  %5817 = vbcast.lane.b32.xlu1 %v11814_v9, 296  ;;  %v5161_v6 = vmul.f32 %v5159_v46, %v10137_v22  ;;  %v4641_v56 = vld [vmem:[#allocation2 + $0xb0] sm:$0xff] }
 0x342   :  { %v1251_v44 = vpop.permute.xlu0 %1250  ;;  %11858 = vst [vmem:[#allocation86_spill] sm:$0xff] %v10143_v24  ;;  %11859 = vst [vmem:[#allocation110_spill] sm:$0xff] %v10145_v50  ;;  %v5844_v61 = vmul.f32 %v5842_v13, %v10133_v39  ;;  %v5812_v13 = vld [vmem:[#allocation3 + $0x2c0] sm:$0xff]  ;;  %v4646_v39 = vld [vmem:[#allocation3 + $0xb0] sm:$0xff]  ;;  %v5809_v57 = vmul.f32 %v5807_v8, %v10145_v50 }
 0x343   :  { %v1449_v43 = vmul.f32 %v1382_v55, %v1251_v44  ;;  %v6314_v55 = vld [vmem:[#allocation3 + $0x3d0] sm:$0xff]  ;;  %v6346_v44 = vmul.f32 %v6344_v62, %v10139_v58 }
 0x344   :  { %5821 = vbcast.lane.b32.xlu0 %v11826_v60, 296  ;;  %v10157_v45 = vadd.f32 %v6314_v55, %v6311_v29  ;;  %v1662_v20 = vpop.permute.xlu1 %1661  ;;  %v10159_v5 = vadd.f32 %v5847_v26, %v5844_v61  ;;  %v10165_v29 = vadd.f32 %v4645_v18, %v4642_v21  ;;  %v4643_v26 = vmul.f32 %v4641_v56, %v10143_v24  ;;  %v5164_v61 = vld [vmem:[#allocation3 + $0x1a8] sm:$0xff]  ;;  %v6349_v62 = vld [vmem:[#allocation3 + $0x330] sm:$0xff]  ;;  %v5843_v24 = vld [vmem:[#allocation2 + $0x2b8] sm:$0xff] }
 0x345   :  { %1481 = vst.msk [vmem:[#allocation3 + $0xf0] sm:$0xff] %vm138_vm0, %v1449_v43  ;;  %1735 = vst.msk [vmem:[#allocation2 + $0x1b8] sm:$0xff] %vm138_vm0, %v1662_v20  ;;  %v5199_v43 = vld [vmem:[#allocation3 + $0x148] sm:$0xff]  ;;  %6103 = vbcast.lane.b32.xlu1 %v11796_v54, 296  ;;  %v6345_v55 = vld [vmem:[#allocation2 + $0x3b0] sm:$0xff]  ;;  %v10173_v8 = vadd.f32 %v5812_v13, %v5809_v57  ;;  %v10175_v58 = vadd.f32 %v6349_v62, %v6346_v44 }
 0x346   :  { %11860 = vst [vmem:[#allocation19_spill] sm:$0xff] %v10157_v45  ;;  %v3205_v37 = vpop.permute.xlu0 %3204  ;;  %11861 = vst [vmem:[#allocation60_spill] sm:$0xff] %v10159_v5  ;;  %v10167_v46 = vadd.f32 %v5199_v43, %v5196_v17  ;;  %v5878_v20 = vld [vmem:[#allocation2 + $0x230] sm:$0xff]  ;;  %v6347_v21 = vmul.f32 %v6345_v55, %v10157_v45  ;;  %v4674_v43 = vld [vmem:[#allocation2 + $0x38] sm:$0xff]  ;;  %v10178_v50 = vadd.f32 %v4646_v39, %v4643_v26 }
 0x347   :  { %v3442_v4 = vmul.f32 %v3333_v30, %v3205_v37  ;;  %11862 = vst [vmem:[#allocation93_spill] sm:$0xff] %v10165_v29  ;;  %v10171_v30 = vadd.f32 %v5164_v61, %v5161_v6  ;;  %v5883_v37 = vld [vmem:[#allocation3 + $0x230] sm:$0xff]  ;;  %11864 = vst [vmem:[#allocation81_spill] sm:$0xff] %v10173_v8  ;;  %v5880_v56 = vmul.f32 %v5878_v20, %v10159_v5  ;;  %v4679_v6 = vld [vmem:[#allocation3 + $0x38] sm:$0xff] }
 0x348   :  { %6073 = vbcast.lane.b32.xlu0 %v11789_v0, 296  ;;  %11865 = vst [vmem:[#allocation13_spill] sm:$0xff] %v10175_v58  ;;  %v4357_v18 = vpop.permute.xlu1 %4356  ;;  %11866 = vst [vmem:[#allocation44_spill] sm:$0xff] %v10178_v50  ;;  %v5230_v44 = vld [vmem:[#allocation2 + $0x168] sm:$0xff]  ;;  %v6380_v13 = vld [vmem:[#allocation2 + $0x310] sm:$0xff]  ;;  %v4676_v39 = vmul.f32 %v4674_v43, %v10165_v29 }
 0x349   :  { %3475 = vst.msk [vmem:[#allocation3 + $0x280] sm:$0xff] %vm138_vm0, %v3442_v4  ;;  %11863 = vst [vmem:[#allocation105_spill] sm:$0xff] %v10171_v30  ;;  %v936_v4 = vcombine.high %v9972_v53, %v9972_v53  ;;  %4583 = vbcast.lane.b32.xlu1 %v11742_v47, 264  ;;  %v5232_v57 = vmul.f32 %v5230_v44, %v10167_v46  ;;  %v5195_v26 = vld [vmem:[#allocation2 + $0x1c8] sm:$0xff]  ;;  %v10189_v61 = vadd.f32 %v5883_v37, %v5880_v56  ;;  %v5848_v62 = vld [vmem:[#allocation3 + $0x2b8] sm:$0xff] }
 0x34a   :  { %v2339_v17 = vpop.permute.xlu0 %2338  ;;  %4429 = vst.msk [vmem:[#allocation3 + $0x3c0] sm:$0xff] %vm138_vm0, %v4357_v18  ;;  %v6350_v55 = vld [vmem:[#allocation3 + $0x3b0] sm:$0xff]  ;;  %v4675_v20 = vld [vmem:[#allocation2 + $0xb8] sm:$0xff]  ;;  %v5197_v53 = vmul.f32 %v5195_v26, %v10171_v30  ;;  %v6382_v5 = vmul.f32 %v6380_v13, %v10175_v58  ;;  %v10196_v43 = vadd.f32 %v4679_v6, %v4676_v39  ;;  %v5235_v37 = vld [vmem:[#allocation3 + $0x168] sm:$0xff] }
 0x34b   :  { %2424 = vst.msk [vmem:[#allocation3 + $0x158] sm:$0xff] %vm138_vm0, %v2339_v17  ;;  %11867 = vst [vmem:[#allocation78_spill] sm:$0xff] %v10189_v61  ;;  %v4680_v18 = vld [vmem:[#allocation3 + $0xb8] sm:$0xff]  ;;  %v5845_v17 = vmul.f32 %v5843_v24, %v10173_v8  ;;  %v10194_v45 = vadd.f32 %v6350_v55, %v6347_v21  ;;  %v4677_v44 = vmul.f32 %v4675_v20, %v10178_v50  ;;  %v5914_v56 = vld [vmem:[#allocation2 + $0x228] sm:$0xff] }
 0x34c   :  { %4587 = vbcast.lane.b32.xlu0 %v11747_v41, 264  ;;  %v3632_v0 = vpop.permute.xlu1 %3631  ;;  %11869 = vst [vmem:[#allocation23_spill] sm:$0xff] %v10196_v43  ;;  %v5919_v29 = vld [vmem:[#allocation3 + $0x228] sm:$0xff]  ;;  %v10207_v6 = vadd.f32 %v5235_v37, %v5232_v57  ;;  %v5916_v13 = vmul.f32 %v5914_v56, %v10189_v61  ;;  %v6385_v39 = vld [vmem:[#allocation3 + $0x310] sm:$0xff]  ;;  %v4708_v55 = vld [vmem:[#allocation2 + $0x40] sm:$0xff] }
 0x34d   :  { %11868 = vst [vmem:[#allocation61_spill] sm:$0xff] %v10194_v45  ;;  %3724 = vst.msk [vmem:[#allocation2 + $0x320] sm:$0xff] %vm138_vm0, %v3632_v0  ;;  %v10201_v26 = vadd.f32 %v5848_v62, %v5845_v17  ;;  %4855 = vbcast.lane.b32.xlu1 %v11765_v36, 264  ;;  %v10205_v24 = vadd.f32 %v4680_v18, %v4677_v44  ;;  %v5200_v21 = vld [vmem:[#allocation3 + $0x1c8] sm:$0xff]  ;;  %v6381_v0 = vld [vmem:[#allocation2 + $0x390] sm:$0xff]  ;;  %v10213_v62 = vadd.f32 %v6385_v39, %v6382_v5 }
 0x34e   :  { %v2371_v38 = vpop.permute.xlu0 %2370  ;;  %11872 = vst [vmem:[#allocation65_spill] sm:$0xff] %v10207_v6  ;;  %v4713_v20 = vld [vmem:[#allocation3 + $0x40] sm:$0xff]  ;;  %v10211_v58 = vadd.f32 %v5200_v21, %v5197_v53  ;;  %v6383_v17 = vmul.f32 %v6381_v0, %v10194_v45  ;;  %v4710_v44 = vmul.f32 %v4708_v55, %v10196_v43  ;;  %v10217_v57 = vadd.f32 %v5919_v29, %v5916_v13  ;;  %v5879_v37 = vld [vmem:[#allocation2 + $0x2b0] sm:$0xff]  ;;  %v5231_v29 = vld [vmem:[#allocation2 + $0x1e8] sm:$0xff] }
 0x34f   :  { %2440 = vst.msk [vmem:[#allocation3 + $0x1d8] sm:$0xff] %vm138_vm0, %v2371_v38  ;;  %11870 = vst [vmem:[#allocation101_spill] sm:$0xff] %v10201_v26  ;;  %v1322_v38 = vrot.slane %v936_v4, %v7788_v23  ;;  %v5884_v56 = vld [vmem:[#allocation3 + $0x2b0] sm:$0xff]  ;;  %v4709_v4 = vld [vmem:[#allocation2 + $0xc0] sm:$0xff]  ;;  %v5881_v53 = vmul.f32 %v5879_v37, %v10201_v26 }
 0x350   :  { %4859 = vbcast.lane.b32.xlu0 %v11771_v52, 264  ;;  %11871 = vst [vmem:[#allocation38_spill] sm:$0xff] %v10205_v24  ;;  %11873 = vst [vmem:[#allocation102_spill] sm:$0xff] %v10211_v58  ;;  %v3664_v50 = vpop.permute.xlu1 %3663  ;;  %v4714_v30 = vld [vmem:[#allocation3 + $0xc0] sm:$0xff]  ;;  %v5266_v8 = vld [vmem:[#allocation2 + $0x110] sm:$0xff]  ;;  %v10223_v5 = vadd.f32 %v4713_v20, %v4710_v44  ;;  %v4711_v21 = vmul.f32 %v4709_v4, %v10205_v24 }
 0x351   :  { %11874 = vst [vmem:[#allocation20_spill] sm:$0xff] %v10213_v62  ;;  %11875 = vst [vmem:[#allocation58_spill] sm:$0xff] %v10217_v57  ;;  %5097 = vbcast.lane.b32.xlu1 %v11765_v36, 280  ;;  %v5268_v13 = vmul.f32 %v5266_v8, %v10207_v6  ;;  %v6416_v39 = vld [vmem:[#allocation2 + $0x368] sm:$0xff]  ;;  %v6386_v0 = vld [vmem:[#allocation3 + $0x390] sm:$0xff] }
 0x352   :  { %v1146_v18 = vpop.permute.xlu0 %1145  ;;  %3740 = vst.msk [vmem:[#allocation2 + $0x3a0] sm:$0xff] %vm138_vm0, %v3664_v50  ;;  %v5233_v50 = vmul.f32 %v5231_v29, %v10211_v58  ;;  %v5955_v55 = vld [vmem:[#allocation3 + $0x220] sm:$0xff]  ;;  %v6418_v37 = vmul.f32 %v6416_v39, %v10213_v62  ;;  %v10232_v45 = vadd.f32 %v6386_v0, %v6383_v17  ;;  %v4742_v4 = vld [vmem:[#allocation2 + $0x48] sm:$0xff]  ;;  %v10234_v26 = vadd.f32 %v4714_v30, %v4711_v21  ;;  %v5271_v29 = vld [vmem:[#allocation3 + $0x110] sm:$0xff] }
 0x353   :  { %v1434_v61 = vmul.f32 %v1322_v38, %v1146_v18  ;;  %v5950_v38 = vld [vmem:[#allocation2 + $0x220] sm:$0xff]  ;;  %v10229_v18 = vadd.f32 %v5884_v56, %v5881_v53  ;;  %v5915_v24 = vld [vmem:[#allocation2 + $0x2a8] sm:$0xff]  ;;  %v4744_v17 = vmul.f32 %v4742_v4, %v10223_v5  ;;  %v10242_v53 = vadd.f32 %v5271_v29, %v5268_v13  ;;  %v4777_v58 = vld [vmem:[#allocation2 + $0xd0] sm:$0xff] }
 0x354   :  { %5029 = vbcast.lane.b32.xlu0 %v11747_v41, 280  ;;  %11877 = vst [vmem:[#allocation90_spill] sm:$0xff] %v10232_v45  ;;  %v1638_v20 = vpop.permute.xlu1 %1637  ;;  %11878 = vst [vmem:[#allocation72_spill] sm:$0xff] %v10234_v26  ;;  %v5952_v8 = vmul.f32 %v5950_v38, %v10217_v57  ;;  %v6417_v56 = vld [vmem:[#allocation2 + $0x3e8] sm:$0xff] }
 0x355   :  { %1466 = vst.msk [vmem:[#allocation3 + $0x78] sm:$0xff] %vm138_vm0, %v1434_v61  ;;  %11876 = vst [vmem:[#allocation32_spill] sm:$0xff] %v10229_v18  ;;  %v4747_v61 = vld [vmem:[#allocation3 + $0x48] sm:$0xff]  ;;  %5497 = vbcast.lane.b32.xlu1 %v11757_v25, 280  ;;  %v6419_v62 = vmul.f32 %v6417_v56, %v10232_v45  ;;  %v5338_v45 = vld [vmem:[#allocation2 + $0x150] sm:$0xff] }
 0x356   :  { %v4309_v44 = vpop.permute.xlu0 %4308  ;;  %1723 = vst.msk [vmem:[#allocation2 + $0x158] sm:$0xff] %vm138_vm0, %v1638_v20  ;;  %v5236_v30 = vld [vmem:[#allocation3 + $0x1e8] sm:$0xff]  ;;  %v10244_v21 = vadd.f32 %v5955_v55, %v5952_v8  ;;  %v10252_v4 = vadd.f32 %v4747_v61, %v4744_v17  ;;  %v5267_v55 = vld [vmem:[#allocation2 + $0x190] sm:$0xff]  ;;  %v5986_v8 = vld [vmem:[#allocation2 + $0x218] sm:$0xff] }
 0x357   :  { %4405 = vst.msk [vmem:[#allocation3 + $0x300] sm:$0xff] %vm138_vm0, %v4309_v44  ;;  %v5920_v39 = vld [vmem:[#allocation3 + $0x2a8] sm:$0xff]  ;;  %v10246_v57 = vadd.f32 %v5236_v30, %v5233_v50  ;;  %v5917_v44 = vmul.f32 %v5915_v24, %v10229_v18  ;;  %v4776_v50 = vld [vmem:[#allocation2 + $0x50] sm:$0xff] }
 0x358   :  { %5169 = vbcast.lane.b32.xlu0 %v11727_v48, 280  ;;  %11879 = vst [vmem:[#allocation39_spill] sm:$0xff] %v10244_v21  ;;  %v6421_v0 = vld [vmem:[#allocation3 + $0x368] sm:$0xff]  ;;  %v4317_v6 = vpop.permute.xlu1 %4316  ;;  %v5302_v30 = vld [vmem:[#allocation2 + $0x130] sm:$0xff] }
 0x359   :  { %v4743_v38 = vld [vmem:[#allocation2 + $0xc8] sm:$0xff]  ;;  %11880 = vst [vmem:[#allocation14_spill] sm:$0xff] %v10246_v57  ;;  %v10249_v43 = vadd.f32 %v6421_v0, %v6418_v37  ;;  %4409 = vst.msk [vmem:[#allocation3 + $0x320] sm:$0xff] %vm138_vm0, %v4317_v6  ;;  %v5307_v24 = vld [vmem:[#allocation3 + $0x130] sm:$0xff]  ;;  %v10257_v0 = vadd.f32 %v5920_v39, %v5917_v44  ;;  %5785 = vbcast.lane.b32.xlu1 %v11731_v32, 296  ;;  %v5304_v56 = vmul.f32 %v5302_v30, %v10242_v53 }
 0x35a   :  { %v4748_v20 = vld [vmem:[#allocation3 + $0xc8] sm:$0xff]  ;;  %v1678_v41 = vpop.permute.xlu0 %1677  ;;  %v4745_v13 = vmul.f32 %v4743_v38, %v10234_v26  ;;  %v5991_v37 = vld [vmem:[#allocation3 + $0x218] sm:$0xff]  ;;  %v5272_v17 = vld [vmem:[#allocation3 + $0x190] sm:$0xff]  ;;  %v5988_v38 = vmul.f32 %v5986_v8, %v10244_v21  ;;  %v5269_v63 = vmul.f32 %v5267_v55, %v10246_v57  ;;  %v1034_v55 = vcombine.high %v10010_v40, %v10010_v40 }
 0x35b   :  { %11881 = vst [vmem:[#allocation47_spill] sm:$0xff] %v10249_v43  ;;  %v6422_v29 = vld [vmem:[#allocation3 + $0x3e8] sm:$0xff]  ;;  %1743 = vst.msk [vmem:[#allocation2 + $0x1f8] sm:$0xff] %vm138_vm0, %v1678_v41  ;;  %v4781_v41 = vld [vmem:[#allocation3 + $0x50] sm:$0xff]  ;;  %v10270_v30 = vadd.f32 %v5307_v24, %v5304_v56 }
 0x35c   :  { %11882 = vst [vmem:[#allocation64_spill] sm:$0xff] %v10257_v0  ;;  %5709 = vbcast.lane.b32.xlu0 %v11752_v14, 296  ;;  %v10261_v61 = vadd.f32 %v4748_v20, %v4745_v13  ;;  %v6452_v6 = vld [vmem:[#allocation2 + $0x348] sm:$0xff]  ;;  %v5951_v39 = vld [vmem:[#allocation2 + $0x2a0] sm:$0xff]  ;;  %v10267_v51 = vadd.f32 %v6422_v29, %v6419_v62  ;;  %v1670_v14 = vpop.permute.xlu1 %1669  ;;  %v4778_v13 = vmul.f32 %v4776_v50, %v10252_v4  ;;  %v5303_v25 = vld [vmem:[#allocation2 + $0x1b0] sm:$0xff] }
 0x35d   :  { %v6453_v18 = vld [vmem:[#allocation2 + $0x3c8] sm:$0xff]  ;;  %v6454_v44 = vmul.f32 %v6452_v6, %v10249_v43  ;;  %11884 = vst [vmem:[#allocation111_spill] sm:$0xff] %v10270_v30  ;;  %v10272_v8 = vadd.f32 %v5991_v37, %v5988_v38  ;;  %v5956_v21 = vld [vmem:[#allocation3 + $0x2a0] sm:$0xff]  ;;  %1739 = vst.msk [vmem:[#allocation2 + $0x1d8] sm:$0xff] %vm138_vm0, %v1670_v14  ;;  %v10278_v6 = vadd.f32 %v5272_v17, %v5269_v63  ;;  %6033 = vbcast.lane.b32.xlu1 %v11767_v59, 296 }
 0x35e   :  { %11883 = vst [vmem:[#allocation107_spill] sm:$0xff] %v10267_v51  ;;  %v2347_v20 = vpop.permute.xlu0 %2346  ;;  %v6458_v26 = vld [vmem:[#allocation3 + $0x3c8] sm:$0xff]  ;;  %v5343_v62 = vld [vmem:[#allocation3 + $0x150] sm:$0xff]  ;;  %v5953_v50 = vmul.f32 %v5951_v39, %v10257_v0  ;;  %v6455_v56 = vmul.f32 %v6453_v18, %v10267_v51  ;;  %v10284_v37 = vadd.f32 %v4781_v41, %v4778_v13  ;;  %v5340_v14 = vmul.f32 %v5338_v45, %v10270_v30 }
 0x35f   :  { %11885 = vst [vmem:[#allocation67_spill] sm:$0xff] %v10272_v8  ;;  %2428 = vst.msk [vmem:[#allocation3 + $0x178] sm:$0xff] %vm138_vm0, %v2347_v20  ;;  %v4782_v29 = vld [vmem:[#allocation3 + $0xd0] sm:$0xff]  ;;  %v6457_v24 = vld [vmem:[#allocation3 + $0x348] sm:$0xff]  ;;  %v4779_v40 = vmul.f32 %v4777_v58, %v10261_v61  ;;  %v5305_v17 = vmul.f32 %v5303_v25, %v10278_v6 }
 0x360   :  { %5997 = vbcast.lane.b32.xlu0 %v11754_v10, 296  ;;  %v5308_v38 = vld [vmem:[#allocation3 + $0x1b0] sm:$0xff]  ;;  %v6488_v20 = vld [vmem:[#allocation2 + $0x328] sm:$0xff]  ;;  %v10289_v57 = vadd.f32 %v5956_v21, %v5953_v50  ;;  %v10291_v18 = vadd.f32 %v6457_v24, %v6454_v44  ;;  %v10293_v51 = vadd.f32 %v6458_v26, %v6455_v56  ;;  %v4349_v41 = vpop.permute.xlu1 %4348  ;;  %v10295_v10 = vadd.f32 %v5343_v62, %v5340_v14  ;;  %v4810_v58 = vld [vmem:[#allocation2 + $0x58] sm:$0xff] }
 0x361   :  { %v6489_v43 = vld [vmem:[#allocation2 + $0x3a8] sm:$0xff]  ;;  %v5374_v63 = vld [vmem:[#allocation2 + $0x170] sm:$0xff]  ;;  %v10297_v45 = vadd.f32 %v4782_v29, %v4779_v40  ;;  %4425 = vst.msk [vmem:[#allocation3 + $0x3a0] sm:$0xff] %vm138_vm0, %v4349_v41  ;;  %v4815_v21 = vld [vmem:[#allocation3 + $0x58] sm:$0xff]  ;;  %v10302_v44 = vadd.f32 %v5308_v38, %v5305_v17  ;;  %6107 = vbcast.lane.b32.xlu1 %v11801_v15, 296  ;;  %v4812_v56 = vmul.f32 %v4810_v58, %v10284_v37 }
 0x362   :  { %v6022_v39 = vld [vmem:[#allocation2 + $0x210] sm:$0xff]  ;;  %11886 = vst [vmem:[#allocation7_spill] sm:$0xff] %v10289_v57  ;;  %11887 = vst [vmem:[#allocation50_spill] sm:$0xff] %v10291_v18  ;;  %v4448_v13 = vpop.permute.xlu0 %4447  ;;  %v6493_v60 = vld [vmem:[#allocation3 + $0x328] sm:$0xff]  ;;  %v6490_v50 = vmul.f32 %v6488_v20, %v10291_v18  ;;  %v6491_v62 = vmul.f32 %v6489_v43, %v10293_v51  ;;  %v5376_v29 = vmul.f32 %v5374_v63, %v10295_v10 }
 0x363   :  { %v6027_v0 = vld [vmem:[#allocation3 + $0x210] sm:$0xff]  ;;  %11888 = vst [vmem:[#allocation27_spill] sm:$0xff] %v10293_v51  ;;  %v6024_v59 = vmul.f32 %v6022_v39, %v10272_v8  ;;  %v4453_v25 = vmul.f32 %v4448_v13, %v9947_v2  ;;  %11889 = vst [vmem:[#allocation71_spill] sm:$0xff] %v10302_v44  ;;  %v6494_v24 = vld [vmem:[#allocation3 + $0x3a8] sm:$0xff]  ;;  %v10313_v17 = vrot.slane %v1034_v55, %v7788_v23 }
 0x364   :  { %v5339_v30 = vld [vmem:[#allocation2 + $0x1d0] sm:$0xff]  ;;  %6463 = vbcast.lane.b32.xlu0 %v8685_v1, 312  ;;  %v5987_v2 = vld [vmem:[#allocation2 + $0x298] sm:$0xff]  ;;  %v10317_v1 = vadd.f32 %v6493_v60, %v6490_v50  ;;  %v3624_v63 = vpop.permute.xlu1 %3623  ;;  %v10319_v58 = vadd.f32 %v4815_v21, %v4812_v56  ;;  %v6524_v23 = vld [vmem:[#allocation2 + $0x308] sm:$0xff]  ;;  %v10324_v55 = vadd.f32 %v6494_v24, %v6491_v62 }
 0x365   :  { %v5379_v26 = vld [vmem:[#allocation3 + $0x170] sm:$0xff]  ;;  %v10310_v40 = vadd.f32 %v6027_v0, %v6024_v59  ;;  %v5992_v38 = vld [vmem:[#allocation3 + $0x298] sm:$0xff]  ;;  %v5341_v20 = vmul.f32 %v5339_v30, %v10302_v44  ;;  %v5989_v13 = vmul.f32 %v5987_v2, %v10289_v57  ;;  %v6525_v30 = vld [vmem:[#allocation2 + $0x388] sm:$0xff]  ;;  %3720 = vst.msk [vmem:[#allocation2 + $0x300] sm:$0xff] %vm138_vm0, %v3624_v63  ;;  %v4455_v44 = vsel %vm138_vm0, %v4453_v25, 0.0  ;;  %4617 = vbcast.lane.b32.xlu1 %v11727_v48, 264 }
 0x366   :  { %v5344_v14 = vld [vmem:[#allocation3 + $0x1d0] sm:$0xff]  ;;  %v5410_v43 = vld [vmem:[#allocation2 + $0x118] sm:$0xff]  ;;  %11891 = vst [vmem:[#allocation54_spill] sm:$0xff] %v10317_v1  ;;  %v4720_v51 = vpop.permute.xlu0 %4719  ;;  %11892 = vst [vmem:[#allocation87_spill] sm:$0xff] %v10319_v58  ;;  %v10321_v0 = vadd.f32 %v5379_v26, %v5376_v29  ;;  %v4456_v63 = vrot.slane %v4455_v44, 4 }
 0x367   :  { %11890 = vst [vmem:[#allocation89_spill] sm:$0xff] %v10310_v40  ;;  %v4811_v39 = vld [vmem:[#allocation2 + $0xd8] sm:$0xff]  ;;  %v5375_v59 = vld [vmem:[#allocation2 + $0x1f0] sm:$0xff]  ;;  %11894 = vst [vmem:[#allocation84_spill] sm:$0xff] %v10324_v55  ;;  %v4725_v60 = vmul.f32 %v4720_v51, %v10223_v5  ;;  %v10329_v50 = vadd.f32 %v5344_v14, %v5341_v20  ;;  %v10331_v57 = vadd.f32 %v5992_v38, %v5989_v13 }
 0x368   :  { %v4816_v41 = vld [vmem:[#allocation3 + $0xd8] sm:$0xff]  ;;  %11893 = vst [vmem:[#allocation112_spill] sm:$0xff] %v10321_v0  ;;  %v4813_v18 = vmul.f32 %v4811_v39, %v10297_v45  ;;  %v6058_v21 = vld [vmem:[#allocation2 + $0x208] sm:$0xff]  ;;  %6607 = vbcast.lane.b32.xlu0 %v11814_v9, 312  ;;  %v5412_v26 = vmul.f32 %v5410_v43, %v10321_v0  ;;  %v4844_v25 = vld [vmem:[#allocation2 + $0x60] sm:$0xff]  ;;  %v6526_v38 = vmul.f32 %v6524_v23, %v10317_v1  ;;  %v3656_v9 = vpop.permute.xlu1 %3655 }
 0x369   :  { %11895 = vst [vmem:[#allocation52_spill] sm:$0xff] %v10329_v50  ;;  %v5415_v2 = vld [vmem:[#allocation3 + $0x118] sm:$0xff]  ;;  %v6063_v56 = vld [vmem:[#allocation3 + $0x208] sm:$0xff]  ;;  %11896 = vst [vmem:[#allocation48_spill] sm:$0xff] %v10331_v57  ;;  %v6060_v62 = vmul.f32 %v6058_v21, %v10310_v40  ;;  %v4727_v51 = vsel %vm138_vm0, %v4725_v60, 0.0  ;;  %v5377_v5 = vmul.f32 %v5375_v59, %v10329_v50  ;;  %v6527_v39 = vmul.f32 %v6525_v30, %v10324_v55 }
 0x36a   :  { %v10337_v24 = vadd.f32 %v4816_v41, %v4813_v18  ;;  %v6529_v29 = vld [vmem:[#allocation3 + $0x308] sm:$0xff]  ;;  %v5446_v14 = vld [vmem:[#allocation2 + $0x138] sm:$0xff]  ;;  %v6023_v20 = vld [vmem:[#allocation2 + $0x290] sm:$0xff]  ;;  %v4728_v43 = vrot.slane %v4727_v51, 4  ;;  %v4990_v0 = vpop.permute.xlu0 %4989  ;;  %v10343_v21 = vadd.f32 %v5415_v2, %v5412_v26  ;;  %3736 = vst.msk [vmem:[#allocation2 + $0x380] sm:$0xff] %vm138_vm0, %v3656_v9  ;;  %v4846_v23 = vmul.f32 %v4844_v25, %v10319_v58  ;;  %4889 = vbcast.lane.b32.xlu1 %v11780_v7, 264 }
 0x36b   :  { %v6530_v13 = vld [vmem:[#allocation3 + $0x388] sm:$0xff]  ;;  %v10345_v18 = vadd.f32 %v6063_v56, %v6060_v62  ;;  %v4849_v41 = vld [vmem:[#allocation3 + $0x60] sm:$0xff]  ;;  %v5380_v8 = vld [vmem:[#allocation3 + $0x1f0] sm:$0xff]  ;;  %v4995_v59 = vmul.f32 %v4990_v0, %v9966_v33  ;;  %v6025_v30 = vmul.f32 %v6023_v20, %v10331_v57  ;;  %v10351_v1 = vadd.f32 %v6529_v29, %v6526_v38 }
 0x36c   :  { %v6028_v60 = vld [vmem:[#allocation3 + $0x290] sm:$0xff]  ;;  %v4845_v55 = vld [vmem:[#allocation2 + $0xe0] sm:$0xff]  ;;  %4621 = vbcast.lane.b32.xlu0 %v11734_v35, 264  ;;  %v5448_v2 = vmul.f32 %v5446_v14, %v10343_v21  ;;  %v5451_v56 = vld [vmem:[#allocation3 + $0x138] sm:$0xff]  ;;  %v10357_v40 = vadd.f32 %v6530_v13, %v6527_v39  ;;  %v10360_v20 = vadd.f32 %v4849_v41, %v4846_v23  ;;  %v10362_v29 = vadd.f32 %v5380_v8, %v5377_v5  ;;  %v1646_v50 = vpop.permute.xlu1 %1645 }
 0x36d   :  { %11897 = vst [vmem:[#allocation106_spill] sm:$0xff] %v10351_v1  ;;  %v5411_v26 = vld [vmem:[#allocation2 + $0x198] sm:$0xff]  ;;  %v4847_v62 = vmul.f32 %v4845_v55, %v10337_v24  ;;  %v6560_v9 = vld [vmem:[#allocation2 + $0x360] sm:$0xff]  ;;  %v4997_v33 = vsel %vm138_vm0, %v4995_v59, 0.0  ;;  %v10364_v38 = vadd.f32 %v6028_v60, %v6025_v30  ;;  %v4457_v14 = vadd.f32 %v4456_v63, %v4455_v44  ;;  %1727 = vst.msk [vmem:[#allocation2 + $0x178] sm:$0xff] %vm138_vm0, %v1646_v50 }
 0x36e   :  { %11898 = vst [vmem:[#allocation70_spill] sm:$0xff] %v10357_v40  ;;  %v6093_v0 = vld [vmem:[#allocation2 + $0x200] sm:$0xff]  ;;  %11899 = vst [vmem:[#allocation45_spill] sm:$0xff] %v10360_v20  ;;  %v4729_v58 = vadd.f32 %v4728_v43, %v4727_v51  ;;  %v4998_v15 = vrot.slane %v4997_v33, 4  ;;  %v5134_v48 = vpop.permute.xlu0 %5133  ;;  %v5416_v39 = vld [vmem:[#allocation3 + $0x198] sm:$0xff]  ;;  %v10369_v59 = vadd.f32 %v5451_v56, %v5448_v2  ;;  %v5413_v8 = vmul.f32 %v5411_v26, %v10362_v29 }
 0x36f   :  { %v6097_v25 = vld [vmem:[#allocation3 + $0x200] sm:$0xff]  ;;  %11900 = vst [vmem:[#allocation57_spill] sm:$0xff] %v10362_v29  ;;  %11901 = vst [vmem:[#allocation88_spill] sm:$0xff] %v10364_v38  ;;  %v6095_v55 = vmul.f32 %v6093_v0, %v10345_v18  ;;  %v5139_v13 = vmul.f32 %v5134_v48, %v10095_v16  ;;  %v4878_v5 = vld [vmem:[#allocation2 + $0x68] sm:$0xff]  ;;  %v6562_v41 = vmul.f32 %v6560_v9, %v10351_v1  ;;  %5101 = vbcast.lane.b32.xlu1 %v11771_v52, 280 }
 0x370   :  { %v6561_v57 = vld [vmem:[#allocation2 + $0x3e0] sm:$0xff]  ;;  %11902 = vst [vmem:[#allocation43_spill] sm:$0xff] %v10369_v59  ;;  %v4999_v44 = vadd.f32 %v4998_v15, %v4997_v33  ;;  %4893 = vbcast.lane.b32.xlu0 %v11786_v42, 264  ;;  %v5447_v63 = vld [vmem:[#allocation2 + $0x1b8] sm:$0xff]  ;;  %v6059_v43 = vld [vmem:[#allocation2 + $0x288] sm:$0xff]  ;;  %v10379_v16 = vadd.f32 %v5416_v39, %v5413_v8  ;;  %v4880_v2 = vmul.f32 %v4878_v5, %v10360_v20  ;;  %v1258_v15 = vpop.permute.xlu1 %1257  ;;  %v4458_v26 = vrot.slane %v4457_v14, 2 }
 0x371   :  { %v10375_v51 = vadd.f32 %v6097_v25, %v6095_v55  ;;  %v4850_v60 = vld [vmem:[#allocation3 + $0xe0] sm:$0xff]  ;;  %v6563_v50 = vmul.f32 %v6561_v57, %v10357_v40  ;;  %v5141_v48 = vsel %vm138_vm0, %v5139_v13, 0.0  ;;  %v6064_v23 = vld [vmem:[#allocation3 + $0x288] sm:$0xff]  ;;  %v6061_v30 = vmul.f32 %v6059_v43, %v10364_v38  ;;  %v5482_v55 = vld [vmem:[#allocation2 + $0x158] sm:$0xff] }
 0x372   :  { %v6565_v56 = vld [vmem:[#allocation3 + $0x360] sm:$0xff]  ;;  %v4730_v9 = vrot.slane %v4729_v58, 2  ;;  %v5000_v33 = vrot.slane %v4999_v44, 2  ;;  %v5142_v0 = vrot.slane %v5141_v48, 4  ;;  %v4452_v25 = vpop.permute.xlu0 %4451  ;;  %v5452_v29 = vld [vmem:[#allocation3 + $0x1b8] sm:$0xff]  ;;  %v1450_v57 = vmul.f32 %v10313_v17, %v1258_v15 }
 0x373   :  { %v4454_v13 = vmul.f32 %v4452_v25, %v9959_v34  ;;  %v5449_v39 = vmul.f32 %v5447_v63, %v10379_v16  ;;  %v10386_v8 = vadd.f32 %v4850_v60, %v4847_v62  ;;  %5241 = vbcast.lane.b32.xlu1 %v11780_v7, 280  ;;  %v5487_v40 = vld [vmem:[#allocation3 + $0x158] sm:$0xff]  ;;  %v10390_v1 = vadd.f32 %v6064_v23, %v6061_v30  ;;  %v6566_v38 = vld [vmem:[#allocation3 + $0x3e0] sm:$0xff]  ;;  %v4883_v30 = vld [vmem:[#allocation3 + $0x68] sm:$0xff] }
 0x374   :  { %v5001_v5 = vadd.f32 %v5000_v33, %v4999_v44  ;;  %v5143_v43 = vadd.f32 %v5142_v0, %v5141_v48  ;;  %5173 = vbcast.lane.b32.xlu0 %v11734_v35, 280  ;;  %1482 = vst.msk [vmem:[#allocation3 + $0xf8] sm:$0xff] %vm138_vm0, %v1450_v57  ;;  %v5484_v34 = vmul.f32 %v5482_v55, %v10369_v59  ;;  %v6596_v63 = vld [vmem:[#allocation2 + $0x340] sm:$0xff]  ;;  %v4341_v60 = vpop.permute.xlu1 %4340  ;;  %v5483_v23 = vld [vmem:[#allocation2 + $0x1d8] sm:$0xff]  ;;  %v4879_v35 = vld [vmem:[#allocation2 + $0xe8] sm:$0xff] }
 0x375   :  { %11903 = vst [vmem:[#allocation95_spill] sm:$0xff] %v10386_v8  ;;  %11904 = vst [vmem:[#allocation69_spill] sm:$0xff] %v10390_v1  ;;  %v4462_v17 = vsel %vm138_vm0, %v4454_v13, 0.0  ;;  %v10395_v15 = vadd.f32 %v5452_v29, %v5449_v39  ;;  %v10397_v62 = vadd.f32 %v6565_v56, %v6562_v41  ;;  %v4459_v44 = vadd.f32 %v4458_v26, %v4457_v14  ;;  %v6094_v29 = vld [vmem:[#allocation2 + $0x280] sm:$0xff] }
 0x376   :  { %v4731_v48 = vadd.f32 %v4730_v9, %v4729_v58  ;;  %v5144_v33 = vrot.slane %v5143_v43, 2  ;;  %v4463_v0 = vrot.slane %v4462_v17, 4  ;;  %v4516_v25 = vpop.permute.xlu0 %4515  ;;  %4421 = vst.msk [vmem:[#allocation3 + $0x380] sm:$0xff] %vm138_vm0, %v4341_v60  ;;  %v10401_v13 = vadd.f32 %v5487_v40, %v5484_v34  ;;  %v11909_v26 = vld [vmem:[#allocation35_spill] sm:$0xff]  ;;  %v5488_v9 = vld [vmem:[#allocation3 + $0x1d8] sm:$0xff] }
 0x377   :  { %11905 = vst [vmem:[#allocation80_spill] sm:$0xff] %v10395_v15  ;;  %11906 = vst [vmem:[#allocation76_spill] sm:$0xff] %v10397_v62  ;;  %v4521_v57 = vmul.f32 %v4516_v25, %v10022_v3  ;;  %v4881_v41 = vmul.f32 %v4879_v35, %v10386_v8  ;;  %v10404_v56 = vadd.f32 %v6566_v38, %v6563_v50  ;;  %5749 = vbcast.lane.b32.xlu1 %v11745_v28, 296  ;;  %v6098_v55 = vld [vmem:[#allocation3 + $0x280] sm:$0xff] }
 0x378   :  { %11907 = vst [vmem:[#allocation113_spill] sm:$0xff] %v10401_v13  ;;  %v5002_v58 = vrot.slane %v5001_v5, 1  ;;  %v4464_v14 = vadd.f32 %v4463_v0, %v4462_v17  ;;  %5313 = vbcast.lane.b32.xlu0 %v11909_v26, 280  ;;  %v6096_v39 = vmul.f32 %v6094_v29, %v10390_v1  ;;  %v6598_v60 = vmul.f32 %v6596_v63, %v10397_v62  ;;  %v6597_v3 = vld [vmem:[#allocation2 + $0x3c0] sm:$0xff]  ;;  %v2379_v50 = vpop.permute.xlu1 %2378  ;;  %v4912_v62 = vld [vmem:[#allocation2 + $0x70] sm:$0xff] }
 0x379   :  { %11908 = vst [vmem:[#allocation114_spill] sm:$0xff] %v10404_v56  ;;  %v5145_v40 = vadd.f32 %v5144_v33, %v5143_v43  ;;  %v4523_v34 = vsel %vm138_vm0, %v4521_v57, 0.0  ;;  %v5485_v35 = vmul.f32 %v5483_v23, %v10395_v15  ;;  %v10412_v38 = vadd.f32 %v4883_v30, %v4880_v2  ;;  %v6601_v20 = vld [vmem:[#allocation3 + $0x340] sm:$0xff]  ;;  %2444 = vst.msk [vmem:[#allocation3 + $0x1f8] sm:$0xff] %vm138_vm0, %v2379_v50  ;;  %v4884_v57 = vld [vmem:[#allocation3 + $0xe8] sm:$0xff] }
 0x37a   :  { %v4460_v25 = vrot.slane %v4459_v44, 1  ;;  %v4732_v59 = vrot.slane %v4731_v48, 1  ;;  %v4465_v17 = vrot.slane %v4464_v14, 2  ;;  %v4524_v0 = vrot.slane %v4523_v34, 4  ;;  %v4758_v8 = vpop.permute.xlu0 %4757  ;;  %v6602_v15 = vld [vmem:[#allocation3 + $0x3c0] sm:$0xff] }
 0x37b   :  { %v4760_v29 = vmul.f32 %v4758_v8, %v10261_v61  ;;  %v10416_v63 = vadd.f32 %v5488_v9, %v5485_v35  ;;  %v10418_v43 = vadd.f32 %v6098_v55, %v6096_v39  ;;  %v6599_v33 = vmul.f32 %v6597_v3, %v10404_v56  ;;  %6037 = vbcast.lane.b32.xlu1 %v11775_v49, 296 }
 0x37c   :  { %v5003_v2 = vadd.f32 %v5002_v58, %v5001_v5  ;;  %v4466_v23 = vadd.f32 %v4465_v17, %v4464_v14  ;;  %v4525_v30 = vadd.f32 %v4524_v0, %v4523_v34  ;;  %5673 = vbcast.lane.b32.xlu0 %v11765_v36, 296  ;;  %v5146_v1 = vrot.slane %v5145_v40, 1  ;;  %v4482_v55 = vpop.permute.xlu1 %4481  ;;  %v6632_v14 = vld [vmem:[#allocation2 + $0x320] sm:$0xff] }
 0x37d   :  { %v4768_v50 = vsel %vm138_vm0, %v4760_v29, 0.0  ;;  %v10424_v61 = vadd.f32 %v6601_v20, %v6598_v60  ;;  %v4914_v8 = vmul.f32 %v4912_v62, %v10412_v38  ;;  %v4461_v9 = vadd.f32 %v4460_v25, %v4459_v44 }
 0x37e   :  { %v10427_v39 = vadd.f32 %v4732_v59, %v4731_v48  ;;  %v4526_v3 = vrot.slane %v4525_v30, 2  ;;  %v4769_v5 = vrot.slane %v4768_v50, 4  ;;  %v4994_v58 = vpop.permute.xlu0 %4993  ;;  %v4487_v34 = vmul.f32 %v4482_v55, %v9983_v19  ;;  %v6633_v48 = vld [vmem:[#allocation2 + $0x3a0] sm:$0xff] }
 0x37f   :  { %11910 = vst [vmem:[#allocation35_spill] sm:$0xff] %v10424_v61  ;;  %v4996_v35 = vmul.f32 %v4994_v58, %v9998_v27  ;;  %v10431_v17 = vadd.f32 %v4884_v57, %v4881_v41  ;;  %v10433_v0 = vadd.f32 %v6602_v15, %v6599_v33  ;;  %6535 = vbcast.lane.b32.xlu1 %v11782_v31, 312  ;;  %v4467_v62 = vrot.slane %v4466_v23, 1  ;;  %v6637_v57 = vld [vmem:[#allocation3 + $0x320] sm:$0xff] }
 0x380   :  { %v10436_v20 = vadd.f32 %v5003_v2, %v4461_v9  ;;  %v4527_v44 = vadd.f32 %v4526_v3, %v4525_v30  ;;  %v4770_v59 = vadd.f32 %v4769_v5, %v4768_v50  ;;  %5961 = vbcast.lane.b32.xlu0 %v11742_v47, 296  ;;  %v4489_v60 = vsel %vm138_vm0, %v4487_v34, 0.0  ;;  %v4754_v41 = vpop.permute.xlu1 %4753  ;;  %v6667_v30 = vld [vmem:[#allocation2 + $0x300] sm:$0xff] }
 0x381   :  { %11911 = vst [vmem:[#allocation115_spill] sm:$0xff] %v10431_v17  ;;  %11912 = vst [vmem:[#allocation116_spill] sm:$0xff] %v10433_v0  ;;  %v10440_v25 = vadd.f32 %v5146_v1, %v5145_v40  ;;  %v5004_v27 = vsel %vm138_vm0, %v4996_v35, 0.0  ;;  %v6634_v19 = vmul.f32 %v6632_v14, %v10424_v61  ;;  %v4490_v15 = vrot.slane %v4489_v60, 4  ;;  %v4917_v14 = vld [vmem:[#allocation3 + $0x70] sm:$0xff] }
 0x382   :  { %v4528_v29 = vrot.slane %v4527_v44, 1  ;;  %v4771_v31 = vrot.slane %v4770_v59, 2  ;;  %v5005_v33 = vrot.slane %v5004_v27, 4  ;;  %v5138_v2 = vpop.permute.xlu0 %5137  ;;  %v4759_v50 = vmul.f32 %v4754_v41, %v10252_v4 }
 0x383   :  { %v5140_v9 = vmul.f32 %v5138_v2, %v10137_v22  ;;  %v10446_v55 = vadd.f32 %v6637_v57, %v6634_v19  ;;  %v10449_v1 = vmul.f32 %v6633_v48, %v10433_v0  ;;  %v4491_v40 = vadd.f32 %v4490_v15, %v4489_v60  ;;  %6677 = vbcast.lane.b32.xlu1 %v11796_v54, 312  ;;  %v6671_v19 = vld [vmem:[#allocation3 + $0x300] sm:$0xff] }
 0x384   :  { %v4468_v3 = vadd.f32 %v4467_v62, %v4466_v23  ;;  %v4772_v5 = vadd.f32 %v4771_v31, %v4770_v59  ;;  %v5006_v58 = vadd.f32 %v5005_v33, %v5004_v27  ;;  %v4761_v34 = vsel %vm138_vm0, %v4759_v50, 0.0  ;;  %6319 = vbcast.lane.b32.xlu0 %v11740_v11, 312  ;;  %v5062_v60 = vpop.permute.xlu1 %5061  ;;  %v11915_v62 = vld [vmem:[#allocation82_spill] sm:$0xff] }
 0x385   :  { %11913 = vst [vmem:[#allocation117_spill] sm:$0xff] %v10446_v55  ;;  %11914 = vst [vmem:[#allocation118_spill] sm:$0xff] %v10449_v1  ;;  %v10453_v35 = vadd.f32 %v4528_v29, %v4527_v44  ;;  %v5148_v4 = vsel %vm138_vm0, %v5140_v9, 0.0  ;;  %v6669_v22 = vmul.f32 %v6667_v30, %v10446_v55  ;;  %v4492_v48 = vrot.slane %v4491_v40, 2  ;;  %v11928_v0 = vld [vmem:[#allocation30_spill] sm:$0xff] }
 0x386   :  { %v4762_v41 = vrot.slane %v4761_v34, 4  ;;  %v4773_v15 = vrot.slane %v4772_v5, 1  ;;  %v5007_v54 = vrot.slane %v5006_v58, 2  ;;  %v5278_v23 = vpop.permute.xlu0 %5277  ;;  %v5067_v59 = vmul.f32 %v5062_v60, %v11915_v62 }
 0x387   :  { %v5149_v27 = vrot.slane %v5148_v4, 4  ;;  %v5283_v31 = vmul.f32 %v5278_v23, %v10242_v53  ;;  %v10460_v44 = vadd.f32 %v4917_v14, %v4914_v8  ;;  %v4493_v29 = vadd.f32 %v4492_v48, %v4491_v40  ;;  %4651 = vbcast.lane.b32.xlu1 %v11909_v26, 264 }
 0x388   :  { %v4763_v33 = vadd.f32 %v4762_v41, %v4761_v34  ;;  %v5008_v11 = vadd.f32 %v5007_v54, %v5006_v58  ;;  %v10463_v2 = vadd.f32 %v6671_v19, %v6669_v22  ;;  %v5069_v57 = vsel %vm138_vm0, %v5067_v59, 0.0  ;;  %6467 = vbcast.lane.b32.xlu0 %v11731_v32, 312  ;;  %v5206_v14 = vpop.permute.xlu1 %5205 }
 0x389   :  { %11916 = vst [vmem:[#allocation82_spill] sm:$0xff] %v10460_v44  ;;  %v10466_v30 = vadd.f32 %v4773_v15, %v4772_v5  ;;  %v5150_v50 = vadd.f32 %v5149_v27, %v5148_v4  ;;  %v5285_v9 = vsel %vm138_vm0, %v5283_v31, 0.0  ;;  %v4494_v60 = vrot.slane %v4493_v29, 1  ;;  %v11918_v4 = vld [vmem:[#allocation21_spill] sm:$0xff]  ;;  %v11919_v27 = vld [vmem:[#allocation36_spill] sm:$0xff] }
 0x38a   :  { %11917 = vst [vmem:[#allocation119_spill] sm:$0xff] %v10463_v2  ;;  %v4764_v53 = vrot.slane %v4763_v33, 2  ;;  %v5070_v8 = vrot.slane %v5069_v57, 4  ;;  %v5009_v40 = vrot.slane %v5008_v11, 1  ;;  %v4520_v34 = vpop.permute.xlu0 %4519  ;;  %v5211_v48 = vmul.f32 %v5206_v14, %v10167_v46  ;;  %v4913_v31 = vld [vmem:[#allocation2 + $0xf0] sm:$0xff] }
 0x38b   :  { %v5151_v58 = vrot.slane %v5150_v50, 2  ;;  %v5286_v22 = vrot.slane %v5285_v9, 4  ;;  %v4522_v19 = vmul.f32 %v4520_v34, %v10035_v12  ;;  %v4495_v41 = vadd.f32 %v4494_v60, %v4493_v29  ;;  %4923 = vbcast.lane.b32.xlu1 %v11918_v4, 264 }
 0x38c   :  { %v4765_v5 = vadd.f32 %v4764_v53, %v4763_v33  ;;  %v5071_v15 = vadd.f32 %v5070_v8, %v5069_v57  ;;  %v5010_v54 = vadd.f32 %v5009_v40, %v5008_v11  ;;  %v5213_v32 = vsel %vm138_vm0, %v5211_v48, 0.0  ;;  %6611 = vbcast.lane.b32.xlu0 %v11919_v27, 312  ;;  %v4486_v55 = vpop.permute.xlu1 %4485  ;;  %v11921_v11 = vld [vmem:[#allocation46_spill] sm:$0xff] }
 0x38d   :  { %v5152_v23 = vadd.f32 %v5151_v58, %v5150_v50  ;;  %v5287_v62 = vadd.f32 %v5286_v22, %v5285_v9  ;;  %v4530_v59 = vsel %vm138_vm0, %v4522_v19, 0.0  ;;  %v5214_v56 = vrot.slane %v5213_v32, 4  ;;  %v11922_v19 = vld [vmem:[#allocation28_spill] sm:$0xff] }
 0x38e   :  { %v4766_v46 = vrot.slane %v4765_v5, 1  ;;  %v5072_v14 = vrot.slane %v5071_v15, 2  ;;  %v4792_v12 = vpop.permute.xlu0 %4791  ;;  %v10477_v29 = vmul.f32 %v4913_v31, %v10431_v17  ;;  %v10480_v33 = vadd.f32 %v10440_v25, %v4495_v41 }
 0x38f   :  { %v4488_v57 = vmul.f32 %v4486_v55, %v11921_v11  ;;  %v10483_v50 = vadd.f32 %v5010_v54, %v4468_v3  ;;  %v5288_v9 = vrot.slane %v5287_v62, 2  ;;  %v5215_v53 = vadd.f32 %v5214_v56, %v5213_v32  ;;  %5245 = vbcast.lane.b32.xlu1 %v11786_v42, 280 }
 0x390   :  { %11920 = vst [vmem:[#allocation21_spill] sm:$0xff] %v10477_v29  ;;  %v5073_v60 = vadd.f32 %v5072_v14, %v5071_v15  ;;  %v5153_v8 = vrot.slane %v5152_v23, 1  ;;  %v4531_v40 = vrot.slane %v4530_v59, 4  ;;  %v4767_v34 = vadd.f32 %v4766_v46, %v4765_v5  ;;  %4655 = vbcast.lane.b32.xlu0 %v11922_v19, 264  ;;  %v4724_v3 = vpop.permute.xlu1 %4723  ;;  %v11923_v15 = vld [vmem:[#allocation72_spill] sm:$0xff] }
 0x391   :  { %v4496_v48 = vsel %vm138_vm0, %v4488_v57, 0.0  ;;  %v5289_v58 = vadd.f32 %v5288_v9, %v5287_v62  ;;  %v4794_v22 = vmul.f32 %v4792_v12, %v10297_v45  ;;  %v5216_v41 = vrot.slane %v5215_v53, 2  ;;  %v11924_v9 = vld [vmem:[#allocation15_spill] sm:$0xff] }
 0x392   :  { %v5074_v25 = vrot.slane %v5073_v60, 1  ;;  %v4497_v55 = vrot.slane %v4496_v48, 4  ;;  %v4532_v54 = vadd.f32 %v4531_v40, %v4530_v59  ;;  %v5282_v27 = vpop.permute.xlu0 %5281  ;;  %v4726_v56 = vmul.f32 %v4724_v3, %v11923_v15 }
 0x393   :  { %v5290_v32 = vrot.slane %v5289_v58, 1  ;;  %v4802_v31 = vsel %vm138_vm0, %v4794_v22, 0.0  ;;  %v5284_v5 = vmul.f32 %v5282_v27, %v10278_v6  ;;  %v5217_v14 = vadd.f32 %v5216_v41, %v5215_v53  ;;  %5385 = vbcast.lane.b32.xlu1 %v11918_v4, 280  ;;  %v11925_v27 = vld [vmem:[#allocation12_spill] sm:$0xff] }
 0x394   :  { %v5075_v46 = vadd.f32 %v5074_v25, %v5073_v60  ;;  %v4498_v62 = vadd.f32 %v4497_v55, %v4496_v48  ;;  %v4533_v45 = vrot.slane %v4532_v54, 2  ;;  %v4734_v12 = vsel %vm138_vm0, %v4726_v56, 0.0  ;;  %4927 = vbcast.lane.b32.xlu0 %v11924_v9, 264  ;;  %v4788_v22 = vpop.permute.xlu1 %4787 }
 0x395   :  { %v5291_v11 = vadd.f32 %v5290_v32, %v5289_v58  ;;  %v4803_v57 = vrot.slane %v4802_v31, 4  ;;  %v5292_v59 = vsel %vm138_vm0, %v5284_v5, 0.0  ;;  %v5218_v40 = vrot.slane %v5217_v14, 1 }
 0x396   :  { %v4499_v3 = vrot.slane %v4498_v62, 2  ;;  %v4735_v15 = vrot.slane %v4734_v12, 4  ;;  %v5154_v29 = vadd.f32 %v5153_v8, %v5152_v23  ;;  %v5422_v6 = vpop.permute.xlu0 %5421  ;;  %v10497_v60 = vadd.f32 %v5075_v46, %v10427_v39 }
 0x397   :  { %v4793_v53 = vmul.f32 %v4788_v22, %v10284_v37  ;;  %v4534_v48 = vadd.f32 %v4533_v45, %v4532_v54  ;;  %v4804_v25 = vadd.f32 %v4803_v57, %v4802_v31  ;;  %v5219_v41 = vadd.f32 %v5218_v40, %v5217_v14  ;;  %5713 = vbcast.lane.b32.xlu1 %v11925_v27, 296  ;;  %v11926_v45 = vld [vmem:[#allocation29_spill] sm:$0xff] }
 0x398   :  { %v4500_v58 = vadd.f32 %v4499_v3, %v4498_v62  ;;  %v4736_v55 = vadd.f32 %v4735_v15, %v4734_v12  ;;  %v5293_v56 = vrot.slane %v5292_v59, 4  ;;  %v10503_v5 = vadd.f32 %v5291_v11, %v10453_v35  ;;  %5317 = vbcast.lane.b32.xlu0 %v11922_v19, 280  ;;  %v5066_v31 = vpop.permute.xlu1 %5065  ;;  %v11927_v15 = vld [vmem:[#allocation25_spill] sm:$0xff] }
 0x399   :  { %v4795_v32 = vsel %vm138_vm0, %v4793_v53, 0.0  ;;  %v4805_v23 = vrot.slane %v4804_v25, 2  ;;  %v5427_v8 = vmul.f32 %v5422_v6, %v10343_v21  ;;  %v4535_v46 = vrot.slane %v4534_v48, 1 }
 0x39a   :  { %v4501_v39 = vrot.slane %v4500_v58, 1  ;;  %v4737_v37 = vrot.slane %v4736_v55, 2  ;;  %v4796_v54 = vrot.slane %v4795_v32, 4  ;;  %v5782_v14 = vpop.permute.xlu0 %5781  ;;  %v10507_v62 = vadd.f32 %v5219_v41, %v4767_v34 }
 0x39b   :  { %v5068_v12 = vmul.f32 %v5066_v31, %v11926_v45  ;;  %v4806_v57 = vadd.f32 %v4805_v23, %v4804_v25  ;;  %v5294_v40 = vadd.f32 %v5293_v56, %v5292_v59  ;;  %6001 = vbcast.lane.b32.xlu1 %v11927_v15, 296  ;;  %v5429_v21 = vsel %vm138_vm0, %v5427_v8, 0.0  ;;  %v11931_v45 = vld [vmem:[#allocation62_spill] sm:$0xff] }
 0x39c   :  { %v4502_v3 = vadd.f32 %v4501_v39, %v4500_v58  ;;  %v4738_v35 = vadd.f32 %v4737_v37, %v4736_v55  ;;  %v4797_v11 = vadd.f32 %v4796_v54, %v4795_v32  ;;  %v5430_v1 = vrot.slane %v5429_v21, 4  ;;  %5457 = vbcast.lane.b32.xlu0 %v11928_v0, 280  ;;  %v5210_v31 = vpop.permute.xlu1 %5209  ;;  %v11929_v55 = vld [vmem:[#allocation102_spill] sm:$0xff]  ;;  %v11930_v37 = vld [vmem:[#allocation33_spill] sm:$0xff] }
 0x39d   :  { %v5076_v22 = vsel %vm138_vm0, %v5068_v12, 0.0  ;;  %v4807_v6 = vrot.slane %v4806_v57, 1  ;;  %v5295_v53 = vrot.slane %v5294_v40, 2  ;;  %v4536_v25 = vadd.f32 %v4535_v46, %v4534_v48 }
 0x39e   :  { %v4739_v34 = vrot.slane %v4738_v35, 1  ;;  %v4798_v41 = vrot.slane %v4797_v11, 2  ;;  %v5077_v44 = vrot.slane %v5076_v22, 4  ;;  %v6070_v59 = vpop.permute.xlu0 %6069  ;;  %v10514_v58 = vadd.f32 %v5154_v29, %v4502_v3 }
 0x39f   :  { %v5212_v56 = vmul.f32 %v5210_v31, %v11929_v55  ;;  %v5296_v32 = vadd.f32 %v5295_v53, %v5294_v40  ;;  %v5431_v23 = vadd.f32 %v5430_v1, %v5429_v21  ;;  %6391 = vbcast.lane.b32.xlu1 %v11930_v37, 312  ;;  %v10518_v54 = vadd.f32 %v4807_v6, %v4806_v57  ;;  %v11933_v37 = vld [vmem:[#allocation34_spill] sm:$0xff] }
 0x3a0   :  { %v4799_v8 = vadd.f32 %v4798_v41, %v4797_v11  ;;  %v5078_v39 = vadd.f32 %v5077_v44, %v5076_v22  ;;  %v5787_v12 = vmul.f32 %v5782_v14, %v11931_v45  ;;  %v6075_v48 = vmul.f32 %v6070_v59, %v10345_v18  ;;  %5637 = vbcast.lane.b32.xlu0 %v11780_v7, 296  ;;  %v5350_v1 = vpop.permute.xlu1 %5349  ;;  %v11932_v41 = vld [vmem:[#allocation9_spill] sm:$0xff] }
 0x3a1   :  { %v5220_v2 = vsel %vm138_vm0, %v5212_v56, 0.0  ;;  %v5297_v17 = vrot.slane %v5296_v32, 1  ;;  %v5432_v61 = vrot.slane %v5431_v23, 2  ;;  %v5355_v57 = vmul.f32 %v5350_v1, %v10295_v10 }
 0x3a2   :  { %v4800_v29 = vrot.slane %v4799_v8, 1  ;;  %v5079_v46 = vrot.slane %v5078_v39, 2  ;;  %v5221_v40 = vrot.slane %v5220_v2, 4  ;;  %v5789_v44 = vsel %vm138_vm0, %v5787_v12, 0.0  ;;  %v4554_v3 = vpop.permute.xlu0 %4553  ;;  %v11936_v12 = vld [vmem:[#allocation77_spill] sm:$0xff] }
 0x3a3   :  { %v5298_v11 = vadd.f32 %v5297_v17, %v5296_v32  ;;  %v5433_v21 = vadd.f32 %v5432_v61, %v5431_v23  ;;  %v5790_v14 = vrot.slane %v5789_v44, 4  ;;  %v4740_v22 = vadd.f32 %v4739_v34, %v4738_v35  ;;  %6539 = vbcast.lane.b32.xlu1 %v11932_v41, 312  ;;  %v11934_v34 = vld [vmem:[#allocation97_spill] sm:$0xff] }
 0x3a4   :  { %v5080_v6 = vadd.f32 %v5079_v46, %v5078_v39  ;;  %v5222_v53 = vadd.f32 %v5221_v40, %v5220_v2  ;;  %v6077_v18 = vsel %vm138_vm0, %v6075_v48, 0.0  ;;  %v10528_v31 = vadd.f32 %v4800_v29, %v4799_v8  ;;  %5925 = vbcast.lane.b32.xlu0 %v11933_v37, 296  ;;  %v4550_v61 = vpop.permute.xlu1 %4549  ;;  %v11937_v40 = vld [vmem:[#allocation8_spill] sm:$0xff]  ;;  %v11938_v37 = vld [vmem:[#allocation18_spill] sm:$0xff] }
 0x3a5   :  { %v5357_v59 = vsel %vm138_vm0, %v5355_v57, 0.0  ;;  %v5434_v55 = vrot.slane %v5433_v21, 1  ;;  %v5791_v56 = vadd.f32 %v5790_v14, %v5789_v44  ;;  %v6078_v32 = vrot.slane %v6077_v18, 4 }
 0x3a6   :  { %v5081_v45 = vrot.slane %v5080_v6, 1  ;;  %v5223_v10 = vrot.slane %v5222_v53, 2  ;;  %v5358_v17 = vrot.slane %v5357_v59, 4  ;;  %v4826_v35 = vpop.permute.xlu0 %4825  ;;  %v4555_v2 = vmul.f32 %v4550_v61, %v11934_v34 }
 0x3a7   :  { %v10533_v23 = vadd.f32 %v5298_v11, %v4536_v25  ;;  %v5792_v39 = vrot.slane %v5791_v56, 2  ;;  %v4556_v8 = vmul.f32 %v4554_v3, %v11936_v12  ;;  %6681 = vbcast.lane.b32.xlu1 %v11937_v40, 312  ;;  %v6079_v1 = vadd.f32 %v6078_v32, %v6077_v18 }
 0x3a8   :  { %v5082_v48 = vadd.f32 %v5081_v45, %v5080_v6  ;;  %v5224_v29 = vadd.f32 %v5223_v10, %v5222_v53  ;;  %v5359_v46 = vadd.f32 %v5358_v17, %v5357_v59  ;;  %v4557_v44 = vsel %vm138_vm0, %v4555_v2, 0.0  ;;  %6175 = vbcast.lane.b32.xlu0 %v11938_v37, 312  ;;  %v4822_v34 = vpop.permute.xlu1 %4821  ;;  %v11939_v53 = vld [vmem:[#allocation87_spill] sm:$0xff] }
 0x3a9   :  { %11935 = vst [vmem:[#allocation36_spill] sm:$0xff] %v10533_v23  ;;  %v5793_v57 = vadd.f32 %v5792_v39, %v5791_v56  ;;  %v4564_v14 = vsel %vm138_vm0, %v4556_v8, 0.0  ;;  %v4828_v41 = vmul.f32 %v4826_v35, %v10337_v24  ;;  %v4558_v61 = vrot.slane %v4557_v44, 4 }
 0x3aa   :  { %v5225_v25 = vrot.slane %v5224_v29, 1  ;;  %v5360_v11 = vrot.slane %v5359_v46, 2  ;;  %v10541_v3 = vadd.f32 %v5434_v55, %v5433_v21  ;;  %v5026_v6 = vpop.permute.xlu0 %5025  ;;  %v4827_v59 = vmul.f32 %v4822_v34, %v11939_v53 }
 0x3ab   :  { %v5794_v45 = vrot.slane %v5793_v57, 1  ;;  %v6080_v18 = vrot.slane %v6079_v1, 2  ;;  %v4565_v10 = vrot.slane %v4564_v14, 4  ;;  %v10544_v17 = vadd.f32 %v5082_v48, %v4740_v22  ;;  %4685 = vbcast.lane.b32.xlu1 %v11928_v0, 264 }
 0x3ac   :  { %v5226_v56 = vadd.f32 %v5225_v25, %v5224_v29  ;;  %v5361_v32 = vadd.f32 %v5360_v11, %v5359_v46  ;;  %v4559_v2 = vadd.f32 %v4558_v61, %v4557_v44  ;;  %v4829_v24 = vsel %vm138_vm0, %v4827_v59, 0.0  ;;  %6323 = vbcast.lane.b32.xlu0 %v11745_v28, 312  ;;  %v5354_v8 = vpop.permute.xlu1 %5353  ;;  %v11940_v29 = vld [vmem:[#allocation52_spill] sm:$0xff]  ;;  %v11941_v61 = vld [vmem:[#allocation22_spill] sm:$0xff] }
 0x3ad   :  { %v6081_v37 = vadd.f32 %v6080_v18, %v6079_v1  ;;  %v4566_v35 = vadd.f32 %v4565_v10, %v4564_v14  ;;  %v4836_v21 = vsel %vm138_vm0, %v4828_v41, 0.0  ;;  %v4830_v12 = vrot.slane %v4829_v24, 4  ;;  %v11942_v59 = vld [vmem:[#allocation100_spill] sm:$0xff] }
 0x3ae   :  { %v5362_v55 = vrot.slane %v5361_v32, 1  ;;  %v4560_v39 = vrot.slane %v4559_v2, 2  ;;  %v5795_v40 = vadd.f32 %v5794_v45, %v5793_v57  ;;  %v5426_v22 = vpop.permute.xlu0 %5425  ;;  %v10551_v48 = vadd.f32 %v5226_v56, %v10466_v30  ;;  %v11943_v45 = vld [vmem:[#allocation24_spill] sm:$0xff] }
 0x3af   :  { %v5356_v46 = vmul.f32 %v5354_v8, %v11940_v29  ;;  %v6082_v44 = vrot.slane %v6081_v37, 1  ;;  %v4567_v25 = vrot.slane %v4566_v35, 2  ;;  %v4831_v14 = vadd.f32 %v4830_v12, %v4829_v24  ;;  %4957 = vbcast.lane.b32.xlu1 %v11941_v61, 264 }
 0x3b0   :  { %v5363_v11 = vadd.f32 %v5362_v55, %v5361_v32  ;;  %v4561_v1 = vadd.f32 %v4560_v39, %v4559_v2  ;;  %v4837_v41 = vrot.slane %v4836_v21, 4  ;;  %v5031_v57 = vmul.f32 %v5026_v6, %v11942_v59  ;;  %4689 = vbcast.lane.b32.xlu0 %v11943_v45, 264  ;;  %v5494_v56 = vpop.permute.xlu1 %5493 }
 0x3b1   :  { %v5364_v28 = vsel %vm138_vm0, %v5356_v46, 0.0  ;;  %v6083_v34 = vadd.f32 %v6082_v44, %v6081_v37  ;;  %v4568_v53 = vadd.f32 %v4567_v25, %v4566_v35  ;;  %v4832_v18 = vrot.slane %v4831_v14, 2 }
 0x3b2   :  { %v4562_v30 = vrot.slane %v4561_v1, 1  ;;  %v5365_v10 = vrot.slane %v5364_v28, 4  ;;  %v10559_v8 = vadd.f32 %v5795_v40, %v10507_v62  ;;  %v5746_v32 = vpop.permute.xlu0 %5745  ;;  %v10562_v2 = vadd.f32 %v5363_v11, %v10528_v31 }
 0x3b3   :  { %v5499_v24 = vmul.f32 %v5494_v56, %v10401_v13  ;;  %v4569_v55 = vrot.slane %v4568_v53, 1  ;;  %v4838_v37 = vadd.f32 %v4837_v41, %v4836_v21  ;;  %v4833_v35 = vadd.f32 %v4832_v18, %v4831_v14  ;;  %5389 = vbcast.lane.b32.xlu1 %v11924_v9, 280  ;;  %v11945_v41 = vld [vmem:[#allocation99_spill] sm:$0xff] }
 0x3b4   :  { %v5366_v39 = vadd.f32 %v5365_v10, %v5364_v28  ;;  %v10567_v6 = vadd.f32 %v6083_v34, %v10480_v33  ;;  %v5033_v12 = vsel %vm138_vm0, %v5031_v57, 0.0  ;;  %v4563_v29 = vadd.f32 %v4562_v30, %v4561_v1  ;;  %5461 = vbcast.lane.b32.xlu0 %v11943_v45, 280  ;;  %v5818_v21 = vpop.permute.xlu1 %5817  ;;  %v11946_v18 = vld [vmem:[#allocation51_spill] sm:$0xff] }
 0x3b5   :  { %v5501_v62 = vsel %vm138_vm0, %v5499_v24, 0.0  ;;  %v4839_v40 = vrot.slane %v4838_v37, 2  ;;  %v5034_v46 = vrot.slane %v5033_v12, 4  ;;  %v4834_v31 = vrot.slane %v4833_v35, 1 }
 0x3b6   :  { %11944 = vst [vmem:[#allocation46_spill] sm:$0xff] %v10567_v6  ;;  %v5367_v44 = vrot.slane %v5366_v39, 2  ;;  %v5502_v25 = vrot.slane %v5501_v62, 4  ;;  %v10572_v11 = vadd.f32 %v4569_v55, %v4568_v53  ;;  %v5822_v14 = vpop.permute.xlu0 %5821  ;;  %v5823_v28 = vmul.f32 %v5818_v21, %v11945_v41 }
 0x3b7   :  { %v4840_v33 = vadd.f32 %v4839_v40, %v4838_v37  ;;  %v5035_v34 = vadd.f32 %v5034_v46, %v5033_v12  ;;  %v5428_v59 = vmul.f32 %v5426_v22, %v10379_v16  ;;  %v10577_v57 = vadd.f32 %v10541_v3, %v4563_v29  ;;  %5529 = vbcast.lane.b32.xlu1 %v11941_v61, 280 }
 0x3b8   :  { %v5368_v1 = vadd.f32 %v5367_v44, %v5366_v39  ;;  %v5503_v30 = vadd.f32 %v5502_v25, %v5501_v62  ;;  %v5751_v10 = vmul.f32 %v5746_v32, %v11946_v18  ;;  %v5825_v56 = vsel %vm138_vm0, %v5823_v28, 0.0  ;;  %5601 = vbcast.lane.b32.xlu0 %v11918_v4, 296  ;;  %v6104_v22 = vpop.permute.xlu1 %6103  ;;  %v11947_v18 = vld [vmem:[#allocation81_spill] sm:$0xff] }
 0x3b9   :  { %v4841_v53 = vrot.slane %v4840_v33, 1  ;;  %v5036_v24 = vrot.slane %v5035_v34, 2  ;;  %v5436_v55 = vsel %vm138_vm0, %v5428_v59, 0.0  ;;  %v5826_v16 = vrot.slane %v5825_v56, 4 }
 0x3ba   :  { %v5369_v37 = vrot.slane %v5368_v1, 1  ;;  %v5504_v12 = vrot.slane %v5503_v30, 2  ;;  %v5437_v39 = vrot.slane %v5436_v55, 4  ;;  %v6074_v3 = vpop.permute.xlu0 %6073  ;;  %v4835_v29 = vadd.f32 %v4834_v31, %v4833_v35 }
 0x3bb   :  { %v6109_v62 = vmul.f32 %v6104_v22, %v10375_v51  ;;  %v5037_v40 = vadd.f32 %v5036_v24, %v5035_v34  ;;  %v5753_v32 = vsel %vm138_vm0, %v5751_v10, 0.0  ;;  %v5827_v25 = vadd.f32 %v5826_v16, %v5825_v56  ;;  %5677 = vbcast.lane.b32.xlu1 %v11771_v52, 296  ;;  %v11949_v10 = vld [vmem:[#allocation55_spill] sm:$0xff] }
 0x3bc   :  { %v5370_v46 = vadd.f32 %v5369_v37, %v5368_v1  ;;  %v5505_v44 = vadd.f32 %v5504_v12, %v5503_v30  ;;  %v5438_v21 = vadd.f32 %v5437_v39, %v5436_v55  ;;  %v5754_v59 = vrot.slane %v5753_v32, 4  ;;  %5889 = vbcast.lane.b32.xlu0 %v11909_v26, 296  ;;  %v4584_v34 = vpop.permute.xlu1 %4583 }
 0x3bd   :  { %v6111_v41 = vsel %vm138_vm0, %v6109_v62, 0.0  ;;  %v5038_v28 = vrot.slane %v5037_v40, 1  ;;  %v5824_v13 = vmul.f32 %v5822_v14, %v11947_v18  ;;  %v5828_v31 = vrot.slane %v5827_v25, 2  ;;  %v11950_v14 = vld [vmem:[#allocation10_spill] sm:$0xff] }
 0x3be   :  { %v5506_v35 = vrot.slane %v5505_v44, 1  ;;  %v6112_v51 = vrot.slane %v6111_v41, 4  ;;  %v10590_v24 = vadd.f32 %v4841_v53, %v4840_v33  ;;  %v10592_v1 = vpop.permute.xlu0 %4587  ;;  %v10595_v30 = vadd.f32 %v5370_v46, %v10518_v54 }
 0x3bf   :  { %v4589_v56 = vmul.f32 %v4584_v34, %v11949_v10  ;;  %v5439_v55 = vrot.slane %v5438_v21, 2  ;;  %v5755_v37 = vadd.f32 %v5754_v59, %v5753_v32  ;;  %v5829_v12 = vadd.f32 %v5828_v31, %v5827_v25  ;;  %5965 = vbcast.lane.b32.xlu1 %v11950_v14, 296 }
 0x3c0   :  { %11948 = vst [vmem:[#allocation28_spill] sm:$0xff] %v10595_v30  ;;  %v6113_v16 = vadd.f32 %v6112_v51, %v6111_v41  ;;  %v10599_v22 = vadd.f32 %v5038_v28, %v5037_v40  ;;  %v5832_v39 = vsel %vm138_vm0, %v5824_v13, 0.0  ;;  %6179 = vbcast.lane.b32.xlu0 %v11925_v27, 312  ;;  %v5507_v54 = vadd.f32 %v5506_v35, %v5505_v44  ;;  %v4856_v32 = vpop.permute.xlu1 %4855  ;;  %v11951_v41 = vld [vmem:[#allocation45_spill] sm:$0xff] }
 0x3c1   :  { %v4591_v33 = vsel %vm138_vm0, %v4589_v56, 0.0  ;;  %v5440_v53 = vadd.f32 %v5439_v55, %v5438_v21  ;;  %v5756_v62 = vrot.slane %v5755_v37, 2  ;;  %v5833_v18 = vrot.slane %v5832_v39, 4  ;;  %v11952_v56 = vld [vmem:[#allocation31_spill] sm:$0xff]  ;;  %v11953_v21 = vld [vmem:[#allocation69_spill] sm:$0xff] }
 0x3c2   :  { %v5830_v46 = vrot.slane %v5829_v12, 1  ;;  %v6114_v34 = vrot.slane %v6113_v16, 2  ;;  %v4592_v10 = vrot.slane %v4591_v33, 4  ;;  %v4860_v25 = vpop.permute.xlu0 %4859  ;;  %v4861_v59 = vmul.f32 %v4856_v32, %v11951_v41 }
 0x3c3   :  { %v5441_v31 = vrot.slane %v5440_v53, 1  ;;  %v5757_v40 = vadd.f32 %v5756_v62, %v5755_v37  ;;  %v5834_v28 = vadd.f32 %v5833_v18, %v5832_v39  ;;  %6247 = vbcast.lane.b32.xlu1 %v11952_v56, 312  ;;  %v6076_v55 = vmul.f32 %v6074_v3, %v11953_v21  ;;  %v11955_v56 = vld [vmem:[#allocation49_spill] sm:$0xff] }
 0x3c4   :  { %v5831_v51 = vadd.f32 %v5830_v46, %v5829_v12  ;;  %v6115_v13 = vadd.f32 %v6114_v34, %v6113_v16  ;;  %v4593_v6 = vadd.f32 %v4592_v10, %v4591_v33  ;;  %v4863_v27 = vsel %vm138_vm0, %v4861_v59, 0.0  ;;  %6571 = vbcast.lane.b32.xlu0 %v11765_v36, 312  ;;  %v5098_v39 = vpop.permute.xlu1 %5097  ;;  %v11954_v33 = vld [vmem:[#allocation17_spill] sm:$0xff] }
 0x3c5   :  { %v5442_v44 = vadd.f32 %v5441_v31, %v5440_v53  ;;  %v5758_v35 = vrot.slane %v5757_v40, 1  ;;  %v5835_v23 = vrot.slane %v5834_v28, 2  ;;  %v10609_v30 = vadd.f32 %v5507_v54, %v4835_v29 }
 0x3c6   :  { %v6116_v32 = vrot.slane %v6115_v13, 1  ;;  %v4594_v41 = vrot.slane %v4593_v6, 2  ;;  %v4864_v37 = vrot.slane %v4863_v27, 4  ;;  %v5030_v12 = vpop.permute.xlu0 %5029  ;;  %v10612_v16 = vadd.f32 %v5831_v51, %v10497_v60 }
 0x3c7   :  { %v5103_v62 = vmul.f32 %v5098_v39, %v11954_v33  ;;  %v5759_v3 = vadd.f32 %v5758_v35, %v5757_v40  ;;  %v5836_v18 = vadd.f32 %v5835_v23, %v5834_v28  ;;  %6395 = vbcast.lane.b32.xlu1 %v11775_v49, 312  ;;  %v6084_v36 = vsel %vm138_vm0, %v6076_v55, 0.0  ;;  %v11957_v35 = vld [vmem:[#allocation95_spill] sm:$0xff] }
 0x3c8   :  { %v6117_v46 = vadd.f32 %v6116_v32, %v6115_v13  ;;  %v4595_v53 = vadd.f32 %v4594_v41, %v4593_v6  ;;  %v4865_v34 = vadd.f32 %v4864_v37, %v4863_v27  ;;  %v10619_v54 = vadd.f32 %v5442_v44, %v10572_v11  ;;  %5565 = vbcast.lane.b32.xlu0 %v11941_v61, 296  ;;  %v5498_v23 = vpop.permute.xlu1 %5497  ;;  %v11956_v44 = vld [vmem:[#allocation16_spill] sm:$0xff] }
 0x3c9   :  { %v5105_v29 = vsel %vm138_vm0, %v5103_v62, 0.0  ;;  %v5837_v10 = vrot.slane %v5836_v18, 1  ;;  %v6085_v59 = vrot.slane %v6084_v36, 4  ;;  %v10623_v6 = vadd.f32 %v5759_v3, %v10562_v2 }
 0x3ca   :  { %v4596_v60 = vrot.slane %v4595_v53, 1  ;;  %v4866_v31 = vrot.slane %v4865_v34, 2  ;;  %v5106_v40 = vrot.slane %v5105_v29, 4  ;;  %v10625_v28 = vpop.permute.xlu0 %5169  ;;  %v5500_v49 = vmul.f32 %v5498_v23, %v10416_v63  ;;  %v11959_v23 = vld [vmem:[#allocation103_spill] sm:$0xff] }
 0x3cb   :  { %v5838_v51 = vadd.f32 %v5837_v10, %v5836_v18  ;;  %v6086_v13 = vadd.f32 %v6085_v59, %v6084_v36  ;;  %v4590_v11 = vmul.f32 %v10592_v1, %v11955_v56  ;;  %v10631_v21 = vadd.f32 %v6117_v46, %v10436_v20  ;;  %4961 = vbcast.lane.b32.xlu1 %v11956_v44, 264  ;;  %v11958_v46 = vld [vmem:[#allocation110_spill] sm:$0xff] }
 0x3cc   :  { %v4867_v55 = vadd.f32 %v4866_v31, %v4865_v34  ;;  %v5107_v27 = vadd.f32 %v5106_v40, %v5105_v29  ;;  %v4862_v32 = vmul.f32 %v4860_v25, %v11957_v35  ;;  %v4597_v2 = vadd.f32 %v4596_v60, %v4595_v53  ;;  %5853 = vbcast.lane.b32.xlu0 %v11928_v0, 296  ;;  %v5786_v3 = vpop.permute.xlu1 %5785 }
 0x3cd   :  { %v5508_v41 = vsel %vm138_vm0, %v5500_v49, 0.0  ;;  %v6087_v37 = vrot.slane %v6086_v13, 2  ;;  %v4598_v39 = vsel %vm138_vm0, %v4590_v11, 0.0  ;;  %v10639_v20 = vadd.f32 %v5838_v51, %v10544_v17 }
 0x3ce   :  { %v4868_v33 = vrot.slane %v4867_v55, 1  ;;  %v5108_v62 = vrot.slane %v5107_v27, 2  ;;  %v5509_v1 = vrot.slane %v5508_v41, 4  ;;  %v10641_v18 = vpop.permute.xlu0 %5709  ;;  %v5788_v34 = vmul.f32 %v5786_v3, %v11958_v46 }
 0x3cf   :  { %v6088_v25 = vadd.f32 %v6087_v37, %v6086_v13  ;;  %v4599_v53 = vrot.slane %v4598_v39, 4  ;;  %v4870_v36 = vsel %vm138_vm0, %v4862_v32, 0.0  ;;  %v10646_v29 = vadd.f32 %v10599_v22, %v4597_v2  ;;  %5533 = vbcast.lane.b32.xlu1 %v11956_v44, 280  ;;  %v11960_v32 = vld [vmem:[#allocation89_spill] sm:$0xff] }
 0x3d0   :  { %v5109_v10 = vadd.f32 %v5108_v62, %v5107_v27  ;;  %v5510_v59 = vadd.f32 %v5509_v1, %v5508_v41  ;;  %v4871_v60 = vrot.slane %v4870_v36, 4  ;;  %v5796_v31 = vsel %vm138_vm0, %v5788_v34, 0.0  ;;  %6427 = vbcast.lane.b32.xlu0 %v11780_v7, 312  ;;  %v6034_v11 = vpop.permute.xlu1 %6033 }
 0x3d1   :  { %v6089_v17 = vrot.slane %v6088_v25, 1  ;;  %v4600_v40 = vadd.f32 %v4599_v53, %v4598_v39  ;;  %v5032_v49 = vmul.f32 %v5030_v12, %v11959_v23  ;;  %v5797_v56 = vrot.slane %v5796_v31, 4 }
 0x3d2   :  { %v5110_v51 = vrot.slane %v5109_v10, 1  ;;  %v5511_v13 = vrot.slane %v5510_v59, 2  ;;  %v4872_v35 = vadd.f32 %v4871_v60, %v4870_v36  ;;  %v5998_v22 = vpop.permute.xlu0 %5997  ;;  %v6039_v27 = vmul.f32 %v6034_v11, %v11960_v32 }
 0x3d3   :  { %v6090_v2 = vadd.f32 %v6089_v17, %v6088_v25  ;;  %v4601_v41 = vrot.slane %v4600_v40, 2  ;;  %v5040_v37 = vsel %vm138_vm0, %v5032_v49, 0.0  ;;  %v4869_v62 = vadd.f32 %v4868_v33, %v4867_v55  ;;  %5641 = vbcast.lane.b32.xlu1 %v11786_v42, 296 }
 0x3d4   :  { %v5512_v1 = vadd.f32 %v5511_v13, %v5510_v59  ;;  %v5798_v3 = vadd.f32 %v5797_v56, %v5796_v31  ;;  %v4873_v12 = vrot.slane %v4872_v35, 2  ;;  %v5111_v39 = vadd.f32 %v5110_v51, %v5109_v10  ;;  %6575 = vbcast.lane.b32.xlu0 %v11771_v52, 312  ;;  %v6108_v17 = vpop.permute.xlu1 %6107  ;;  %v11961_v51 = vld [vmem:[#allocation26_spill] sm:$0xff]  ;;  %v11962_v52 = vld [vmem:[#allocation79_spill] sm:$0xff] }
 0x3d5   :  { %v6041_v7 = vsel %vm138_vm0, %v6039_v27, 0.0  ;;  %v4602_v46 = vadd.f32 %v4601_v41, %v4600_v40  ;;  %v5041_v34 = vrot.slane %v5040_v37, 4  ;;  %v10658_v25 = vadd.f32 %v6090_v2, %v10514_v58 }
 0x3d6   :  { %v5513_v53 = vrot.slane %v5512_v1, 1  ;;  %v5799_v36 = vrot.slane %v5798_v3, 2  ;;  %v6042_v60 = vrot.slane %v6041_v7, 4  ;;  %v10660_v55 = vpop.permute.xlu0 %6463  ;;  %v6110_v33 = vmul.f32 %v6108_v17, %v10418_v43 }
 0x3d7   :  { %v4603_v59 = vrot.slane %v4602_v46, 1  ;;  %v4874_v31 = vadd.f32 %v4873_v12, %v4872_v35  ;;  %v5042_v10 = vadd.f32 %v5041_v34, %v5040_v37  ;;  %5929 = vbcast.lane.b32.xlu1 %v11961_v51, 296  ;;  %v5175_v13 = vmul.f32 %v10625_v28, %v11962_v52 }
 0x3d8   :  { %v5514_v23 = vadd.f32 %v5513_v53, %v5512_v1  ;;  %v5800_v49 = vadd.f32 %v5799_v36, %v5798_v3  ;;  %v6043_v40 = vadd.f32 %v6042_v60, %v6041_v7  ;;  %v10666_v56 = vadd.f32 %v5111_v39, %v4869_v62  ;;  %5569 = vbcast.lane.b32.xlu0 %v11956_v44, 296  ;;  %v4618_v2 = vpop.permute.xlu1 %4617  ;;  %v11963_v3 = vld [vmem:[#allocation56_spill] sm:$0xff]  ;;  %v11964_v60 = vld [vmem:[#allocation75_spill] sm:$0xff] }
 0x3d9   :  { %v6118_v58 = vsel %vm138_vm0, %v6110_v33, 0.0  ;;  %v4604_v11 = vadd.f32 %v4603_v59, %v4602_v46  ;;  %v5043_v32 = vrot.slane %v5042_v10, 2  ;;  %v4875_v41 = vrot.slane %v4874_v31, 1  ;;  %v11965_v33 = vld [vmem:[#allocation67_spill] sm:$0xff] }
 0x3da   :  { %v5801_v43 = vrot.slane %v5800_v49, 1  ;;  %v6044_v27 = vrot.slane %v6043_v40, 2  ;;  %v6119_v35 = vrot.slane %v6118_v58, 4  ;;  %v10670_v37 = vpop.permute.xlu0 %6607  ;;  %v10673_v1 = vadd.f32 %v5514_v23, %v10590_v24 }
 0x3db   :  { %v4623_v28 = vmul.f32 %v4618_v2, %v11963_v3  ;;  %v5044_v62 = vadd.f32 %v5043_v32, %v5042_v10  ;;  %v5177_v12 = vsel %vm138_vm0, %v5175_v13, 0.0  ;;  %6251 = vbcast.lane.b32.xlu1 %v11927_v15, 312  ;;  %v5715_v17 = vmul.f32 %v10641_v18, %v11964_v60  ;;  %v11967_v60 = vld [vmem:[#allocation50_spill] sm:$0xff] }
 0x3dc   :  { %v5802_v39 = vadd.f32 %v5801_v43, %v5800_v49  ;;  %v6045_v7 = vadd.f32 %v6044_v27, %v6043_v40  ;;  %v6120_v46 = vadd.f32 %v6119_v35, %v6118_v58  ;;  %v5178_v34 = vrot.slane %v5177_v12, 4  ;;  %6283 = vbcast.lane.b32.xlu0 %v11918_v4, 312  ;;  %v4890_v49 = vpop.permute.xlu1 %4889 }
 0x3dd   :  { %v4625_v53 = vsel %vm138_vm0, %v4623_v28, 0.0  ;;  %v5045_v36 = vrot.slane %v5044_v62, 1  ;;  %v6003_v24 = vmul.f32 %v5998_v22, %v11965_v33  ;;  %v10683_v52 = vadd.f32 %v4875_v41, %v4874_v31 }
 0x3de   :  { %v6046_v59 = vrot.slane %v6045_v7, 1  ;;  %v6121_v10 = vrot.slane %v6120_v46, 2  ;;  %v4626_v23 = vrot.slane %v4625_v53, 4  ;;  %v10685_v40 = vpop.permute.xlu0 %4621  ;;  %v4895_v15 = vmul.f32 %v4890_v49, %v10412_v38 }
 0x3df   :  { %v5046_v13 = vadd.f32 %v5045_v36, %v5044_v62  ;;  %v5179_v58 = vadd.f32 %v5178_v34, %v5177_v12  ;;  %v5717_v32 = vsel %vm138_vm0, %v5715_v17, 0.0  ;;  %v10690_v18 = vadd.f32 %v5802_v39, %v10551_v48  ;;  %6643 = vbcast.lane.b32.xlu1 %v11742_v47, 312  ;;  %v11966_v12 = vld [vmem:[#allocation83_spill] sm:$0xff] }
 0x3e0   :  { %v6122_v22 = vadd.f32 %v6121_v10, %v6120_v46  ;;  %v4627_v43 = vadd.f32 %v4626_v23, %v4625_v53  ;;  %v5718_v4 = vrot.slane %v5717_v32, 4  ;;  %v6047_v27 = vadd.f32 %v6046_v59, %v6045_v7  ;;  %6431 = vbcast.lane.b32.xlu0 %v11786_v42, 312 }
 0x3e1   :  { %v4897_v31 = vsel %vm138_vm0, %v4895_v15, 0.0  ;;  %v5180_v35 = vrot.slane %v5179_v58, 2  ;;  %v6005_v2 = vsel %vm138_vm0, %v6003_v24, 0.0  ;;  %v10696_v28 = vadd.f32 %v5046_v13, %v4604_v11  ;;  %v5102_v48 = vpop.permute.xlu1 %5101 }
 0x3e2   :  { %v6123_v38 = vrot.slane %v6122_v22, 1  ;;  %v4628_v41 = vrot.slane %v4627_v43, 2  ;;  %v4898_v3 = vrot.slane %v4897_v31, 4  ;;  %v10698_v62 = vpop.permute.xlu0 %4893  ;;  %v5104_v39 = vmul.f32 %v5102_v48, %v11966_v12 }
 0x3e3   :  { %v5181_v47 = vadd.f32 %v5180_v35, %v5179_v58  ;;  %v5719_v46 = vadd.f32 %v5718_v4, %v5717_v32  ;;  %v6006_v7 = vrot.slane %v6005_v2, 4  ;;  %5605 = vbcast.lane.b32.xlu1 %v11924_v9, 296  ;;  %v6469_v42 = vmul.f32 %v10660_v55, %v11967_v60  ;;  %v11968_v55 = vld [vmem:[#allocation65_spill] sm:$0xff] }
 0x3e4   :  { %v6124_v34 = vadd.f32 %v6123_v38, %v6122_v22  ;;  %v4629_v53 = vadd.f32 %v4628_v41, %v4627_v43  ;;  %v4899_v36 = vadd.f32 %v4898_v3, %v4897_v31  ;;  %v5112_v17 = vsel %vm138_vm0, %v5104_v39, 0.0  ;;  %6139 = vbcast.lane.b32.xlu0 %v11941_v61, 312 }
 0x3e5   :  { %v5182_v11 = vrot.slane %v5181_v47, 1  ;;  %v5720_v33 = vrot.slane %v5719_v46, 2  ;;  %v6007_v24 = vadd.f32 %v6006_v7, %v6005_v2  ;;  %v10707_v59 = vadd.f32 %v6047_v27, %v10503_v5  ;;  %v5242_v15 = vpop.permute.xlu1 %5241 }
 0x3e6   :  { %v4630_v10 = vrot.slane %v4629_v53, 1  ;;  %v4900_v23 = vrot.slane %v4899_v36, 2  ;;  %v5113_v49 = vrot.slane %v5112_v17, 4  ;;  %v10709_v13 = vpop.permute.xlu0 %5173  ;;  %v10712_v58 = vadd.f32 %v6124_v34, %v10483_v50 }
 0x3e7   :  { %v5247_v32 = vmul.f32 %v5242_v15, %v11968_v55  ;;  %v5721_v22 = vadd.f32 %v5720_v33, %v5719_v46  ;;  %v6008_v43 = vrot.slane %v6007_v24, 2  ;;  %v5183_v35 = vadd.f32 %v5182_v11, %v5181_v47  ;;  %5893 = vbcast.lane.b32.xlu1 %v11922_v19, 296  ;;  %v11969_v47 = vld [vmem:[#allocation73_spill] sm:$0xff]  ;;  %v11970_v11 = vld [vmem:[#allocation34_spill] sm:$0xff]  ;;  %v11971_v33 = vld [vmem:[#allocation35_spill] sm:$0xff] }
 0x3e8   :  { %v4901_v4 = vadd.f32 %v4900_v23, %v4899_v36  ;;  %v5114_v31 = vadd.f32 %v5113_v49, %v5112_v17  ;;  %v6471_v5 = vsel %vm138_vm0, %v6469_v42, 0.0  ;;  %6287 = vbcast.lane.b32.xlu0 %v11924_v9, 312  ;;  %v4631_v50 = vadd.f32 %v4630_v10, %v4629_v53 }
 0x3e9   :  { %v5249_v61 = vsel %vm138_vm0, %v5247_v32, 0.0  ;;  %v5722_v27 = vrot.slane %v5721_v22, 1  ;;  %v6009_v2 = vadd.f32 %v6008_v43, %v6007_v24  ;;  %v6472_v38 = vrot.slane %v6471_v5, 4  ;;  %v5750_v12 = vpop.permute.xlu1 %5749 }
 0x3ea   :  { %v4902_v41 = vrot.slane %v4901_v4, 1  ;;  %v5115_v3 = vrot.slane %v5114_v31, 2  ;;  %v5250_v48 = vrot.slane %v5249_v61, 4  ;;  %v10719_v39 = vpop.permute.xlu0 %5313  ;;  %v5752_v7 = vmul.f32 %v5750_v12, %v11969_v47 }
 0x3eb   :  { %v5723_v46 = vadd.f32 %v5722_v27, %v5721_v22  ;;  %v6010_v34 = vrot.slane %v6009_v2, 1  ;;  %v6473_v36 = vadd.f32 %v6472_v38, %v6471_v5  ;;  %v10722_v42 = vadd.f32 %v5183_v35, %v4631_v50  ;;  %6499 = vbcast.lane.b32.xlu1 %v11970_v11, 312  ;;  %v11972_v35 = vld [vmem:[#allocation88_spill] sm:$0xff] }
 0x3ec   :  { %v5116_v60 = vadd.f32 %v5115_v3, %v5114_v31  ;;  %v5251_v17 = vadd.f32 %v5250_v48, %v5249_v61  ;;  %v6613_v9 = vmul.f32 %v10670_v37, %v11971_v33  ;;  %v4903_v53 = vadd.f32 %v4902_v41, %v4901_v4  ;;  %6143 = vbcast.lane.b32.xlu0 %v11956_v44, 312  ;;  %v11973_v44 = vld [vmem:[#allocation86_spill] sm:$0xff]  ;;  %v11974_v48 = vld [vmem:[#allocation115_spill] sm:$0xff] }
 0x3ed   :  { %v5760_v24 = vsel %vm138_vm0, %v5752_v7, 0.0  ;;  %v6011_v10 = vadd.f32 %v6010_v34, %v6009_v2  ;;  %v6474_v23 = vrot.slane %v6473_v36, 2  ;;  %v6038_v32 = vpop.permute.xlu1 %6037  ;;  %v10733_v31 = vadd.f32 %v5723_v46, %v10609_v30 }
 0x3ee   :  { %v5117_v49 = vrot.slane %v5116_v60, 1  ;;  %v5252_v15 = vrot.slane %v5251_v17, 2  ;;  %v5761_v55 = vrot.slane %v5760_v24, 4  ;;  %v6615_v22 = vsel %vm138_vm0, %v6613_v9, 0.0  ;;  %v10730_v43 = vpop.permute.xlu0 %5673 }
 0x3ef   :  { %v6040_v37 = vmul.f32 %v6038_v32, %v11972_v35  ;;  %v6475_v4 = vadd.f32 %v6474_v23, %v6473_v36  ;;  %v6616_v5 = vrot.slane %v6615_v22, 4  ;;  %6647 = vbcast.lane.b32.xlu1 %v11950_v14, 312  ;;  %v4624_v38 = vmul.f32 %v10685_v40, %v11973_v44 }
 0x3f0   :  { %v5118_v61 = vadd.f32 %v5117_v49, %v5116_v60  ;;  %v5253_v27 = vadd.f32 %v5252_v15, %v5251_v17  ;;  %v5762_v2 = vadd.f32 %v5761_v55, %v5760_v24  ;;  %v4896_v30 = vmul.f32 %v10698_v62, %v11974_v48  ;;  %v11975_v60 = vld [vmem:[#allocation106_spill] sm:$0xff] }
 0x3f1   :  { %v6048_v50 = vsel %vm138_vm0, %v6040_v37, 0.0  ;;  %v6476_v41 = vrot.slane %v6475_v4, 1  ;;  %v6617_v3 = vadd.f32 %v6616_v5, %v6615_v22  ;;  %v10743_v47 = vadd.f32 %v6011_v10, %v10577_v57  ;;  %v6536_v34 = vpop.permute.xlu1 %6535 }
 0x3f2   :  { %v5254_v12 = vrot.slane %v5253_v27, 1  ;;  %v5763_v46 = vrot.slane %v5762_v2, 2  ;;  %v6049_v7 = vrot.slane %v6048_v50, 4  ;;  %v10745_v36 = vpop.permute.xlu0 %5961  ;;  %v6541_v40 = vmul.f32 %v6536_v34, %v11975_v60 }
 0x3f3   :  { %v6477_v14 = vadd.f32 %v6476_v41, %v6475_v4  ;;  %v6618_v17 = vrot.slane %v6617_v3, 2  ;;  %v4632_v11 = vsel %vm138_vm0, %v4624_v38, 0.0  ;;  %5857 = vbcast.lane.b32.xlu1 %v11943_v45, 296  ;;  %v10751_v57 = vadd.f32 %v5118_v61, %v10683_v52  ;;  %v11976_v4 = vld [vmem:[#allocation119_spill] sm:$0xff] }
 0x3f4   :  { %v5255_v33 = vadd.f32 %v5254_v12, %v5253_v27  ;;  %v5764_v9 = vadd.f32 %v5763_v46, %v5762_v2  ;;  %v6050_v24 = vadd.f32 %v6049_v7, %v6048_v50  ;;  %v4633_v62 = vrot.slane %v4632_v11, 4  ;;  %v11977_v50 = vld [vmem:[#allocation105_spill] sm:$0xff] }
 0x3f5   :  { %v6543_v10 = vsel %vm138_vm0, %v6541_v40, 0.0  ;;  %v6619_v23 = vadd.f32 %v6618_v17, %v6617_v3  ;;  %v4904_v49 = vsel %vm138_vm0, %v4896_v30, 0.0  ;;  %v6678_v35 = vpop.permute.xlu1 %6677  ;;  %v6485_v61 = vadd.f32 %v6477_v14, %v10559_v8  ;;  %v11978_v8 = vld [vmem:[#allocation93_spill] sm:$0xff] }
 0x3f6   :  { %v10755_v15 = vadd.f32 %v5255_v33, %v4903_v53  ;;  %v5765_v55 = vrot.slane %v5764_v9, 1  ;;  %v6051_v32 = vrot.slane %v6050_v24, 2  ;;  %v6544_v22 = vrot.slane %v6543_v10, 4  ;;  %v10758_v44 = vpop.permute.xlu0 %6319 }
 0x3f7   :  { %v6620_v37 = vrot.slane %v6619_v23, 1  ;;  %v6683_v5 = vmul.f32 %v6678_v35, %v11976_v4  ;;  %v4634_v27 = vadd.f32 %v4633_v62, %v4632_v11  ;;  %v4905_v2 = vrot.slane %v4904_v49, 4  ;;  %6355 = vbcast.lane.b32.xlu1 %v11909_v26, 312  ;;  %v11980_v4 = vld [vmem:[#allocation36_spill] sm:$0xff] }
 0x3f8   :  { %v6052_v52 = vadd.f32 %v6051_v32, %v6050_v24  ;;  %v6545_v38 = vadd.f32 %v6544_v22, %v6543_v10  ;;  %v5176_v53 = vmul.f32 %v10709_v13, %v11977_v50  ;;  %v5766_v12 = vadd.f32 %v5765_v55, %v5764_v9 }
 0x3f9   :  { %v6621_v41 = vadd.f32 %v6620_v37, %v6619_v23  ;;  %v6685_v3 = vsel %vm138_vm0, %v6683_v5, 0.0  ;;  %v4635_v48 = vrot.slane %v4634_v27, 2  ;;  %v4906_v30 = vadd.f32 %v4905_v2, %v4904_v49  ;;  %v4652_v60 = vpop.permute.xlu1 %4651  ;;  %v11979_v49 = vld [vmem:[#allocation28_spill] sm:$0xff] }
 0x3fa   :  { %v6053_v46 = vrot.slane %v6052_v52, 1  ;;  %v6546_v7 = vrot.slane %v6545_v38, 2  ;;  %v6686_v34 = vrot.slane %v6685_v3, 4  ;;  %v4657_v14 = vmul.f32 %v4652_v60, %v11978_v8  ;;  %v10767_v26 = vpop.permute.xlu0 %6467 }
 0x3fb   :  { %v6629_v40 = vadd.f32 %v6621_v41, %v10612_v16  ;;  %v4636_v17 = vadd.f32 %v4635_v48, %v4634_v27  ;;  %v4907_v11 = vrot.slane %v4906_v30, 2  ;;  %6503 = vbcast.lane.b32.xlu1 %v11961_v51, 312  ;;  %v5184_v62 = vsel %vm138_vm0, %v5176_v53, 0.0  ;;  %v11981_v27 = vld [vmem:[#allocation82_spill] sm:$0xff]  ;;  %v11982_v41 = vld [vmem:[#allocation111_spill] sm:$0xff] }
 0x3fc   :  { %v6054_v33 = vadd.f32 %v6053_v46, %v6052_v52  ;;  %v6547_v13 = vadd.f32 %v6546_v7, %v6545_v38  ;;  %v6687_v24 = vadd.f32 %v6686_v34, %v6685_v3  ;;  %v4659_v23 = vsel %vm138_vm0, %v4657_v14, 0.0  ;;  %v11983_v46 = vld [vmem:[#allocation59_spill] sm:$0xff] }
 0x3fd   :  { %v10772_v9 = vsel %vm6701_vm1, %v6629_v40, %v6485_v61  ;;  %v4637_v10 = vrot.slane %v4636_v17, 1  ;;  %v4908_v16 = vadd.f32 %v4907_v11, %v4906_v30  ;;  %v10776_v55 = vadd.f32 %v5766_v12, %v11979_v49  ;;  %v4924_v37 = vpop.permute.xlu1 %4923  ;;  %v11984_v11 = vld [vmem:[#allocation14_spill] sm:$0xff] }
 0x3fe   :  { %v6548_v32 = vrot.slane %v6547_v13, 1  ;;  %v6688_v22 = vrot.slane %v6687_v24, 2  ;;  %v4660_v35 = vrot.slane %v4659_v23, 4  ;;  %v10779_v5 = vadd.f32 %v6054_v33, %v11980_v4  ;;  %v10782_v61 = vpop.permute.xlu0 %6611 }
 0x3ff   :  { %v4909_v51 = vrot.slane %v4908_v16, 1  ;;  %v4929_v2 = vmul.f32 %v4924_v37, %v11981_v27  ;;  %v5185_v52 = vrot.slane %v5184_v62, 4  ;;  %v4638_v50 = vadd.f32 %v4637_v10, %v4636_v17  ;;  %6211 = vbcast.lane.b32.xlu1 %v11928_v0, 312 }
 0x400   :  { %v6689_v38 = vadd.f32 %v6688_v22, %v6687_v24  ;;  %v4661_v53 = vadd.f32 %v4660_v35, %v4659_v23  ;;  %v5319_v3 = vmul.f32 %v10719_v39, %v11982_v41  ;;  %v6549_v48 = vadd.f32 %v6548_v32, %v6547_v13  ;;  %v11985_v23 = vld [vmem:[#allocation46_spill] sm:$0xff]  ;;  %v11987_v41 = vld [vmem:[#allocation112_spill] sm:$0xff] }
 0x401   :  { %v4931_v30 = vsel %vm138_vm0, %v4929_v2, 0.0  ;;  %v5186_v12 = vadd.f32 %v5185_v52, %v5184_v62  ;;  %v5679_v7 = vmul.f32 %v10730_v43, %v11983_v46  ;;  %v10790_v40 = vadd.f32 %v4909_v51, %v4908_v16  ;;  %v5246_v14 = vpop.permute.xlu1 %5245  ;;  %v11986_v2 = vld [vmem:[#allocation39_spill] sm:$0xff] }
 0x402   :  { %v6690_v34 = vrot.slane %v6689_v38, 1  ;;  %v4662_v60 = vrot.slane %v4661_v53, 2  ;;  %v4932_v8 = vrot.slane %v4931_v30, 4  ;;  %v5248_v33 = vmul.f32 %v5246_v14, %v11984_v11  ;;  %v10795_v13 = vpop.permute.xlu0 %4655 }
 0x403   :  { %v5187_v17 = vrot.slane %v5186_v12, 2  ;;  %v5321_v0 = vsel %vm138_vm0, %v5319_v3, 0.0  ;;  %v5681_v39 = vsel %vm138_vm0, %v5679_v7, 0.0  ;;  %6359 = vbcast.lane.b32.xlu1 %v11922_v19, 312  ;;  %v6557_v16 = vadd.f32 %v6549_v48, %v11985_v23 }
 0x404   :  { %v6691_v24 = vadd.f32 %v6690_v34, %v6689_v38  ;;  %v4663_v62 = vadd.f32 %v4662_v60, %v4661_v53  ;;  %v4933_v10 = vadd.f32 %v4932_v8, %v4931_v30  ;;  %v5322_v43 = vrot.slane %v5321_v0, 4 }
 0x405   :  { %v5188_v49 = vadd.f32 %v5187_v17, %v5186_v12  ;;  %v5256_v32 = vsel %vm138_vm0, %v5248_v33, 0.0  ;;  %v5682_v22 = vrot.slane %v5681_v39, 4  ;;  %v5386_v51 = vpop.permute.xlu1 %5385  ;;  %v5967_v52 = vmul.f32 %v10745_v36, %v11986_v2 }
 0x406   :  { %v6699_v35 = vadd.f32 %v6691_v24, %v10631_v21  ;;  %v4934_v37 = vrot.slane %v4933_v10, 2  ;;  %v5257_v4 = vrot.slane %v5256_v32, 4  ;;  %v5323_v53 = vadd.f32 %v5322_v43, %v5321_v0  ;;  %v10804_v30 = vpop.permute.xlu0 %4927  ;;  %v11988_v43 = vld [vmem:[#allocation11_spill] sm:$0xff] }
 0x407   :  { %v5189_v38 = vrot.slane %v5188_v49, 1  ;;  %v5391_v3 = vmul.f32 %v5386_v51, %v11987_v41  ;;  %v5683_v19 = vadd.f32 %v5682_v22, %v5681_v39  ;;  %v4664_v12 = vrot.slane %v4663_v62, 1  ;;  %6215 = vbcast.lane.b32.xlu1 %v11943_v45, 312 }
 0x408   :  { %v10807_v48 = vsel %vm6701_vm1, %v6699_v35, %v6557_v16  ;;  %v4935_v46 = vadd.f32 %v4934_v37, %v4933_v10  ;;  %v5258_v7 = vadd.f32 %v5257_v4, %v5256_v32  ;;  %v5324_v34 = vrot.slane %v5323_v53, 2 }
 0x409   :  { %v5190_v21 = vadd.f32 %v5189_v38, %v5188_v49  ;;  %v5393_v60 = vsel %vm138_vm0, %v5391_v3, 0.0  ;;  %v5684_v36 = vrot.slane %v5683_v19, 2  ;;  %v5714_v11 = vpop.permute.xlu1 %5713  ;;  %v5969_v33 = vsel %vm138_vm0, %v5967_v52, 0.0  ;;  %v11989_v3 = vld [vmem:[#allocation48_spill] sm:$0xff] }
 0x40a   :  { %v4936_v8 = vrot.slane %v4935_v46, 1  ;;  %v5259_v14 = vrot.slane %v5258_v7, 2  ;;  %v5394_v17 = vrot.slane %v5393_v60, 4  ;;  %v5325_v39 = vadd.f32 %v5324_v34, %v5323_v53  ;;  %v10815_v23 = vpop.permute.xlu0 %5317 }
 0x40b   :  { %v10812_v0 = vadd.f32 %v5190_v21, %v4638_v50  ;;  %v5685_v24 = vadd.f32 %v5684_v36, %v5683_v19  ;;  %v5716_v10 = vmul.f32 %v5714_v11, %v11988_v43  ;;  %v4665_v45 = vadd.f32 %v4664_v12, %v4663_v62  ;;  %v11990_v21 = vld [vmem:[#allocation41_spill] sm:$0xff] }
 0x40c   :  { %v5260_v16 = vadd.f32 %v5259_v14, %v5258_v7  ;;  %v5395_v49 = vadd.f32 %v5394_v17, %v5393_v60  ;;  %v5970_v32 = vrot.slane %v5969_v33, 4  ;;  %v4937_v22 = vadd.f32 %v4936_v8, %v4935_v46 }
 0x40d   :  { %v5326_v35 = vrot.slane %v5325_v39, 1  ;;  %v5686_v37 = vrot.slane %v5685_v24, 1  ;;  %v5724_v4 = vsel %vm138_vm0, %v5716_v10, 0.0  ;;  %v6002_v38 = vpop.permute.xlu1 %6001  ;;  %v6325_v62 = vmul.f32 %v10758_v44, %v11990_v21 }
 0x40e   :  { %v5261_v51 = vrot.slane %v5260_v16, 1  ;;  %v5396_v2 = vrot.slane %v5395_v49, 2  ;;  %v5725_v52 = vrot.slane %v5724_v4, 4  ;;  %v5971_v50 = vadd.f32 %v5970_v32, %v5969_v33  ;;  %v10821_v12 = vpop.permute.xlu0 %5457 }
 0x40f   :  { %v5327_v53 = vadd.f32 %v5326_v35, %v5325_v39  ;;  %v5687_v41 = vadd.f32 %v5686_v37, %v5685_v24  ;;  %v6004_v19 = vmul.f32 %v6002_v38, %v11989_v3  ;;  %v6327_v17 = vsel %vm138_vm0, %v6325_v62, 0.0 }
 0x410   :  { %v5262_v7 = vadd.f32 %v5261_v51, %v5260_v16  ;;  %v5397_v46 = vadd.f32 %v5396_v2, %v5395_v49  ;;  %v5726_v34 = vadd.f32 %v5725_v52, %v5724_v4  ;;  %v5972_v60 = vrot.slane %v5971_v50, 2  ;;  %v11991_v16 = vld [vmem:[#allocation20_spill] sm:$0xff] }
 0x411   :  { %v10823_v36 = vadd.f32 %v5327_v53, %v4665_v45  ;;  %v10826_v8 = vadd.f32 %v5687_v41, %v10666_v56  ;;  %v6012_v14 = vsel %vm138_vm0, %v6004_v19, 0.0  ;;  %v6392_v24 = vpop.permute.xlu1 %6391  ;;  %v6328_v10 = vrot.slane %v6327_v17, 4  ;;  %v11992_v45 = vld [vmem:[#allocation27_spill] sm:$0xff]  ;;  %v11993_v51 = vld [vmem:[#allocation116_spill] sm:$0xff] }
 0x412   :  { %v10831_v11 = vadd.f32 %v5262_v7, %v10790_v40  ;;  %v5398_v33 = vrot.slane %v5397_v46, 1  ;;  %v5727_v44 = vrot.slane %v5726_v34, 2  ;;  %v5973_v39 = vadd.f32 %v5972_v60, %v5971_v50  ;;  %v10836_v56 = vpop.permute.xlu0 %5637 }
 0x413   :  { %v6013_v43 = vrot.slane %v6012_v14, 4  ;;  %v6397_v49 = vmul.f32 %v6392_v24, %v11991_v16  ;;  %v6470_v32 = vmul.f32 %v10767_v26, %v11992_v45  ;;  %v6614_v40 = vmul.f32 %v10782_v61, %v11993_v51  ;;  %v11995_v51 = vld [vmem:[#allocation118_spill] sm:$0xff] }
 0x414   :  { %v5399_v35 = vadd.f32 %v5398_v33, %v5397_v46  ;;  %v5728_v37 = vadd.f32 %v5727_v44, %v5726_v34  ;;  %v5974_v4 = vrot.slane %v5973_v39, 1  ;;  %v6329_v52 = vadd.f32 %v6328_v10, %v6327_v17  ;;  %v11994_v46 = vld [vmem:[#allocation70_spill] sm:$0xff] }
 0x415   :  { %v6014_v2 = vadd.f32 %v6013_v43, %v6012_v14  ;;  %v6399_v50 = vsel %vm138_vm0, %v6397_v49, 0.0  ;;  %v6478_v38 = vsel %vm138_vm0, %v6470_v32, 0.0  ;;  %v6540_v19 = vpop.permute.xlu1 %6539  ;;  %v6622_v17 = vsel %vm138_vm0, %v6614_v40, 0.0  ;;  %v6638_v33 = vld [vmem:[#allocation3 + $0x3a0] sm:$0xff] }
 0x416   :  { %v10842_v53 = vadd.f32 %v5399_v35, %v4937_v22  ;;  %v5729_v41 = vrot.slane %v5728_v37, 1  ;;  %v5975_v3 = vadd.f32 %v5974_v4, %v5973_v39  ;;  %v6400_v26 = vrot.slane %v6399_v50, 4  ;;  %v10850_v43 = vpop.permute.xlu0 %5925  ;;  %v6668_v32 = vld [vmem:[#allocation2 + $0x380] sm:$0xff] }
 0x417   :  { %v6015_v21 = vrot.slane %v6014_v2, 2  ;;  %v6330_v62 = vrot.slane %v6329_v52, 2  ;;  %v6479_v7 = vrot.slane %v6478_v38, 4  ;;  %v6542_v34 = vmul.f32 %v6540_v19, %v11994_v46 }
 0x418   :  { %v5730_v60 = vadd.f32 %v5729_v41, %v5728_v37  ;;  %v10846_v61 = vadd.f32 %v5975_v3, %v10646_v29  ;;  %v6401_v14 = vadd.f32 %v6400_v26, %v6399_v50  ;;  %v6623_v45 = vrot.slane %v6622_v17, 4  ;;  %v11996_v41 = vld [vmem:[#allocation44_spill] sm:$0xff] }
 0x419   :  { %v6016_v22 = vadd.f32 %v6015_v21, %v6014_v2  ;;  %v6331_v44 = vadd.f32 %v6330_v62, %v6329_v52  ;;  %v6480_v24 = vadd.f32 %v6479_v7, %v6478_v38  ;;  %v6550_v39 = vsel %vm138_vm0, %v6542_v34, 0.0  ;;  %v6682_v29 = vpop.permute.xlu1 %6681  ;;  %v6672_v38 = vld [vmem:[#allocation3 + $0x380] sm:$0xff] }
 0x41a   :  { %v10853_v10 = vadd.f32 %v5730_v60, %v10673_v1  ;;  %v6402_v16 = vrot.slane %v6401_v14, 2  ;;  %v6551_v49 = vrot.slane %v6550_v39, 4  ;;  %v10856_v40 = vadd.f32 %v6638_v33, %v11995_v51 }
 0x41b   :  { %v6017_v35 = vrot.slane %v6016_v22, 1  ;;  %v6332_v37 = vrot.slane %v6331_v44, 1  ;;  %v6481_v4 = vrot.slane %v6480_v24, 2  ;;  %v6624_v50 = vadd.f32 %v6623_v45, %v6622_v17 }
 0x41c   :  { %v6403_v2 = vadd.f32 %v6402_v16, %v6401_v14  ;;  %v6552_v52 = vadd.f32 %v6551_v49, %v6550_v39  ;;  %v4658_v3 = vmul.f32 %v10795_v13, %v11996_v41  ;;  %v6670_v21 = vmul.f32 %v6668_v32, %v10856_v40  ;;  %v10866_v16 = vpop.permute.xlu0 %6175  ;;  %v4918_v49 = vld [vmem:[#allocation3 + $0xf0] sm:$0xff] }
 0x41d   :  { %v6018_v1 = vadd.f32 %v6017_v35, %v6016_v22  ;;  %v6333_v26 = vadd.f32 %v6332_v37, %v6331_v44  ;;  %v6482_v19 = vadd.f32 %v6481_v4, %v6480_v24  ;;  %v6625_v46 = vrot.slane %v6624_v50, 2  ;;  %v4686_v60 = vpop.permute.xlu1 %4685  ;;  %v11997_v37 = vld [vmem:[#allocation23_spill] sm:$0xff] }
 0x41e   :  { %v6404_v62 = vrot.slane %v6403_v2, 1  ;;  %v6553_v7 = vrot.slane %v6552_v52, 2  ;;  %v4666_v34 = vsel %vm138_vm0, %v4658_v3, 0.0  ;;  %v6674_v39 = vadd.f32 %v6672_v38, %v6670_v21  ;;  %v11998_v3 = vld [vmem:[#allocation21_spill] sm:$0xff] }
 0x41f   :  { %v10863_v33 = vadd.f32 %v6018_v1, %v10619_v54  ;;  %v6341_v14 = vadd.f32 %v6333_v26, %v10623_v6  ;;  %v6483_v17 = vrot.slane %v6482_v19, 1  ;;  %v6626_v44 = vadd.f32 %v6625_v46, %v6624_v50  ;;  %v4951_v21 = vld [vmem:[#allocation3 + $0x78] sm:$0xff] }
 0x420   :  { %v6405_v13 = vadd.f32 %v6404_v62, %v6403_v2  ;;  %v6554_v22 = vadd.f32 %v6553_v7, %v6552_v52  ;;  %v4667_v24 = vrot.slane %v4666_v34, 4  ;;  %v6684_v35 = vmul.f32 %v6682_v29, %v6674_v39 }
 0x421   :  { %v10870_v45 = vsel %vm6704_vm2, %v10772_v9, %v6341_v14  ;;  %v6484_v32 = vadd.f32 %v6483_v17, %v6482_v19  ;;  %v4691_v54 = vmul.f32 %v4686_v60, %v11997_v37  ;;  %v6627_v51 = vrot.slane %v6626_v44, 1  ;;  %v4958_v41 = vpop.permute.xlu1 %4957  ;;  %v4946_v19 = vld [vmem:[#allocation2 + $0x78] sm:$0xff]  ;;  %v11999_v17 = vld [vmem:[#allocation71_spill] sm:$0xff] }
 0x422   :  { %v6413_v4 = vadd.f32 %v6405_v13, %v10707_v59  ;;  %v6555_v6 = vrot.slane %v6554_v22, 1  ;;  %v4668_v38 = vadd.f32 %v4667_v24, %v4666_v34  ;;  %v6692_v52 = vsel %vm138_vm0, %v6684_v35, 0.0  ;;  %v10887_v34 = vpop.permute.xlu0 %6323 }
 0x423   :  { %v6486_v2 = vadd.f32 %v6484_v32, %v10690_v18  ;;  %v4693_v50 = vsel %vm138_vm0, %v4691_v54, 0.0  ;;  %v10878_v1 = vadd.f32 %v4918_v49, %v11998_v3  ;;  %v6628_v26 = vadd.f32 %v6627_v51, %v6626_v44 }
 0x424   :  { %v10882_v9 = vsel %vm6704_vm2, %v10807_v48, %v6413_v4  ;;  %v6556_v29 = vadd.f32 %v6555_v6, %v6554_v22  ;;  %v6693_v59 = vrot.slane %v6692_v52, 4  ;;  %v4669_v62 = vrot.slane %v4668_v38, 2 }
 0x425   :  { %v4694_v7 = vrot.slane %v4693_v50, 4  ;;  %v4930_v18 = vmul.f32 %v10804_v30, %v10878_v1  ;;  %v4948_v46 = vmul.f32 %v4946_v19, %v11981_v27  ;;  %v6630_v14 = vadd.f32 %v6628_v26, %v10639_v20  ;;  %v5390_v13 = vpop.permute.xlu1 %5389 }
 0x426   :  { %v6558_v60 = vadd.f32 %v6556_v29, %v10658_v25  ;;  %v6694_v48 = vadd.f32 %v6693_v59, %v6692_v52  ;;  %v5320_v39 = vmul.f32 %v10815_v23, %v11999_v17  ;;  %v4670_v22 = vadd.f32 %v4669_v62, %v4668_v38  ;;  %v12000_v23 = vld [vmem:[#allocation57_spill] sm:$0xff]  ;;  %v12001_v38 = vld [vmem:[#allocation43_spill] sm:$0xff]  ;;  %v10902_v59 = vpop.permute.xlu0 %4689 }
 0x427   :  { %v4695_v44 = vadd.f32 %v4694_v7, %v4693_v50  ;;  %v4938_v24 = vsel %vm138_vm0, %v4930_v18, 0.0  ;;  %v4953_v49 = vadd.f32 %v4951_v21, %v4948_v46  ;;  %v10895_v30 = vsel %vm6701_vm1, %v6630_v14, %v6486_v2  ;;  %v5518_v7 = vld [vmem:[#allocation2 + $0x178] sm:$0xff] }
 0x428   :  { %v6695_v27 = vrot.slane %v6694_v48, 2  ;;  %v4939_v32 = vrot.slane %v4938_v24, 4  ;;  %v5328_v35 = vsel %vm138_vm0, %v5320_v39, 0.0  ;;  %v4671_v25 = vrot.slane %v4670_v22, 1 }
 0x429   :  { %v4696_v37 = vrot.slane %v4695_v44, 2  ;;  %v4963_v20 = vmul.f32 %v4958_v41, %v4953_v49  ;;  %v5329_v54 = vrot.slane %v5328_v35, 4  ;;  %v5392_v51 = vmul.f32 %v5390_v13, %v12000_v23  ;;  %v5530_v50 = vpop.permute.xlu1 %5529 }
 0x42a   :  { %v6696_v4 = vadd.f32 %v6695_v27, %v6694_v48  ;;  %v4940_v6 = vadd.f32 %v4939_v32, %v4938_v24  ;;  %v5463_v52 = vmul.f32 %v10821_v12, %v12001_v38  ;;  %v4672_v3 = vadd.f32 %v4671_v25, %v4670_v22  ;;  %v5523_v22 = vld [vmem:[#allocation3 + $0x178] sm:$0xff] }
 0x42b   :  { %v4697_v29 = vadd.f32 %v4696_v37, %v4695_v44  ;;  %v4965_v2 = vsel %vm138_vm0, %v4963_v20, 0.0  ;;  %v5330_v26 = vadd.f32 %v5329_v54, %v5328_v35  ;;  %v5400_v41 = vsel %vm138_vm0, %v5392_v51, 0.0  ;;  %v12002_v32 = vld [vmem:[#allocation113_spill] sm:$0xff] }
 0x42c   :  { %v6697_v19 = vrot.slane %v6696_v4, 1  ;;  %v4941_v21 = vrot.slane %v4940_v6, 2  ;;  %v4966_v62 = vrot.slane %v4965_v2, 4  ;;  %v5401_v14 = vrot.slane %v5400_v41, 4 }
 0x42d   :  { %v4698_v18 = vrot.slane %v4697_v29, 1  ;;  %v5331_v46 = vrot.slane %v5330_v26, 2  ;;  %v5465_v48 = vsel %vm138_vm0, %v5463_v52, 0.0  ;;  %v5678_v44 = vpop.permute.xlu1 %5677  ;;  %v5520_v35 = vmul.f32 %v5518_v7, %v12002_v32  ;;  %v12003_v52 = vld [vmem:[#allocation108_spill] sm:$0xff] }
 0x42e   :  { %v6698_v12 = vadd.f32 %v6697_v19, %v6696_v4  ;;  %v4942_v17 = vadd.f32 %v4941_v21, %v4940_v6  ;;  %v4967_v39 = vadd.f32 %v4966_v62, %v4965_v2  ;;  %v5466_v13 = vrot.slane %v5465_v48, 4  ;;  %v10910_v6 = vpop.permute.xlu0 %5461 }
 0x42f   :  { %v4699_v24 = vadd.f32 %v4698_v18, %v4697_v29  ;;  %v5332_v49 = vadd.f32 %v5331_v46, %v5330_v26  ;;  %v5402_v27 = vadd.f32 %v5401_v14, %v5400_v41  ;;  %v5525_v38 = vadd.f32 %v5523_v22, %v5520_v35  ;;  %v12005_v22 = vld [vmem:[#allocation58_spill] sm:$0xff] }
 0x430   :  { %v6700_v25 = vadd.f32 %v6698_v12, %v10712_v58  ;;  %v4943_v37 = vrot.slane %v4942_v17, 1  ;;  %v4968_v20 = vrot.slane %v4967_v39, 2  ;;  %v5467_v54 = vadd.f32 %v5466_v13, %v5465_v48  ;;  %v12004_v48 = vld [vmem:[#allocation85_spill] sm:$0xff] }
 0x431   :  { %v5333_v23 = vrot.slane %v5332_v49, 1  ;;  %v5403_v51 = vrot.slane %v5402_v27, 2  ;;  %v5643_v4 = vmul.f32 %v10836_v56, %v12003_v52  ;;  %v5966_v21 = vpop.permute.xlu1 %5965  ;;  %v5535_v41 = vmul.f32 %v5530_v50, %v5525_v38 }
 0x432   :  { %v10913_v2 = vsel %vm6701_vm1, %v6700_v25, %v6558_v60  ;;  %v4944_v29 = vadd.f32 %v4943_v37, %v4942_v17  ;;  %v4969_v26 = vadd.f32 %v4968_v20, %v4967_v39  ;;  %v5468_v19 = vrot.slane %v5467_v54, 2  ;;  %v12006_v20 = vld [vmem:[#allocation7_spill] sm:$0xff] }
 0x433   :  { %v5334_v62 = vadd.f32 %v5333_v23, %v5332_v49  ;;  %v5404_v58 = vadd.f32 %v5403_v51, %v5402_v27  ;;  %v5645_v7 = vsel %vm138_vm0, %v5643_v4, 0.0  ;;  %v5680_v12 = vmul.f32 %v5678_v44, %v12004_v48  ;;  %v12008_v48 = vld [vmem:[#allocation74_spill] sm:$0xff] }
 0x434   :  { %v4970_v18 = vrot.slane %v4969_v26, 1  ;;  %v5469_v46 = vadd.f32 %v5468_v19, %v5467_v54  ;;  %v5646_v14 = vrot.slane %v5645_v7, 4  ;;  %v5537_v60 = vsel %vm138_vm0, %v5535_v41, 0.0 }
 0x435   :  { %v10917_v56 = vadd.f32 %v5334_v62, %v4672_v3  ;;  %v5405_v13 = vrot.slane %v5404_v58, 1  ;;  %v5931_v17 = vmul.f32 %v10850_v43, %v12005_v22  ;;  %v5538_v49 = vrot.slane %v5537_v60, 4  ;;  %v6248_v50 = vpop.permute.xlu1 %6247  ;;  %v10925_v3 = vpop.permute.xlu0 %5601 }
 0x436   :  { %v4971_v39 = vadd.f32 %v4970_v18, %v4969_v26  ;;  %v5470_v32 = vrot.slane %v5469_v46, 1  ;;  %v5647_v27 = vadd.f32 %v5646_v14, %v5645_v7  ;;  %v5688_v25 = vsel %vm138_vm0, %v5680_v12, 0.0  ;;  %v12007_v26 = vld [vmem:[#allocation92_spill] sm:$0xff] }
 0x437   :  { %v5406_v35 = vadd.f32 %v5405_v13, %v5404_v58  ;;  %v5933_v37 = vsel %vm138_vm0, %v5931_v17, 0.0  ;;  %v5968_v44 = vmul.f32 %v5966_v21, %v12006_v20  ;;  %v5539_v23 = vadd.f32 %v5538_v49, %v5537_v60 }
 0x438   :  { %v5471_v54 = vadd.f32 %v5470_v32, %v5469_v46  ;;  %v5648_v51 = vrot.slane %v5647_v27, 2  ;;  %v5689_v38 = vrot.slane %v5688_v25, 4  ;;  %v5934_v43 = vrot.slane %v5933_v37, 4 }
 0x439   :  { %v10927_v52 = vadd.f32 %v5406_v35, %v4944_v29  ;;  %v5976_v4 = vsel %vm138_vm0, %v5968_v44, 0.0  ;;  %v6181_v19 = vmul.f32 %v10866_v16, %v12007_v26  ;;  %v5540_v58 = vrot.slane %v5539_v23, 2  ;;  %v6396_v21 = vpop.permute.xlu1 %6395 }
 0x43a   :  { %v10932_v62 = vadd.f32 %v5471_v54, %v4699_v24  ;;  %v5649_v41 = vadd.f32 %v5648_v51, %v5647_v27  ;;  %v5690_v7 = vadd.f32 %v5689_v38, %v5688_v25  ;;  %v5935_v18 = vadd.f32 %v5934_v43, %v5933_v37  ;;  %v12009_v24 = vld [vmem:[#allocation19_spill] sm:$0xff]  ;;  %v10939_v27 = vpop.permute.xlu0 %5889 }
 0x43b   :  { %v5977_v14 = vrot.slane %v5976_v4, 4  ;;  %v6183_v46 = vsel %vm138_vm0, %v6181_v19, 0.0  ;;  %v6253_v12 = vmul.f32 %v6248_v50, %v12008_v48  ;;  %v5541_v29 = vadd.f32 %v5540_v58, %v5539_v23 }
 0x43c   :  { %v5650_v13 = vrot.slane %v5649_v41, 1  ;;  %v5691_v60 = vrot.slane %v5690_v7, 2  ;;  %v6184_v22 = vrot.slane %v6183_v46, 4  ;;  %v5936_v17 = vrot.slane %v5935_v18, 2 }
 0x43d   :  { %v5978_v32 = vadd.f32 %v5977_v14, %v5976_v4  ;;  %v6255_v16 = vsel %vm138_vm0, %v6253_v12, 0.0  ;;  %v6326_v49 = vmul.f32 %v10887_v34, %v12009_v24  ;;  %v5542_v35 = vrot.slane %v5541_v29, 1  ;;  %v4962_v44 = vpop.permute.xlu1 %4961 }
 0x43e   :  { %v5651_v25 = vadd.f32 %v5650_v13, %v5649_v41  ;;  %v5692_v37 = vadd.f32 %v5691_v60, %v5690_v7  ;;  %v6185_v20 = vadd.f32 %v6184_v22, %v6183_v46  ;;  %v5937_v54 = vadd.f32 %v5936_v17, %v5935_v18  ;;  %v12010_v46 = vld [vmem:[#allocation90_spill] sm:$0xff]  ;;  %v10948_v17 = vpop.permute.xlu0 %6179 }
 0x43f   :  { %v5979_v50 = vrot.slane %v5978_v32, 2  ;;  %v6256_v23 = vrot.slane %v6255_v16, 4  ;;  %v6334_v51 = vsel %vm138_vm0, %v6326_v49, 0.0  ;;  %v5543_v38 = vadd.f32 %v5542_v35, %v5541_v29 }
 0x440   :  { %v10943_v43 = vadd.f32 %v5651_v25, %v10755_v15  ;;  %v5693_v4 = vrot.slane %v5692_v37, 1  ;;  %v6186_v26 = vrot.slane %v6185_v20, 2  ;;  %v5938_v19 = vrot.slane %v5937_v54, 1 }
 0x441   :  { %v5980_v34 = vadd.f32 %v5979_v50, %v5978_v32  ;;  %v6257_v58 = vadd.f32 %v6256_v23, %v6255_v16  ;;  %v6335_v14 = vrot.slane %v6334_v51, 4  ;;  %v10945_v48 = vadd.f32 %v5543_v38, %v4971_v39  ;;  %v5534_v12 = vpop.permute.xlu1 %5533  ;;  %v12011_v16 = vld [vmem:[#allocation38_spill] sm:$0xff] }
 0x442   :  { %v5694_v41 = vadd.f32 %v5693_v4, %v5692_v37  ;;  %v6187_v7 = vadd.f32 %v6186_v26, %v6185_v20  ;;  %v6398_v18 = vmul.f32 %v6396_v21, %v12010_v46  ;;  %v5939_v13 = vadd.f32 %v5938_v19, %v5937_v54  ;;  %v4947_v37 = vld [vmem:[#allocation2 + $0xf8] sm:$0xff] }
 0x443   :  { %v5981_v60 = vrot.slane %v5980_v34, 1  ;;  %v6258_v22 = vrot.slane %v6257_v58, 2  ;;  %v6336_v29 = vadd.f32 %v6335_v14, %v6334_v51  ;;  %v4692_v39 = vmul.f32 %v10902_v59, %v12011_v16  ;;  %v4952_v20 = vld [vmem:[#allocation3 + $0xf8] sm:$0xff]  ;;  %v12012_v14 = vld [vmem:[#allocation80_spill] sm:$0xff] }
 0x444   :  { %v10951_v15 = vadd.f32 %v5694_v41, %v10751_v57  ;;  %v6188_v24 = vrot.slane %v6187_v7, 1  ;;  %v6406_v32 = vsel %vm138_vm0, %v6398_v18, 0.0  ;;  %v10957_v49 = vadd.f32 %v5939_v13, %v10722_v42  ;;  %v5519_v51 = vld [vmem:[#allocation2 + $0x1f8] sm:$0xff] }
 0x445   :  { %v5982_v21 = vadd.f32 %v5981_v60, %v5980_v34  ;;  %v6259_v35 = vadd.f32 %v6258_v22, %v6257_v58  ;;  %v6337_v25 = vrot.slane %v6336_v29, 2  ;;  %v6407_v50 = vrot.slane %v6406_v32, 4  ;;  %v5642_v38 = vpop.permute.xlu1 %5641  ;;  %v5524_v13 = vld [vmem:[#allocation3 + $0x1f8] sm:$0xff]  ;;  %v10970_v60 = vpop.permute.xlu0 %6571 }
 0x446   :  { %v6189_v54 = vadd.f32 %v6188_v24, %v6187_v7  ;;  %v4700_v23 = vsel %vm138_vm0, %v4692_v39, 0.0  ;;  %v4949_v57 = vmul.f32 %v4947_v37, %v10878_v1  ;;  %v5464_v41 = vmul.f32 %v10910_v6, %v12012_v14  ;;  %v12013_v24 = vld [vmem:[#allocation40_spill] sm:$0xff] }
 0x447   :  { %v10962_v4 = vadd.f32 %v5982_v21, %v10696_v28  ;;  %v6260_v59 = vrot.slane %v6259_v35, 1  ;;  %v6338_v26 = vadd.f32 %v6337_v25, %v6336_v29  ;;  %v4701_v42 = vrot.slane %v4700_v23, 4 }
 0x448   :  { %v10965_v19 = vadd.f32 %v6189_v54, %v10733_v31  ;;  %v6408_v34 = vadd.f32 %v6407_v50, %v6406_v32  ;;  %v4954_v58 = vadd.f32 %v4952_v20, %v4949_v57  ;;  %v5521_v1 = vmul.f32 %v5519_v51, %v10416_v63  ;;  %v12014_v51 = vld [vmem:[#allocation68_spill] sm:$0xff] }
 0x449   :  { %v6261_v7 = vadd.f32 %v6260_v59, %v6259_v35  ;;  %v6339_v46 = vrot.slane %v6338_v26, 1  ;;  %v4702_v18 = vadd.f32 %v4701_v42, %v4700_v23  ;;  %v5472_v29 = vsel %vm138_vm0, %v5464_v41, 0.0  ;;  %v5930_v32 = vpop.permute.xlu1 %5929  ;;  %v10986_v14 = vpop.permute.xlu0 %5565 }
 0x44a   :  { %v6409_v28 = vrot.slane %v6408_v34, 2  ;;  %v4964_v22 = vmul.f32 %v4962_v44, %v4954_v58  ;;  %v5607_v31 = vmul.f32 %v10925_v3, %v12013_v24  ;;  %v5473_v21 = vrot.slane %v5472_v29, 4 }
 0x44b   :  { %v10976_v16 = vadd.f32 %v6261_v7, %v10743_v47  ;;  %v6340_v6 = vadd.f32 %v6339_v46, %v6338_v26  ;;  %v4703_v39 = vrot.slane %v4702_v18, 2  ;;  %v5526_v25 = vadd.f32 %v5524_v13, %v5521_v1 }
 0x44c   :  { %v6410_v35 = vadd.f32 %v6409_v28, %v6408_v34  ;;  %v4972_v63 = vsel %vm138_vm0, %v4964_v22, 0.0  ;;  %v5609_v37 = vsel %vm138_vm0, %v5607_v31, 0.0  ;;  %v5474_v50 = vadd.f32 %v5473_v21, %v5472_v29  ;;  %v12015_v22 = vld [vmem:[#allocation78_spill] sm:$0xff]  ;;  %v12016_v21 = vld [vmem:[#allocation64_spill] sm:$0xff] }
 0x44d   :  { %v6342_v44 = vadd.f32 %v6340_v6, %v10776_v55  ;;  %v4704_v20 = vadd.f32 %v4703_v39, %v4702_v18  ;;  %v4973_v54 = vrot.slane %v4972_v63, 4  ;;  %v5536_v3 = vmul.f32 %v5534_v12, %v5526_v25  ;;  %v6252_v59 = vpop.permute.xlu1 %6251 }
 0x44e   :  { %v6411_v23 = vrot.slane %v6410_v35, 1  ;;  %v5610_v57 = vrot.slane %v5609_v37, 4  ;;  %v5644_v47 = vmul.f32 %v5642_v38, %v12014_v51  ;;  %v5475_v58 = vrot.slane %v5474_v50, 2  ;;  %v12017_v51 = vld [vmem:[#allocation37_spill] sm:$0xff] }
 0x44f   :  { %v10984_v26 = vsel %vm6704_vm2, %v10895_v30, %v6342_v44  ;;  %v4705_v42 = vrot.slane %v4704_v20, 1  ;;  %v4974_v34 = vadd.f32 %v4973_v54, %v4972_v63  ;;  %v5544_v55 = vsel %vm138_vm0, %v5536_v3, 0.0 }
 0x450   :  { %v6412_v41 = vadd.f32 %v6411_v23, %v6410_v35  ;;  %v5611_v7 = vadd.f32 %v5610_v57, %v5609_v37  ;;  %v5652_v46 = vsel %vm138_vm0, %v5644_v47, 0.0  ;;  %v5476_v1 = vadd.f32 %v5475_v58, %v5474_v50  ;;  %v10999_v23 = vpop.permute.xlu0 %5853 }
 0x451   :  { %v4706_v12 = vadd.f32 %v4705_v42, %v4704_v20  ;;  %v4975_v18 = vrot.slane %v4974_v34, 2  ;;  %v5545_v38 = vrot.slane %v5544_v55, 4  ;;  %v5653_v30 = vrot.slane %v5652_v46, 4  ;;  %v6644_v24 = vpop.permute.xlu1 %6643 }
 0x452   :  { %v6414_v13 = vadd.f32 %v6412_v41, %v10779_v5  ;;  %v5612_v28 = vrot.slane %v5611_v7, 2  ;;  %v5895_v29 = vmul.f32 %v10939_v27, %v12015_v22  ;;  %v5477_v6 = vrot.slane %v5476_v1, 1 }
 0x453   :  { %v4976_v31 = vadd.f32 %v4975_v18, %v4974_v34  ;;  %v5546_v39 = vadd.f32 %v5545_v38, %v5544_v55  ;;  %v5932_v35 = vmul.f32 %v5930_v32, %v12016_v21  ;;  %v5654_v37 = vadd.f32 %v5653_v30, %v5652_v46 }
 0x454   :  { %v10996_v63 = vsel %vm6704_vm2, %v10913_v2, %v6414_v13  ;;  %v5613_v25 = vadd.f32 %v5612_v28, %v5611_v7  ;;  %v5897_v44 = vsel %vm138_vm0, %v5895_v29, 0.0  ;;  %v5478_v20 = vadd.f32 %v5477_v6, %v5476_v1  ;;  %v12018_v13 = vld [vmem:[#allocation53_spill] sm:$0xff]  ;;  %v12019_v29 = vld [vmem:[#allocation76_spill] sm:$0xff] }
 0x455   :  { %v4977_v5 = vrot.slane %v4976_v31, 1  ;;  %v5547_v54 = vrot.slane %v5546_v39, 2  ;;  %v5898_v50 = vrot.slane %v5897_v44, 4  ;;  %v5655_v3 = vrot.slane %v5654_v37, 2  ;;  %v5606_v47 = vpop.permute.xlu1 %5605 }
 0x456   :  { %v5614_v27 = vrot.slane %v5613_v25, 1  ;;  %v5940_v57 = vsel %vm138_vm0, %v5932_v35, 0.0  ;;  %v6182_v32 = vmul.f32 %v10948_v17, %v12017_v51  ;;  %v11004_v42 = vadd.f32 %v5478_v20, %v4706_v12 }
 0x457   :  { %v4978_v2 = vadd.f32 %v4977_v5, %v4976_v31  ;;  %v5548_v34 = vadd.f32 %v5547_v54, %v5546_v39  ;;  %v5899_v58 = vadd.f32 %v5898_v50, %v5897_v44  ;;  %v5656_v55 = vadd.f32 %v5655_v3, %v5654_v37 }
 0x458   :  { %v5615_v41 = vadd.f32 %v5614_v27, %v5613_v25  ;;  %v5941_v7 = vrot.slane %v5940_v57, 4  ;;  %v6190_v46 = vsel %vm138_vm0, %v6182_v32, 0.0  ;;  %v6254_v28 = vmul.f32 %v6252_v59, %v12018_v13  ;;  %v6428_v25 = vpop.permute.xlu0 %6427 }
 0x459   :  { %v5549_v18 = vrot.slane %v5548_v34, 1  ;;  %v5900_v1 = vrot.slane %v5899_v58, 2  ;;  %v6191_v38 = vrot.slane %v6190_v46, 4  ;;  %v5657_v17 = vrot.slane %v5656_v55, 1  ;;  %v5894_v31 = vpop.permute.xlu1 %5893 }
 0x45a   :  { %v11009_v30 = vadd.f32 %v5615_v41, %v10842_v53  ;;  %v5942_v22 = vadd.f32 %v5941_v7, %v5940_v57  ;;  %v6577_v12 = vmul.f32 %v10970_v60, %v12019_v29  ;;  %v6262_v35 = vsel %vm138_vm0, %v6254_v28, 0.0  ;;  %v12020_v57 = vld [vmem:[#allocation117_spill] sm:$0xff] }
 0x45b   :  { %v5550_v6 = vadd.f32 %v5549_v18, %v5548_v34  ;;  %v5901_v39 = vadd.f32 %v5900_v1, %v5899_v58  ;;  %v6192_v21 = vadd.f32 %v6191_v38, %v6190_v46  ;;  %v5658_v37 = vadd.f32 %v5657_v17, %v5656_v55  ;;  %v12021_v55 = vld [vmem:[#allocation91_spill] sm:$0xff]  ;;  %v12022_v1 = vld [vmem:[#allocation42_spill] sm:$0xff] }
 0x45c   :  { %v5943_v44 = vrot.slane %v5942_v22, 2  ;;  %v6263_v5 = vrot.slane %v6262_v35, 4  ;;  %v6579_v59 = vsel %vm138_vm0, %v6577_v12, 0.0  ;;  %v6649_v51 = vmul.f32 %v6644_v24, %v12020_v57  ;;  %v6576_v24 = vpop.permute.xlu0 %6575 }
 0x45d   :  { %v11015_v20 = vadd.f32 %v5550_v6, %v4978_v2  ;;  %v5902_v53 = vrot.slane %v5901_v39, 1  ;;  %v6193_v54 = vrot.slane %v6192_v21, 2  ;;  %v6580_v50 = vrot.slane %v6579_v59, 4  ;;  %v6500_v32 = vpop.permute.xlu1 %6499 }
 0x45e   :  { %v11018_v27 = vadd.f32 %v5658_v37, %v10831_v11  ;;  %v5944_v60 = vadd.f32 %v5943_v44, %v5942_v22  ;;  %v6264_v3 = vadd.f32 %v6263_v5, %v6262_v35  ;;  %v5571_v7 = vmul.f32 %v10986_v14, %v12021_v55  ;;  %v12023_v5 = vld [vmem:[#allocation60_spill] sm:$0xff] }
 0x45f   :  { %v5903_v34 = vadd.f32 %v5902_v53, %v5901_v39  ;;  %v6194_v58 = vadd.f32 %v6193_v54, %v6192_v21  ;;  %v6581_v41 = vadd.f32 %v6580_v50, %v6579_v59  ;;  %v6651_v18 = vsel %vm138_vm0, %v6649_v51, 0.0 }
 0x460   :  { %v5945_v46 = vrot.slane %v5944_v60, 1  ;;  %v6265_v2 = vrot.slane %v6264_v3, 2  ;;  %v5608_v38 = vmul.f32 %v5606_v47, %v12022_v1  ;;  %v6652_v17 = vrot.slane %v6651_v18, 4 }
 0x461   :  { %v11026_v11 = vadd.f32 %v5903_v34, %v10823_v36  ;;  %v6195_v13 = vrot.slane %v6194_v58, 1  ;;  %v6582_v28 = vrot.slane %v6581_v41, 2  ;;  %v5573_v12 = vsel %vm138_vm0, %v5571_v7, 0.0  ;;  %v6648_v37 = vpop.permute.xlu1 %6647  ;;  %v12024_v34 = vld [vmem:[#allocation32_spill] sm:$0xff] }
 0x462   :  { %v5946_v22 = vadd.f32 %v5945_v46, %v5944_v60  ;;  %v6266_v29 = vadd.f32 %v6265_v2, %v6264_v3  ;;  %v5616_v6 = vsel %vm138_vm0, %v5608_v38, 0.0  ;;  %v6653_v21 = vadd.f32 %v6652_v17, %v6651_v18  ;;  %v5570_v46 = vpop.permute.xlu0 %5569  ;;  %v12025_v18 = vld [vmem:[#allocation47_spill] sm:$0xff] }
 0x463   :  { %v6196_v14 = vadd.f32 %v6195_v13, %v6194_v58  ;;  %v6583_v39 = vadd.f32 %v6582_v28, %v6581_v41  ;;  %v5574_v35 = vrot.slane %v5573_v12, 4  ;;  %v5617_v44 = vrot.slane %v5616_v6, 4 }
 0x464   :  { %v11031_v47 = vadd.f32 %v5946_v22, %v10812_v0  ;;  %v6267_v36 = vrot.slane %v6266_v29, 1  ;;  %v5859_v59 = vmul.f32 %v10999_v23, %v12023_v5  ;;  %v6654_v50 = vrot.slane %v6653_v21, 2 }
 0x465   :  { %v11036_v53 = vadd.f32 %v6196_v14, %v10853_v10  ;;  %v6584_v54 = vrot.slane %v6583_v39, 1  ;;  %v5575_v60 = vadd.f32 %v5574_v35, %v5573_v12  ;;  %v5618_v57 = vadd.f32 %v5617_v44, %v5616_v6  ;;  %v12026_v6 = vld [vmem:[#allocation54_spill] sm:$0xff] }
 0x466   :  { %v6268_v3 = vadd.f32 %v6267_v36, %v6266_v29  ;;  %v5861_v51 = vsel %vm138_vm0, %v5859_v59, 0.0  ;;  %v5896_v58 = vmul.f32 %v5894_v31, %v12024_v34  ;;  %v6655_v0 = vadd.f32 %v6654_v50, %v6653_v21  ;;  %v5858_v31 = vpop.permute.xlu1 %5857 }
 0x467   :  { %v6585_v41 = vadd.f32 %v6584_v54, %v6583_v39  ;;  %v5576_v55 = vrot.slane %v5575_v60, 2  ;;  %v5862_v7 = vrot.slane %v5861_v51, 4  ;;  %v5619_v23 = vrot.slane %v5618_v57, 2 }
 0x468   :  { %v11041_v2 = vadd.f32 %v6268_v3, %v10863_v33  ;;  %v5904_v10 = vsel %vm138_vm0, %v5896_v58, 0.0  ;;  %v6433_v1 = vmul.f32 %v6428_v25, %v12025_v18  ;;  %v6656_v13 = vrot.slane %v6655_v0, 1  ;;  %v6284_v3 = vpop.permute.xlu0 %6283 }
 0x469   :  { %v11046_v38 = vadd.f32 %v6585_v41, %v10826_v8  ;;  %v5577_v28 = vadd.f32 %v5576_v55, %v5575_v60  ;;  %v5863_v17 = vadd.f32 %v5862_v7, %v5861_v51  ;;  %v5620_v22 = vadd.f32 %v5619_v23, %v5618_v57  ;;  %v12027_v8 = vld [vmem:[#allocation114_spill] sm:$0xff] }
 0x46a   :  { %v5905_v29 = vrot.slane %v5904_v10, 4  ;;  %v6435_v12 = vsel %vm138_vm0, %v6433_v1, 0.0  ;;  %v6505_v14 = vmul.f32 %v6500_v32, %v12026_v6  ;;  %v6657_v33 = vadd.f32 %v6656_v13, %v6655_v0  ;;  %v6356_v7 = vpop.permute.xlu1 %6355 }
 0x46b   :  { %v5578_v39 = vrot.slane %v5577_v28, 1  ;;  %v5864_v21 = vrot.slane %v5863_v17, 2  ;;  %v6436_v35 = vrot.slane %v6435_v12, 4  ;;  %v5621_v36 = vrot.slane %v5620_v22, 1 }
 0x46c   :  { %v5906_v44 = vadd.f32 %v5905_v29, %v5904_v10  ;;  %v6507_v25 = vsel %vm138_vm0, %v6505_v14, 0.0  ;;  %v6578_v5 = vmul.f32 %v6576_v24, %v12027_v8  ;;  %v11053_v59 = vadd.f32 %v6657_v33, %v10846_v61 }
 0x46d   :  { %v5579_v54 = vadd.f32 %v5578_v39, %v5577_v28  ;;  %v5865_v50 = vadd.f32 %v5864_v21, %v5863_v17  ;;  %v6437_v60 = vadd.f32 %v6436_v35, %v6435_v12  ;;  %v5622_v57 = vadd.f32 %v5621_v36, %v5620_v22  ;;  %v12028_v28 = vld [vmem:[#allocation96_spill] sm:$0xff]  ;;  %v12029_v12 = vld [vmem:[#allocation101_spill] sm:$0xff]  ;;  %v6432_v21 = vpop.permute.xlu0 %6431 }
 0x46e   :  { %v5907_v51 = vrot.slane %v5906_v44, 2  ;;  %v6508_v32 = vrot.slane %v6507_v25, 4  ;;  %v6586_v34 = vsel %vm138_vm0, %v6578_v5, 0.0  ;;  %v6650_v10 = vmul.f32 %v6648_v37, %v10856_v40  ;;  %v6504_v5 = vpop.permute.xlu1 %6503 }
 0x46f   :  { %v11057_v58 = vadd.f32 %v5579_v54, %v10945_v48  ;;  %v5866_v41 = vrot.slane %v5865_v50, 1  ;;  %v6438_v0 = vrot.slane %v6437_v60, 2  ;;  %v6587_v55 = vrot.slane %v6586_v34, 4 }
 0x470   :  { %v11060_v24 = vadd.f32 %v5622_v57, %v10927_v52  ;;  %v5908_v61 = vadd.f32 %v5907_v51, %v5906_v44  ;;  %v6509_v23 = vadd.f32 %v6508_v32, %v6507_v25  ;;  %v5572_v17 = vmul.f32 %v5570_v46, %v12028_v28 }
 0x471   :  { %v5867_v18 = vadd.f32 %v5866_v41, %v5865_v50  ;;  %v6439_v1 = vadd.f32 %v6438_v0, %v6437_v60  ;;  %v6588_v13 = vadd.f32 %v6587_v55, %v6586_v34  ;;  %v6658_v48 = vsel %vm138_vm0, %v6650_v10, 0.0  ;;  %v12030_v50 = vld [vmem:[#allocation109_spill] sm:$0xff] }
 0x472   :  { %v5909_v22 = vrot.slane %v5908_v61, 1  ;;  %v6510_v29 = vrot.slane %v6509_v23, 2  ;;  %v5860_v6 = vmul.f32 %v5858_v31, %v12029_v12  ;;  %v6659_v39 = vrot.slane %v6658_v48, 4 }
 0x473   :  { %v11067_v14 = vadd.f32 %v5867_v18, %v10932_v62  ;;  %v6440_v52 = vrot.slane %v6439_v1, 1  ;;  %v6589_v33 = vrot.slane %v6588_v13, 2  ;;  %v5580_v37 = vsel %vm138_vm0, %v5572_v17, 0.0  ;;  %v12032_v17 = vld [vmem:[#allocation107_spill] sm:$0xff] }
 0x474   :  { %v5910_v35 = vadd.f32 %v5909_v22, %v5908_v61  ;;  %v6511_v40 = vadd.f32 %v6510_v29, %v6509_v23  ;;  %v5868_v36 = vsel %vm138_vm0, %v5860_v6, 0.0  ;;  %v6660_v25 = vadd.f32 %v6659_v39, %v6658_v48  ;;  %v12031_v61 = vld [vmem:[#allocation13_spill] sm:$0xff] }
 0x475   :  { %v6441_v46 = vadd.f32 %v6440_v52, %v6439_v1  ;;  %v6590_v44 = vadd.f32 %v6589_v33, %v6588_v13  ;;  %v5581_v8 = vrot.slane %v5580_v37, 4  ;;  %v5869_v54 = vrot.slane %v5868_v36, 4  ;;  %v6140_v13 = vpop.permute.xlu0 %6139 }
 0x476   :  { %v11072_v31 = vadd.f32 %v5910_v35, %v10917_v56  ;;  %v6512_v62 = vrot.slane %v6511_v40, 1  ;;  %v6289_v60 = vmul.f32 %v6284_v3, %v12030_v50  ;;  %v6661_v32 = vrot.slane %v6660_v25, 2  ;;  %v12033_v35 = vld [vmem:[#allocation84_spill] sm:$0xff] }
 0x477   :  { %v11076_v57 = vadd.f32 %v6441_v46, %v10943_v43  ;;  %v6591_v51 = vrot.slane %v6590_v44, 1  ;;  %v5582_v34 = vadd.f32 %v5581_v8, %v5580_v37  ;;  %v5870_v0 = vadd.f32 %v5869_v54, %v5868_v36 }
 0x478   :  { %v6513_v41 = vadd.f32 %v6512_v62, %v6511_v40  ;;  %v6291_v55 = vsel %vm138_vm0, %v6289_v60, 0.0  ;;  %v6361_v23 = vmul.f32 %v6356_v7, %v12031_v61  ;;  %v6662_v18 = vadd.f32 %v6661_v32, %v6660_v25  ;;  %v6212_v7 = vpop.permute.xlu1 %6211 }
 0x479   :  { %v6592_v10 = vadd.f32 %v6591_v51, %v6590_v44  ;;  %v5583_v56 = vrot.slane %v5582_v34, 2  ;;  %v6292_v1 = vrot.slane %v6291_v55, 4  ;;  %v5871_v3 = vrot.slane %v5870_v0, 2  ;;  %v6288_v51 = vpop.permute.xlu0 %6287 }
 0x47a   :  { %v11081_v28 = vadd.f32 %v6513_v41, %v10957_v49  ;;  %v6363_v43 = vsel %vm138_vm0, %v6361_v23, 0.0  ;;  %v6434_v22 = vmul.f32 %v6432_v21, %v12032_v17  ;;  %v6663_v48 = vrot.slane %v6662_v18, 1 }
 0x47b   :  { %v11086_v29 = vadd.f32 %v6592_v10, %v10951_v15  ;;  %v5584_v12 = vadd.f32 %v5583_v56, %v5582_v34  ;;  %v6293_v6 = vadd.f32 %v6292_v1, %v6291_v55  ;;  %v5872_v52 = vadd.f32 %v5871_v3, %v5870_v0  ;;  %v12034_v15 = vld [vmem:[#allocation98_spill] sm:$0xff]  ;;  %v12035_v1 = vld [vmem:[#allocation63_spill] sm:$0xff] }
 0x47c   :  { %v6364_v33 = vrot.slane %v6363_v43, 4  ;;  %v6442_v39 = vsel %vm138_vm0, %v6434_v22, 0.0  ;;  %v6506_v40 = vmul.f32 %v6504_v5, %v12033_v35  ;;  %v6664_v49 = vadd.f32 %v6663_v48, %v6662_v18  ;;  %v6360_v10 = vpop.permute.xlu1 %6359  ;;  %v12036_v22 = vld [vmem:[#allocation104_spill] sm:$0xff] }
 0x47d   :  { %v5585_v37 = vrot.slane %v5584_v12, 1  ;;  %v6294_v36 = vrot.slane %v6293_v6, 2  ;;  %v6443_v46 = vrot.slane %v6442_v39, 4  ;;  %v5873_v44 = vrot.slane %v5872_v52, 1 }
 0x47e   :  { %v6365_v25 = vadd.f32 %v6364_v33, %v6363_v43  ;;  %v6514_v21 = vsel %vm138_vm0, %v6506_v40, 0.0  ;;  %v6145_v8 = vmul.f32 %v6140_v13, %v12034_v15  ;;  %v11093_v62 = vadd.f32 %v6664_v49, %v10962_v4  ;;  %v6144_v49 = vpop.permute.xlu0 %6143 }
 0x47f   :  { %v5586_v54 = vadd.f32 %v5585_v37, %v5584_v12  ;;  %v6295_v50 = vadd.f32 %v6294_v36, %v6293_v6  ;;  %v6444_v60 = vadd.f32 %v6443_v46, %v6442_v39  ;;  %v5874_v32 = vadd.f32 %v5873_v44, %v5872_v52  ;;  %v12037_v52 = vld [vmem:[#allocation61_spill] sm:$0xff] }
 0x480   :  { %v6366_v34 = vrot.slane %v6365_v25, 2  ;;  %v6515_v5 = vrot.slane %v6514_v21, 4  ;;  %v6147_v41 = vsel %vm138_vm0, %v6145_v8, 0.0  ;;  %v6217_v13 = vmul.f32 %v6212_v7, %v12035_v1  ;;  %v6216_v8 = vpop.permute.xlu1 %6215 }
 0x481   :  { %v11097_v0 = vadd.f32 %v5586_v54, %v11015_v20  ;;  %v6296_v55 = vrot.slane %v6295_v50, 1  ;;  %v6445_v61 = vrot.slane %v6444_v60, 2  ;;  %v6148_v23 = vrot.slane %v6147_v41, 4 }
 0x482   :  { %v11100_v18 = vadd.f32 %v5874_v32, %v11004_v42  ;;  %v6367_v4 = vadd.f32 %v6366_v34, %v6365_v25  ;;  %v6516_v56 = vadd.f32 %v6515_v5, %v6514_v21  ;;  %v6290_v48 = vmul.f32 %v6288_v51, %v12036_v22 }
 0x483   :  { %v6297_v3 = vadd.f32 %v6296_v55, %v6295_v50  ;;  %v6446_v43 = vadd.f32 %v6445_v61, %v6444_v60  ;;  %v6149_v17 = vadd.f32 %v6148_v23, %v6147_v41  ;;  %v6219_v20 = vsel %vm138_vm0, %v6217_v13, 0.0  ;;  %v12038_v60 = vld [vmem:[#allocation94_spill] sm:$0xff] }
 0x484   :  { %v6368_v12 = vrot.slane %v6367_v4, 1  ;;  %v6517_v6 = vrot.slane %v6516_v56, 2  ;;  %v6362_v33 = vmul.f32 %v6360_v10, %v12037_v52  ;;  %v6220_v40 = vrot.slane %v6219_v20, 4  ;;  %v12039_v10 = vld [vmem:[#allocation66_spill] sm:$0xff] }
 0x485   :  { %v11107_v39 = vadd.f32 %v6297_v3, %v11009_v30  ;;  %v6447_v42 = vrot.slane %v6446_v43, 1  ;;  %v6150_v35 = vrot.slane %v6149_v17, 2  ;;  %v6298_v36 = vsel %vm138_vm0, %v6290_v48, 0.0 }
 0x486   :  { %v6369_v37 = vadd.f32 %v6368_v12, %v6367_v4  ;;  %v6518_v7 = vadd.f32 %v6517_v6, %v6516_v56  ;;  %v6370_v46 = vsel %vm138_vm0, %v6362_v33, 0.0  ;;  %v6221_v21 = vadd.f32 %v6220_v40, %v6219_v20 }
 0x487   :  { %v6448_v44 = vadd.f32 %v6447_v42, %v6446_v43  ;;  %v6151_v25 = vadd.f32 %v6150_v35, %v6149_v17  ;;  %v6299_v15 = vrot.slane %v6298_v36, 4  ;;  %v6371_v50 = vrot.slane %v6370_v46, 4 }
 0x488   :  { %v11112_v54 = vadd.f32 %v6369_v37, %v11026_v11  ;;  %v6519_v30 = vrot.slane %v6518_v7, 1  ;;  %v6146_v51 = vmul.f32 %v6144_v49, %v12038_v60  ;;  %v6222_v5 = vrot.slane %v6221_v21, 2  ;;  %v7608_v60 = vld [vmem:[%s11299_s0] sm:$0xff] }
 0x489   :  { %v11116_v32 = vadd.f32 %v6448_v44, %v11018_v27  ;;  %v6152_v34 = vrot.slane %v6151_v25, 1  ;;  %v6300_v41 = vadd.f32 %v6299_v15, %v6298_v36  ;;  %v6372_v61 = vadd.f32 %v6371_v50, %v6370_v46 }
 0x48a   :  { %v6520_v55 = vadd.f32 %v6519_v30, %v6518_v7  ;;  %v6154_v23 = vsel %vm138_vm0, %v6146_v51, 0.0  ;;  %v6218_v4 = vmul.f32 %v6216_v8, %v12039_v10  ;;  %v6223_v1 = vadd.f32 %v6222_v5, %v6221_v21 }
 0x48b   :  { %v6153_v56 = vadd.f32 %v6152_v34, %v6151_v25  ;;  %v6301_v11 = vrot.slane %v6300_v41, 2  ;;  %v6155_v13 = vrot.slane %v6154_v23, 4  ;;  %v6373_v43 = vrot.slane %v6372_v61, 2  ;;  %v7607_v25 = vld [vmem:[%s11299_s0 + $0x8] sm:$0xff] }
 0x48c   :  { %v6522_v3 = vadd.f32 %v6520_v55, %v11031_v47  ;;  %v6226_v17 = vsel %vm138_vm0, %v6218_v4, 0.0  ;;  %v6224_v27 = vrot.slane %v6223_v1, 1  ;;  %v7186_v47 = vld [vmem:[%s11305_s6] ss:$0 sm:$0xff]  ;;  %v6726_v49 = vsel %vm6707_vm3, %v10870_v45, %v10965_v19 }
 0x48d   :  { %v6302_v22 = vadd.f32 %v6301_v11, %v6300_v41  ;;  %v6156_v48 = vadd.f32 %v6155_v13, %v6154_v23  ;;  %v6227_v12 = vrot.slane %v6226_v17, 4  ;;  %v6374_v6 = vadd.f32 %v6373_v43, %v6372_v61  ;;  %v6826_v43 = vld [vmem:[%s11300_s1] sm:$0xff] }
 0x48e   :  { %v6161_v20 = vadd.f32 %v6153_v56, %v11057_v58  ;;  %v6225_v52 = vadd.f32 %v6224_v27, %v6223_v1  ;;  %v6728_v36 = vsel %vm6710_vm4, %v6726_v49, %v11046_v38  ;;  %v6744_v21 = vmul.f32 %v7607_v25, %v7186_v47  ;;  %v6828_v27 = vld [vmem:[%s11300_s1 + $0x10] sm:$0xff] }
 0x48f   :  { %v6303_v33 = vrot.slane %v6302_v22, 1  ;;  %v6157_v42 = vrot.slane %v6156_v48, 2  ;;  %v6228_v35 = vadd.f32 %v6227_v12, %v6226_v17  ;;  %v6375_v40 = vrot.slane %v6374_v6, 1  ;;  %v6829_v12 = vld [vmem:[%s11300_s1 + $0x18] sm:$0xff] }
 0x490   :  { %v6730_v44 = vsel %vm6713_vm5, %v6728_v36, %v11076_v57  ;;  %v6233_v15 = vadd.f32 %v6225_v52, %v11067_v14  ;;  %v6708_v57 = vsel %vm6707_vm3, %v10882_v9, %v10976_v16  ;;  %v6743_v14 = vmul.f32 %v7608_v60, %v7186_v47  ;;  %v7609_v9 = vld [vmem:[%s11299_s0 + $0x10] sm:$0xff] }
 0x491   :  { %v6304_v37 = vadd.f32 %v6303_v33, %v6302_v22  ;;  %v6158_v7 = vadd.f32 %v6157_v42, %v6156_v48  ;;  %v6229_v58 = vrot.slane %v6228_v35, 2  ;;  %v6376_v46 = vadd.f32 %v6375_v40, %v6374_v6 }
 0x492   :  { %v6732_v30 = vsel %vm6716_vm6, %v6730_v44, %v11107_v39  ;;  %v6711_v5 = vsel %vm6710_vm4, %v6708_v57, %v11053_v59  ;;  %v6709_v39 = vsel %vm6707_vm3, %v10996_v63, %v11041_v2  ;;  %v6745_v16 = vmul.f32 %v7609_v9, %v7186_v47 }
 0x493   :  { %v6306_v8 = vadd.f32 %v6304_v37, %v11060_v24  ;;  %v6159_v45 = vrot.slane %v6158_v7, 1  ;;  %v6230_v19 = vadd.f32 %v6229_v58, %v6228_v35  ;;  %v6378_v38 = vadd.f32 %v6376_v46, %v11072_v31 }
 0x494   :  { %v6734_v50 = vsel %vm6719_vm7, %v6732_v30, %v6161_v20  ;;  %v6714_v31 = vsel %vm6713_vm5, %v6711_v5, %v11081_v28  ;;  %v6727_v41 = vsel %vm6707_vm3, %v10984_v26, %v11036_v53  ;;  %v6712_v28 = vsel %vm6710_vm4, %v6709_v39, %v11093_v62  ;;  %v6827_v20 = vld [vmem:[%s11300_s1 + $0x8] sm:$0xff] }
 0x495   :  { %v6160_v51 = vadd.f32 %v6159_v45, %v6158_v7  ;;  %v6231_v24 = vrot.slane %v6230_v19, 1  ;;  %v6748_v34 = vadd.f32 %v6744_v21, %v6734_v50  ;;  %v6717_v59 = vsel %vm6716_vm6, %v6714_v31, %v11112_v54 }
 0x496   :  { %v6720_v63 = vsel %vm6719_vm7, %v6717_v59, %v6233_v15  ;;  %v6715_v2 = vsel %vm6713_vm5, %v6712_v28, %v6522_v3  ;;  %v6729_v10 = vsel %vm6710_vm4, %v6727_v41, %v11086_v29  ;;  %v7189_v17 = vmul.f32 -1.442695, %v6826_v43  ;;  %v7275_v59 = vld [vmem:[%s11308_s9] sm:$0xff]   ;;  %v7276_v28 = vld [vmem:[%s11308_s9 + $0x8] sm:$0xff]  }
 0x497   :  { %v6232_v55 = vadd.f32 %v6231_v24, %v6230_v19  ;;  %v6756_v61 = vsel %vm138_vm0, %v6748_v34, 0.0  ;;  %v6162_v23 = vadd.f32 %v6160_v51, %v11097_v0  ;;  %v6747_v26 = vadd.f32 %v6743_v14, %v6720_v63  ;;  %v7610_v0 = vld [vmem:[%s11299_s0 + $0x18] sm:$0xff]  ;;  %7233 = vmatprep.subr.bf16.mxu0 %v7275_v59  ;;  %v7277_v63 = vld [vmem:[%s11308_s9 + $0x10] sm:$0xff]  }
 0x498   :  { %6757 = vadd.xlane.f32.xlu1 %v6756_v61  ;;  %v6718_v4 = vsel %vm6716_vm6, %v6715_v2, %v6378_v38  ;;  %v6731_v54 = vsel %vm6713_vm5, %v6729_v10, %v11116_v32  ;;  %v6746_v11 = vmul.f32 %v7610_v0, %v7186_v47  ;;  %7569 = vpow2.f32 %v7189_v17  ;;  %7234 = vmatpush3.bf16.msra.mxu0 %v7275_v59  ;;  %v7278_v2 = vld [vmem:[%s11308_s9 + $0x18] sm:$0xff]  }
 0x499   :  { %v6234_v53 = vadd.f32 %v6232_v55, %v11100_v18  ;;  %v6733_v62 = vsel %vm6716_vm6, %v6731_v54, %v6306_v8  ;;  %v6753_v56 = vsel %vm138_vm0, %v6747_v26, 0.0  ;;  %v7191_v22 = vmul.f32 -1.442695, %v6828_v27  ;;  %7235 = vmatprep.subr.bf16.mxu0 %v7276_v28 }
 0x49a   :  { %6754 = vadd.xlane.f32.xlu0 %v6753_v56  ;;  %v6735_v18 = vsel %vm6719_vm7, %v6733_v62, %v6162_v23  ;;  %v7192_v33 = vmul.f32 -1.442695, %v6829_v12  ;;  %v7190_v35 = vmul.f32 -1.442695, %v6827_v20 }
 0x49b   :  { %v6721_v1 = vsel %vm6719_vm7, %v6718_v4, %v6234_v53  ;;  %v6750_v3 = vadd.f32 %v6746_v11, %v6735_v18  ;;  %7571 = vpow2.f32 %v7191_v22 }
 0x49c   :  { %v6749_v29 = vadd.f32 %v6745_v16, %v6721_v1  ;;  %7573 = vpow2.f32 %v7192_v33  ;;  %7236 = vmatpush3.bf16.msra.mxu0 %v7276_v28 }
 0x49d   :  { %v6762_v32 = vsel %vm138_vm0, %v6750_v3, 0.0  ;;  %7575 = vpow2.f32 %v7190_v35  ;;  %7237 = vmatprep.subr.bf16.mxu0 %v7277_v63 }
 0x49e   :  { %v6759_v13 = vsel %vm138_vm0, %v6749_v29, 0.0 }
 0x49f   :  { %6760 = vadd.xlane.f32.xlu0 %v6759_v13  ;;  %v7187_v13 = vld [vmem:[%s11306_s7] ss:$0 sm:$0xff] }
 0x4a0   :  { %7238 = vmatpush3.bf16.msra.mxu0 %v7277_v63 }
 0x4a1   :  { %7239 = vmatprep.subr.bf16.mxu0 %v7278_v2 }
 0x4a2   :  { %v7570_v58 = vpop.eup %7569 }
 0x4a3   :  { %6763 = vadd.xlane.f32.xlu0 %v6762_v32  ;;  %v6842_v15 = vadd.f32 1.0, %v7570_v58  ;;  %v7188_v32 = vld [vmem:[%s11307_s8] ss:$0 sm:$0xff] }
 0x4a4   :  { %7240 = vmatpush3.bf16.msra.mxu0 %v7278_v2 }
 0x4a5   :  { %v7572_v8 = vpop.eup %7571  ;;  %7577 = vrcp.f32 %v6842_v15 }
 0x4a6   :  { %v6844_v50 = vadd.f32 1.0, %v7572_v8  ;;  %v7574_v57 = vpop.eup %7573 }
 0x4a7   :  { %v7576_v14 = vpop.eup %7575  ;;  %v6845_v24 = vadd.f32 1.0, %v7574_v57 }
 0x4a8   :  { %7579 = vrcp.f32 %v6844_v50 }
 0x4a9   :  { %7581 = vrcp.f32 %v6845_v24 }
 0x4af   :  { %v7578_v5 = vpop.eup %7577 }
 0x4b0   :  { %v6854_v31 = vmul.f32 %v7578_v5, %v6826_v43 }
 0x4b2   :  { %v7580_v39 = vpop.eup %7579 }
 0x4b3   :  { %v6856_v9 = vmul.f32 %v7580_v39, %v6828_v27  ;;  %v7582_v16 = vpop.eup %7581 }
 0x4b4   :  { %v6857_v55 = vmul.f32 %v7582_v16, %v6829_v12  ;;  %v6977_v16 = vld [vmem:[%s11301_s2 + $0x18] sm:$0xff] }
 0x525   :  { %v6758_v48 = vpop.xlane.xlu1 %6757 }
 0x526   :  { %v6767_v6 = vmul.f32 0.015625, %v6758_v48 }
 0x527   :  { %v6755_v42 = vpop.xlane.xlu0 %6754 }
 0x528   :  { %v11196_v52 = vsub.f32 %v6748_v34, %v6767_v6  ;;  %v6766_v47 = vmul.f32 0.015625, %v6755_v42  ;;  %v6843_v34 = vadd.f32 1.0, %v7576_v14 }
 0x52a   :  { %v6775_v40 = vmul.f32 %v11196_v52, %v11196_v52  ;;  %v11200_v49 = vsub.f32 %v6747_v26, %v6766_v47  ;;  %7583 = vrcp.f32 %v6843_v34 }
 0x52c   :  { %v6781_v37 = vsel %vm138_vm0, %v6775_v40, 0.0  ;;  %v6761_v7 = vpop.xlane.xlu0 %6760  ;;  %v6774_v36 = vmul.f32 %v11200_v49, %v11200_v49 }
 0x52d   :  { %6782 = vadd.xlane.f32.xlu0 %v6781_v37  ;;  %v6768_v46 = vmul.f32 0.015625, %v6761_v7 }
 0x52e   :  { %v6778_v44 = vsel %vm138_vm0, %v6774_v36, 0.0 }
 0x52f   :  { %v11206_v25 = vsub.f32 %v6749_v29, %v6768_v46  ;;  %6779 = vadd.xlane.f32.xlu1 %v6778_v44 }
 0x530   :  { %v6764_v21 = vpop.xlane.xlu0 %6763 }
 0x531   :  { %v6769_v45 = vmul.f32 0.015625, %v6764_v21  ;;  %v6776_v19 = vmul.f32 %v11206_v25, %v11206_v25 }
 0x533   :  { %v11210_v30 = vsub.f32 %v6750_v3, %v6769_v45  ;;  %v6784_v38 = vsel %vm138_vm0, %v6776_v19, 0.0 }
 0x534   :  { %6785 = vadd.xlane.f32.xlu1 %v6784_v38  ;;  %v7584_v41 = vpop.eup %7583 }
 0x535   :  { %v6777_v60 = vmul.f32 %v11210_v30, %v11210_v30  ;;  %v6855_v61 = vmul.f32 %v7584_v41, %v6827_v20 }
 0x537   :  { %v6787_v51 = vsel %vm138_vm0, %v6777_v60, 0.0  ;;  %v6976_v60 = vld [vmem:[%s11301_s2 + $0x10] sm:$0xff] }
 0x538   :  { %6788 = vadd.xlane.f32.xlu0 %v6787_v51  ;;  %v6975_v51 = vld [vmem:[%s11301_s2 + $0x8] sm:$0xff] }
 0x545   :  { %6862 = vrot.lane.b32.xlu1 %v6854_v31, %s7636_s18 }
 0x549   :  { %6866 = vrot.lane.b32.xlu1 %v6856_v9, %s7636_s18 }
 0x54d   :  { %6868 = vrot.lane.b32.xlu1 %v6857_v55, %s7636_s18 }
 0x54e   :  { %6864 = vrot.lane.b32.xlu0 %v6855_v61, %s7636_s18 }
 0x5ba   :  { %v6783_v23 = vpop.xlane.xlu0 %6782 }
 0x5bb   :  { %v6791_v10 = vmul.f32 0.015625, %v6783_v23 }
 0x5bc   :  { %v6780_v53 = vpop.xlane.xlu1 %6779 }
 0x5bd   :  { %v6795_v26 = vadd.f32 1e-05, %v6791_v10  ;;  %v6790_v4 = vmul.f32 0.015625, %v6780_v53 }
 0x5bf   :  { %7585 = vrsqrt.f32 %v6795_v26  ;;  %v6794_v54 = vadd.f32 1e-05, %v6790_v4 }
 0x5c1   :  { %v6786_v62 = vpop.xlane.xlu1 %6785  ;;  %7587 = vrsqrt.f32 %v6794_v54 }
 0x5c2   :  { %v6792_v56 = vmul.f32 0.015625, %v6786_v62 }
 0x5c4   :  { %v6796_v1 = vadd.f32 1e-05, %v6792_v56 }
 0x5c5   :  { %v6789_v0 = vpop.xlane.xlu0 %6788  ;;  %v6863_v48 = vpop.permute.xlu1 %6862 }
 0x5c6   :  { %7589 = vrsqrt.f32 %v6796_v1  ;;  %v6793_v11 = vmul.f32 0.015625, %v6789_v0 }
 0x5c8   :  { %v6797_v18 = vadd.f32 1e-05, %v6793_v11 }
 0x5c9   :  { %v7586_v29 = vpop.eup %7585  ;;  %v6865_v12 = vpop.permute.xlu0 %6864 }
 0x5ca   :  { %v6803_v3 = vmul.f32 %v7586_v29, %v11196_v52  ;;  %7591 = vrsqrt.f32 %v6797_v18  ;;  %v6867_v47 = vpop.permute.xlu1 %6866 }
 0x5cb   :  { %v7588_v17 = vpop.eup %7587 }
 0x5cc   :  { %v6813_v43 = vmul.f32 %v7187_v13, %v6803_v3  ;;  %v6802_v27 = vmul.f32 %v7588_v17, %v11200_v49  ;;  %v7279_v17 = vld [vmem:[%s11312_s13] sm:$0xff]  }
 0x5ce   :  { %v6823_v22 = vadd.f32 %v7188_v32, %v6813_v43  ;;  %v6812_v6 = vmul.f32 %v7187_v13, %v6802_v27  ;;  %v6869_v46 = vpop.permute.xlu1 %6868  ;;  %v7638_v27 = vmov 0.0  }
 0x5cf   :  { %7245 = vmatprep.subr.bf16.mxu1 %v7638_v27  ;;  %7249 = vmatprep.mubr.msk.bf16.mxu1 %vm7639_vm9, %v7638_v27 }
 0x5d0   :  { %v7590_v20 = vpop.eup %7589  ;;  %v6822_v33 = vadd.f32 %v7188_v32, %v6812_v6  ;;  %v6875_v42 = vmul.f32 %v6865_v12, %v6823_v22  ;;  %7246 = vmatpush3.bf16.msra.mxu1 %v7279_v17  ;;  %v7280_v22 = vld [vmem:[%s11312_s13 + $0x8] sm:$0xff]  }
 0x5d1   :  { %v6804_v35 = vmul.f32 %v7590_v20, %v11206_v25  ;;  %v7193_v25 = vld [vmem:[%s11309_s10] ss:$0 sm:$0xff]  ;;  %7247 = vmatprep.subr.bf16.mxu1 %v7638_v27 }
 0x5d2   :  { %v6874_v52 = vmul.f32 %v6863_v48, %v6822_v33 }
 0x5d3   :  { %v6814_v40 = vmul.f32 %v7187_v13, %v6804_v35 }
 0x5d4   :  { %v7592_v37 = vpop.eup %7591  ;;  %v6878_v7 = vpack.c.bf16 %v6875_v42, %v6874_v52  ;;  %7248 = vmatpush3.bf16.msra.mxu1 %v7280_v22 }
 0x5d5   :  { %v6805_v58 = vmul.f32 %v7592_v37, %v11210_v30  ;;  %v6824_v36 = vadd.f32 %v7188_v32, %v6814_v40  ;;  %v6974_v30 = vld [vmem:[%s11301_s2] sm:$0xff] }
 0x5d6   :  { %7241 = vmatprep.mubr.msk.bf16.mxu0 %vm138_vm0, %v6878_v7 }
 0x5d7   :  { %v6815_v49 = vmul.f32 %v7187_v13, %v6805_v58  ;;  %v6876_v21 = vmul.f32 %v6867_v47, %v6824_v36  ;;  %v7200_v36 = vld [vmem:[%s11310_s11] ss:$0 sm:$0xff] }
 0x5d9   :  { %v6825_v44 = vadd.f32 %v7188_v32, %v6815_v49 }
 0x5db   :  { %v6877_v15 = vmul.f32 %v6869_v46, %v6825_v44  ;;  %v7201_v44 = vld [vmem:[%s11311_s12] ss:$0 sm:$0xff] }
 0x5dd   :  { %v6879_v8 = vpack.c.bf16 %v6877_v15, %v6876_v21 }
 0x5df   :  { %7242 = vmatmul.mubr.msk.bf16.vlgmr.msra.gmra.mrb[8].mxu0 %vm138_vm0, %v6879_v8 }
 0x6b2   :  { %v7243_v45 = vpop.f32.mrb[8].mxu0 }
 0x6b3   :  { %v6959_v19 = vpop.f32.mrb[9].mxu0  ;;  %v6968_v38 = vadd.f32 %v7243_v45, %v7193_v25 }
 0x6b4   :  { %v6960_v50 = vadd.f32 %v7193_v25, %v6959_v19  ;;  %v7244_v57 = vpop.f32.mrb[10].mxu0 }
 0x6b5   :  { %v6962_v14 = vpop.f32.mrb[11].mxu0  ;;  %v6980_v5 = vadd.f32 %v6976_v60, %v6968_v38  ;;  %v6971_v31 = vadd.f32 %v7244_v57, %v7193_v25 }
 0x6b6   :  { %v6978_v24 = vadd.f32 %v6974_v30, %v6960_v50  ;;  %v6963_v34 = vadd.f32 %v7193_v25, %v6962_v14 }
 0x6b7   :  { %v6981_v55 = vadd.f32 %v6977_v16, %v6971_v31  ;;  %v6991_v61 = vsel %vm6984_vm8, %v6980_v5, 0.0 }
 0x6b8   :  { %v6979_v39 = vadd.f32 %v6975_v51, %v6963_v34  ;;  %v6985_v9 = vsel %vm6984_vm8, %v6978_v24, 0.0 }
 0x6b9   :  { %6986 = vadd.xlane.f32.xlu0 %v6985_v9  ;;  %v6994_v59 = vsel %vm6984_vm8, %v6981_v55, 0.0 }
 0x6ba   :  { %v6988_v41 = vsel %vm6984_vm8, %v6979_v39, 0.0 }
 0x6bb   :  { %6989 = vadd.xlane.f32.xlu1 %v6988_v41 }
 0x6bd   :  { %6992 = vadd.xlane.f32.xlu0 %v6991_v61 }
 0x6c1   :  { %6995 = vadd.xlane.f32.xlu0 %v6994_v59 }
 0x746   :  { %v6987_v28 = vpop.xlane.xlu0 %6986 }
 0x747   :  { %v6998_v63 = vmul.f32 0.03125, %v6987_v28 }
 0x748   :  { %v6990_v2 = vpop.xlane.xlu1 %6989 }
 0x749   :  { %v7002_v23 = vsub.f32 %v6978_v24, %v6998_v63  ;;  %v6999_v10 = vmul.f32 0.03125, %v6990_v2 }
 0x74a   :  { %v6993_v26 = vpop.xlane.xlu0 %6992 }
 0x74b   :  { %v7003_v53 = vsub.f32 %v6979_v39, %v6999_v10  ;;  %v7000_v4 = vmul.f32 0.03125, %v6993_v26  ;;  %v7006_v54 = vmul.f32 %v7002_v23, %v7002_v23 }
 0x74d   :  { %v7004_v62 = vsub.f32 %v6980_v5, %v7000_v4  ;;  %v7010_v56 = vsel %vm6984_vm8, %v7006_v54, 0.0  ;;  %v7007_v1 = vmul.f32 %v7003_v53, %v7003_v53 }
 0x74e   :  { %7011 = vadd.xlane.f32.xlu1 %v7010_v56  ;;  %v6996_v0 = vpop.xlane.xlu0 %6995 }
 0x74f   :  { %v7001_v11 = vmul.f32 0.03125, %v6996_v0  ;;  %v7013_v29 = vsel %vm6984_vm8, %v7007_v1, 0.0  ;;  %v7008_v18 = vmul.f32 %v7004_v62, %v7004_v62 }
 0x750   :  { %7014 = vadd.xlane.f32.xlu0 %v7013_v29 }
 0x751   :  { %v7005_v13 = vsub.f32 %v6981_v55, %v7001_v11  ;;  %v7016_v3 = vsel %vm6984_vm8, %v7008_v18, 0.0  ;;  %v7202_v18 = vld [vmem:[%s11313_s14] ss:$0 sm:$0xff] }
 0x752   :  { %7017 = vadd.xlane.f32.xlu1 %v7016_v3 }
 0x753   :  { %v7009_v32 = vmul.f32 %v7005_v13, %v7005_v13 }
 0x755   :  { %v7019_v43 = vsel %vm6984_vm8, %v7009_v32, 0.0 }
 0x756   :  { %7020 = vadd.xlane.f32.xlu0 %v7019_v43 }
 0x7db   :  { %v7012_v48 = vpop.xlane.xlu1 %7011 }
 0x7dc   :  { %v7022_v12 = vmul.f32 0.03125, %v7012_v48 }
 0x7dd   :  { %v7015_v6 = vpop.xlane.xlu0 %7014 }
 0x7de   :  { %v7026_v20 = vadd.f32 1e-05, %v7022_v12  ;;  %v7023_v33 = vmul.f32 0.03125, %v7015_v6 }
 0x7df   :  { %v7018_v42 = vpop.xlane.xlu1 %7017 }
 0x7e0   :  { %7593 = vrsqrt.f32 %v7026_v20  ;;  %v7027_v35 = vadd.f32 1e-05, %v7023_v33  ;;  %v7024_v47 = vmul.f32 0.03125, %v7018_v42 }
 0x7e2   :  { %7595 = vrsqrt.f32 %v7027_v35  ;;  %v7028_v52 = vadd.f32 1e-05, %v7024_v47 }
 0x7e3   :  { %v7021_v40 = vpop.xlane.xlu0 %7020 }
 0x7e4   :  { %7597 = vrsqrt.f32 %v7028_v52  ;;  %v7025_v37 = vmul.f32 0.03125, %v7021_v40 }
 0x7e6   :  { %v7029_v7 = vadd.f32 1e-05, %v7025_v37 }
 0x7e8   :  { %7599 = vrsqrt.f32 %v7029_v7 }
 0x7ea   :  { %v7594_v58 = vpop.eup %7593 }
 0x7eb   :  { %v7034_v49 = vmul.f32 %v7594_v58, %v7002_v23 }
 0x7ec   :  { %v7596_v46 = vpop.eup %7595 }
 0x7ed   :  { %v7044_v21 = vmul.f32 %v7200_v36, %v7034_v49  ;;  %v7035_v15 = vmul.f32 %v7596_v46, %v7003_v53 }
 0x7ee   :  { %v7598_v8 = vpop.eup %7597 }
 0x7ef   :  { %v7054_v25 = vadd.f32 %v7201_v44, %v7044_v21  ;;  %v7045_v45 = vmul.f32 %v7200_v36, %v7035_v15  ;;  %v7036_v19 = vmul.f32 %v7598_v8, %v7004_v62 }
 0x7f1   :  { %v7055_v30 = vadd.f32 %v7201_v44, %v7045_v45  ;;  %v7046_v38 = vmul.f32 %v7200_v36, %v7036_v19  ;;  %v7058_v57 = vsel %vm6984_vm8, %v7054_v25, 0.0 }
 0x7f2   :  { %v7600_v50 = vpop.eup %7599 }
 0x7f3   :  { %v7059_v60 = vsel %vm6984_vm8, %v7055_v30, 0.0  ;;  %v7037_v14 = vmul.f32 %v7600_v50, %v7005_v13  ;;  %v7056_v24 = vadd.f32 %v7201_v44, %v7046_v38 }
 0x7f4   :  { %v7060_v51 = vadd.f32 %v7059_v60, %v7058_v57 }
 0x7f5   :  { %v7047_v34 = vmul.f32 %v7200_v36, %v7037_v14  ;;  %v7067_v9 = vsel %vm6984_vm8, %v7056_v24, 0.0 }
 0x7f6   :  { %v7061_v5 = vrot.slane %v7060_v51, 4 }
 0x7f7   :  { %v7057_v31 = vadd.f32 %v7201_v44, %v7047_v34 }
 0x7f8   :  { %v7062_v39 = vadd.f32 %v7061_v5, %v7060_v51 }
 0x7f9   :  { %v7068_v16 = vsel %vm6984_vm8, %v7057_v31, 0.0 }
 0x7fa   :  { %v7069_v41 = vadd.f32 %v7068_v16, %v7067_v9  ;;  %v7063_v55 = vrot.slane %v7062_v39, 2 }
 0x7fc   :  { %v7070_v61 = vrot.slane %v7069_v41, 4  ;;  %v7064_v59 = vadd.f32 %v7063_v55, %v7062_v39 }
 0x7fe   :  { %v7071_v28 = vadd.f32 %v7070_v61, %v7069_v41  ;;  %v7065_v63 = vrot.slane %v7064_v59, 1 }
 0x800   :  { %v7066_v2 = vadd.f32 %v7065_v63, %v7064_v59  ;;  %v7072_v23 = vrot.slane %v7071_v28, 2 }
 0x802   :  { %v7073_v10 = vadd.f32 %v7072_v23, %v7071_v28  ;;  %v7077_v53 = vmul.f32 0.0625, %v7066_v2 }
 0x804   :  { %v7074_v26 = vrot.slane %v7073_v10, 1  ;;  %v7079_v62 = vpack.c.bf16 %v7077_v53, %v7077_v53 }
 0x806   :  { %v7075_v4 = vadd.f32 %v7074_v26, %v7073_v10  ;;  %v7094_v1 = vunpack.c.l.b16 %v7079_v62 }
 0x808   :  { %v7078_v54 = vmul.f32 0.0625, %v7075_v4 }
 0x80a   :  { %v7080_v56 = vpack.c.bf16 %v7078_v54, %v7078_v54 }
 0x80c   :  { %v7095_v0 = vunpack.c.l.b16 %v7080_v56 }
 0x80e   :  { %v7097_v11 = vsel %vm7096_vm10, %v7095_v0, %v7094_v1 }
 0x80f   :  { %v7098_v29 = vpack.c.b16 %v7097_v11, %v7097_v11 }
 0x811   :  { %7250 = vmatmul.mubr.msk.bf16.vlgmr.msra.gmra.mrb[4].mxu1 %vm6984_vm8, %v7098_v29 }
 0x8e4   :  { %v7148_v13 = vpop.f32.mrb[4].mxu1 }
 0x8e5   :  { %v7149_v3 = vadd.f32 %v7202_v18, %v7148_v13  ;;  %v7251_v32 = vpop.f32.mrb[5].mxu1 }
 0x8e6   :  { %v7151_v43 = vpop.f32.mrb[6].mxu1 }
 0x8e7   :  { %v7252_v17 = vpop.f32.mrb[7].mxu1  ;;  %7155 = vst.msk [vmem:[#allocation4] sm:$0x3] %vm7154_vm11, %v7149_v3 }
 0x8e8   :  { %7622 = shalt.err (!%p7619_p4)
}
 0x8e9   :  { %s7623_s14 = scalar_lea.hbm %s11314_s15, 32 }
 0x8ea   :  { %p7624_p5 = scmp.ne.s32.totalorder %s11314_s15, %s7623_s14  ;;  %p7627_p6 = scmp.lt.u32.totalorder %s7623_s14, %s11314_s15 }
 0x8ec   :  { %p7629_p7 = pnand %p7627_p6, %p7624_p5 }
 0x8ee   :  { %7632 = shalt.err (!%p7629_p7)
}
 0x8ef   :  { %7165 = dma.vmem_to_hbm [thread:$0]  %s7163_s26, 32, %s11314_s15, [#allocation5]  }
 0x8f0   :  { %7633 = dma.done.wait [#allocation5], 32  }
 0x8f1   :  { %7634 = vsyncadd [#allocation5], 4294967264 }
 0x8f2   :  { %7169 = vsyncpa [#allocation5], 1 }

</bundles_post_ra>
